<compile_context>
chip_gen: v7x
topology: tpu7x:2x2x1
jax: 0.10.0
libtpu: 0.0.40
codegen_flags: <defaults>
</compile_context>

<pallas_src>
import functools

import jax
import jax.numpy as jnp
from jax.experimental import pallas as pl
from jax.experimental.pallas import tpu as pltpu


_VMEM_LIMIT = 48 * 1024 * 1024    # explicit scoped-VMEM limit (v5e default is 16 MiB)
_VMEM_BUDGET = 24 * 1024 * 1024   # per-call working-set target (safe on v7x's 64 MiB)


# ----------------------------- Pallas kernels ------------------------------ #

def _apply_act(y, act):
    if act == "lrelu":
        return jnp.where(y > 0, y, 0.2 * y)
    if act == "relu":
        return jnp.maximum(y, 0.0)
    if act == "tanh":
        return jnp.tanh(y)
    return y


def _matmul_kernel(a_ref, b_ref, *rest, has_prologue, prologue_act, has_bias,
                   act, with_stats):
    """Fused (optional BN-apply prologue) -> matmul -> (optional bias, act)
    epilogue -> (optional per-tile BN batch-stat partial sums)."""
    i = 0
    if has_prologue:
        asc_ref, ash_ref = rest[i], rest[i + 1]
        i += 2
    if has_bias:
        bias_ref = rest[i]
        i += 1
    o_ref = rest[i]
    i += 1

    a = a_ref[...]
    if has_prologue:
        # Producer's BatchNorm + activation folded onto the A tile.  Exact here:
        # the prologue is only used where A carries no conv zero-padding
        # (e5 / d1 are plain matmuls).  Affine done in f32 (v5e has no bf16 VALU).
        a = _apply_act(a.astype(jnp.float32) * asc_ref[...] + ash_ref[...],
                       prologue_act).astype(jnp.bfloat16)

    y = jnp.dot(a, b_ref[...], preferred_element_type=jnp.float32)
    if has_bias:
        y = y + bias_ref[...]
    y = _apply_act(y, act)
    o_ref[...] = y.astype(o_ref.dtype)

    if with_stats:
        sum_ref, ssq_ref = rest[i], rest[i + 1]
        # Own (1,1,N) block per row tile -> no revisited blocks, grid axis stays
        # "parallel" (v7x megacore); reduced across tiles in bn_from_stats.
        sum_ref[...] = jnp.sum(y, axis=0, keepdims=True).reshape(1, 1, -1)
        ssq_ref[...] = jnp.sum(y * y, axis=0, keepdims=True).reshape(1, 1, -1)


def _row_tile(M, K, N):
    """Largest row tile whose (double-buffered) footprint fits the VMEM budget.
    Prefer a single full-array block (grid=1) when the whole layer fits: each
    grid step costs ~0.35us and these layers are traffic/step-overhead bound."""
    def fits(t):
        # 2 bufs x (bf16 A tile + f32-worst-case out tile) + 2 x bf16 weight + slack
        return 2 * t * (2 * K + 4 * N) + 4 * K * N + (1 << 20) <= _VMEM_BUDGET

    if fits(M):
        return M
    for t in (4096, 2048, 1024, 512, 256, 128, 64, 32, 16, 8):
        if t < M and M % t == 0 and fits(t):
            return t
    return M  # fallback: let the raised vmem_limit_bytes absorb it


def matmul_fused(a, b, bias=None, act=None, a_scale=None, a_shift=None,
                 a_act=None, with_stats=False, out_dtype=jnp.bfloat16):
    """out = act(prologue(a) @ b [+ bias]); optional per-tile BN batch stats.

    a: (M, K) bf16, b: (K, N) bf16, bias: (1, N) f32,
    a_scale/a_shift: (K,) f32 per-column BN scale/shift applied (with a_act)
    to the A tile before the dot.
    """
    M, K = a.shape
    N = b.shape[1]
    tm = _row_tile(M, K, N)
    grid_m = M // tm
    has_prologue = a_scale is not None
    has_bias = bias is not None

    in_specs = [pl.BlockSpec((tm, K), lambda i: (i, 0)),
                pl.BlockSpec((K, N), lambda i: (0, 0))]
    args = [a, b]
    if has_prologue:
        in_specs += [pl.BlockSpec((1, K), lambda i: (0, 0)),
                     pl.BlockSpec((1, K), lambda i: (0, 0))]
        args += [a_scale.reshape(1, K).astype(jnp.float32),
                 a_shift.reshape(1, K).astype(jnp.float32)]
    if has_bias:
        in_specs += [pl.BlockSpec((1, N), lambda i: (0, 0))]
        args += [bias]

    out_block = pl.BlockSpec((tm, N), lambda i: (i, 0))
    if with_stats:
        out_shape = (jax.ShapeDtypeStruct((M, N), out_dtype),
                     jax.ShapeDtypeStruct((grid_m, 1, N), jnp.float32),
                     jax.ShapeDtypeStruct((grid_m, 1, N), jnp.float32))
        out_specs = (out_block,
                     pl.BlockSpec((1, 1, N), lambda i: (i, 0, 0)),
                     pl.BlockSpec((1, 1, N), lambda i: (i, 0, 0)))
    else:
        out_shape = jax.ShapeDtypeStruct((M, N), out_dtype)
        out_specs = out_block

    kernel = functools.partial(_matmul_kernel, has_prologue=has_prologue,
                               prologue_act=a_act, has_bias=has_bias, act=act,
                               with_stats=with_stats)
    return pl.pallas_call(
        kernel,
        out_shape=out_shape,
        grid=(grid_m,),
        in_specs=in_specs,
        out_specs=out_specs,
        compiler_params=pltpu.CompilerParams(
            dimension_semantics=("parallel",),
            vmem_limit_bytes=_VMEM_LIMIT),
    )(*args)


# ------------------------------- JAX glue ---------------------------------- #

def conv_patches(x, K, S, P):
    """NHWC -> (N*OH*OW, K*K*C) patch matrix; rows (n,oh,ow), cols (kh,kw,c).
    TODO(synk): still a materialized im2col; see header."""
    N, H, W, C = x.shape
    xp = jnp.pad(x, ((0, 0), (P, P), (P, P), (0, 0)))
    OH = (H + 2 * P - K) // S + 1
    OW = (W + 2 * P - K) // S + 1
    cols = [xp[:, kh:kh + (OH - 1) * S + 1:S, kw:kw + (OW - 1) * S + 1:S, :]
            for kh in range(K) for kw in range(K)]
    p = jnp.stack(cols, axis=3)                       # (N, OH, OW, K*K, C)
    return p.reshape(N * OH * OW, K * K * C), (N, OH, OW)


def bn_from_stats(col_sum, col_ssq, total_rows, groups, gamma, beta, eps=1e-5):
    """Fold per-tile per-column (sum, sumsq) into per-channel BN scale/shift."""
    C = gamma.shape[0]
    s = jnp.sum(col_sum, axis=(0, 1)).reshape(groups, C).sum(axis=0)
    ss = jnp.sum(col_ssq, axis=(0, 1)).reshape(groups, C).sum(axis=0)
    count = total_rows * groups
    mean = s / count
    # TODO(synk): E[y^2]-E[y]^2 can cancel at large row counts; a shifted /
    # Welford accumulation would match the f32 reference more tightly.
    var = jnp.maximum(ss / count - mean * mean, 0.0)   # biased var (PyTorch train)
    scale = gamma * jax.lax.rsqrt(var + eps)
    shift = beta - mean * scale
    return scale, shift


def interleave_phases(y, N, H, W):
    """(N*H*W, 4*C) with columns (r, c, ch) -> NHWC (N, 2H, 2W, C)."""
    C = y.shape[1] // 4
    y = y.reshape(N, H, W, 2, 2, C).transpose(0, 1, 3, 2, 4, 5)
    return y.reshape(N, 2 * H, 2 * W, C)


# ------------------------------ parameters --------------------------------- #

def init_params(key, nc, nef, nBottleneck, ngf):
    keys = iter(jax.random.split(key, 64))

    def conv_w(cout, cin, k):
        return 0.02 * jax.random.normal(next(keys), (cout, cin, k, k), jnp.float32)

    def convT_w(cin, cout, k):
        return 0.02 * jax.random.normal(next(keys), (cin, cout, k, k), jnp.float32)

    def bias(c):
        return 0.01 * jax.random.normal(next(keys), (c,), jnp.float32)

    def bn(c):
        g = 1.0 + 0.02 * jax.random.normal(next(keys), (c,), jnp.float32)
        b = 0.02 * jax.random.normal(next(keys), (c,), jnp.float32)
        return g, b

    p = {}
    # encodeNet
    p["e1_w"], p["e1_b"] = conv_w(nef, nc, 4), bias(nef)
    p["e2_w"], p["e2_b"] = conv_w(nef * 2, nef, 4), bias(nef * 2)
    p["e2_g"], p["e2_beta"] = bn(nef * 2)
    p["e3_w"], p["e3_b"] = conv_w(nef * 4, nef * 2, 4), bias(nef * 4)
    p["e3_g"], p["e3_beta"] = bn(nef * 4)
    p["e4_w"], p["e4_b"] = conv_w(nef * 8, nef * 4, 4), bias(nef * 8)
    p["e4_g"], p["e4_beta"] = bn(nef * 8)
    p["e5_w"], p["e5_b"] = conv_w(nBottleneck, nef * 8, 4), bias(nBottleneck)
    # midNet
    p["mid_g"], p["mid_beta"] = bn(nBottleneck)
    # decodeNet
    p["d1_w"], p["d1_b"] = convT_w(nBottleneck, ngf * 8, 4), bias(ngf * 8)
    p["d1_g"], p["d1_beta"] = bn(ngf * 8)
    p["d2_w"], p["d2_b"] = convT_w(ngf * 8, ngf * 4, 4), bias(ngf * 4)
    p["d2_g"], p["d2_beta"] = bn(ngf * 4)
    p["d3_w"], p["d3_b"] = convT_w(ngf * 4, ngf * 2, 4), bias(ngf * 2)
    p["d3_g"], p["d3_beta"] = bn(ngf * 2)
    p["d4_w"], p["d4_b"] = convT_w(ngf * 2, ngf, 4), bias(ngf)
    p["d4_g"], p["d4_beta"] = bn(ngf)            # <-- fix: was missing (KeyError)
    p["d5_w"], p["d5_b"] = convT_w(ngf, nc, 4), bias(nc)
    return p


def _conv_w_to_mat(w):
    """PyTorch Conv2d weight (Cout, Cin, KH, KW) -> (KH*KW*Cin, Cout)."""
    cout = w.shape[0]
    return w.transpose(2, 3, 1, 0).reshape(-1, cout)


def _convT_s1_to_mat(wt):
    """ConvTranspose2d(k=4, s=1, p=0) on a 1x1 map == outer product:
    (Cin, Cout, 4, 4) -> (Cin, 16*Cout), columns ordered (kh, kw, cout)."""
    cin, cout = wt.shape[0], wt.shape[1]
    return wt.transpose(0, 2, 3, 1).reshape(cin, 16 * cout)


def _convT_s2_to_mat(wt):
    """ConvTranspose2d(k=4, s=2, p=1) as one stride-1 3x3 conv over the pad-1
    input producing all 4 output parities (sub-pixel decomposition).
    Rows ordered (u, v, cin); columns ordered (r, c, cout)."""
    cin, cout = wt.shape[0], wt.shape[1]
    bmat = jnp.zeros((9 * cin, 4 * cout), jnp.float32)
    for u in range(3):
        for v in range(3):
            for r in range(2):
                for c in range(2):
                    if (u - r) in (0, 1) and (v - c) in (0, 1):
                        kh, kw = 3 + r - 2 * u, 3 + c - 2 * v
                        bmat = bmat.at[(u * 3 + v) * cin:(u * 3 + v + 1) * cin,
                                       (r * 2 + c) * cout:(r * 2 + c + 1) * cout
                                       ].set(wt[:, :, kh, kw])
    return bmat


def prepare_params(p):
    """One-time weight re-layout (outside jit): bf16 matmul-ready weights.
    Biases of BN-followed layers (e2-e5, d1-d4) are dropped: train-mode BN
    subtracts the batch mean, so a constant conv bias is exactly cancelled."""
    pp = {}
    for name in ("e1", "e2", "e3", "e4", "e5"):
        pp[name + "_w"] = _conv_w_to_mat(p[name + "_w"]).astype(jnp.bfloat16)
    pp["e1_b"] = p["e1_b"].reshape(1, -1)
    pp["d1_w"] = _convT_s1_to_mat(p["d1_w"]).astype(jnp.bfloat16)
    for name in ("d2", "d3", "d4", "d5"):
        pp[name + "_w"] = _convT_s2_to_mat(p[name + "_w"]).astype(jnp.bfloat16)
    pp["d5_b"] = jnp.tile(p["d5_b"], 4).reshape(1, -1)
    for name in ("e2", "e3", "e4", "mid", "d1", "d2", "d3", "d4"):
        pp[name + "_g"] = p[name + "_g"]
        pp[name + "_beta"] = p[name + "_beta"]
    return pp


# -------------------------------- forward ---------------------------------- #

def netG_forward(pp, x):
    h = jnp.transpose(x, (0, 2, 3, 1)).astype(jnp.bfloat16)   # NCHW -> NHWC once

    # ---- encodeNet ----
    # e1: Conv(nc, nef, 4, 2, 1) + LeakyReLU(0.2) -- bias + act fused in the epilogue.
    a, (B, OH, OW) = conv_patches(h, 4, 2, 1)
    m = matmul_fused(a, pp["e1_w"], bias=pp["e1_b"], act="lrelu")
    h = m.reshape(B, OH, OW, -1)

    # e2, e3: Conv + BN + LeakyReLU.  Batch stats accumulate inside the matmul;
    # the BN apply + act stays a lazy jnp expression that XLA fuses into the
    # next layer's patch-matrix producer (no standalone BN Pallas pass).
    for name in ("e2", "e3"):
        a, (B, OH, OW) = conv_patches(h, 4, 2, 1)
        m, s, ss = matmul_fused(a, pp[name + "_w"], with_stats=True)
        sc, sh = bn_from_stats(s, ss, m.shape[0], 1,
                               pp[name + "_g"], pp[name + "_beta"])
        h = _apply_act(m.astype(jnp.float32) * sc + sh, "lrelu").astype(jnp.bfloat16)
        h = h.reshape(B, OH, OW, -1)

    # e4: Conv + BN + LeakyReLU -- the BN apply is folded into e5's A-prologue.
    a, (B, OH, OW) = conv_patches(h, 4, 2, 1)
    m4, s, ss = matmul_fused(a, pp["e4_w"], with_stats=True)
    sc4, sh4 = bn_from_stats(s, ss, m4.shape[0], 1, pp["e4_g"], pp["e4_beta"])

    # e5: Conv(nef*8, nBottleneck, 4) on the 4x4 map (pad 0) == one matmul with
    # A = raw e4 output; e4's BN + LeakyReLU applied in-kernel on the A tile.
    a5 = m4.reshape(B, -1)                           # (batch, 4*4*nef*8), raw bf16
    m5, s, ss = matmul_fused(a5, pp["e5_w"], with_stats=True,
                             a_scale=jnp.tile(sc4, OH * OW),
                             a_shift=jnp.tile(sh4, OH * OW), a_act="lrelu")

    # ---- midNet: BN(nBottleneck) + LeakyReLU -> folded into d1's A-prologue ----
    scm, shm = bn_from_stats(s, ss, m5.shape[0], 1, pp["mid_g"], pp["mid_beta"])

    # ---- decodeNet ----
    # d1: ConvT(nz_size, ngf*8, 4) from 1x1 == outer-product matmul; mid BN +
    # LeakyReLU applied in-kernel on the A tile; d1's own BN stats accumulated.
    m, s, ss = matmul_fused(m5, pp["d1_w"], with_stats=True,
                            a_scale=scm, a_shift=shm, a_act="lrelu")
    sc, sh = bn_from_stats(s, ss, m.shape[0], 16, pp["d1_g"], pp["d1_beta"])
    h = _apply_act(m.astype(jnp.float32) * jnp.tile(sc, 16) + jnp.tile(sh, 16),
                   "relu").astype(jnp.bfloat16)
    h = h.reshape(B, 4, 4, -1)

    # d2-d4: ConvT(..., 4, 2, 1) + BN + ReLU via sub-pixel decomposition: one
    # stride-1 3x3 matmul emits all 4 output parities (no zero-insertion).
    for name in ("d2", "d3", "d4"):
        a, (B, OH, OW) = conv_patches(h, 3, 1, 1)
        m, s, ss = matmul_fused(a, pp[name + "_w"], with_stats=True)
        sc, sh = bn_from_stats(s, ss, m.shape[0], 4,
                               pp[name + "_g"], pp[name + "_beta"])
        hn = _apply_act(m.astype(jnp.float32) * jnp.tile(sc, 4) + jnp.tile(sh, 4),
                        "relu").astype(jnp.bfloat16)
        # TODO(synk): this interleave is an XLA transpose; indexing the
        # phase-split layout directly in the next patch gather would remove it.
        h = interleave_phases(hn, B, OH, OW)

    # d5: ConvT(ngf, nc, 4, 2, 1) + Tanh -- bias + tanh fused; f32 output.
    a, (B, OH, OW) = conv_patches(h, 3, 1, 1)
    m = matmul_fused(a, pp["d5_w"], bias=pp["d5_b"], act="tanh",
                     out_dtype=jnp.float32)
    h = interleave_phases(m, B, OH, OW)
    return jnp.transpose(h, (0, 3, 1, 2))            # NHWC -> NCHW once


# --------------------------------- main ------------------------------------ #

if __name__ == "__main__":
    key = jax.random.PRNGKey(0)
    kx, kp = jax.random.split(key)

    # Small demo config (noiseGen=False, fineSize=64).  At these channel counts
    # the matmuls fill <25% of a 256-wide MXU -- the network is traffic /
    # step-overhead bound by design, which is what the kernels optimize for.
    batch, nc, nef, nBottleneck, nz, ngf, fineSize = 2, 3, 8, 16, 8, 8, 64

    x = jax.random.normal(kx, (batch, nc, fineSize, fineSize), jnp.float32)
    params = init_params(kp, nc, nef, nBottleneck, ngf)
    pp = prepare_params(params)          # one-time weight re-layout, outside jit

    fwd = jax.jit(netG_forward)
    out = jax.block_until_ready(fwd(pp, x))

    assert out.shape == (batch, nc, fineSize, fineSize), out.shape
    assert out.dtype == jnp.float32
    assert bool(jnp.all(jnp.isfinite(out)))
    assert bool(jnp.all(jnp.abs(out) <= 1.0))  # tanh output range
    print("KERNEL_OK")
</pallas_src>

<mosaic_0001>
module attributes {stable_mosaic.version = 11 : i64} {
  func.func @_matmul_kernel(%arg0: i32, %arg1: memref<2048x48xbf16, #tpu.memory_space<vmem>>, %arg2: memref<48x8xbf16, #tpu.memory_space<vmem>>, %arg3: memref<1x8xf32, #tpu.memory_space<vmem>>, %arg4: memref<2048x8xbf16, #tpu.memory_space<vmem>>) attributes {dimension_semantics = [#tpu.dimension_semantics<parallel>], iteration_bounds = array<i64: 1>, scalar_prefetch = 0 : i64, scratch_operands = 0 : i64, tpu.core_type = #tpu.core_type<tc>, window_params = [{transform_indices = @transform_0, window_bounds = array<i64: 2048, 48>}, {pipeline_mode = #tpu.pipeline_mode<synchronous>, transform_indices = @transform_1, window_bounds = array<i64: 48, 8>}, {pipeline_mode = #tpu.pipeline_mode<synchronous>, transform_indices = @transform_2, window_bounds = array<i64: 1, 8>}, {transform_indices = @transform_3, window_bounds = array<i64: 2048, 8>}]} {
    %c0 = arith.constant 0 : index
    %c0_0 = arith.constant 0 : index
    %0 = vector.load %arg1[%c0, %c0_0] : memref<2048x48xbf16, #tpu.memory_space<vmem>>, vector<2048x48xbf16>
    %c0_1 = arith.constant 0 : index
    %c0_2 = arith.constant 0 : index
    %1 = vector.load %arg2[%c0_1, %c0_2] : memref<48x8xbf16, #tpu.memory_space<vmem>>, vector<48x8xbf16>
    %cst = arith.constant dense<0.000000e+00> : vector<2048x8xf32>
    %2 = tpu.matmul %0, %1, %cst {dimension_numbers = #tpu.dot_dimension_numbers<[1], [0], [0], [1], [0, 0, 1, 1], [], []>} : vector<2048x48xbf16>, vector<48x8xbf16>, vector<2048x8xf32> -> vector<2048x8xf32>
    %c0_3 = arith.constant 0 : index
    %c0_4 = arith.constant 0 : index
    %3 = vector.load %arg3[%c0_3, %c0_4] : memref<1x8xf32, #tpu.memory_space<vmem>>, vector<1x8xf32>
    %4 = vector.broadcast %3 : vector<1x8xf32> to vector<2048x8xf32>
    %5 = arith.addf %2, %4 : vector<2048x8xf32>
    %cst_5 = arith.constant 0.000000e+00 : f32
    %6 = vector.broadcast %cst_5 : f32 to vector<2048x8xf32>
    %7 = arith.cmpf ogt, %5, %6 : vector<2048x8xf32>
    %cst_6 = arith.constant 2.000000e-01 : f32
    %8 = vector.broadcast %cst_6 : f32 to vector<2048x8xf32>
    %9 = arith.mulf %8, %5 : vector<2048x8xf32>
    %10 = arith.select %7, %5, %9 : vector<2048x8xi1>, vector<2048x8xf32>
    %11 = arith.truncf %10 : vector<2048x8xf32> to vector<2048x8xbf16>
    %c0_7 = arith.constant 0 : index
    %c0_8 = arith.constant 0 : index
    %12 = vector.load %arg4[%c0_7, %c0_8] : memref<2048x8xbf16, #tpu.memory_space<vmem>>, vector<2048x8xbf16>
    tpu.vector_store %arg4[%c0_7, %c0_8], %11 {strides = array<i32>} : memref<2048x8xbf16, #tpu.memory_space<vmem>>, vector<2048x8xbf16>,
    return
  }
  func.func @transform_0(%arg0: i32) -> (i32, i32) {
    %c0_i32 = arith.constant 0 : i32
    %c0_i32_0 = arith.constant 0 : i32
    return %arg0, %c0_i32 : i32, i32
  }
  func.func @transform_1(%arg0: i32) -> (i32, i32) {
    %c0_i32 = arith.constant 0 : i32
    %c0_i32_0 = arith.constant 0 : i32
    %c0_i32_1 = arith.constant 0 : i32
    return %c0_i32, %c0_i32_0 : i32, i32
  }
  func.func @transform_2(%arg0: i32) -> (i32, i32) {
    %c0_i32 = arith.constant 0 : i32
    %c0_i32_0 = arith.constant 0 : i32
    %c0_i32_1 = arith.constant 0 : i32
    return %c0_i32, %c0_i32_0 : i32, i32
  }
  func.func @transform_3(%arg0: i32) -> (i32, i32) {
    %c0_i32 = arith.constant 0 : i32
    %c0_i32_0 = arith.constant 0 : i32
    return %arg0, %c0_i32 : i32, i32
  }
}

module attributes {stable_mosaic.version = 11 : i64} {
  func.func @_matmul_kernel(%arg0: i32, %arg1: memref<512x128xbf16, #tpu.memory_space<vmem>>, %arg2: memref<128x16xbf16, #tpu.memory_space<vmem>>, %arg3: memref<512x16xbf16, #tpu.memory_space<vmem>>, %arg4: memref<1x1x16xf32, #tpu.memory_space<vmem>>, %arg5: memref<1x1x16xf32, #tpu.memory_space<vmem>>) attributes {dimension_semantics = [#tpu.dimension_semantics<parallel>], iteration_bounds = array<i64: 1>, scalar_prefetch = 0 : i64, scratch_operands = 0 : i64, tpu.core_type = #tpu.core_type<tc>, window_params = [{transform_indices = @transform_0, window_bounds = array<i64: 512, 128>}, {pipeline_mode = #tpu.pipeline_mode<synchronous>, transform_indices = @transform_1, window_bounds = array<i64: 128, 16>}, {transform_indices = @transform_2, window_bounds = array<i64: 512, 16>}, {transform_indices = @transform_3, window_bounds = array<i64: 1, 1, 16>}, {transform_indices = @transform_4, window_bounds = array<i64: 1, 1, 16>}]} {
    %c0 = arith.constant 0 : index
    %c0_0 = arith.constant 0 : index
    %0 = vector.load %arg1[%c0, %c0_0] : memref<512x128xbf16, #tpu.memory_space<vmem>>, vector<512x128xbf16>
    %c0_1 = arith.constant 0 : index
    %c0_2 = arith.constant 0 : index
    %1 = vector.load %arg2[%c0_1, %c0_2] : memref<128x16xbf16, #tpu.memory_space<vmem>>, vector<128x16xbf16>
    %cst = arith.constant dense<0.000000e+00> : vector<512x16xf32>
    %2 = tpu.matmul %0, %1, %cst {dimension_numbers = #tpu.dot_dimension_numbers<[1], [0], [0], [1], [0, 0, 1, 1], [], []>} : vector<512x128xbf16>, vector<128x16xbf16>, vector<512x16xf32> -> vector<512x16xf32>
    %3 = arith.truncf %2 : vector<512x16xf32> to vector<512x16xbf16>
    %c0_3 = arith.constant 0 : index
    %c0_4 = arith.constant 0 : index
    %4 = vector.load %arg3[%c0_3, %c0_4] : memref<512x16xbf16, #tpu.memory_space<vmem>>, vector<512x16xbf16>
    tpu.vector_store %arg3[%c0_3, %c0_4], %3 {strides = array<i32>} : memref<512x16xbf16, #tpu.memory_space<vmem>>, vector<512x16xbf16>,
    %cst_5 = arith.constant dense<0.000000e+00> : vector<16xf32>
    %5 = vector.multi_reduction <add>, %2, %cst_5 [0] : vector<512x16xf32> to vector<16xf32>
    %6 = vector.shape_cast %5 : vector<16xf32> to vector<1x16xf32>
    %7 = vector.shape_cast %6 : vector<1x16xf32> to vector<1x1x16xf32>
    %c0_6 = arith.constant 0 : index
    %c0_7 = arith.constant 0 : index
    %c0_8 = arith.constant 0 : index
    %8 = vector.load %arg4[%c0_6, %c0_7, %c0_8] : memref<1x1x16xf32, #tpu.memory_space<vmem>>, vector<1x1x16xf32>
    tpu.vector_store %arg4[%c0_6, %c0_7, %c0_8], %7 {strides = array<i32>} : memref<1x1x16xf32, #tpu.memory_space<vmem>>, vector<1x1x16xf32>,
    %9 = arith.mulf %2, %2 : vector<512x16xf32>
    %cst_9 = arith.constant dense<0.000000e+00> : vector<16xf32>
    %10 = vector.multi_reduction <add>, %9, %cst_9 [0] : vector<512x16xf32> to vector<16xf32>
    %11 = vector.shape_cast %10 : vector<16xf32> to vector<1x16xf32>
    %12 = vector.shape_cast %11 : vector<1x16xf32> to vector<1x1x16xf32>
    %c0_10 = arith.constant 0 : index
    %c0_11 = arith.constant 0 : index
    %c0_12 = arith.constant 0 : index
    %13 = vector.load %arg5[%c0_10, %c0_11, %c0_12] : memref<1x1x16xf32, #tpu.memory_space<vmem>>, vector<1x1x16xf32>
    tpu.vector_store %arg5[%c0_10, %c0_11, %c0_12], %12 {strides = array<i32>} : memref<1x1x16xf32, #tpu.memory_space<vmem>>, vector<1x1x16xf32>,
    return
  }
  func.func @transform_0(%arg0: i32) -> (i32, i32) {
    %c0_i32 = arith.constant 0 : i32
    %c0_i32_0 = arith.constant 0 : i32
    return %arg0, %c0_i32 : i32, i32
  }
  func.func @transform_1(%arg0: i32) -> (i32, i32) {
    %c0_i32 = arith.constant 0 : i32
    %c0_i32_0 = arith.constant 0 : i32
    %c0_i32_1 = arith.constant 0 : i32
    return %c0_i32, %c0_i32_0 : i32, i32
  }
  func.func @transform_2(%arg0: i32) -> (i32, i32) {
    %c0_i32 = arith.constant 0 : i32
    %c0_i32_0 = arith.constant 0 : i32
    return %arg0, %c0_i32 : i32, i32
  }
  func.func @transform_3(%arg0: i32) -> (i32, i32, i32) {
    %c0_i32 = arith.constant 0 : i32
    %c0_i32_0 = arith.constant 0 : i32
    %c0_i32_1 = arith.constant 0 : i32
    return %arg0, %c0_i32, %c0_i32_0 : i32, i32, i32
  }
  func.func @transform_4(%arg0: i32) -> (i32, i32, i32) {
    %c0_i32 = arith.constant 0 : i32
    %c0_i32_0 = arith.constant 0 : i32
    %c0_i32_1 = arith.constant 0 : i32
    return %arg0, %c0_i32, %c0_i32_0 : i32, i32, i32
  }
}

module attributes {stable_mosaic.version = 11 : i64} {
  func.func @_matmul_kernel(%arg0: i32, %arg1: memref<128x256xbf16, #tpu.memory_space<vmem>>, %arg2: memref<256x32xbf16, #tpu.memory_space<vmem>>, %arg3: memref<128x32xbf16, #tpu.memory_space<vmem>>, %arg4: memref<1x1x32xf32, #tpu.memory_space<vmem>>, %arg5: memref<1x1x32xf32, #tpu.memory_space<vmem>>) attributes {dimension_semantics = [#tpu.dimension_semantics<parallel>], iteration_bounds = array<i64: 1>, scalar_prefetch = 0 : i64, scratch_operands = 0 : i64, tpu.core_type = #tpu.core_type<tc>, window_params = [{transform_indices = @transform_0, window_bounds = array<i64: 128, 256>}, {pipeline_mode = #tpu.pipeline_mode<synchronous>, transform_indices = @transform_1, window_bounds = array<i64: 256, 32>}, {transform_indices = @transform_2, window_bounds = array<i64: 128, 32>}, {transform_indices = @transform_3, window_bounds = array<i64: 1, 1, 32>}, {transform_indices = @transform_4, window_bounds = array<i64: 1, 1, 32>}]} {
    %c0 = arith.constant 0 : index
    %c0_0 = arith.constant 0 : index
    %0 = vector.load %arg1[%c0, %c0_0] : memref<128x256xbf16, #tpu.memory_space<vmem>>, vector<128x256xbf16>
    %c0_1 = arith.constant 0 : index
    %c0_2 = arith.constant 0 : index
    %1 = vector.load %arg2[%c0_1, %c0_2] : memref<256x32xbf16, #tpu.memory_space<vmem>>, vector<256x32xbf16>
    %cst = arith.constant dense<0.000000e+00> : vector<128x32xf32>
    %2 = tpu.matmul %0, %1, %cst {dimension_numbers = #tpu.dot_dimension_numbers<[1], [0], [0], [1], [0, 0, 1, 1], [], []>} : vector<128x256xbf16>, vector<256x32xbf16>, vector<128x32xf32> -> vector<128x32xf32>
    %3 = arith.truncf %2 : vector<128x32xf32> to vector<128x32xbf16>
    %c0_3 = arith.constant 0 : index
    %c0_4 = arith.constant 0 : index
    %4 = vector.load %arg3[%c0_3, %c0_4] : memref<128x32xbf16, #tpu.memory_space<vmem>>, vector<128x32xbf16>
    tpu.vector_store %arg3[%c0_3, %c0_4], %3 {strides = array<i32>} : memref<128x32xbf16, #tpu.memory_space<vmem>>, vector<128x32xbf16>,
    %cst_5 = arith.constant dense<0.000000e+00> : vector<32xf32>
    %5 = vector.multi_reduction <add>, %2, %cst_5 [0] : vector<128x32xf32> to vector<32xf32>
    %6 = vector.shape_cast %5 : vector<32xf32> to vector<1x32xf32>
    %7 = vector.shape_cast %6 : vector<1x32xf32> to vector<1x1x32xf32>
    %c0_6 = arith.constant 0 : index
    %c0_7 = arith.constant 0 : index
    %c0_8 = arith.constant 0 : index
    %8 = vector.load %arg4[%c0_6, %c0_7, %c0_8] : memref<1x1x32xf32, #tpu.memory_space<vmem>>, vector<1x1x32xf32>
    tpu.vector_store %arg4[%c0_6, %c0_7, %c0_8], %7 {strides = array<i32>} : memref<1x1x32xf32, #tpu.memory_space<vmem>>, vector<1x1x32xf32>,
    %9 = arith.mulf %2, %2 : vector<128x32xf32>
    %cst_9 = arith.constant dense<0.000000e+00> : vector<32xf32>
    %10 = vector.multi_reduction <add>, %9, %cst_9 [0] : vector<128x32xf32> to vector<32xf32>
    %11 = vector.shape_cast %10 : vector<32xf32> to vector<1x32xf32>
    %12 = vector.shape_cast %11 : vector<1x32xf32> to vector<1x1x32xf32>
    %c0_10 = arith.constant 0 : index
    %c0_11 = arith.constant 0 : index
    %c0_12 = arith.constant 0 : index
    %13 = vector.load %arg5[%c0_10, %c0_11, %c0_12] : memref<1x1x32xf32, #tpu.memory_space<vmem>>, vector<1x1x32xf32>
    tpu.vector_store %arg5[%c0_10, %c0_11, %c0_12], %12 {strides = array<i32>} : memref<1x1x32xf32, #tpu.memory_space<vmem>>, vector<1x1x32xf32>,
    return
  }
  func.func @transform_0(%arg0: i32) -> (i32, i32) {
    %c0_i32 = arith.constant 0 : i32
    %c0_i32_0 = arith.constant 0 : i32
    return %arg0, %c0_i32 : i32, i32
  }
  func.func @transform_1(%arg0: i32) -> (i32, i32) {
    %c0_i32 = arith.constant 0 : i32
    %c0_i32_0 = arith.constant 0 : i32
    %c0_i32_1 = arith.constant 0 : i32
    return %c0_i32, %c0_i32_0 : i32, i32
  }
  func.func @transform_2(%arg0: i32) -> (i32, i32) {
    %c0_i32 = arith.constant 0 : i32
    %c0_i32_0 = arith.constant 0 : i32
    return %arg0, %c0_i32 : i32, i32
  }
  func.func @transform_3(%arg0: i32) -> (i32, i32, i32) {
    %c0_i32 = arith.constant 0 : i32
    %c0_i32_0 = arith.constant 0 : i32
    %c0_i32_1 = arith.constant 0 : i32
    return %arg0, %c0_i32, %c0_i32_0 : i32, i32, i32
  }
  func.func @transform_4(%arg0: i32) -> (i32, i32, i32) {
    %c0_i32 = arith.constant 0 : i32
    %c0_i32_0 = arith.constant 0 : i32
    %c0_i32_1 = arith.constant 0 : i32
    return %arg0, %c0_i32, %c0_i32_0 : i32, i32, i32
  }
}

module attributes {stable_mosaic.version = 11 : i64} {
  func.func @_matmul_kernel(%arg0: i32, %arg1: memref<32x512xbf16, #tpu.memory_space<vmem>>, %arg2: memref<512x64xbf16, #tpu.memory_space<vmem>>, %arg3: memref<32x64xbf16, #tpu.memory_space<vmem>>, %arg4: memref<1x1x64xf32, #tpu.memory_space<vmem>>, %arg5: memref<1x1x64xf32, #tpu.memory_space<vmem>>) attributes {dimension_semantics = [#tpu.dimension_semantics<parallel>], iteration_bounds = array<i64: 1>, scalar_prefetch = 0 : i64, scratch_operands = 0 : i64, tpu.core_type = #tpu.core_type<tc>, window_params = [{transform_indices = @transform_0, window_bounds = array<i64: 32, 512>}, {pipeline_mode = #tpu.pipeline_mode<synchronous>, transform_indices = @transform_1, window_bounds = array<i64: 512, 64>}, {transform_indices = @transform_2, window_bounds = array<i64: 32, 64>}, {transform_indices = @transform_3, window_bounds = array<i64: 1, 1, 64>}, {transform_indices = @transform_4, window_bounds = array<i64: 1, 1, 64>}]} {
    %c0 = arith.constant 0 : index
    %c0_0 = arith.constant 0 : index
    %0 = vector.load %arg1[%c0, %c0_0] : memref<32x512xbf16, #tpu.memory_space<vmem>>, vector<32x512xbf16>
    %c0_1 = arith.constant 0 : index
    %c0_2 = arith.constant 0 : index
    %1 = vector.load %arg2[%c0_1, %c0_2] : memref<512x64xbf16, #tpu.memory_space<vmem>>, vector<512x64xbf16>
    %cst = arith.constant dense<0.000000e+00> : vector<32x64xf32>
    %2 = tpu.matmul %0, %1, %cst {dimension_numbers = #tpu.dot_dimension_numbers<[1], [0], [0], [1], [0, 0, 1, 1], [], []>} : vector<32x512xbf16>, vector<512x64xbf16>, vector<32x64xf32> -> vector<32x64xf32>
    %3 = arith.truncf %2 : vector<32x64xf32> to vector<32x64xbf16>
    %c0_3 = arith.constant 0 : index
    %c0_4 = arith.constant 0 : index
    %4 = vector.load %arg3[%c0_3, %c0_4] : memref<32x64xbf16, #tpu.memory_space<vmem>>, vector<32x64xbf16>
    tpu.vector_store %arg3[%c0_3, %c0_4], %3 {strides = array<i32>} : memref<32x64xbf16, #tpu.memory_space<vmem>>, vector<32x64xbf16>,
    %cst_5 = arith.constant dense<0.000000e+00> : vector<64xf32>
    %5 = vector.multi_reduction <add>, %2, %cst_5 [0] : vector<32x64xf32> to vector<64xf32>
    %6 = vector.shape_cast %5 : vector<64xf32> to vector<1x64xf32>
    %7 = vector.shape_cast %6 : vector<1x64xf32> to vector<1x1x64xf32>
    %c0_6 = arith.constant 0 : index
    %c0_7 = arith.constant 0 : index
    %c0_8 = arith.constant 0 : index
    %8 = vector.load %arg4[%c0_6, %c0_7, %c0_8] : memref<1x1x64xf32, #tpu.memory_space<vmem>>, vector<1x1x64xf32>
    tpu.vector_store %arg4[%c0_6, %c0_7, %c0_8], %7 {strides = array<i32>} : memref<1x1x64xf32, #tpu.memory_space<vmem>>, vector<1x1x64xf32>,
    %9 = arith.mulf %2, %2 : vector<32x64xf32>
    %cst_9 = arith.constant dense<0.000000e+00> : vector<64xf32>
    %10 = vector.multi_reduction <add>, %9, %cst_9 [0] : vector<32x64xf32> to vector<64xf32>
    %11 = vector.shape_cast %10 : vector<64xf32> to vector<1x64xf32>
    %12 = vector.shape_cast %11 : vector<1x64xf32> to vector<1x1x64xf32>
    %c0_10 = arith.constant 0 : index
    %c0_11 = arith.constant 0 : index
    %c0_12 = arith.constant 0 : index
    %13 = vector.load %arg5[%c0_10, %c0_11, %c0_12] : memref<1x1x64xf32, #tpu.memory_space<vmem>>, vector<1x1x64xf32>
    tpu.vector_store %arg5[%c0_10, %c0_11, %c0_12], %12 {strides = array<i32>} : memref<1x1x64xf32, #tpu.memory_space<vmem>>, vector<1x1x64xf32>,
    return
  }
  func.func @transform_0(%arg0: i32) -> (i32, i32) {
    %c0_i32 = arith.constant 0 : i32
    %c0_i32_0 = arith.constant 0 : i32
    return %arg0, %c0_i32 : i32, i32
  }
  func.func @transform_1(%arg0: i32) -> (i32, i32) {
    %c0_i32 = arith.constant 0 : i32
    %c0_i32_0 = arith.constant 0 : i32
    %c0_i32_1 = arith.constant 0 : i32
    return %c0_i32, %c0_i32_0 : i32, i32
  }
  func.func @transform_2(%arg0: i32) -> (i32, i32) {
    %c0_i32 = arith.constant 0 : i32
    %c0_i32_0 = arith.constant 0 : i32
    return %arg0, %c0_i32 : i32, i32
  }
  func.func @transform_3(%arg0: i32) -> (i32, i32, i32) {
    %c0_i32 = arith.constant 0 : i32
    %c0_i32_0 = arith.constant 0 : i32
    %c0_i32_1 = arith.constant 0 : i32
    return %arg0, %c0_i32, %c0_i32_0 : i32, i32, i32
  }
  func.func @transform_4(%arg0: i32) -> (i32, i32, i32) {
    %c0_i32 = arith.constant 0 : i32
    %c0_i32_0 = arith.constant 0 : i32
    %c0_i32_1 = arith.constant 0 : i32
    return %arg0, %c0_i32, %c0_i32_0 : i32, i32, i32
  }
}

module attributes {stable_mosaic.version = 11 : i64} {
  func.func @_matmul_kernel(%arg0: i32, %arg1: memref<2x1024xbf16, #tpu.memory_space<vmem>>, %arg2: memref<1024x16xbf16, #tpu.memory_space<vmem>>, %arg3: memref<1x1024xf32, #tpu.memory_space<vmem>>, %arg4: memref<1x1024xf32, #tpu.memory_space<vmem>>, %arg5: memref<2x16xbf16, #tpu.memory_space<vmem>>, %arg6: memref<1x1x16xf32, #tpu.memory_space<vmem>>, %arg7: memref<1x1x16xf32, #tpu.memory_space<vmem>>) attributes {dimension_semantics = [#tpu.dimension_semantics<parallel>], iteration_bounds = array<i64: 1>, scalar_prefetch = 0 : i64, scratch_operands = 0 : i64, tpu.core_type = #tpu.core_type<tc>, window_params = [{transform_indices = @transform_0, window_bounds = array<i64: 2, 1024>}, {pipeline_mode = #tpu.pipeline_mode<synchronous>, transform_indices = @transform_1, window_bounds = array<i64: 1024, 16>}, {pipeline_mode = #tpu.pipeline_mode<synchronous>, transform_indices = @transform_2, window_bounds = array<i64: 1, 1024>}, {pipeline_mode = #tpu.pipeline_mode<synchronous>, transform_indices = @transform_3, window_bounds = array<i64: 1, 1024>}, {transform_indices = @transform_4, window_bounds = array<i64: 2, 16>}, {transform_indices = @transform_5, window_bounds = array<i64: 1, 1, 16>}, {transform_indices = @transform_6, window_bounds = array<i64: 1, 1, 16>}]} {
    %c0 = arith.constant 0 : index
    %c0_0 = arith.constant 0 : index
    %0 = vector.load %arg1[%c0, %c0_0] : memref<2x1024xbf16, #tpu.memory_space<vmem>>, vector<2x1024xbf16>
    %1 = arith.extf %0 : vector<2x1024xbf16> to vector<2x1024xf32>
    %c0_1 = arith.constant 0 : index
    %c0_2 = arith.constant 0 : index
    %2 = vector.load %arg3[%c0_1, %c0_2] : memref<1x1024xf32, #tpu.memory_space<vmem>>, vector<1x1024xf32>
    %3 = vector.broadcast %2 : vector<1x1024xf32> to vector<2x1024xf32>
    %4 = arith.mulf %1, %3 : vector<2x1024xf32>
    %c0_3 = arith.constant 0 : index
    %c0_4 = arith.constant 0 : index
    %5 = vector.load %arg4[%c0_3, %c0_4] : memref<1x1024xf32, #tpu.memory_space<vmem>>, vector<1x1024xf32>
    %6 = vector.broadcast %5 : vector<1x1024xf32> to vector<2x1024xf32>
    %7 = arith.addf %4, %6 : vector<2x1024xf32>
    %cst = arith.constant 0.000000e+00 : f32
    %8 = vector.broadcast %cst : f32 to vector<2x1024xf32>
    %9 = arith.cmpf ogt, %7, %8 : vector<2x1024xf32>
    %cst_5 = arith.constant 2.000000e-01 : f32
    %10 = vector.broadcast %cst_5 : f32 to vector<2x1024xf32>
    %11 = arith.mulf %10, %7 : vector<2x1024xf32>
    %12 = arith.select %9, %7, %11 : vector<2x1024xi1>, vector<2x1024xf32>
    %13 = arith.truncf %12 : vector<2x1024xf32> to vector<2x1024xbf16>
    %c0_6 = arith.constant 0 : index
    %c0_7 = arith.constant 0 : index
    %14 = vector.load %arg2[%c0_6, %c0_7] : memref<1024x16xbf16, #tpu.memory_space<vmem>>, vector<1024x16xbf16>
    %cst_8 = arith.constant dense<0.000000e+00> : vector<2x16xf32>
    %15 = tpu.matmul %13, %14, %cst_8 {dimension_numbers = #tpu.dot_dimension_numbers<[1], [0], [0], [1], [0, 0, 1, 1], [], []>} : vector<2x1024xbf16>, vector<1024x16xbf16>, vector<2x16xf32> -> vector<2x16xf32>
    %16 = arith.truncf %15 : vector<2x16xf32> to vector<2x16xbf16>
    %c0_9 = arith.constant 0 : index
    %c0_10 = arith.constant 0 : index
    %17 = vector.load %arg5[%c0_9, %c0_10] : memref<2x16xbf16, #tpu.memory_space<vmem>>, vector<2x16xbf16>
    tpu.vector_store %arg5[%c0_9, %c0_10], %16 {strides = array<i32>} : memref<2x16xbf16, #tpu.memory_space<vmem>>, vector<2x16xbf16>,
    %cst_11 = arith.constant dense<0.000000e+00> : vector<16xf32>
    %18 = vector.multi_reduction <add>, %15, %cst_11 [0] : vector<2x16xf32> to vector<16xf32>
    %19 = vector.shape_cast %18 : vector<16xf32> to vector<1x16xf32>
    %20 = vector.shape_cast %19 : vector<1x16xf32> to vector<1x1x16xf32>
    %c0_12 = arith.constant 0 : index
    %c0_13 = arith.constant 0 : index
    %c0_14 = arith.constant 0 : index
    %21 = vector.load %arg6[%c0_12, %c0_13, %c0_14] : memref<1x1x16xf32, #tpu.memory_space<vmem>>, vector<1x1x16xf32>
    tpu.vector_store %arg6[%c0_12, %c0_13, %c0_14], %20 {strides = array<i32>} : memref<1x1x16xf32, #tpu.memory_space<vmem>>, vector<1x1x16xf32>,
    %22 = arith.mulf %15, %15 : vector<2x16xf32>
    %cst_15 = arith.constant dense<0.000000e+00> : vector<16xf32>
    %23 = vector.multi_reduction <add>, %22, %cst_15 [0] : vector<2x16xf32> to vector<16xf32>
    %24 = vector.shape_cast %23 : vector<16xf32> to vector<1x16xf32>
    %25 = vector.shape_cast %24 : vector<1x16xf32> to vector<1x1x16xf32>
    %c0_16 = arith.constant 0 : index
    %c0_17 = arith.constant 0 : index
    %c0_18 = arith.constant 0 : index
    %26 = vector.load %arg7[%c0_16, %c0_17, %c0_18] : memref<1x1x16xf32, #tpu.memory_space<vmem>>, vector<1x1x16xf32>
    tpu.vector_store %arg7[%c0_16, %c0_17, %c0_18], %25 {strides = array<i32>} : memref<1x1x16xf32, #tpu.memory_space<vmem>>, vector<1x1x16xf32>,
    return
  }
  func.func @transform_0(%arg0: i32) -> (i32, i32) {
    %c0_i32 = arith.constant 0 : i32
    %c0_i32_0 = arith.constant 0 : i32
    return %arg0, %c0_i32 : i32, i32
  }
  func.func @transform_1(%arg0: i32) -> (i32, i32) {
    %c0_i32 = arith.constant 0 : i32
    %c0_i32_0 = arith.constant 0 : i32
    %c0_i32_1 = arith.constant 0 : i32
    return %c0_i32, %c0_i32_0 : i32, i32
  }
  func.func @transform_2(%arg0: i32) -> (i32, i32) {
    %c0_i32 = arith.constant 0 : i32
    %c0_i32_0 = arith.constant 0 : i32
    %c0_i32_1 = arith.constant 0 : i32
    return %c0_i32, %c0_i32_0 : i32, i32
  }
  func.func @transform_3(%arg0: i32) -> (i32, i32) {
    %c0_i32 = arith.constant 0 : i32
    %c0_i32_0 = arith.constant 0 : i32
    %c0_i32_1 = arith.constant 0 : i32
    return %c0_i32, %c0_i32_0 : i32, i32
  }
  func.func @transform_4(%arg0: i32) -> (i32, i32) {
    %c0_i32 = arith.constant 0 : i32
    %c0_i32_0 = arith.constant 0 : i32
    return %arg0, %c0_i32 : i32, i32
  }
  func.func @transform_5(%arg0: i32) -> (i32, i32, i32) {
    %c0_i32 = arith.constant 0 : i32
    %c0_i32_0 = arith.constant 0 : i32
    %c0_i32_1 = arith.constant 0 : i32
    return %arg0, %c0_i32, %c0_i32_0 : i32, i32, i32
  }
  func.func @transform_6(%arg0: i32) -> (i32, i32, i32) {
    %c0_i32 = arith.constant 0 : i32
    %c0_i32_0 = arith.constant 0 : i32
    %c0_i32_1 = arith.constant 0 : i32
    return %arg0, %c0_i32, %c0_i32_0 : i32, i32, i32
  }
}

module attributes {stable_mosaic.version = 11 : i64} {
  func.func @_matmul_kernel(%arg0: i32, %arg1: memref<2x16xbf16, #tpu.memory_space<vmem>>, %arg2: memref<16x1024xbf16, #tpu.memory_space<vmem>>, %arg3: memref<1x16xf32, #tpu.memory_space<vmem>>, %arg4: memref<1x16xf32, #tpu.memory_space<vmem>>, %arg5: memref<2x1024xbf16, #tpu.memory_space<vmem>>, %arg6: memref<1x1x1024xf32, #tpu.memory_space<vmem>>, %arg7: memref<1x1x1024xf32, #tpu.memory_space<vmem>>) attributes {dimension_semantics = [#tpu.dimension_semantics<parallel>], iteration_bounds = array<i64: 1>, scalar_prefetch = 0 : i64, scratch_operands = 0 : i64, tpu.core_type = #tpu.core_type<tc>, window_params = [{transform_indices = @transform_0, window_bounds = array<i64: 2, 16>}, {pipeline_mode = #tpu.pipeline_mode<synchronous>, transform_indices = @transform_1, window_bounds = array<i64: 16, 1024>}, {pipeline_mode = #tpu.pipeline_mode<synchronous>, transform_indices = @transform_2, window_bounds = array<i64: 1, 16>}, {pipeline_mode = #tpu.pipeline_mode<synchronous>, transform_indices = @transform_3, window_bounds = array<i64: 1, 16>}, {transform_indices = @transform_4, window_bounds = array<i64: 2, 1024>}, {transform_indices = @transform_5, window_bounds = array<i64: 1, 1, 1024>}, {transform_indices = @transform_6, window_bounds = array<i64: 1, 1, 1024>}]} {
    %c0 = arith.constant 0 : index
    %c0_0 = arith.constant 0 : index
    %0 = vector.load %arg1[%c0, %c0_0] : memref<2x16xbf16, #tpu.memory_space<vmem>>, vector<2x16xbf16>
    %1 = arith.extf %0 : vector<2x16xbf16> to vector<2x16xf32>
    %c0_1 = arith.constant 0 : index
    %c0_2 = arith.constant 0 : index
    %2 = vector.load %arg3[%c0_1, %c0_2] : memref<1x16xf32, #tpu.memory_space<vmem>>, vector<1x16xf32>
    %3 = vector.broadcast %2 : vector<1x16xf32> to vector<2x16xf32>
    %4 = arith.mulf %1, %3 : vector<2x16xf32>
    %c0_3 = arith.constant 0 : index
    %c0_4 = arith.constant 0 : index
    %5 = vector.load %arg4[%c0_3, %c0_4] : memref<1x16xf32, #tpu.memory_space<vmem>>, vector<1x16xf32>
    %6 = vector.broadcast %5 : vector<1x16xf32> to vector<2x16xf32>
    %7 = arith.addf %4, %6 : vector<2x16xf32>
    %cst = arith.constant 0.000000e+00 : f32
    %8 = vector.broadcast %cst : f32 to vector<2x16xf32>
    %9 = arith.cmpf ogt, %7, %8 : vector<2x16xf32>
    %cst_5 = arith.constant 2.000000e-01 : f32
    %10 = vector.broadcast %cst_5 : f32 to vector<2x16xf32>
    %11 = arith.mulf %10, %7 : vector<2x16xf32>
    %12 = arith.select %9, %7, %11 : vector<2x16xi1>, vector<2x16xf32>
    %13 = arith.truncf %12 : vector<2x16xf32> to vector<2x16xbf16>
    %c0_6 = arith.constant 0 : index
    %c0_7 = arith.constant 0 : index
    %14 = vector.load %arg2[%c0_6, %c0_7] : memref<16x1024xbf16, #tpu.memory_space<vmem>>, vector<16x1024xbf16>
    %cst_8 = arith.constant dense<0.000000e+00> : vector<2x1024xf32>
    %15 = tpu.matmul %13, %14, %cst_8 {dimension_numbers = #tpu.dot_dimension_numbers<[1], [0], [0], [1], [0, 0, 1, 1], [], []>} : vector<2x16xbf16>, vector<16x1024xbf16>, vector<2x1024xf32> -> vector<2x1024xf32>
    %16 = arith.truncf %15 : vector<2x1024xf32> to vector<2x1024xbf16>
    %c0_9 = arith.constant 0 : index
    %c0_10 = arith.constant 0 : index
    %17 = vector.load %arg5[%c0_9, %c0_10] : memref<2x1024xbf16, #tpu.memory_space<vmem>>, vector<2x1024xbf16>
    tpu.vector_store %arg5[%c0_9, %c0_10], %16 {strides = array<i32>} : memref<2x1024xbf16, #tpu.memory_space<vmem>>, vector<2x1024xbf16>,
    %cst_11 = arith.constant dense<0.000000e+00> : vector<1024xf32>
    %18 = vector.multi_reduction <add>, %15, %cst_11 [0] : vector<2x1024xf32> to vector<1024xf32>
    %19 = vector.shape_cast %18 : vector<1024xf32> to vector<1x1024xf32>
    %20 = vector.shape_cast %19 : vector<1x1024xf32> to vector<1x1x1024xf32>
    %c0_12 = arith.constant 0 : index
    %c0_13 = arith.constant 0 : index
    %c0_14 = arith.constant 0 : index
    %21 = vector.load %arg6[%c0_12, %c0_13, %c0_14] : memref<1x1x1024xf32, #tpu.memory_space<vmem>>, vector<1x1x1024xf32>
    tpu.vector_store %arg6[%c0_12, %c0_13, %c0_14], %20 {strides = array<i32>} : memref<1x1x1024xf32, #tpu.memory_space<vmem>>, vector<1x1x1024xf32>,
    %22 = arith.mulf %15, %15 : vector<2x1024xf32>
    %cst_15 = arith.constant dense<0.000000e+00> : vector<1024xf32>
    %23 = vector.multi_reduction <add>, %22, %cst_15 [0] : vector<2x1024xf32> to vector<1024xf32>
    %24 = vector.shape_cast %23 : vector<1024xf32> to vector<1x1024xf32>
    %25 = vector.shape_cast %24 : vector<1x1024xf32> to vector<1x1x1024xf32>
    %c0_16 = arith.constant 0 : index
    %c0_17 = arith.constant 0 : index
    %c0_18 = arith.constant 0 : index
    %26 = vector.load %arg7[%c0_16, %c0_17, %c0_18] : memref<1x1x1024xf32, #tpu.memory_space<vmem>>, vector<1x1x1024xf32>
    tpu.vector_store %arg7[%c0_16, %c0_17, %c0_18], %25 {strides = array<i32>} : memref<1x1x1024xf32, #tpu.memory_space<vmem>>, vector<1x1x1024xf32>,
    return
  }
  func.func @transform_0(%arg0: i32) -> (i32, i32) {
    %c0_i32 = arith.constant 0 : i32
    %c0_i32_0 = arith.constant 0 : i32
    return %arg0, %c0_i32 : i32, i32
  }
  func.func @transform_1(%arg0: i32) -> (i32, i32) {
    %c0_i32 = arith.constant 0 : i32
    %c0_i32_0 = arith.constant 0 : i32
    %c0_i32_1 = arith.constant 0 : i32
    return %c0_i32, %c0_i32_0 : i32, i32
  }
  func.func @transform_2(%arg0: i32) -> (i32, i32) {
    %c0_i32 = arith.constant 0 : i32
    %c0_i32_0 = arith.constant 0 : i32
    %c0_i32_1 = arith.constant 0 : i32
    return %c0_i32, %c0_i32_0 : i32, i32
  }
  func.func @transform_3(%arg0: i32) -> (i32, i32) {
    %c0_i32 = arith.constant 0 : i32
    %c0_i32_0 = arith.constant 0 : i32
    %c0_i32_1 = arith.constant 0 : i32
    return %c0_i32, %c0_i32_0 : i32, i32
  }
  func.func @transform_4(%arg0: i32) -> (i32, i32) {
    %c0_i32 = arith.constant 0 : i32
    %c0_i32_0 = arith.constant 0 : i32
    return %arg0, %c0_i32 : i32, i32
  }
  func.func @transform_5(%arg0: i32) -> (i32, i32, i32) {
    %c0_i32 = arith.constant 0 : i32
    %c0_i32_0 = arith.constant 0 : i32
    %c0_i32_1 = arith.constant 0 : i32
    return %arg0, %c0_i32, %c0_i32_0 : i32, i32, i32
  }
  func.func @transform_6(%arg0: i32) -> (i32, i32, i32) {
    %c0_i32 = arith.constant 0 : i32
    %c0_i32_0 = arith.constant 0 : i32
    %c0_i32_1 = arith.constant 0 : i32
    return %arg0, %c0_i32, %c0_i32_0 : i32, i32, i32
  }
}

module attributes {stable_mosaic.version = 11 : i64} {
  func.func @_matmul_kernel(%arg0: i32, %arg1: memref<32x576xbf16, #tpu.memory_space<vmem>>, %arg2: memref<576x128xbf16, #tpu.memory_space<vmem>>, %arg3: memref<32x128xbf16, #tpu.memory_space<vmem>>, %arg4: memref<1x1x128xf32, #tpu.memory_space<vmem>>, %arg5: memref<1x1x128xf32, #tpu.memory_space<vmem>>) attributes {dimension_semantics = [#tpu.dimension_semantics<parallel>], iteration_bounds = array<i64: 1>, scalar_prefetch = 0 : i64, scratch_operands = 0 : i64, tpu.core_type = #tpu.core_type<tc>, window_params = [{transform_indices = @transform_0, window_bounds = array<i64: 32, 576>}, {pipeline_mode = #tpu.pipeline_mode<synchronous>, transform_indices = @transform_1, window_bounds = array<i64: 576, 128>}, {transform_indices = @transform_2, window_bounds = array<i64: 32, 128>}, {transform_indices = @transform_3, window_bounds = array<i64: 1, 1, 128>}, {transform_indices = @transform_4, window_bounds = array<i64: 1, 1, 128>}]} {
    %c0 = arith.constant 0 : index
    %c0_0 = arith.constant 0 : index
    %0 = vector.load %arg1[%c0, %c0_0] : memref<32x576xbf16, #tpu.memory_space<vmem>>, vector<32x576xbf16>
    %c0_1 = arith.constant 0 : index
    %c0_2 = arith.constant 0 : index
    %1 = vector.load %arg2[%c0_1, %c0_2] : memref<576x128xbf16, #tpu.memory_space<vmem>>, vector<576x128xbf16>
    %cst = arith.constant dense<0.000000e+00> : vector<32x128xf32>
    %2 = tpu.matmul %0, %1, %cst {dimension_numbers = #tpu.dot_dimension_numbers<[1], [0], [0], [1], [0, 0, 1, 1], [], []>} : vector<32x576xbf16>, vector<576x128xbf16>, vector<32x128xf32> -> vector<32x128xf32>
    %3 = arith.truncf %2 : vector<32x128xf32> to vector<32x128xbf16>
    %c0_3 = arith.constant 0 : index
    %c0_4 = arith.constant 0 : index
    %4 = vector.load %arg3[%c0_3, %c0_4] : memref<32x128xbf16, #tpu.memory_space<vmem>>, vector<32x128xbf16>
    tpu.vector_store %arg3[%c0_3, %c0_4], %3 {strides = array<i32>} : memref<32x128xbf16, #tpu.memory_space<vmem>>, vector<32x128xbf16>,
    %cst_5 = arith.constant dense<0.000000e+00> : vector<128xf32>
    %5 = vector.multi_reduction <add>, %2, %cst_5 [0] : vector<32x128xf32> to vector<128xf32>
    %6 = vector.shape_cast %5 : vector<128xf32> to vector<1x128xf32>
    %7 = vector.shape_cast %6 : vector<1x128xf32> to vector<1x1x128xf32>
    %c0_6 = arith.constant 0 : index
    %c0_7 = arith.constant 0 : index
    %c0_8 = arith.constant 0 : index
    %8 = vector.load %arg4[%c0_6, %c0_7, %c0_8] : memref<1x1x128xf32, #tpu.memory_space<vmem>>, vector<1x1x128xf32>
    tpu.vector_store %arg4[%c0_6, %c0_7, %c0_8], %7 {strides = array<i32>} : memref<1x1x128xf32, #tpu.memory_space<vmem>>, vector<1x1x128xf32>,
    %9 = arith.mulf %2, %2 : vector<32x128xf32>
    %cst_9 = arith.constant dense<0.000000e+00> : vector<128xf32>
    %10 = vector.multi_reduction <add>, %9, %cst_9 [0] : vector<32x128xf32> to vector<128xf32>
    %11 = vector.shape_cast %10 : vector<128xf32> to vector<1x128xf32>
    %12 = vector.shape_cast %11 : vector<1x128xf32> to vector<1x1x128xf32>
    %c0_10 = arith.constant 0 : index
    %c0_11 = arith.constant 0 : index
    %c0_12 = arith.constant 0 : index
    %13 = vector.load %arg5[%c0_10, %c0_11, %c0_12] : memref<1x1x128xf32, #tpu.memory_space<vmem>>, vector<1x1x128xf32>
    tpu.vector_store %arg5[%c0_10, %c0_11, %c0_12], %12 {strides = array<i32>} : memref<1x1x128xf32, #tpu.memory_space<vmem>>, vector<1x1x128xf32>,
    return
  }
  func.func @transform_0(%arg0: i32) -> (i32, i32) {
    %c0_i32 = arith.constant 0 : i32
    %c0_i32_0 = arith.constant 0 : i32
    return %arg0, %c0_i32 : i32, i32
  }
  func.func @transform_1(%arg0: i32) -> (i32, i32) {
    %c0_i32 = arith.constant 0 : i32
    %c0_i32_0 = arith.constant 0 : i32
    %c0_i32_1 = arith.constant 0 : i32
    return %c0_i32, %c0_i32_0 : i32, i32
  }
  func.func @transform_2(%arg0: i32) -> (i32, i32) {
    %c0_i32 = arith.constant 0 : i32
    %c0_i32_0 = arith.constant 0 : i32
    return %arg0, %c0_i32 : i32, i32
  }
  func.func @transform_3(%arg0: i32) -> (i32, i32, i32) {
    %c0_i32 = arith.constant 0 : i32
    %c0_i32_0 = arith.constant 0 : i32
    %c0_i32_1 = arith.constant 0 : i32
    return %arg0, %c0_i32, %c0_i32_0 : i32, i32, i32
  }
  func.func @transform_4(%arg0: i32) -> (i32, i32, i32) {
    %c0_i32 = arith.constant 0 : i32
    %c0_i32_0 = arith.constant 0 : i32
    %c0_i32_1 = arith.constant 0 : i32
    return %arg0, %c0_i32, %c0_i32_0 : i32, i32, i32
  }
}

module attributes {stable_mosaic.version = 11 : i64} {
  func.func @_matmul_kernel(%arg0: i32, %arg1: memref<128x288xbf16, #tpu.memory_space<vmem>>, %arg2: memref<288x64xbf16, #tpu.memory_space<vmem>>, %arg3: memref<128x64xbf16, #tpu.memory_space<vmem>>, %arg4: memref<1x1x64xf32, #tpu.memory_space<vmem>>, %arg5: memref<1x1x64xf32, #tpu.memory_space<vmem>>) attributes {dimension_semantics = [#tpu.dimension_semantics<parallel>], iteration_bounds = array<i64: 1>, scalar_prefetch = 0 : i64, scratch_operands = 0 : i64, tpu.core_type = #tpu.core_type<tc>, window_params = [{transform_indices = @transform_0, window_bounds = array<i64: 128, 288>}, {pipeline_mode = #tpu.pipeline_mode<synchronous>, transform_indices = @transform_1, window_bounds = array<i64: 288, 64>}, {transform_indices = @transform_2, window_bounds = array<i64: 128, 64>}, {transform_indices = @transform_3, window_bounds = array<i64: 1, 1, 64>}, {transform_indices = @transform_4, window_bounds = array<i64: 1, 1, 64>}]} {
    %c0 = arith.constant 0 : index
    %c0_0 = arith.constant 0 : index
    %0 = vector.load %arg1[%c0, %c0_0] : memref<128x288xbf16, #tpu.memory_space<vmem>>, vector<128x288xbf16>
    %c0_1 = arith.constant 0 : index
    %c0_2 = arith.constant 0 : index
    %1 = vector.load %arg2[%c0_1, %c0_2] : memref<288x64xbf16, #tpu.memory_space<vmem>>, vector<288x64xbf16>
    %cst = arith.constant dense<0.000000e+00> : vector<128x64xf32>
    %2 = tpu.matmul %0, %1, %cst {dimension_numbers = #tpu.dot_dimension_numbers<[1], [0], [0], [1], [0, 0, 1, 1], [], []>} : vector<128x288xbf16>, vector<288x64xbf16>, vector<128x64xf32> -> vector<128x64xf32>
    %3 = arith.truncf %2 : vector<128x64xf32> to vector<128x64xbf16>
    %c0_3 = arith.constant 0 : index
    %c0_4 = arith.constant 0 : index
    %4 = vector.load %arg3[%c0_3, %c0_4] : memref<128x64xbf16, #tpu.memory_space<vmem>>, vector<128x64xbf16>
    tpu.vector_store %arg3[%c0_3, %c0_4], %3 {strides = array<i32>} : memref<128x64xbf16, #tpu.memory_space<vmem>>, vector<128x64xbf16>,
    %cst_5 = arith.constant dense<0.000000e+00> : vector<64xf32>
    %5 = vector.multi_reduction <add>, %2, %cst_5 [0] : vector<128x64xf32> to vector<64xf32>
    %6 = vector.shape_cast %5 : vector<64xf32> to vector<1x64xf32>
    %7 = vector.shape_cast %6 : vector<1x64xf32> to vector<1x1x64xf32>
    %c0_6 = arith.constant 0 : index
    %c0_7 = arith.constant 0 : index
    %c0_8 = arith.constant 0 : index
    %8 = vector.load %arg4[%c0_6, %c0_7, %c0_8] : memref<1x1x64xf32, #tpu.memory_space<vmem>>, vector<1x1x64xf32>
    tpu.vector_store %arg4[%c0_6, %c0_7, %c0_8], %7 {strides = array<i32>} : memref<1x1x64xf32, #tpu.memory_space<vmem>>, vector<1x1x64xf32>,
    %9 = arith.mulf %2, %2 : vector<128x64xf32>
    %cst_9 = arith.constant dense<0.000000e+00> : vector<64xf32>
    %10 = vector.multi_reduction <add>, %9, %cst_9 [0] : vector<128x64xf32> to vector<64xf32>
    %11 = vector.shape_cast %10 : vector<64xf32> to vector<1x64xf32>
    %12 = vector.shape_cast %11 : vector<1x64xf32> to vector<1x1x64xf32>
    %c0_10 = arith.constant 0 : index
    %c0_11 = arith.constant 0 : index
    %c0_12 = arith.constant 0 : index
    %13 = vector.load %arg5[%c0_10, %c0_11, %c0_12] : memref<1x1x64xf32, #tpu.memory_space<vmem>>, vector<1x1x64xf32>
    tpu.vector_store %arg5[%c0_10, %c0_11, %c0_12], %12 {strides = array<i32>} : memref<1x1x64xf32, #tpu.memory_space<vmem>>, vector<1x1x64xf32>,
    return
  }
  func.func @transform_0(%arg0: i32) -> (i32, i32) {
    %c0_i32 = arith.constant 0 : i32
    %c0_i32_0 = arith.constant 0 : i32
    return %arg0, %c0_i32 : i32, i32
  }
  func.func @transform_1(%arg0: i32) -> (i32, i32) {
    %c0_i32 = arith.constant 0 : i32
    %c0_i32_0 = arith.constant 0 : i32
    %c0_i32_1 = arith.constant 0 : i32
    return %c0_i32, %c0_i32_0 : i32, i32
  }
  func.func @transform_2(%arg0: i32) -> (i32, i32) {
    %c0_i32 = arith.constant 0 : i32
    %c0_i32_0 = arith.constant 0 : i32
    return %arg0, %c0_i32 : i32, i32
  }
  func.func @transform_3(%arg0: i32) -> (i32, i32, i32) {
    %c0_i32 = arith.constant 0 : i32
    %c0_i32_0 = arith.constant 0 : i32
    %c0_i32_1 = arith.constant 0 : i32
    return %arg0, %c0_i32, %c0_i32_0 : i32, i32, i32
  }
  func.func @transform_4(%arg0: i32) -> (i32, i32, i32) {
    %c0_i32 = arith.constant 0 : i32
    %c0_i32_0 = arith.constant 0 : i32
    %c0_i32_1 = arith.constant 0 : i32
    return %arg0, %c0_i32, %c0_i32_0 : i32, i32, i32
  }
}

module attributes {stable_mosaic.version = 11 : i64} {
  func.func @_matmul_kernel(%arg0: i32, %arg1: memref<512x144xbf16, #tpu.memory_space<vmem>>, %arg2: memref<144x32xbf16, #tpu.memory_space<vmem>>, %arg3: memref<512x32xbf16, #tpu.memory_space<vmem>>, %arg4: memref<1x1x32xf32, #tpu.memory_space<vmem>>, %arg5: memref<1x1x32xf32, #tpu.memory_space<vmem>>) attributes {dimension_semantics = [#tpu.dimension_semantics<parallel>], iteration_bounds = array<i64: 1>, scalar_prefetch = 0 : i64, scratch_operands = 0 : i64, tpu.core_type = #tpu.core_type<tc>, window_params = [{transform_indices = @transform_0, window_bounds = array<i64: 512, 144>}, {pipeline_mode = #tpu.pipeline_mode<synchronous>, transform_indices = @transform_1, window_bounds = array<i64: 144, 32>}, {transform_indices = @transform_2, window_bounds = array<i64: 512, 32>}, {transform_indices = @transform_3, window_bounds = array<i64: 1, 1, 32>}, {transform_indices = @transform_4, window_bounds = array<i64: 1, 1, 32>}]} {
    %c0 = arith.constant 0 : index
    %c0_0 = arith.constant 0 : index
    %0 = vector.load %arg1[%c0, %c0_0] : memref<512x144xbf16, #tpu.memory_space<vmem>>, vector<512x144xbf16>
    %c0_1 = arith.constant 0 : index
    %c0_2 = arith.constant 0 : index
    %1 = vector.load %arg2[%c0_1, %c0_2] : memref<144x32xbf16, #tpu.memory_space<vmem>>, vector<144x32xbf16>
    %cst = arith.constant dense<0.000000e+00> : vector<512x32xf32>
    %2 = tpu.matmul %0, %1, %cst {dimension_numbers = #tpu.dot_dimension_numbers<[1], [0], [0], [1], [0, 0, 1, 1], [], []>} : vector<512x144xbf16>, vector<144x32xbf16>, vector<512x32xf32> -> vector<512x32xf32>
    %3 = arith.truncf %2 : vector<512x32xf32> to vector<512x32xbf16>
    %c0_3 = arith.constant 0 : index
    %c0_4 = arith.constant 0 : index
    %4 = vector.load %arg3[%c0_3, %c0_4] : memref<512x32xbf16, #tpu.memory_space<vmem>>, vector<512x32xbf16>
    tpu.vector_store %arg3[%c0_3, %c0_4], %3 {strides = array<i32>} : memref<512x32xbf16, #tpu.memory_space<vmem>>, vector<512x32xbf16>,
    %cst_5 = arith.constant dense<0.000000e+00> : vector<32xf32>
    %5 = vector.multi_reduction <add>, %2, %cst_5 [0] : vector<512x32xf32> to vector<32xf32>
    %6 = vector.shape_cast %5 : vector<32xf32> to vector<1x32xf32>
    %7 = vector.shape_cast %6 : vector<1x32xf32> to vector<1x1x32xf32>
    %c0_6 = arith.constant 0 : index
    %c0_7 = arith.constant 0 : index
    %c0_8 = arith.constant 0 : index
    %8 = vector.load %arg4[%c0_6, %c0_7, %c0_8] : memref<1x1x32xf32, #tpu.memory_space<vmem>>, vector<1x1x32xf32>
    tpu.vector_store %arg4[%c0_6, %c0_7, %c0_8], %7 {strides = array<i32>} : memref<1x1x32xf32, #tpu.memory_space<vmem>>, vector<1x1x32xf32>,
    %9 = arith.mulf %2, %2 : vector<512x32xf32>
    %cst_9 = arith.constant dense<0.000000e+00> : vector<32xf32>
    %10 = vector.multi_reduction <add>, %9, %cst_9 [0] : vector<512x32xf32> to vector<32xf32>
    %11 = vector.shape_cast %10 : vector<32xf32> to vector<1x32xf32>
    %12 = vector.shape_cast %11 : vector<1x32xf32> to vector<1x1x32xf32>
    %c0_10 = arith.constant 0 : index
    %c0_11 = arith.constant 0 : index
    %c0_12 = arith.constant 0 : index
    %13 = vector.load %arg5[%c0_10, %c0_11, %c0_12] : memref<1x1x32xf32, #tpu.memory_space<vmem>>, vector<1x1x32xf32>
    tpu.vector_store %arg5[%c0_10, %c0_11, %c0_12], %12 {strides = array<i32>} : memref<1x1x32xf32, #tpu.memory_space<vmem>>, vector<1x1x32xf32>,
    return
  }
  func.func @transform_0(%arg0: i32) -> (i32, i32) {
    %c0_i32 = arith.constant 0 : i32
    %c0_i32_0 = arith.constant 0 : i32
    return %arg0, %c0_i32 : i32, i32
  }
  func.func @transform_1(%arg0: i32) -> (i32, i32) {
    %c0_i32 = arith.constant 0 : i32
    %c0_i32_0 = arith.constant 0 : i32
    %c0_i32_1 = arith.constant 0 : i32
    return %c0_i32, %c0_i32_0 : i32, i32
  }
  func.func @transform_2(%arg0: i32) -> (i32, i32) {
    %c0_i32 = arith.constant 0 : i32
    %c0_i32_0 = arith.constant 0 : i32
    return %arg0, %c0_i32 : i32, i32
  }
  func.func @transform_3(%arg0: i32) -> (i32, i32, i32) {
    %c0_i32 = arith.constant 0 : i32
    %c0_i32_0 = arith.constant 0 : i32
    %c0_i32_1 = arith.constant 0 : i32
    return %arg0, %c0_i32, %c0_i32_0 : i32, i32, i32
  }
  func.func @transform_4(%arg0: i32) -> (i32, i32, i32) {
    %c0_i32 = arith.constant 0 : i32
    %c0_i32_0 = arith.constant 0 : i32
    %c0_i32_1 = arith.constant 0 : i32
    return %arg0, %c0_i32, %c0_i32_0 : i32, i32, i32
  }
}

module attributes {stable_mosaic.version = 11 : i64} {
  func.func @_matmul_kernel(%arg0: i32, %arg1: memref<2048x72xbf16, #tpu.memory_space<vmem>>, %arg2: memref<72x12xbf16, #tpu.memory_space<vmem>>, %arg3: memref<1x12xf32, #tpu.memory_space<vmem>>, %arg4: memref<2048x12xf32, #tpu.memory_space<vmem>>) attributes {dimension_semantics = [#tpu.dimension_semantics<parallel>], iteration_bounds = array<i64: 1>, scalar_prefetch = 0 : i64, scratch_operands = 0 : i64, tpu.core_type = #tpu.core_type<tc>, window_params = [{transform_indices = @transform_0, window_bounds = array<i64: 2048, 72>}, {pipeline_mode = #tpu.pipeline_mode<synchronous>, transform_indices = @transform_1, window_bounds = array<i64: 72, 12>}, {pipeline_mode = #tpu.pipeline_mode<synchronous>, transform_indices = @transform_2, window_bounds = array<i64: 1, 12>}, {transform_indices = @transform_3, window_bounds = array<i64: 2048, 12>}]} {
    %c0 = arith.constant 0 : index
    %c0_0 = arith.constant 0 : index
    %0 = vector.load %arg1[%c0, %c0_0] : memref<2048x72xbf16, #tpu.memory_space<vmem>>, vector<2048x72xbf16>
    %c0_1 = arith.constant 0 : index
    %c0_2 = arith.constant 0 : index
    %1 = vector.load %arg2[%c0_1, %c0_2] : memref<72x12xbf16, #tpu.memory_space<vmem>>, vector<72x12xbf16>
    %cst = arith.constant dense<0.000000e+00> : vector<2048x12xf32>
    %2 = tpu.matmul %0, %1, %cst {dimension_numbers = #tpu.dot_dimension_numbers<[1], [0], [0], [1], [0, 0, 1, 1], [], []>} : vector<2048x72xbf16>, vector<72x12xbf16>, vector<2048x12xf32> -> vector<2048x12xf32>
    %c0_3 = arith.constant 0 : index
    %c0_4 = arith.constant 0 : index
    %3 = vector.load %arg3[%c0_3, %c0_4] : memref<1x12xf32, #tpu.memory_space<vmem>>, vector<1x12xf32>
    %4 = vector.broadcast %3 : vector<1x12xf32> to vector<2048x12xf32>
    %5 = arith.addf %2, %4 : vector<2048x12xf32>
    %6 = math.tanh %5 : vector<2048x12xf32>
    %c0_5 = arith.constant 0 : index
    %c0_6 = arith.constant 0 : index
    %7 = vector.load %arg4[%c0_5, %c0_6] : memref<2048x12xf32, #tpu.memory_space<vmem>>, vector<2048x12xf32>
    tpu.vector_store %arg4[%c0_5, %c0_6], %6 {strides = array<i32>} : memref<2048x12xf32, #tpu.memory_space<vmem>>, vector<2048x12xf32>,
    return
  }
  func.func @transform_0(%arg0: i32) -> (i32, i32) {
    %c0_i32 = arith.constant 0 : i32
    %c0_i32_0 = arith.constant 0 : i32
    return %arg0, %c0_i32 : i32, i32
  }
  func.func @transform_1(%arg0: i32) -> (i32, i32) {
    %c0_i32 = arith.constant 0 : i32
    %c0_i32_0 = arith.constant 0 : i32
    %c0_i32_1 = arith.constant 0 : i32
    return %c0_i32, %c0_i32_0 : i32, i32
  }
  func.func @transform_2(%arg0: i32) -> (i32, i32) {
    %c0_i32 = arith.constant 0 : i32
    %c0_i32_0 = arith.constant 0 : i32
    %c0_i32_1 = arith.constant 0 : i32
    return %c0_i32, %c0_i32_0 : i32, i32
  }
  func.func @transform_3(%arg0: i32) -> (i32, i32) {
    %c0_i32 = arith.constant 0 : i32
    %c0_i32_0 = arith.constant 0 : i32
    return %arg0, %c0_i32 : i32, i32
  }
}

</mosaic_0001>

<bundles_post_ra>
// kernel: netG_forward.10
= control target key start
LH: loop header
LB: loop body
LE: loop exit
PB: predicated region body
PF: predicated region fallthrough
CT: control target
= control target key end

     0   :  { %vm942_vm0 = vcmask 392192   ;;  %vm4176_vm1 = vcmask 60416   ;;  %s8258_s1 = inlined_call_operand.vmem [shape: bf16[48,8], index: 1, kind: input, shape index: {}]   ;;  %s8259_s0 = inlined_call_operand.vmem [shape: bf16[2048,48], index: 0, kind: input, shape index: {}]   ;;  %s8260_s2 = inlined_call_operand.vmem [shape: f32[1,8], index: 2, kind: input, shape index: {}]   ;;  %s8261_s3 = inlined_call_operand.vmem [shape: bf16[2048,8], index: 3, kind: output, shape index: {}]  }
   0x1   :  { %v5608_v0 = vld [vmem:[%s8258_s1] sm:$0xff]   ;;  %v5609_v1 = vld [vmem:[%s8258_s1 + $0x8] sm:$0xff]   ;;  %v5610_v2 = vld [vmem:[%s8258_s1 + $0x10] sm:$0xff]  }
   0x2   :  { %5340 = vmatprep.subr.bf16.mxu0 %v5608_v0  ;;  %5602 = vmatprep.subr.bf16.mxu1 %v5608_v0  ;;  %v5611_v3 = vld [vmem:[%s8259_s0] sm:$0xff]   ;;  %v5613_v5 = vld [vmem:[%s8259_s0 + $0x8] sm:$0xff]   ;;  %v5615_v7 = vld [vmem:[%s8259_s0 + $0x10] sm:$0xff]  }
   0x3   :  { %5341 = vmatpush3.bf16.msra.mxu0 %v5608_v0  ;;  %5605 = vmatpush3.bf16.msra.mxu1 %v5608_v0  ;;  %v5612_v4 = vld [vmem:[%s8259_s0 + $0x200] sm:$0xff]   ;;  %v5614_v6 = vld [vmem:[%s8259_s0 + $0x208] sm:$0xff]   ;;  %v5616_v8 = vld [vmem:[%s8259_s0 + $0x210] sm:$0xff]  }
   0x4   :  { %5342 = vmatprep.subr.bf16.mxu0 %v5609_v1  ;;  %5603 = vmatprep.subr.bf16.mxu1 %v5609_v1  ;;  %v5617_v9 = vld [vmem:[%s8259_s0 + $0x18] sm:$0xff]   ;;  %v5619_v11 = vld [vmem:[%s8259_s0 + $0x20] sm:$0xff]   ;;  %v5621_v13 = vld [vmem:[%s8259_s0 + $0x28] sm:$0xff]  }
   0x5   :  { %5346 = vmatprep.mubr.msk.bf16.mxu0 %vm942_vm0, %v5611_v3  ;;  %5474 = vmatprep.mubr.msk.bf16.mxu1 %vm942_vm0, %v5612_v4  ;;  %v5618_v10 = vld [vmem:[%s8259_s0 + $0x218] sm:$0xff]   ;;  %v5620_v12 = vld [vmem:[%s8259_s0 + $0x220] sm:$0xff]   ;;  %v5622_v14 = vld [vmem:[%s8259_s0 + $0x228] sm:$0xff]  }
   0x6   :  { %v5623_v15 = vld [vmem:[%s8259_s0 + $0x30] sm:$0xff]   ;;  %v5625_v17 = vld [vmem:[%s8259_s0 + $0x38] sm:$0xff]   ;;  %v5627_v19 = vld [vmem:[%s8259_s0 + $0x40] sm:$0xff]  }
   0x7   :  { %5343 = vmatpush3.bf16.msra.mxu0 %v5609_v1  ;;  %5606 = vmatpush3.bf16.msra.mxu1 %v5609_v1  ;;  %v5624_v16 = vld [vmem:[%s8259_s0 + $0x230] sm:$0xff]   ;;  %v5626_v18 = vld [vmem:[%s8259_s0 + $0x238] sm:$0xff]   ;;  %v5628_v20 = vld [vmem:[%s8259_s0 + $0x240] sm:$0xff]  }
   0x8   :  { %5344 = vmatprep.subr.bf16.mxu0 %v5610_v2  ;;  %5604 = vmatprep.subr.bf16.mxu1 %v5610_v2  ;;  %v5629_v21 = vld [vmem:[%s8259_s0 + $0x48] sm:$0xff]   ;;  %v5631_v23 = vld [vmem:[%s8259_s0 + $0x50] sm:$0xff]   ;;  %v5633_v25 = vld [vmem:[%s8259_s0 + $0x58] sm:$0xff]  }
   0x9   :  { %v5630_v22 = vld [vmem:[%s8259_s0 + $0x248] sm:$0xff]   ;;  %v5632_v24 = vld [vmem:[%s8259_s0 + $0x250] sm:$0xff]   ;;  %v5634_v26 = vld [vmem:[%s8259_s0 + $0x258] sm:$0xff]  }
   0xa   :  { %v5635_v27 = vld [vmem:[%s8259_s0 + $0x60] sm:$0xff]   ;;  %v5637_v29 = vld [vmem:[%s8259_s0 + $0x68] sm:$0xff]   ;;  %v5639_v31 = vld [vmem:[%s8259_s0 + $0x70] sm:$0xff]  }
   0xb   :  { %5345 = vmatpush3.bf16.msra.mxu0 %v5610_v2  ;;  %5607 = vmatpush3.bf16.msra.mxu1 %v5610_v2  ;;  %v5636_v28 = vld [vmem:[%s8259_s0 + $0x260] sm:$0xff]   ;;  %v5638_v30 = vld [vmem:[%s8259_s0 + $0x268] sm:$0xff]   ;;  %v5640_v32 = vld [vmem:[%s8259_s0 + $0x270] sm:$0xff]  }
   0xc   :  { %v5641_v33 = vld [vmem:[%s8259_s0 + $0x78] sm:$0xff]   ;;  %v5643_v35 = vld [vmem:[%s8259_s0 + $0x80] sm:$0xff]   ;;  %v5645_v37 = vld [vmem:[%s8259_s0 + $0x88] sm:$0xff]  }
   0xd   :  { %v5642_v34 = vld [vmem:[%s8259_s0 + $0x278] sm:$0xff]   ;;  %v5644_v36 = vld [vmem:[%s8259_s0 + $0x280] sm:$0xff]   ;;  %v5646_v38 = vld [vmem:[%s8259_s0 + $0x288] sm:$0xff]  }
   0xe   :  { %5347 = vmatmul.mubr.msk.bf16.vlgmr.msra.gmra.mrb[0].mxu0 %vm942_vm0, %v5613_v5  ;;  %5475 = vmatmul.mubr.msk.bf16.vlgmr.msra.gmra.mrb[0].mxu1 %vm942_vm0, %v5614_v6  ;;  %v5647_v39 = vld [vmem:[%s8259_s0 + $0x90] sm:$0xff]   ;;  %v5649_v41 = vld [vmem:[%s8259_s0 + $0x98] sm:$0xff]   ;;  %v5651_v43 = vld [vmem:[%s8259_s0 + $0xa0] sm:$0xff]  }
   0xf   :  { %5350 = vmatprep.mubr.msk.bf16.mxu0 %vm942_vm0, %v5615_v7  ;;  %5478 = vmatprep.mubr.msk.bf16.mxu1 %vm942_vm0, %v5616_v8  ;;  %v5648_v40 = vld [vmem:[%s8259_s0 + $0x290] sm:$0xff]   ;;  %v5650_v42 = vld [vmem:[%s8259_s0 + $0x298] sm:$0xff]   ;;  %v5652_v44 = vld [vmem:[%s8259_s0 + $0x2a0] sm:$0xff]  }
  0x10   :  { %v5653_v45 = vld [vmem:[%s8259_s0 + $0xa8] sm:$0xff]   ;;  %v5655_v47 = vld [vmem:[%s8259_s0 + $0xb0] sm:$0xff]   ;;  %v5657_v49 = vld [vmem:[%s8259_s0 + $0xb8] sm:$0xff]  }
  0x11   :  { %v5654_v46 = vld [vmem:[%s8259_s0 + $0x2a8] sm:$0xff]   ;;  %v5656_v48 = vld [vmem:[%s8259_s0 + $0x2b0] sm:$0xff]   ;;  %v5658_v50 = vld [vmem:[%s8259_s0 + $0x2b8] sm:$0xff]  }
  0x12   :  { %v5659_v51 = vld [vmem:[%s8259_s0 + $0xc0] sm:$0xff]   ;;  %v5661_v53 = vld [vmem:[%s8259_s0 + $0xc8] sm:$0xff]   ;;  %v5663_v55 = vld [vmem:[%s8259_s0 + $0xd0] sm:$0xff]  }
  0x13   :  { %v5660_v52 = vld [vmem:[%s8259_s0 + $0x2c0] sm:$0xff]   ;;  %v5662_v54 = vld [vmem:[%s8259_s0 + $0x2c8] sm:$0xff]   ;;  %v5664_v56 = vld [vmem:[%s8259_s0 + $0x2d0] sm:$0xff]  }
  0x14   :  { %v5665_v57 = vld [vmem:[%s8259_s0 + $0xd8] sm:$0xff]   ;;  %v5667_v59 = vld [vmem:[%s8259_s0 + $0xe0] sm:$0xff]   ;;  %v5669_v61 = vld [vmem:[%s8259_s0 + $0xe8] sm:$0xff]  }
  0x15   :  { %v5666_v58 = vld [vmem:[%s8259_s0 + $0x2d8] sm:$0xff]   ;;  %v5668_v60 = vld [vmem:[%s8259_s0 + $0x2e0] sm:$0xff]   ;;  %v5670_v62 = vld [vmem:[%s8259_s0 + $0x2e8] sm:$0xff]  }
  0x16   :  { %5351 = vmatmul.mubr.msk.bf16.gmra.mrb[4].mxu0 %vm942_vm0, %v5617_v9  ;;  %5479 = vmatmul.mubr.msk.bf16.gmra.mrb[4].mxu1 %vm942_vm0, %v5618_v10  ;;  %v5671_v63 = vld [vmem:[%s8259_s0 + $0xf0] sm:$0xff]   ;;  %v5673_v1 = vld [vmem:[%s8259_s0 + $0xf8] sm:$0xff]   ;;  %v5675_v3 = vld [vmem:[%s8259_s0 + $0x100] sm:$0xff]  }
  0x17   :  { %5354 = vmatprep.mubr.msk.bf16.mxu0 %vm942_vm0, %v5619_v11  ;;  %5482 = vmatprep.mubr.msk.bf16.mxu1 %vm942_vm0, %v5620_v12  ;;  %v5672_v0 = vld [vmem:[%s8259_s0 + $0x2f0] sm:$0xff]   ;;  %v5674_v2 = vld [vmem:[%s8259_s0 + $0x2f8] sm:$0xff]   ;;  %v5676_v4 = vld [vmem:[%s8259_s0 + $0x300] sm:$0xff]  }
  0x18   :  { %v5677_v5 = vld [vmem:[%s8259_s0 + $0x108] sm:$0xff]   ;;  %v5679_v7 = vld [vmem:[%s8259_s0 + $0x110] sm:$0xff]   ;;  %v5681_v9 = vld [vmem:[%s8259_s0 + $0x118] sm:$0xff]  }
  0x19   :  { %v5678_v6 = vld [vmem:[%s8259_s0 + $0x308] sm:$0xff]   ;;  %v5680_v8 = vld [vmem:[%s8259_s0 + $0x310] sm:$0xff]   ;;  %v5682_v10 = vld [vmem:[%s8259_s0 + $0x318] sm:$0xff]  }
  0x1a   :  { %v5683_v11 = vld [vmem:[%s8259_s0 + $0x120] sm:$0xff]  }
  0x1b   :  { %v5684_v12 = vld [vmem:[%s8259_s0 + $0x320] sm:$0xff]  }
  0x1e   :  { %5355 = vmatmul.mubr.msk.bf16.gmra.mrb[8].mxu0 %vm942_vm0, %v5621_v13  ;;  %5483 = vmatmul.mubr.msk.bf16.gmra.mrb[8].mxu1 %vm942_vm0, %v5622_v14  ;;  %v5685_v13 = vld [vmem:[%s8259_s0 + $0x128] sm:$0xff]  }
  0x1f   :  { %5358 = vmatprep.mubr.msk.bf16.mxu0 %vm942_vm0, %v5623_v15  ;;  %5486 = vmatprep.mubr.msk.bf16.mxu1 %vm942_vm0, %v5624_v16  ;;  %v5686_v14 = vld [vmem:[%s8259_s0 + $0x328] sm:$0xff]   ;;  %v5687_v15 = vld [vmem:[%s8259_s0 + $0x130] sm:$0xff]  }
  0x20   :  { %v5688_v16 = vld [vmem:[%s8259_s0 + $0x330] sm:$0xff]  }
  0x26   :  { %5359 = vmatmul.mubr.msk.bf16.gmra.mrb[12].mxu0 %vm942_vm0, %v5625_v17  ;;  %5487 = vmatmul.mubr.msk.bf16.gmra.mrb[12].mxu1 %vm942_vm0, %v5626_v18  ;;  %v5689_v17 = vld [vmem:[%s8259_s0 + $0x138] sm:$0xff]  }
  0x27   :  { %5362 = vmatprep.mubr.msk.bf16.mxu0 %vm942_vm0, %v5627_v19  ;;  %5490 = vmatprep.mubr.msk.bf16.mxu1 %vm942_vm0, %v5628_v20  ;;  %v5690_v18 = vld [vmem:[%s8259_s0 + $0x338] sm:$0xff]   ;;  %v5691_v19 = vld [vmem:[%s8259_s0 + $0x140] sm:$0xff]  }
  0x28   :  { %v5692_v20 = vld [vmem:[%s8259_s0 + $0x340] sm:$0xff]  }
  0x2e   :  { %5363 = vmatmul.mubr.msk.bf16.gmra.mrb[16].mxu0 %vm942_vm0, %v5629_v21  ;;  %5491 = vmatmul.mubr.msk.bf16.gmra.mrb[16].mxu1 %vm942_vm0, %v5630_v22  ;;  %v5693_v21 = vld [vmem:[%s8259_s0 + $0x148] sm:$0xff]  }
  0x2f   :  { %5366 = vmatprep.mubr.msk.bf16.mxu0 %vm942_vm0, %v5631_v23  ;;  %5494 = vmatprep.mubr.msk.bf16.mxu1 %vm942_vm0, %v5632_v24  ;;  %v5694_v22 = vld [vmem:[%s8259_s0 + $0x348] sm:$0xff]   ;;  %v5695_v23 = vld [vmem:[%s8259_s0 + $0x150] sm:$0xff]  }
  0x30   :  { %v5696_v24 = vld [vmem:[%s8259_s0 + $0x350] sm:$0xff]  }
  0x36   :  { %5367 = vmatmul.mubr.msk.bf16.gmra.mrb[20].mxu0 %vm942_vm0, %v5633_v25  ;;  %5495 = vmatmul.mubr.msk.bf16.gmra.mrb[20].mxu1 %vm942_vm0, %v5634_v26  ;;  %v5697_v25 = vld [vmem:[%s8259_s0 + $0x158] sm:$0xff]  }
  0x37   :  { %5370 = vmatprep.mubr.msk.bf16.mxu0 %vm942_vm0, %v5635_v27  ;;  %5498 = vmatprep.mubr.msk.bf16.mxu1 %vm942_vm0, %v5636_v28  ;;  %v5698_v26 = vld [vmem:[%s8259_s0 + $0x358] sm:$0xff]   ;;  %v5699_v27 = vld [vmem:[%s8259_s0 + $0x160] sm:$0xff]  }
  0x38   :  { %v5700_v28 = vld [vmem:[%s8259_s0 + $0x360] sm:$0xff]  }
  0x3e   :  { %5371 = vmatmul.mubr.msk.bf16.gmra.mrb[24].mxu0 %vm942_vm0, %v5637_v29  ;;  %5499 = vmatmul.mubr.msk.bf16.gmra.mrb[24].mxu1 %vm942_vm0, %v5638_v30  ;;  %v5701_v29 = vld [vmem:[%s8259_s0 + $0x168] sm:$0xff]  }
  0x3f   :  { %5374 = vmatprep.mubr.msk.bf16.mxu0 %vm942_vm0, %v5639_v31  ;;  %5502 = vmatprep.mubr.msk.bf16.mxu1 %vm942_vm0, %v5640_v32  ;;  %v5702_v30 = vld [vmem:[%s8259_s0 + $0x368] sm:$0xff]   ;;  %v5703_v31 = vld [vmem:[%s8259_s0 + $0x170] sm:$0xff]  }
  0x40   :  { %v5704_v32 = vld [vmem:[%s8259_s0 + $0x370] sm:$0xff]  }
  0x46   :  { %5375 = vmatmul.mubr.msk.bf16.gmra.mrb[28].mxu0 %vm942_vm0, %v5641_v33  ;;  %5503 = vmatmul.mubr.msk.bf16.gmra.mrb[28].mxu1 %vm942_vm0, %v5642_v34  ;;  %v5705_v33 = vld [vmem:[%s8259_s0 + $0x178] sm:$0xff]  }
  0x47   :  { %5378 = vmatprep.mubr.msk.bf16.mxu0 %vm942_vm0, %v5643_v35  ;;  %5506 = vmatprep.mubr.msk.bf16.mxu1 %vm942_vm0, %v5644_v36  ;;  %v5706_v34 = vld [vmem:[%s8259_s0 + $0x378] sm:$0xff]   ;;  %v5707_v35 = vld [vmem:[%s8259_s0 + $0x180] sm:$0xff]  }
  0x48   :  { %v5708_v36 = vld [vmem:[%s8259_s0 + $0x380] sm:$0xff]  }
  0x4e   :  { %5379 = vmatmul.mubr.msk.bf16.gmra.mrb[32].mxu0 %vm942_vm0, %v5645_v37  ;;  %5507 = vmatmul.mubr.msk.bf16.gmra.mrb[32].mxu1 %vm942_vm0, %v5646_v38  ;;  %v5709_v37 = vld [vmem:[%s8259_s0 + $0x188] sm:$0xff]  }
  0x4f   :  { %5382 = vmatprep.mubr.msk.bf16.mxu0 %vm942_vm0, %v5647_v39  ;;  %5510 = vmatprep.mubr.msk.bf16.mxu1 %vm942_vm0, %v5648_v40  ;;  %v5710_v38 = vld [vmem:[%s8259_s0 + $0x388] sm:$0xff]   ;;  %v5711_v39 = vld [vmem:[%s8259_s0 + $0x190] sm:$0xff]  }
  0x50   :  { %v5712_v40 = vld [vmem:[%s8259_s0 + $0x390] sm:$0xff]  }
  0x56   :  { %5383 = vmatmul.mubr.msk.bf16.gmra.mrb[36].mxu0 %vm942_vm0, %v5649_v41  ;;  %5511 = vmatmul.mubr.msk.bf16.gmra.mrb[36].mxu1 %vm942_vm0, %v5650_v42  ;;  %v5713_v41 = vld [vmem:[%s8259_s0 + $0x198] sm:$0xff]  }
  0x57   :  { %5386 = vmatprep.mubr.msk.bf16.mxu0 %vm942_vm0, %v5651_v43  ;;  %5514 = vmatprep.mubr.msk.bf16.mxu1 %vm942_vm0, %v5652_v44  ;;  %v5714_v42 = vld [vmem:[%s8259_s0 + $0x398] sm:$0xff]   ;;  %v5715_v43 = vld [vmem:[%s8259_s0 + $0x1a0] sm:$0xff]  }
  0x58   :  { %v5716_v44 = vld [vmem:[%s8259_s0 + $0x3a0] sm:$0xff]  }
  0x5e   :  { %5387 = vmatmul.mubr.msk.bf16.gmra.mrb[40].mxu0 %vm942_vm0, %v5653_v45  ;;  %5515 = vmatmul.mubr.msk.bf16.gmra.mrb[40].mxu1 %vm942_vm0, %v5654_v46  ;;  %v5717_v45 = vld [vmem:[%s8259_s0 + $0x1a8] sm:$0xff]  }
  0x5f   :  { %5390 = vmatprep.mubr.msk.bf16.mxu0 %vm942_vm0, %v5655_v47  ;;  %5518 = vmatprep.mubr.msk.bf16.mxu1 %vm942_vm0, %v5656_v48  ;;  %v5718_v46 = vld [vmem:[%s8259_s0 + $0x3a8] sm:$0xff]   ;;  %v5719_v47 = vld [vmem:[%s8259_s0 + $0x1b0] sm:$0xff]  }
  0x60   :  { %v5720_v48 = vld [vmem:[%s8259_s0 + $0x3b0] sm:$0xff]  }
  0x66   :  { %5391 = vmatmul.mubr.msk.bf16.gmra.mrb[44].mxu0 %vm942_vm0, %v5657_v49  ;;  %5519 = vmatmul.mubr.msk.bf16.gmra.mrb[44].mxu1 %vm942_vm0, %v5658_v50  ;;  %v6212_v49 = vld [vmem:[%s8260_s2] ss:$0 sm:$0xff] }
  0x67   :  { %5394 = vmatprep.mubr.msk.bf16.mxu0 %vm942_vm0, %v5659_v51  ;;  %5522 = vmatprep.mubr.msk.bf16.mxu1 %vm942_vm0, %v5660_v52 }
  0x6e   :  { %5395 = vmatmul.mubr.msk.bf16.gmra.mrb[48].mxu0 %vm942_vm0, %v5661_v53  ;;  %5523 = vmatmul.mubr.msk.bf16.gmra.mrb[48].mxu1 %vm942_vm0, %v5662_v54 }
  0x6f   :  { %5398 = vmatprep.mubr.msk.bf16.mxu0 %vm942_vm0, %v5663_v55  ;;  %5526 = vmatprep.mubr.msk.bf16.mxu1 %vm942_vm0, %v5664_v56  ;;  %v5721_v56 = vld [vmem:[%s8259_s0 + $0x1b8] sm:$0xff]  }
  0x76   :  { %5399 = vmatmul.mubr.msk.bf16.gmra.mrb[52].mxu0 %vm942_vm0, %v5665_v57  ;;  %5527 = vmatmul.mubr.msk.bf16.gmra.mrb[52].mxu1 %vm942_vm0, %v5666_v58 }
  0x77   :  { %5402 = vmatprep.mubr.msk.bf16.mxu0 %vm942_vm0, %v5667_v59  ;;  %5530 = vmatprep.mubr.msk.bf16.mxu1 %vm942_vm0, %v5668_v60 }
  0x7e   :  { %5403 = vmatmul.mubr.msk.bf16.gmra.mrb[56].mxu0 %vm942_vm0, %v5669_v61  ;;  %5531 = vmatmul.mubr.msk.bf16.gmra.mrb[56].mxu1 %vm942_vm0, %v5670_v62  ;;  %v5722_v61 = vld [vmem:[%s8259_s0 + $0x3b8] sm:$0xff]   ;;  %v5723_v62 = vld [vmem:[%s8259_s0 + $0x1c0] sm:$0xff]  }
  0x7f   :  { %5406 = vmatprep.mubr.msk.bf16.mxu0 %vm942_vm0, %v5671_v63  ;;  %5534 = vmatprep.mubr.msk.bf16.mxu1 %vm942_vm0, %v5672_v0  ;;  %v5724_v63 = vld [vmem:[%s8259_s0 + $0x3c0] sm:$0xff]  }
  0x86   :  { %5407 = vmatmul.mubr.msk.bf16.gmra.mrb[60].mxu0 %vm942_vm0, %v5673_v1  ;;  %5535 = vmatmul.mubr.msk.bf16.gmra.mrb[60].mxu1 %vm942_vm0, %v5674_v2 }
  0x87   :  { %5410 = vmatprep.mubr.msk.bf16.mxu0 %vm942_vm0, %v5675_v3  ;;  %5538 = vmatprep.mubr.msk.bf16.mxu1 %vm942_vm0, %v5676_v4 }
  0x8e   :  { %5411 = vmatmul.mubr.msk.bf16.gmra.mrb[64].mxu0 %vm942_vm0, %v5677_v5  ;;  %5539 = vmatmul.mubr.msk.bf16.gmra.mrb[64].mxu1 %vm942_vm0, %v5678_v6 }
  0x8f   :  { %5414 = vmatprep.mubr.msk.bf16.mxu0 %vm942_vm0, %v5679_v7  ;;  %5542 = vmatprep.mubr.msk.bf16.mxu1 %vm942_vm0, %v5680_v8 }
  0x96   :  { %5415 = vmatmul.mubr.msk.bf16.gmra.mrb[68].mxu0 %vm942_vm0, %v5681_v9  ;;  %5543 = vmatmul.mubr.msk.bf16.gmra.mrb[68].mxu1 %vm942_vm0, %v5682_v10 }
  0x97   :  { %5418 = vmatprep.mubr.msk.bf16.mxu0 %vm942_vm0, %v5683_v11  ;;  %5546 = vmatprep.mubr.msk.bf16.mxu1 %vm942_vm0, %v5684_v12 }
  0x9e   :  { %5419 = vmatmul.mubr.msk.bf16.gmra.mrb[72].mxu0 %vm942_vm0, %v5685_v13  ;;  %5547 = vmatmul.mubr.msk.bf16.gmra.mrb[72].mxu1 %vm942_vm0, %v5686_v14 }
  0x9f   :  { %5422 = vmatprep.mubr.msk.bf16.mxu0 %vm942_vm0, %v5687_v15  ;;  %5550 = vmatprep.mubr.msk.bf16.mxu1 %vm942_vm0, %v5688_v16 }
  0xa6   :  { %5423 = vmatmul.mubr.msk.bf16.gmra.mrb[76].mxu0 %vm942_vm0, %v5689_v17  ;;  %5551 = vmatmul.mubr.msk.bf16.gmra.mrb[76].mxu1 %vm942_vm0, %v5690_v18 }
  0xa7   :  { %5426 = vmatprep.mubr.msk.bf16.mxu0 %vm942_vm0, %v5691_v19  ;;  %5554 = vmatprep.mubr.msk.bf16.mxu1 %vm942_vm0, %v5692_v20 }
  0xae   :  { %5427 = vmatmul.mubr.msk.bf16.gmra.mrb[80].mxu0 %vm942_vm0, %v5693_v21  ;;  %5555 = vmatmul.mubr.msk.bf16.gmra.mrb[80].mxu1 %vm942_vm0, %v5694_v22 }
  0xaf   :  { %5430 = vmatprep.mubr.msk.bf16.mxu0 %vm942_vm0, %v5695_v23  ;;  %5558 = vmatprep.mubr.msk.bf16.mxu1 %vm942_vm0, %v5696_v24 }
  0xb6   :  { %5431 = vmatmul.mubr.msk.bf16.gmra.mrb[84].mxu0 %vm942_vm0, %v5697_v25  ;;  %5559 = vmatmul.mubr.msk.bf16.gmra.mrb[84].mxu1 %vm942_vm0, %v5698_v26 }
  0xb7   :  { %5434 = vmatprep.mubr.msk.bf16.mxu0 %vm942_vm0, %v5699_v27  ;;  %5562 = vmatprep.mubr.msk.bf16.mxu1 %vm942_vm0, %v5700_v28  ;;  %v5725_v27 = vld [vmem:[%s8259_s0 + $0x1c8] sm:$0xff]  }
  0xb8   :  { %v5726_v28 = vld [vmem:[%s8259_s0 + $0x3c8] sm:$0xff]  }
  0xbe   :  { %5435 = vmatmul.mubr.msk.bf16.gmra.mrb[88].mxu0 %vm942_vm0, %v5701_v29  ;;  %5563 = vmatmul.mubr.msk.bf16.gmra.mrb[88].mxu1 %vm942_vm0, %v5702_v30  ;;  %v5727_v29 = vld [vmem:[%s8259_s0 + $0x1d0] sm:$0xff]  }
  0xbf   :  { %5438 = vmatprep.mubr.msk.bf16.mxu0 %vm942_vm0, %v5703_v31  ;;  %5566 = vmatprep.mubr.msk.bf16.mxu1 %vm942_vm0, %v5704_v32 }
  0xc6   :  { %5439 = vmatmul.mubr.msk.bf16.gmra.mrb[92].mxu0 %vm942_vm0, %v5705_v33  ;;  %5567 = vmatmul.mubr.msk.bf16.gmra.mrb[92].mxu1 %vm942_vm0, %v5706_v34 }
  0xc7   :  { %5442 = vmatprep.mubr.msk.bf16.mxu0 %vm942_vm0, %v5707_v35  ;;  %5570 = vmatprep.mubr.msk.bf16.mxu1 %vm942_vm0, %v5708_v36  ;;  %v5728_v35 = vld [vmem:[%s8259_s0 + $0x3d0] sm:$0xff]  }
  0xce   :  { %5443 = vmatmul.mubr.msk.bf16.gmra.mrb[96].mxu0 %vm942_vm0, %v5709_v37  ;;  %5571 = vmatmul.mubr.msk.bf16.gmra.mrb[96].mxu1 %vm942_vm0, %v5710_v38 }
  0xcf   :  { %5446 = vmatprep.mubr.msk.bf16.mxu0 %vm942_vm0, %v5711_v39  ;;  %5574 = vmatprep.mubr.msk.bf16.mxu1 %vm942_vm0, %v5712_v40 }
  0xd6   :  { %5447 = vmatmul.mubr.msk.bf16.gmra.mrb[100].mxu0 %vm942_vm0, %v5713_v41  ;;  %5575 = vmatmul.mubr.msk.bf16.gmra.mrb[100].mxu1 %vm942_vm0, %v5714_v42 }
  0xd7   :  { %5450 = vmatprep.mubr.msk.bf16.mxu0 %vm942_vm0, %v5715_v43  ;;  %5578 = vmatprep.mubr.msk.bf16.mxu1 %vm942_vm0, %v5716_v44 }
  0xde   :  { %5451 = vmatmul.mubr.msk.bf16.gmra.mrb[104].mxu0 %vm942_vm0, %v5717_v45  ;;  %5579 = vmatmul.mubr.msk.bf16.gmra.mrb[104].mxu1 %vm942_vm0, %v5718_v46 }
  0xdf   :  { %5454 = vmatprep.mubr.msk.bf16.mxu0 %vm942_vm0, %v5719_v47  ;;  %5582 = vmatprep.mubr.msk.bf16.mxu1 %vm942_vm0, %v5720_v48 }
  0xe1   :  { %v5348_v50 = vpop.f32.mrb[0].mxu0  ;;  %v5476_v51 = vpop.f32.mrb[0].mxu1 }
  0xe2   :  { %v1370_v52 = vadd.f32 %v5348_v50, %v6212_v49  ;;  %v1882_v53 = vadd.f32 %v5476_v51, %v6212_v49  ;;  %v1361_v54 = vpop.f32.mrb[1].mxu0  ;;  %v1873_v55 = vpop.f32.mrb[1].mxu1 }
  0xe3   :  { %v1362_v57 = vadd.f32 %v6212_v49, %v1361_v54  ;;  %v1874_v58 = vadd.f32 %v6212_v49, %v1873_v55  ;;  %v5349_v59 = vpop.f32.mrb[2].mxu0  ;;  %v5477_v60 = vpop.f32.mrb[2].mxu1 }
  0xe4   :  { %vm2386_vm2 = vcmp.gt.f32.partialorder %v1370_v52, 0.0  ;;  %v2642_v0 = vmul.f32 0.2, %v1370_v52  ;;  %vm2514_vm3 = vcmp.gt.f32.partialorder %v1882_v53, 0.0  ;;  %v2770_v1 = vmul.f32 0.2, %v1882_v53 }
  0xe5   :  { %vm2384_vm4 = vcmp.gt.f32.partialorder %v1362_v57, 0.0  ;;  %v2640_v2 = vmul.f32 0.2, %v1362_v57  ;;  %vm2512_vm5 = vcmp.gt.f32.partialorder %v1874_v58, 0.0  ;;  %v2768_v3 = vmul.f32 0.2, %v1874_v58 }
  0xe6   :  { %v2898_v4 = vsel %vm2386_vm2, %v1370_v52, %v2642_v0  ;;  %v3026_v5 = vsel %vm2514_vm3, %v1882_v53, %v2770_v1  ;;  %v1373_v6 = vadd.f32 %v5349_v59, %v6212_v49  ;;  %v1885_v7 = vadd.f32 %v5477_v60, %v6212_v49  ;;  %v1364_v8 = vpop.f32.mrb[3].mxu0  ;;  %v1876_v9 = vpop.f32.mrb[3].mxu1  ;;  %5455 = vmatmul.mubr.msk.bf16.gmra.mrb[108].mxu0 %vm942_vm0, %v5721_v56 }
  0xe7   :  { %v4955_v10 = vpack.c.bf16 %v2898_v4, %v2898_v4  ;;  %v5083_v11 = vpack.c.bf16 %v3026_v5, %v3026_v5  ;;  %v2896_v12 = vsel %vm2384_vm4, %v1362_v57, %v2640_v2  ;;  %v3024_v13 = vsel %vm2512_vm5, %v1874_v58, %v2768_v3  ;;  %5583 = vmatmul.mubr.msk.bf16.gmra.mrb[108].mxu1 %vm942_vm0, %v5722_v61 }
  0xe8   :  { %v4953_v14 = vpack.c.bf16 %v2896_v12, %v2896_v12  ;;  %v5081_v15 = vpack.c.bf16 %v3024_v13, %v3024_v13  ;;  %vm2387_vm6 = vcmp.gt.f32.partialorder %v1373_v6, 0.0  ;;  %v2643_v16 = vmul.f32 0.2, %v1373_v6  ;;  %5458 = vmatprep.mubr.msk.bf16.mxu0 %vm942_vm0, %v5723_v62  ;;  %5586 = vmatprep.mubr.msk.bf16.mxu1 %vm942_vm0, %v5724_v63  ;;  %v5729_v63 = vld [vmem:[%s8259_s0 + $0x1d8] sm:$0xff]   ;;  %v5732_v13 = vld [vmem:[%s8259_s0 + $0x3e0] sm:$0xff]  }
  0xe9   :  { %4179 = vst.msk [vmem:[%s8261_s3 + $0x8] sm:$0xf] %vm4176_vm1, %v4955_v10  ;;  %4307 = vst.msk [vmem:[%s8261_s3 + $0x208] sm:$0xf] %vm4176_vm1, %v5083_v11  ;;  %vm2515_vm7 = vcmp.gt.f32.partialorder %v1885_v7, 0.0  ;;  %v1365_v18 = vadd.f32 %v6212_v49, %v1364_v8  ;;  %v1877_v19 = vadd.f32 %v6212_v49, %v1876_v9  ;;  %v5352_v20 = vpop.f32.mrb[4].mxu0 }
  0xea   :  { %v2771_v17 = vmul.f32 0.2, %v1885_v7  ;;  %v5480_v21 = vpop.f32.mrb[4].mxu1  ;;  %4177 = vst.msk [vmem:[%s8261_s3] sm:$0xf] %vm4176_vm1, %v4953_v14  ;;  %v2899_v22 = vsel %vm2387_vm6, %v1373_v6, %v2643_v16  ;;  %v1386_v23 = vadd.f32 %v5352_v20, %v6212_v49  ;;  %v1377_v25 = vpop.f32.mrb[5].mxu0 }
  0xeb   :  { %4305 = vst.msk [vmem:[%s8261_s3 + $0x200] sm:$0xf] %vm4176_vm1, %v5081_v15  ;;  %v1898_v24 = vadd.f32 %v5480_v21, %v6212_v49  ;;  %v1889_v26 = vpop.f32.mrb[5].mxu1  ;;  %v4956_v30 = vpack.c.bf16 %v2899_v22, %v2899_v22  ;;  %vm2385_vm8 = vcmp.gt.f32.partialorder %v1365_v18, 0.0  ;;  %v2641_v32 = vmul.f32 0.2, %v1365_v18 }
  0xec   :  { %v3027_v31 = vsel %vm2515_vm7, %v1885_v7, %v2771_v17  ;;  %v5353_v33 = vpop.f32.mrb[6].mxu0  ;;  %v5481_v34 = vpop.f32.mrb[6].mxu1  ;;  %vm2513_vm9 = vcmp.gt.f32.partialorder %v1877_v19, 0.0  ;;  %v2769_v37 = vmul.f32 0.2, %v1877_v19  ;;  %vm2390_vm10 = vcmp.gt.f32.partialorder %v1386_v23, 0.0 }
  0xed   :  { %v5084_v36 = vpack.c.bf16 %v3027_v31, %v3027_v31  ;;  %v1380_v38 = vpop.f32.mrb[7].mxu0  ;;  %v1892_v39 = vpop.f32.mrb[7].mxu1  ;;  %4180 = vst.msk [vmem:[%s8261_s3 + $0xc] sm:$0xf] %vm4176_vm1, %v4956_v30  ;;  %v2897_v40 = vsel %vm2385_vm8, %v1365_v18, %v2641_v32  ;;  %v2646_v41 = vmul.f32 0.2, %v1386_v23  ;;  %v1378_v45 = vadd.f32 %v6212_v49, %v1377_v25 }
  0xee   :  { %vm2518_vm11 = vcmp.gt.f32.partialorder %v1898_v24, 0.0  ;;  %v2774_v42 = vmul.f32 0.2, %v1898_v24  ;;  %v4954_v43 = vpack.c.bf16 %v2897_v40, %v2897_v40  ;;  %v3025_v44 = vsel %vm2513_vm9, %v1877_v19, %v2769_v37  ;;  %5459 = vmatmul.mubr.msk.bf16.gmra.mrb[112].mxu0 %vm942_vm0, %v5725_v27  ;;  %v5730_v6 = vld [vmem:[%s8259_s0 + $0x3d8] sm:$0xff]   ;;  %v5731_v7 = vld [vmem:[%s8259_s0 + $0x1e0] sm:$0xff]  }
  0xef   :  { %4308 = vst.msk [vmem:[%s8261_s3 + $0x20c] sm:$0xf] %vm4176_vm1, %v5084_v36  ;;  %v1890_v46 = vadd.f32 %v6212_v49, %v1889_v26  ;;  %v5082_v47 = vpack.c.bf16 %v3025_v44, %v3025_v44  ;;  %v2902_v48 = vsel %vm2390_vm10, %v1386_v23, %v2646_v41  ;;  %v1389_v51 = vadd.f32 %v5353_v33, %v6212_v49 }
  0xf0   :  { %v3030_v50 = vsel %vm2518_vm11, %v1898_v24, %v2774_v42  ;;  %5587 = vmatmul.mubr.msk.bf16.gmra.mrb[112].mxu1 %vm942_vm0, %v5726_v28  ;;  %4178 = vst.msk [vmem:[%s8261_s3 + $0x4] sm:$0xf] %vm4176_vm1, %v4954_v43  ;;  %v4959_v52 = vpack.c.bf16 %v2902_v48, %v2902_v48  ;;  %vm2388_vm12 = vcmp.gt.f32.partialorder %v1378_v45, 0.0  ;;  %v2644_v54 = vmul.f32 0.2, %v1378_v45  ;;  %5462 = vmatprep.mubr.msk.bf16.mxu0 %vm942_vm0, %v5727_v29 }
  0xf1   :  { %v5087_v53 = vpack.c.bf16 %v3030_v50, %v3030_v50  ;;  %5590 = vmatprep.mubr.msk.bf16.mxu1 %vm942_vm0, %v5728_v35  ;;  %4306 = vst.msk [vmem:[%s8261_s3 + $0x204] sm:$0xf] %vm4176_vm1, %v5082_v47  ;;  %vm2516_vm13 = vcmp.gt.f32.partialorder %v1890_v46, 0.0  ;;  %v2772_v55 = vmul.f32 0.2, %v1890_v46  ;;  %vm2391_vm14 = vcmp.gt.f32.partialorder %v1389_v51, 0.0 }
  0xf2   :  { %v2647_v56 = vmul.f32 0.2, %v1389_v51  ;;  %4183 = vst.msk [vmem:[%s8261_s3 + $0x18] sm:$0xf] %vm4176_vm1, %v4959_v52  ;;  %v2900_v57 = vsel %vm2388_vm12, %v1378_v45, %v2644_v54  ;;  %v1901_v58 = vadd.f32 %v5481_v34, %v6212_v49  ;;  %v1381_v59 = vadd.f32 %v6212_v49, %v1380_v38  ;;  %v5356_v61 = vpop.f32.mrb[8].mxu0  ;;  %v5484_v62 = vpop.f32.mrb[8].mxu1 }
  0xf3   :  { %4311 = vst.msk [vmem:[%s8261_s3 + $0x218] sm:$0xf] %vm4176_vm1, %v5087_v53  ;;  %v1893_v60 = vadd.f32 %v6212_v49, %v1892_v39  ;;  %v4957_v0 = vpack.c.bf16 %v2900_v57, %v2900_v57  ;;  %v3028_v1 = vsel %vm2516_vm13, %v1890_v46, %v2772_v55  ;;  %v1402_v3 = vadd.f32 %v5356_v61, %v6212_v49  ;;  %v1393_v4 = vpop.f32.mrb[9].mxu0  ;;  %v1905_v5 = vpop.f32.mrb[9].mxu1  ;;  %v5733_v38 = vld [vmem:[%s8259_s0 + $0x1e8] sm:$0xff]   ;;  %v5735_v46 = vld [vmem:[%s8259_s0 + $0x1f0] sm:$0xff]  }
  0xf4   :  { %v2903_v2 = vsel %vm2391_vm14, %v1389_v51, %v2647_v56  ;;  %v5085_v8 = vpack.c.bf16 %v3028_v1, %v3028_v1  ;;  %vm2519_vm15 = vcmp.gt.f32.partialorder %v1901_v58, 0.0  ;;  %v2775_v10 = vmul.f32 0.2, %v1901_v58  ;;  %v5357_v11 = vpop.f32.mrb[10].mxu0  ;;  %v5485_v12 = vpop.f32.mrb[10].mxu1  ;;  %v5734_v45 = vld [vmem:[%s8259_s0 + $0x3e8] sm:$0xff]  }
  0xf5   :  { %v4960_v9 = vpack.c.bf16 %v2903_v2, %v2903_v2  ;;  %4181 = vst.msk [vmem:[%s8261_s3 + $0x10] sm:$0xf] %vm4176_vm1, %v4957_v0  ;;  %vm2389_vm2 = vcmp.gt.f32.partialorder %v1381_v59, 0.0  ;;  %v2645_v14 = vmul.f32 0.2, %v1381_v59  ;;  %vm2517_vm3 = vcmp.gt.f32.partialorder %v1893_v60, 0.0 }
  0xf6   :  { %v2773_v15 = vmul.f32 0.2, %v1893_v60  ;;  %4309 = vst.msk [vmem:[%s8261_s3 + $0x210] sm:$0xf] %vm4176_vm1, %v5085_v8  ;;  %v3031_v16 = vsel %vm2519_vm15, %v1901_v58, %v2775_v10  ;;  %vm2394_vm4 = vcmp.gt.f32.partialorder %v1402_v3, 0.0  ;;  %v1914_v18 = vadd.f32 %v5484_v62, %v6212_v49  ;;  %v1396_v19 = vpop.f32.mrb[11].mxu0  ;;  %5463 = vmatmul.mubr.msk.bf16.gmra.mrb[116].mxu0 %vm942_vm0, %v5729_v63 }
  0xf7   :  { %4184 = vst.msk [vmem:[%s8261_s3 + $0x1c] sm:$0xf] %vm4176_vm1, %v4960_v9  ;;  %v2650_v17 = vmul.f32 0.2, %v1402_v3  ;;  %v1908_v20 = vpop.f32.mrb[11].mxu1  ;;  %v5088_v21 = vpack.c.bf16 %v3031_v16, %v3031_v16  ;;  %v2901_v22 = vsel %vm2389_vm2, %v1381_v59, %v2645_v14  ;;  %v1394_v24 = vadd.f32 %v6212_v49, %v1393_v4  ;;  %5466 = vmatprep.mubr.msk.bf16.mxu0 %vm942_vm0, %v5731_v7  ;;  %v5736_v53 = vld [vmem:[%s8259_s0 + $0x3f0] sm:$0xff]  }
  0xf8   :  { %v3029_v23 = vsel %vm2517_vm3, %v1893_v60, %v2773_v15  ;;  %5591 = vmatmul.mubr.msk.bf16.gmra.mrb[116].mxu1 %vm942_vm0, %v5730_v6  ;;  %v4958_v25 = vpack.c.bf16 %v2901_v22, %v2901_v22  ;;  %vm2522_vm5 = vcmp.gt.f32.partialorder %v1914_v18, 0.0  ;;  %v2778_v29 = vmul.f32 0.2, %v1914_v18  ;;  %v5737_v14 = vld [vmem:[%s8259_s0 + $0x1f8] sm:$0xff]  }
  0xf9   :  { %v5086_v26 = vpack.c.bf16 %v3029_v23, %v3029_v23  ;;  %v2906_v27 = vsel %vm2394_vm4, %v1402_v3, %v2650_v17  ;;  %5594 = vmatprep.mubr.msk.bf16.mxu1 %vm942_vm0, %v5732_v13  ;;  %4312 = vst.msk [vmem:[%s8261_s3 + $0x21c] sm:$0xf] %vm4176_vm1, %v5088_v21  ;;  %vm2392_vm6 = vcmp.gt.f32.partialorder %v1394_v24, 0.0  ;;  %v2648_v30 = vmul.f32 0.2, %v1394_v24  ;;  %v5360_v31 = vpop.f32.mrb[12].mxu0 }
  0xfa   :  { %v4963_v28 = vpack.c.bf16 %v2906_v27, %v2906_v27  ;;  %4182 = vst.msk [vmem:[%s8261_s3 + $0x14] sm:$0xf] %vm4176_vm1, %v4958_v25  ;;  %v1906_v32 = vadd.f32 %v6212_v49, %v1905_v5  ;;  %v1405_v33 = vadd.f32 %v5357_v11, %v6212_v49  ;;  %v1917_v34 = vadd.f32 %v5485_v12, %v6212_v49  ;;  %v5488_v36 = vpop.f32.mrb[12].mxu1  ;;  %v1409_v37 = vpop.f32.mrb[13].mxu0 }
  0xfb   :  { %4310 = vst.msk [vmem:[%s8261_s3 + $0x214] sm:$0xf] %vm4176_vm1, %v5086_v26  ;;  %v1397_v35 = vadd.f32 %v6212_v49, %v1396_v19  ;;  %v3034_v39 = vsel %vm2522_vm5, %v1914_v18, %v2778_v29  ;;  %v2904_v40 = vsel %vm2392_vm6, %v1394_v24, %v2648_v30  ;;  %v1909_v41 = vadd.f32 %v6212_v49, %v1908_v20  ;;  %v1921_v43 = vpop.f32.mrb[13].mxu1  ;;  %v5361_v44 = vpop.f32.mrb[14].mxu0  ;;  %v5738_v20 = vld [vmem:[%s8259_s0 + $0x3f8] sm:$0xff]  }
  0xfc   :  { %4187 = vst.msk [vmem:[%s8261_s3 + $0x28] sm:$0xf] %vm4176_vm1, %v4963_v28  ;;  %v1418_v42 = vadd.f32 %v5360_v31, %v6212_v49  ;;  %v5091_v47 = vpack.c.bf16 %v3034_v39, %v3034_v39  ;;  %v4961_v48 = vpack.c.bf16 %v2904_v40, %v2904_v40  ;;  %vm2520_vm7 = vcmp.gt.f32.partialorder %v1906_v32, 0.0  ;;  %v5489_v51 = vpop.f32.mrb[14].mxu1  ;;  %v6368_v52 = vpop.f32.mrb[15].mxu0 }
  0xfd   :  { %v2776_v50 = vmul.f32 0.2, %v1906_v32  ;;  %vm2395_vm8 = vcmp.gt.f32.partialorder %v1405_v33, 0.0  ;;  %v2651_v54 = vmul.f32 0.2, %v1405_v33  ;;  %vm2523_vm9 = vcmp.gt.f32.partialorder %v1917_v34, 0.0 }
  0xfe   :  { %v2779_v55 = vmul.f32 0.2, %v1917_v34  ;;  %4315 = vst.msk [vmem:[%s8261_s3 + $0x228] sm:$0xf] %vm4176_vm1, %v5091_v47  ;;  %4185 = vst.msk [vmem:[%s8261_s3 + $0x20] sm:$0xf] %vm4176_vm1, %v4961_v48  ;;  %5467 = vmatmul.mubr.msk.bf16.gmra.mrb[120].mxu0 %vm942_vm0, %v5733_v38  ;;  %v1930_v5 = vadd.f32 %v5488_v36, %v6212_v49  ;;  %v1410_v9 = vadd.f32 %v6212_v49, %v1409_v37 }
  0xff   :  { %v3032_v56 = vsel %vm2520_vm7, %v1906_v32, %v2776_v50  ;;  %vm2393_vm10 = vcmp.gt.f32.partialorder %v1397_v35, 0.0  ;;  %v2649_v57 = vmul.f32 0.2, %v1397_v35  ;;  %vm2521_vm11 = vcmp.gt.f32.partialorder %v1909_v41, 0.0  ;;  %v6381_v58 = vpop.f32.mrb[15].mxu1  ;;  %5470 = vmatprep.mubr.msk.bf16.mxu0 %vm942_vm0, %v5735_v46 }
 0x100   :  { %v5089_v59 = vpack.c.bf16 %v3032_v56, %v3032_v56  ;;  %v2907_v60 = vsel %vm2395_vm8, %v1405_v33, %v2651_v54  ;;  %v3035_v61 = vsel %vm2523_vm9, %v1917_v34, %v2779_v55  ;;  %v2777_v62 = vmul.f32 0.2, %v1909_v41  ;;  %5595 = vmatmul.mubr.msk.bf16.gmra.mrb[120].mxu1 %vm942_vm0, %v5734_v45 }
 0x101   :  { %v4964_v63 = vpack.c.bf16 %v2907_v60, %v2907_v60  ;;  %v5092_v0 = vpack.c.bf16 %v3035_v61, %v3035_v61  ;;  %v2905_v1 = vsel %vm2393_vm10, %v1397_v35, %v2649_v57  ;;  %vm2398_vm12 = vcmp.gt.f32.partialorder %v1418_v42, 0.0  ;;  %5598 = vmatprep.mubr.msk.bf16.mxu1 %vm942_vm0, %v5736_v53  ;;  %v5364_v6 = vpop.f32.mrb[16].mxu0  ;;  %v5492_v7 = vpop.f32.mrb[16].mxu1 }
 0x102   :  { %4313 = vst.msk [vmem:[%s8261_s3 + $0x220] sm:$0xf] %vm4176_vm1, %v5089_v59  ;;  %v4962_v2 = vpack.c.bf16 %v2905_v1, %v2905_v1  ;;  %v3033_v3 = vsel %vm2521_vm11, %v1909_v41, %v2777_v62  ;;  %v2654_v4 = vmul.f32 0.2, %v1418_v42  ;;  %v1922_v10 = vadd.f32 %v6212_v49, %v1921_v43  ;;  %v1425_v12 = vpop.f32.mrb[17].mxu0  ;;  %v1937_v13 = vpop.f32.mrb[17].mxu1 }
 0x103   :  { %4188 = vst.msk [vmem:[%s8261_s3 + $0x2c] sm:$0xf] %vm4176_vm1, %v4964_v63  ;;  %4316 = vst.msk [vmem:[%s8261_s3 + $0x22c] sm:$0xf] %vm4176_vm1, %v5092_v0  ;;  %v5090_v8 = vpack.c.bf16 %v3033_v3, %v3033_v3  ;;  %v1421_v11 = vadd.f32 %v5361_v44, %v6212_v49  ;;  %vm2526_vm13 = vcmp.gt.f32.partialorder %v1930_v5, 0.0  ;;  %v1933_v17 = vadd.f32 %v5489_v51, %v6212_v49  ;;  %v6413_v18 = vpop.f32.mrb[18].mxu0 }
 0x104   :  { %4186 = vst.msk [vmem:[%s8261_s3 + $0x24] sm:$0xf] %vm4176_vm1, %v4962_v2  ;;  %v2910_v15 = vsel %vm2398_vm12, %v1418_v42, %v2654_v4  ;;  %v2782_v16 = vmul.f32 0.2, %v1930_v5  ;;  %v6415_v19 = vpop.f32.mrb[18].mxu1  ;;  %vm2396_vm14 = vcmp.gt.f32.partialorder %v1410_v9, 0.0  ;;  %v1413_v34 = vadd.f32 %v6212_v49, %v6368_v52 }
 0x105   :  { %4314 = vst.msk [vmem:[%s8261_s3 + $0x224] sm:$0xf] %vm4176_vm1, %v5090_v8  ;;  %v4967_v21 = vpack.c.bf16 %v2910_v15, %v2910_v15  ;;  %v2652_v22 = vmul.f32 0.2, %v1410_v9  ;;  %vm2524_vm15 = vcmp.gt.f32.partialorder %v1922_v10, 0.0  ;;  %v6424_v23 = vpop.f32.mrb[19].mxu0  ;;  %v1925_v38 = vadd.f32 %v6212_v49, %v6381_v58 }
 0x106   :  { %v6426_v24 = vpop.f32.mrb[19].mxu1  ;;  %v3038_v25 = vsel %vm2526_vm13, %v1930_v5, %v2782_v16  ;;  %v2780_v26 = vmul.f32 0.2, %v1922_v10  ;;  %vm2399_vm2 = vcmp.gt.f32.partialorder %v1421_v11, 0.0  ;;  %v2655_v27 = vmul.f32 0.2, %v1421_v11  ;;  %5471 = vmatmul.mubr.msk.bf16.gmra.mrb[124].mxu0 %vm942_vm0, %v5737_v14 }
 0x107   :  { %4191 = vst.msk [vmem:[%s8261_s3 + $0x38] sm:$0xf] %vm4176_vm1, %v4967_v21  ;;  %v5095_v28 = vpack.c.bf16 %v3038_v25, %v3038_v25  ;;  %v2908_v29 = vsel %vm2396_vm14, %v1410_v9, %v2652_v22  ;;  %vm2527_vm3 = vcmp.gt.f32.partialorder %v1933_v17, 0.0  ;;  %v2783_v30 = vmul.f32 0.2, %v1933_v17 }
 0x108   :  { %v4965_v31 = vpack.c.bf16 %v2908_v29, %v2908_v29  ;;  %v3036_v32 = vsel %vm2524_vm15, %v1922_v10, %v2780_v26  ;;  %v2911_v33 = vsel %vm2399_vm2, %v1421_v11, %v2655_v27  ;;  %5599 = vmatmul.mubr.msk.bf16.gmra.mrb[124].mxu1 %vm942_vm0, %v5738_v20  ;;  %vm2397_vm4 = vcmp.gt.f32.partialorder %v1413_v34, 0.0 }
 0x109   :  { %4319 = vst.msk [vmem:[%s8261_s3 + $0x238] sm:$0xf] %vm4176_vm1, %v5095_v28  ;;  %v5093_v35 = vpack.c.bf16 %v3036_v32, %v3036_v32  ;;  %v4968_v36 = vpack.c.bf16 %v2911_v33, %v2911_v33  ;;  %v3039_v37 = vsel %vm2527_vm3, %v1933_v17, %v2783_v30  ;;  %v2653_v40 = vmul.f32 0.2, %v1413_v34  ;;  %v5368_v42 = vpop.f32.mrb[20].mxu0  ;;  %v5496_v43 = vpop.f32.mrb[20].mxu1 }
 0x10a   :  { %4189 = vst.msk [vmem:[%s8261_s3 + $0x30] sm:$0xf] %vm4176_vm1, %v4965_v31  ;;  %v5096_v39 = vpack.c.bf16 %v3039_v37, %v3039_v37  ;;  %v1434_v41 = vadd.f32 %v5364_v6, %v6212_v49  ;;  %vm2525_vm0 = vcmp.gt.f32.partialorder %v1925_v38, 0.0  ;;  %v2781_v44 = vmul.f32 0.2, %v1925_v38  ;;  %v1441_v47 = vpop.f32.mrb[21].mxu0 }
 0x10b   :  { %4317 = vst.msk [vmem:[%s8261_s3 + $0x230] sm:$0xf] %vm4176_vm1, %v5093_v35  ;;  %4192 = vst.msk [vmem:[%s8261_s3 + $0x3c] sm:$0xf] %vm4176_vm1, %v4968_v36  ;;  %v1946_v45 = vadd.f32 %v5492_v7, %v6212_v49  ;;  %v1426_v46 = vadd.f32 %v6212_v49, %v1425_v12  ;;  %v6457_v48 = vpop.f32.mrb[21].mxu1  ;;  %v2909_v50 = vsel %vm2397_vm4, %v1413_v34, %v2653_v40  ;;  %v6464_v53 = vpop.f32.mrb[22].mxu0 }
 0x10c   :  { %4320 = vst.msk [vmem:[%s8261_s3 + $0x23c] sm:$0xf] %vm4176_vm1, %v5096_v39  ;;  %vm2402_vm5 = vcmp.gt.f32.partialorder %v1434_v41, 0.0  ;;  %v2658_v51 = vmul.f32 0.2, %v1434_v41  ;;  %v1938_v52 = vadd.f32 %v6212_v49, %v1937_v13  ;;  %v6466_v54 = vpop.f32.mrb[22].mxu1  ;;  %v4966_v55 = vpack.c.bf16 %v2909_v50, %v2909_v50 }
 0x10d   :  { %v3037_v56 = vsel %vm2525_vm0, %v1925_v38, %v2781_v44  ;;  %vm2530_vm6 = vcmp.gt.f32.partialorder %v1946_v45, 0.0  ;;  %v2786_v57 = vmul.f32 0.2, %v1946_v45  ;;  %v6468_v58 = vpop.f32.mrb[23].mxu0  ;;  %v6470_v59 = vpop.f32.mrb[23].mxu1  ;;  %vm2400_vm7 = vcmp.gt.f32.partialorder %v1426_v46, 0.0 }
 0x10e   :  { %v5094_v60 = vpack.c.bf16 %v3037_v56, %v3037_v56  ;;  %v2914_v61 = vsel %vm2402_vm5, %v1434_v41, %v2658_v51  ;;  %v2656_v62 = vmul.f32 0.2, %v1426_v46  ;;  %4190 = vst.msk [vmem:[%s8261_s3 + $0x34] sm:$0xf] %vm4176_vm1, %v4966_v55  ;;  %vm2528_vm8 = vcmp.gt.f32.partialorder %v1938_v52, 0.0 }
 0x10f   :  { %v4971_v63 = vpack.c.bf16 %v2914_v61, %v2914_v61  ;;  %v3042_v0 = vsel %vm2530_vm6, %v1946_v45, %v2786_v57  ;;  %v2784_v1 = vmul.f32 0.2, %v1938_v52  ;;  %v1437_v4 = vadd.f32 %v6413_v18, %v6212_v49 }
 0x110   :  { %4318 = vst.msk [vmem:[%s8261_s3 + $0x234] sm:$0xf] %vm4176_vm1, %v5094_v60  ;;  %v5099_v2 = vpack.c.bf16 %v3042_v0, %v3042_v0  ;;  %v2912_v3 = vsel %vm2400_vm7, %v1426_v46, %v2656_v62  ;;  %v1949_v5 = vadd.f32 %v6415_v19, %v6212_v49  ;;  %v1429_v8 = vadd.f32 %v6212_v49, %v6424_v23 }
 0x111   :  { %4195 = vst.msk [vmem:[%s8261_s3 + $0x48] sm:$0xf] %vm4176_vm1, %v4971_v63  ;;  %v4969_v6 = vpack.c.bf16 %v2912_v3, %v2912_v3  ;;  %v3040_v7 = vsel %vm2528_vm8, %v1938_v52, %v2784_v1  ;;  %v1941_v9 = vadd.f32 %v6212_v49, %v6426_v24  ;;  %vm2403_vm9 = vcmp.gt.f32.partialorder %v1437_v4, 0.0  ;;  %v6496_v12 = vpop.f32.mrb[24].mxu0  ;;  %v6498_v13 = vpop.f32.mrb[24].mxu1 }
 0x112   :  { %4323 = vst.msk [vmem:[%s8261_s3 + $0x248] sm:$0xf] %vm4176_vm1, %v5099_v2  ;;  %v5097_v10 = vpack.c.bf16 %v3040_v7, %v3040_v7  ;;  %v2659_v11 = vmul.f32 0.2, %v1437_v4  ;;  %vm2531_vm10 = vcmp.gt.f32.partialorder %v1949_v5, 0.0  ;;  %vm2401_vm11 = vcmp.gt.f32.partialorder %v1429_v8, 0.0 }
 0x113   :  { %4193 = vst.msk [vmem:[%s8261_s3 + $0x40] sm:$0xf] %vm4176_vm1, %v4969_v6  ;;  %v2787_v14 = vmul.f32 0.2, %v1949_v5  ;;  %v2657_v15 = vmul.f32 0.2, %v1429_v8  ;;  %v1450_v18 = vadd.f32 %v5368_v42, %v6212_v49  ;;  %v1962_v19 = vadd.f32 %v5496_v43, %v6212_v49 }
 0x114   :  { %vm2529_vm12 = vcmp.gt.f32.partialorder %v1941_v9, 0.0  ;;  %4321 = vst.msk [vmem:[%s8261_s3 + $0x240] sm:$0xf] %vm4176_vm1, %v5097_v10  ;;  %v2915_v16 = vsel %vm2403_vm9, %v1437_v4, %v2659_v11  ;;  %v2785_v17 = vmul.f32 0.2, %v1941_v9  ;;  %v6510_v20 = vpop.f32.mrb[25].mxu0  ;;  %v1442_v25 = vadd.f32 %v6212_v49, %v1441_v47 }
 0x115   :  { %v6512_v21 = vpop.f32.mrb[25].mxu1  ;;  %v4972_v22 = vpack.c.bf16 %v2915_v16, %v2915_v16  ;;  %v3043_v23 = vsel %vm2531_vm10, %v1949_v5, %v2787_v14  ;;  %v2913_v24 = vsel %vm2401_vm11, %v1429_v8, %v2657_v15  ;;  %v6516_v26 = vpop.f32.mrb[26].mxu0  ;;  %vm2406_vm13 = vcmp.gt.f32.partialorder %v1450_v18, 0.0 }
 0x116   :  { %v6518_v27 = vpop.f32.mrb[26].mxu1  ;;  %v5100_v28 = vpack.c.bf16 %v3043_v23, %v3043_v23  ;;  %v4970_v29 = vpack.c.bf16 %v2913_v24, %v2913_v24  ;;  %v3041_v30 = vsel %vm2529_vm12, %v1941_v9, %v2785_v17  ;;  %v6521_v31 = vpop.f32.mrb[27].mxu0  ;;  %v2662_v34 = vmul.f32 0.2, %v1450_v18 }
 0x117   :  { %v6523_v32 = vpop.f32.mrb[27].mxu1  ;;  %4196 = vst.msk [vmem:[%s8261_s3 + $0x4c] sm:$0xf] %vm4176_vm1, %v4972_v22  ;;  %v5098_v33 = vpack.c.bf16 %v3041_v30, %v3041_v30  ;;  %vm2534_vm14 = vcmp.gt.f32.partialorder %v1962_v19, 0.0  ;;  %v2790_v35 = vmul.f32 0.2, %v1962_v19  ;;  %v1954_v37 = vadd.f32 %v6212_v49, %v6457_v48 }
 0x118   :  { %4324 = vst.msk [vmem:[%s8261_s3 + $0x24c] sm:$0xf] %vm4176_vm1, %v5100_v28  ;;  %4194 = vst.msk [vmem:[%s8261_s3 + $0x44] sm:$0xf] %vm4176_vm1, %v4970_v29  ;;  %vm2404_vm15 = vcmp.gt.f32.partialorder %v1442_v25, 0.0  ;;  %v1453_v38 = vadd.f32 %v6464_v53, %v6212_v49  ;;  %v2918_v39 = vsel %vm2406_vm13, %v1450_v18, %v2662_v34  ;;  %v1965_v41 = vadd.f32 %v6466_v54, %v6212_v49 }
 0x119   :  { %v2660_v36 = vmul.f32 0.2, %v1442_v25  ;;  %4322 = vst.msk [vmem:[%s8261_s3 + $0x244] sm:$0xf] %vm4176_vm1, %v5098_v33  ;;  %v3046_v40 = vsel %vm2534_vm14, %v1962_v19, %v2790_v35  ;;  %v1445_v42 = vadd.f32 %v6212_v49, %v6468_v58  ;;  %v4975_v43 = vpack.c.bf16 %v2918_v39, %v2918_v39  ;;  %v6549_v46 = vpop.f32.mrb[28].mxu0  ;;  %v6551_v47 = vpop.f32.mrb[28].mxu1 }
 0x11a   :  { %v5103_v44 = vpack.c.bf16 %v3046_v40, %v3046_v40  ;;  %vm2532_vm2 = vcmp.gt.f32.partialorder %v1954_v37, 0.0  ;;  %v2788_v50 = vmul.f32 0.2, %v1954_v37  ;;  %vm2407_vm3 = vcmp.gt.f32.partialorder %v1453_v38, 0.0  ;;  %v6553_v52 = vpop.f32.mrb[29].mxu0  ;;  %v6571_v60 = vpop.f32.mrb[29].mxu1 }
 0x11b   :  { %v2916_v45 = vsel %vm2404_vm15, %v1442_v25, %v2660_v36  ;;  %v2663_v51 = vmul.f32 0.2, %v1453_v38  ;;  %4199 = vst.msk [vmem:[%s8261_s3 + $0x58] sm:$0xf] %vm4176_vm1, %v4975_v43  ;;  %vm2535_vm4 = vcmp.gt.f32.partialorder %v1965_v41, 0.0  ;;  %vm2405_vm0 = vcmp.gt.f32.partialorder %v1445_v42, 0.0 }
 0x11c   :  { %v4973_v48 = vpack.c.bf16 %v2916_v45, %v2916_v45  ;;  %4327 = vst.msk [vmem:[%s8261_s3 + $0x258] sm:$0xf] %vm4176_vm1, %v5103_v44  ;;  %v2791_v53 = vmul.f32 0.2, %v1965_v41  ;;  %v2661_v54 = vmul.f32 0.2, %v1445_v42  ;;  %v3044_v55 = vsel %vm2532_vm2, %v1954_v37, %v2788_v50 }
 0x11d   :  { %v2919_v56 = vsel %vm2407_vm3, %v1453_v38, %v2663_v51  ;;  %v1957_v57 = vadd.f32 %v6212_v49, %v6470_v59  ;;  %v1466_v58 = vadd.f32 %v6496_v12, %v6212_v49  ;;  %v6573_v61 = vpop.f32.mrb[30].mxu0  ;;  %v5101_v62 = vpack.c.bf16 %v3044_v55, %v3044_v55  ;;  %v6575_v2 = vpop.f32.mrb[30].mxu1 }
 0x11e   :  { %4197 = vst.msk [vmem:[%s8261_s3 + $0x50] sm:$0xf] %vm4176_vm1, %v4973_v48  ;;  %v4976_v63 = vpack.c.bf16 %v2919_v56, %v2919_v56  ;;  %v3047_v0 = vsel %vm2535_vm4, %v1965_v41, %v2791_v53  ;;  %v2917_v1 = vsel %vm2405_vm0, %v1445_v42, %v2661_v54  ;;  %v6577_v3 = vpop.f32.mrb[31].mxu0  ;;  %v6579_v59 = vpop.f32.mrb[31].mxu1  ;;  %v1978_v8 = vadd.f32 %v6498_v13, %v6212_v49 }
 0x11f   :  { %v5104_v4 = vpack.c.bf16 %v3047_v0, %v3047_v0  ;;  %v4974_v5 = vpack.c.bf16 %v2917_v1, %v2917_v1  ;;  %vm2533_vm5 = vcmp.gt.f32.partialorder %v1957_v57, 0.0  ;;  %v2789_v6 = vmul.f32 0.2, %v1957_v57  ;;  %4325 = vst.msk [vmem:[%s8261_s3 + $0x250] sm:$0xf] %vm4176_vm1, %v5101_v62 }
 0x120   :  { %4200 = vst.msk [vmem:[%s8261_s3 + $0x5c] sm:$0xf] %vm4176_vm1, %v4976_v63  ;;  %vm2410_vm6 = vcmp.gt.f32.partialorder %v1466_v58, 0.0  ;;  %v2666_v7 = vmul.f32 0.2, %v1466_v58  ;;  %v1458_v9 = vadd.f32 %v6212_v49, %v6510_v20  ;;  %v1970_v11 = vadd.f32 %v6212_v49, %v6512_v21 }
 0x121   :  { %4328 = vst.msk [vmem:[%s8261_s3 + $0x25c] sm:$0xf] %vm4176_vm1, %v5104_v4  ;;  %4198 = vst.msk [vmem:[%s8261_s3 + $0x54] sm:$0xf] %vm4176_vm1, %v4974_v5  ;;  %v3045_v10 = vsel %vm2533_vm5, %v1957_v57, %v2789_v6  ;;  %v1469_v12 = vadd.f32 %v6516_v26, %v6212_v49  ;;  %v1981_v13 = vadd.f32 %v6518_v27, %v6212_v49  ;;  %vm2538_vm7 = vcmp.gt.f32.partialorder %v1978_v8, 0.0  ;;  %v6607_v17 = vpop.f32.mrb[32].mxu0 }
 0x122   :  { %v5102_v14 = vpack.c.bf16 %v3045_v10, %v3045_v10  ;;  %v2922_v15 = vsel %vm2410_vm6, %v1466_v58, %v2666_v7  ;;  %v2794_v16 = vmul.f32 0.2, %v1978_v8  ;;  %v6609_v18 = vpop.f32.mrb[32].mxu1  ;;  %vm2408_vm8 = vcmp.gt.f32.partialorder %v1458_v9, 0.0  ;;  %v6611_v22 = vpop.f32.mrb[33].mxu0 }
 0x123   :  { %v4979_v19 = vpack.c.bf16 %v2922_v15, %v2922_v15  ;;  %v2664_v20 = vmul.f32 0.2, %v1458_v9  ;;  %vm2536_vm9 = vcmp.gt.f32.partialorder %v1970_v11, 0.0  ;;  %v6613_v21 = vpop.f32.mrb[33].mxu1  ;;  %v2792_v24 = vmul.f32 0.2, %v1970_v11 }
 0x124   :  { %4326 = vst.msk [vmem:[%s8261_s3 + $0x254] sm:$0xf] %vm4176_vm1, %v5102_v14  ;;  %v3050_v23 = vsel %vm2538_vm7, %v1978_v8, %v2794_v16  ;;  %vm2411_vm10 = vcmp.gt.f32.partialorder %v1469_v12, 0.0  ;;  %v2667_v25 = vmul.f32 0.2, %v1469_v12  ;;  %v6619_v26 = vpop.f32.mrb[34].mxu0  ;;  %v1461_v37 = vadd.f32 %v6212_v49, %v6521_v31 }
 0x125   :  { %4203 = vst.msk [vmem:[%s8261_s3 + $0x68] sm:$0xf] %vm4176_vm1, %v4979_v19  ;;  %v5107_v27 = vpack.c.bf16 %v3050_v23, %v3050_v23  ;;  %v2920_v28 = vsel %vm2408_vm8, %v1458_v9, %v2664_v20  ;;  %vm2539_vm11 = vcmp.gt.f32.partialorder %v1981_v13, 0.0  ;;  %v2795_v29 = vmul.f32 0.2, %v1981_v13  ;;  %v6625_v30 = vpop.f32.mrb[34].mxu1 }
 0x126   :  { %v6627_v33 = vpop.f32.mrb[35].mxu0  ;;  %v4977_v34 = vpack.c.bf16 %v2920_v28, %v2920_v28  ;;  %v3048_v35 = vsel %vm2536_vm9, %v1970_v11, %v2792_v24  ;;  %v2923_v36 = vsel %vm2411_vm10, %v1469_v12, %v2667_v25  ;;  %v6632_v38 = vpop.f32.mrb[35].mxu1  ;;  %v1973_v42 = vadd.f32 %v6212_v49, %v6523_v32 }
 0x127   :  { %4331 = vst.msk [vmem:[%s8261_s3 + $0x268] sm:$0xf] %vm4176_vm1, %v5107_v27  ;;  %v5105_v39 = vpack.c.bf16 %v3048_v35, %v3048_v35  ;;  %v4980_v40 = vpack.c.bf16 %v2923_v36, %v2923_v36  ;;  %v3051_v41 = vsel %vm2539_vm11, %v1981_v13, %v2795_v29  ;;  %vm2409_vm12 = vcmp.gt.f32.partialorder %v1461_v37, 0.0 }
 0x128   :  { %4201 = vst.msk [vmem:[%s8261_s3 + $0x60] sm:$0xf] %vm4176_vm1, %v4977_v34  ;;  %v5108_v43 = vpack.c.bf16 %v3051_v41, %v3051_v41  ;;  %v2665_v31 = vmul.f32 0.2, %v1461_v37  ;;  %v1482_v44 = vadd.f32 %v6549_v46, %v6212_v49  ;;  %vm2537_vm13 = vcmp.gt.f32.partialorder %v1973_v42, 0.0 }
 0x129   :  { %4329 = vst.msk [vmem:[%s8261_s3 + $0x260] sm:$0xf] %vm4176_vm1, %v5105_v39  ;;  %4204 = vst.msk [vmem:[%s8261_s3 + $0x6c] sm:$0xf] %vm4176_vm1, %v4980_v40  ;;  %v2793_v32 = vmul.f32 0.2, %v1973_v42  ;;  %v1994_v45 = vadd.f32 %v6551_v47, %v6212_v49  ;;  %v1474_v48 = vadd.f32 %v6212_v49, %v6553_v52  ;;  %v1986_v51 = vadd.f32 %v6212_v49, %v6571_v60 }
 0x12a   :  { %4332 = vst.msk [vmem:[%s8261_s3 + $0x26c] sm:$0xf] %vm4176_vm1, %v5108_v43  ;;  %v2921_v46 = vsel %vm2409_vm12, %v1461_v37, %v2665_v31  ;;  %vm2414_vm14 = vcmp.gt.f32.partialorder %v1482_v44, 0.0  ;;  %v2670_v50 = vmul.f32 0.2, %v1482_v44  ;;  %v6664_v53 = vpop.f32.mrb[36].mxu0  ;;  %v1485_v10 = vadd.f32 %v6573_v61, %v6212_v49 }
 0x12b   :  { %v6666_v54 = vpop.f32.mrb[36].mxu1  ;;  %v4978_v55 = vpack.c.bf16 %v2921_v46, %v2921_v46  ;;  %v3049_v47 = vsel %vm2537_vm13, %v1973_v42, %v2793_v32  ;;  %vm2542_vm15 = vcmp.gt.f32.partialorder %v1994_v45, 0.0  ;;  %v2798_v56 = vmul.f32 0.2, %v1994_v45  ;;  %v6668_v52 = vpop.f32.mrb[37].mxu0 }
 0x12c   :  { %v6670_v57 = vpop.f32.mrb[37].mxu1  ;;  %v5106_v58 = vpack.c.bf16 %v3049_v47, %v3049_v47  ;;  %v2926_v62 = vsel %vm2414_vm14, %v1482_v44, %v2670_v50  ;;  %vm2412_vm2 = vcmp.gt.f32.partialorder %v1474_v48, 0.0  ;;  %v2668_v63 = vmul.f32 0.2, %v1474_v48  ;;  %v6672_v0 = vpop.f32.mrb[38].mxu0 }
 0x12d   :  { %v6674_v1 = vpop.f32.mrb[38].mxu1  ;;  %4202 = vst.msk [vmem:[%s8261_s3 + $0x64] sm:$0xf] %vm4176_vm1, %v4978_v55  ;;  %v4983_v60 = vpack.c.bf16 %v2926_v62, %v2926_v62  ;;  %v3054_v4 = vsel %vm2542_vm15, %v1994_v45, %v2798_v56  ;;  %vm2540_vm3 = vcmp.gt.f32.partialorder %v1986_v51, 0.0  ;;  %v2796_v5 = vmul.f32 0.2, %v1986_v51 }
 0x12e   :  { %v6680_v6 = vpop.f32.mrb[39].mxu0  ;;  %v6682_v7 = vpop.f32.mrb[39].mxu1  ;;  %4330 = vst.msk [vmem:[%s8261_s3 + $0x264] sm:$0xf] %vm4176_vm1, %v5106_v58  ;;  %v5111_v8 = vpack.c.bf16 %v3054_v4, %v3054_v4  ;;  %v2924_v9 = vsel %vm2412_vm2, %v1474_v48, %v2668_v63  ;;  %v1997_v11 = vadd.f32 %v6575_v2, %v6212_v49  ;;  %v1477_v14 = vadd.f32 %v6212_v49, %v6577_v3  ;;  %v6748_v31 = vld [vmem:[%s8260_s2] ss:$0 sm:$0xff] }
 0x12f   :  { %4207 = vst.msk [vmem:[%s8261_s3 + $0x78] sm:$0xf] %vm4176_vm1, %v4983_v60  ;;  %v4981_v12 = vpack.c.bf16 %v2924_v9, %v2924_v9  ;;  %v3052_v13 = vsel %vm2540_vm3, %v1986_v51, %v2796_v5  ;;  %v1989_v15 = vadd.f32 %v6212_v49, %v6579_v59  ;;  %vm2415_vm4 = vcmp.gt.f32.partialorder %v1485_v10, 0.0 }
 0x130   :  { %4335 = vst.msk [vmem:[%s8261_s3 + $0x278] sm:$0xf] %vm4176_vm1, %v5111_v8  ;;  %v5109_v61 = vpack.c.bf16 %v3052_v13, %v3052_v13  ;;  %v2671_v2 = vmul.f32 0.2, %v1485_v10  ;;  %vm2543_vm0 = vcmp.gt.f32.partialorder %v1997_v11, 0.0  ;;  %vm2413_vm5 = vcmp.gt.f32.partialorder %v1477_v14, 0.0 }
 0x131   :  { %4205 = vst.msk [vmem:[%s8261_s3 + $0x70] sm:$0xf] %vm4176_vm1, %v4981_v12  ;;  %v2799_v16 = vmul.f32 0.2, %v1997_v11  ;;  %v2669_v3 = vmul.f32 0.2, %v1477_v14  ;;  %v1498_v20 = vadd.f32 %v6607_v17, %v6212_v49  ;;  %v2010_v23 = vadd.f32 %v6609_v18, %v6212_v49 }
 0x132   :  { %vm2541_vm6 = vcmp.gt.f32.partialorder %v1989_v15, 0.0  ;;  %4333 = vst.msk [vmem:[%s8261_s3 + $0x270] sm:$0xf] %vm4176_vm1, %v5109_v61  ;;  %v2927_v59 = vsel %vm2415_vm4, %v1485_v10, %v2671_v2  ;;  %v2797_v19 = vmul.f32 0.2, %v1989_v15  ;;  %v6716_v24 = vpop.f32.mrb[40].mxu0  ;;  %v1490_v34 = vadd.f32 %v6212_v49, %v6611_v22 }
 0x133   :  { %v6718_v25 = vpop.f32.mrb[40].mxu1  ;;  %v4984_v27 = vpack.c.bf16 %v2927_v59, %v2927_v59  ;;  %v3055_v28 = vsel %vm2543_vm0, %v1997_v11, %v2799_v16  ;;  %v2925_v29 = vsel %vm2413_vm5, %v1477_v14, %v2669_v3  ;;  %v6722_v35 = vpop.f32.mrb[41].mxu0  ;;  %vm2418_vm7 = vcmp.gt.f32.partialorder %v1498_v20, 0.0 }
 0x134   :  { %v6724_v36 = vpop.f32.mrb[41].mxu1  ;;  %v5112_v37 = vpack.c.bf16 %v3055_v28, %v3055_v28  ;;  %v4982_v39 = vpack.c.bf16 %v2925_v29, %v2925_v29  ;;  %v3053_v17 = vsel %vm2541_vm6, %v1989_v15, %v2797_v19  ;;  %v6727_v18 = vpop.f32.mrb[42].mxu0  ;;  %v2674_v49 = vmul.f32 0.2, %v1498_v20 }
 0x135   :  { %v6729_v40 = vpop.f32.mrb[42].mxu1  ;;  %4208 = vst.msk [vmem:[%s8261_s3 + $0x7c] sm:$0xf] %vm4176_vm1, %v4984_v27  ;;  %v5110_v41 = vpack.c.bf16 %v3053_v17, %v3053_v17  ;;  %vm2546_vm8 = vcmp.gt.f32.partialorder %v2010_v23, 0.0  ;;  %v2802_v22 = vmul.f32 0.2, %v2010_v23  ;;  %v2002_v44 = vadd.f32 %v6748_v31, %v6613_v21 }
 0x136   :  { %v6735_v42 = vpop.f32.mrb[43].mxu0  ;;  %4336 = vst.msk [vmem:[%s8261_s3 + $0x27c] sm:$0xf] %vm4176_vm1, %v5112_v37  ;;  %4206 = vst.msk [vmem:[%s8261_s3 + $0x74] sm:$0xf] %vm4176_vm1, %v4982_v39  ;;  %vm2416_vm9 = vcmp.gt.f32.partialorder %v1490_v34, 0.0  ;;  %v1501_v32 = vadd.f32 %v6748_v31, %v6619_v26  ;;  %v2930_v48 = vsel %vm2418_vm7, %v1498_v20, %v2674_v49  ;;  %v2013_v50 = vadd.f32 %v6748_v31, %v6625_v30 }
 0x137   :  { %v2672_v43 = vmul.f32 0.2, %v1490_v34  ;;  %v6754_v45 = vpop.f32.mrb[43].mxu1  ;;  %4334 = vst.msk [vmem:[%s8261_s3 + $0x274] sm:$0xf] %vm4176_vm1, %v5110_v41  ;;  %v3058_v46 = vsel %vm2546_vm8, %v2010_v23, %v2802_v22  ;;  %v1493_v51 = vadd.f32 %v6748_v31, %v6627_v33  ;;  %v4987_v21 = vpack.c.bf16 %v2930_v48, %v2930_v48 }
 0x138   :  { %v5115_v55 = vpack.c.bf16 %v3058_v46, %v3058_v46  ;;  %vm2544_vm10 = vcmp.gt.f32.partialorder %v2002_v44, 0.0  ;;  %v2800_v56 = vmul.f32 0.2, %v2002_v44  ;;  %vm2419_vm11 = vcmp.gt.f32.partialorder %v1501_v32, 0.0 }
 0x139   :  { %v2928_v47 = vsel %vm2416_vm9, %v1490_v34, %v2672_v43  ;;  %v2675_v58 = vmul.f32 0.2, %v1501_v32  ;;  %4211 = vst.msk [vmem:[%s8261_s3 + $0x88] sm:$0xf] %vm4176_vm1, %v4987_v21  ;;  %vm2547_vm12 = vcmp.gt.f32.partialorder %v2013_v50, 0.0  ;;  %vm2417_vm13 = vcmp.gt.f32.partialorder %v1493_v51, 0.0 }
 0x13a   :  { %v4985_v26 = vpack.c.bf16 %v2928_v47, %v2928_v47  ;;  %4339 = vst.msk [vmem:[%s8261_s3 + $0x288] sm:$0xf] %vm4176_vm1, %v5115_v55  ;;  %v2803_v30 = vmul.f32 0.2, %v2013_v50  ;;  %v2673_v33 = vmul.f32 0.2, %v1493_v51  ;;  %v3056_v62 = vsel %vm2544_vm10, %v2002_v44, %v2800_v56 }
 0x13b   :  { %v2931_v63 = vsel %vm2419_vm11, %v1501_v32, %v2675_v58  ;;  %v2005_v60 = vadd.f32 %v6748_v31, %v6632_v38  ;;  %v1514_v4 = vadd.f32 %v6748_v31, %v6664_v53  ;;  %v6781_v5 = vpop.f32.mrb[44].mxu0  ;;  %v6783_v8 = vpop.f32.mrb[44].mxu1  ;;  %v5113_v9 = vpack.c.bf16 %v3056_v62, %v3056_v62 }
 0x13c   :  { %4209 = vst.msk [vmem:[%s8261_s3 + $0x80] sm:$0xf] %vm4176_vm1, %v4985_v26  ;;  %v4988_v10 = vpack.c.bf16 %v2931_v63, %v2931_v63  ;;  %v3059_v11 = vsel %vm2547_vm12, %v2013_v50, %v2803_v30  ;;  %v2929_v12 = vsel %vm2417_vm13, %v1493_v51, %v2673_v33  ;;  %v6785_v13 = vpop.f32.mrb[45].mxu0  ;;  %v6787_v14 = vpop.f32.mrb[45].mxu1  ;;  %v2026_v3 = vadd.f32 %v6748_v31, %v6666_v54 }
 0x13d   :  { %v5116_v15 = vpack.c.bf16 %v3059_v11, %v3059_v11  ;;  %v4986_v61 = vpack.c.bf16 %v2929_v12, %v2929_v12  ;;  %vm2545_vm14 = vcmp.gt.f32.partialorder %v2005_v60, 0.0  ;;  %v2801_v2 = vmul.f32 0.2, %v2005_v60  ;;  %v6789_v38 = vpop.f32.mrb[46].mxu0  ;;  %v6791_v16 = vpop.f32.mrb[46].mxu1 }
 0x13e   :  { %4337 = vst.msk [vmem:[%s8261_s3 + $0x280] sm:$0xf] %vm4176_vm1, %v5113_v9  ;;  %4212 = vst.msk [vmem:[%s8261_s3 + $0x8c] sm:$0xf] %vm4176_vm1, %v4988_v10  ;;  %vm2422_vm15 = vcmp.gt.f32.partialorder %v1514_v4, 0.0  ;;  %v1506_v59 = vadd.f32 %v6748_v31, %v6668_v52  ;;  %v6805_v19 = vpop.f32.mrb[47].mxu0  ;;  %v2018_v54 = vadd.f32 %v6748_v31, %v6670_v57  ;;  %v1517_v52 = vadd.f32 %v6748_v31, %v6672_v0 }
 0x13f   :  { %v2678_v53 = vmul.f32 0.2, %v1514_v4  ;;  %v6807_v20 = vpop.f32.mrb[47].mxu1  ;;  %4340 = vst.msk [vmem:[%s8261_s3 + $0x28c] sm:$0xf] %vm4176_vm1, %v5116_v15  ;;  %v3057_v23 = vsel %vm2545_vm14, %v2005_v60, %v2801_v2  ;;  %v2029_v27 = vadd.f32 %v6748_v31, %v6674_v1  ;;  %vm2550_vm2 = vcmp.gt.f32.partialorder %v2026_v3, 0.0 }
 0x140   :  { %4210 = vst.msk [vmem:[%s8261_s3 + $0x84] sm:$0xf] %vm4176_vm1, %v4986_v61  ;;  %v5114_v28 = vpack.c.bf16 %v3057_v23, %v3057_v23  ;;  %v2806_v34 = vmul.f32 0.2, %v2026_v3  ;;  %vm2420_vm3 = vcmp.gt.f32.partialorder %v1506_v59, 0.0  ;;  %vm2548_vm4 = vcmp.gt.f32.partialorder %v2018_v54, 0.0 }
 0x141   :  { %v2934_v29 = vsel %vm2422_vm15, %v1514_v4, %v2678_v53  ;;  %v2676_v39 = vmul.f32 0.2, %v1506_v59  ;;  %v2804_v17 = vmul.f32 0.2, %v2018_v54  ;;  %vm2423_vm0 = vcmp.gt.f32.partialorder %v1517_v52, 0.0  ;;  %v6827_v41 = vpop.f32.mrb[48].mxu0 }
 0x142   :  { %v4991_v37 = vpack.c.bf16 %v2934_v29, %v2934_v29  ;;  %4338 = vst.msk [vmem:[%s8261_s3 + $0x284] sm:$0xf] %vm4176_vm1, %v5114_v28  ;;  %v3062_v57 = vsel %vm2550_vm2, %v2026_v3, %v2806_v34  ;;  %v2679_v0 = vmul.f32 0.2, %v1517_v52  ;;  %vm2551_vm5 = vcmp.gt.f32.partialorder %v2029_v27, 0.0  ;;  %v6833_v43 = vpop.f32.mrb[48].mxu1 }
 0x143   :  { %v5119_v1 = vpack.c.bf16 %v3062_v57, %v3062_v57  ;;  %v2932_v49 = vsel %vm2420_vm3, %v1506_v59, %v2676_v39  ;;  %v2807_v22 = vmul.f32 0.2, %v2029_v27  ;;  %v6835_v44 = vpop.f32.mrb[49].mxu0  ;;  %v3060_v48 = vsel %vm2548_vm4, %v2018_v54, %v2804_v17  ;;  %v6839_v51 = vpop.f32.mrb[49].mxu1 }
 0x144   :  { %4215 = vst.msk [vmem:[%s8261_s3 + $0x98] sm:$0xf] %vm4176_vm1, %v4991_v37  ;;  %v4989_v32 = vpack.c.bf16 %v2932_v49, %v2932_v49  ;;  %v2935_v46 = vsel %vm2423_vm0, %v1517_v52, %v2679_v0  ;;  %v1509_v50 = vadd.f32 %v6748_v31, %v6680_v6  ;;  %v6841_v21 = vpop.f32.mrb[50].mxu0  ;;  %v5117_v55 = vpack.c.bf16 %v3060_v48, %v3060_v48  ;;  %v6849_v58 = vpop.f32.mrb[50].mxu1 }
 0x145   :  { %4343 = vst.msk [vmem:[%s8261_s3 + $0x298] sm:$0xf] %vm4176_vm1, %v5119_v1  ;;  %v4992_v47 = vpack.c.bf16 %v2935_v46, %v2935_v46  ;;  %v3063_v26 = vsel %vm2551_vm5, %v2029_v27, %v2807_v22  ;;  %v2021_v56 = vadd.f32 %v6748_v31, %v6682_v7  ;;  %v6851_v30 = vpop.f32.mrb[51].mxu0  ;;  %v1530_v62 = vadd.f32 %v6748_v31, %v6716_v24  ;;  %v6859_v63 = vpop.f32.mrb[51].mxu1 }
 0x146   :  { %4213 = vst.msk [vmem:[%s8261_s3 + $0x90] sm:$0xf] %vm4176_vm1, %v4989_v32  ;;  %v5120_v6 = vpack.c.bf16 %v3063_v26, %v3063_v26  ;;  %vm2421_vm6 = vcmp.gt.f32.partialorder %v1509_v50, 0.0  ;;  %v2677_v33 = vmul.f32 0.2, %v1509_v50  ;;  %v2042_v60 = vadd.f32 %v6748_v31, %v6718_v25 }
 0x147   :  { %4341 = vst.msk [vmem:[%s8261_s3 + $0x290] sm:$0xf] %vm4176_vm1, %v5117_v55  ;;  %4216 = vst.msk [vmem:[%s8261_s3 + $0x9c] sm:$0xf] %vm4176_vm1, %v4992_v47  ;;  %vm2549_vm7 = vcmp.gt.f32.partialorder %v2021_v56, 0.0  ;;  %v1522_v24 = vadd.f32 %v6748_v31, %v6722_v35  ;;  %vm2426_vm8 = vcmp.gt.f32.partialorder %v1530_v62, 0.0  ;;  %v2034_v10 = vadd.f32 %v6748_v31, %v6724_v36 }
 0x148   :  { %v2805_v7 = vmul.f32 0.2, %v2021_v56  ;;  %4344 = vst.msk [vmem:[%s8261_s3 + $0x29c] sm:$0xf] %vm4176_vm1, %v5120_v6  ;;  %v2933_v4 = vsel %vm2421_vm6, %v1509_v50, %v2677_v33  ;;  %v2682_v9 = vmul.f32 0.2, %v1530_v62  ;;  %v1533_v28 = vadd.f32 %v6748_v31, %v6727_v18 }
 0x149   :  { %v4990_v11 = vpack.c.bf16 %v2933_v4, %v2933_v4  ;;  %vm2554_vm9 = vcmp.gt.f32.partialorder %v2042_v60, 0.0  ;;  %v2810_v15 = vmul.f32 0.2, %v2042_v60  ;;  %vm2424_vm10 = vcmp.gt.f32.partialorder %v1522_v24, 0.0  ;;  %v6879_v35 = vpop.f32.mrb[52].mxu0  ;;  %v6881_v53 = vpop.f32.mrb[52].mxu1 }
 0x14a   :  { %v3061_v12 = vsel %vm2549_vm7, %v2021_v56, %v2805_v7  ;;  %v2938_v25 = vsel %vm2426_vm8, %v1530_v62, %v2682_v9  ;;  %v2680_v2 = vmul.f32 0.2, %v1522_v24  ;;  %vm2552_vm11 = vcmp.gt.f32.partialorder %v2034_v10, 0.0  ;;  %v6887_v23 = vpop.f32.mrb[53].mxu0  ;;  %v6889_v54 = vpop.f32.mrb[53].mxu1 }
 0x14b   :  { %v5118_v61 = vpack.c.bf16 %v3061_v12, %v3061_v12  ;;  %4214 = vst.msk [vmem:[%s8261_s3 + $0x94] sm:$0xf] %vm4176_vm1, %v4990_v11  ;;  %v4995_v3 = vpack.c.bf16 %v2938_v25, %v2938_v25  ;;  %v3066_v59 = vsel %vm2554_vm9, %v2042_v60, %v2810_v15  ;;  %v2808_v36 = vmul.f32 0.2, %v2034_v10  ;;  %v6899_v34 = vpop.f32.mrb[54].mxu0  ;;  %v6901_v37 = vpop.f32.mrb[54].mxu1 }
 0x14c   :  { %v5123_v52 = vpack.c.bf16 %v3066_v59, %v3066_v59  ;;  %v2936_v27 = vsel %vm2424_vm10, %v1522_v24, %v2680_v2  ;;  %v2045_v29 = vadd.f32 %v6748_v31, %v6729_v40  ;;  %v1525_v17 = vadd.f32 %v6748_v31, %v6735_v42  ;;  %v6911_v0 = vpop.f32.mrb[55].mxu0  ;;  %v6913_v40 = vpop.f32.mrb[55].mxu1 }
 0x14d   :  { %4342 = vst.msk [vmem:[%s8261_s3 + $0x294] sm:$0xf] %vm4176_vm1, %v5118_v61  ;;  %4219 = vst.msk [vmem:[%s8261_s3 + $0xa8] sm:$0xf] %vm4176_vm1, %v4995_v3  ;;  %v4993_v39 = vpack.c.bf16 %v2936_v27, %v2936_v27  ;;  %v3064_v57 = vsel %vm2552_vm11, %v2034_v10, %v2808_v36  ;;  %v2037_v18 = vadd.f32 %v6748_v31, %v6754_v45  ;;  %vm2427_vm12 = vcmp.gt.f32.partialorder %v1533_v28, 0.0 }
 0x14e   :  { %4347 = vst.msk [vmem:[%s8261_s3 + $0x2a8] sm:$0xf] %vm4176_vm1, %v5123_v52  ;;  %v5121_v1 = vpack.c.bf16 %v3064_v57, %v3064_v57  ;;  %v2683_v49 = vmul.f32 0.2, %v1533_v28  ;;  %vm2555_vm13 = vcmp.gt.f32.partialorder %v2045_v29, 0.0  ;;  %vm2425_vm14 = vcmp.gt.f32.partialorder %v1525_v17, 0.0 }
 0x14f   :  { %4217 = vst.msk [vmem:[%s8261_s3 + $0xa0] sm:$0xf] %vm4176_vm1, %v4993_v39  ;;  %v2811_v42 = vmul.f32 0.2, %v2045_v29  ;;  %v2681_v45 = vmul.f32 0.2, %v1525_v17  ;;  %v1546_v48 = vadd.f32 %v6748_v31, %v6781_v5  ;;  %v2058_v46 = vadd.f32 %v6748_v31, %v6783_v8 }
 0x150   :  { %vm2553_vm15 = vcmp.gt.f32.partialorder %v2037_v18, 0.0  ;;  %4345 = vst.msk [vmem:[%s8261_s3 + $0x2a0] sm:$0xf] %vm4176_vm1, %v5121_v1  ;;  %v2939_v22 = vsel %vm2427_vm12, %v1533_v28, %v2683_v49  ;;  %v2809_v32 = vmul.f32 0.2, %v2037_v18  ;;  %v1538_v26 = vadd.f32 %v6748_v31, %v6785_v13 }
 0x151   :  { %v4996_v50 = vpack.c.bf16 %v2939_v22, %v2939_v22  ;;  %v3067_v55 = vsel %vm2555_vm13, %v2045_v29, %v2811_v42  ;;  %v2937_v47 = vsel %vm2425_vm14, %v1525_v17, %v2681_v45  ;;  %vm2430_vm2 = vcmp.gt.f32.partialorder %v1546_v48, 0.0  ;;  %v6933_v62 = vpop.f32.mrb[56].mxu0  ;;  %v6935_v7 = vpop.f32.mrb[56].mxu1 }
 0x152   :  { %v5124_v56 = vpack.c.bf16 %v3067_v55, %v3067_v55  ;;  %v4994_v6 = vpack.c.bf16 %v2937_v47, %v2937_v47  ;;  %v3065_v33 = vsel %vm2553_vm15, %v2037_v18, %v2809_v32  ;;  %v2686_v8 = vmul.f32 0.2, %v1546_v48  ;;  %v6941_v24 = vpop.f32.mrb[57].mxu0  ;;  %v6955_v10 = vpop.f32.mrb[57].mxu1 }
 0x153   :  { %4220 = vst.msk [vmem:[%s8261_s3 + $0xac] sm:$0xf] %vm4176_vm1, %v4996_v50  ;;  %v5122_v5 = vpack.c.bf16 %v3065_v33, %v3065_v33  ;;  %vm2558_vm3 = vcmp.gt.f32.partialorder %v2058_v46, 0.0  ;;  %v2814_v60 = vmul.f32 0.2, %v2058_v46  ;;  %vm2428_vm4 = vcmp.gt.f32.partialorder %v1538_v26, 0.0 }
 0x154   :  { %4348 = vst.msk [vmem:[%s8261_s3 + $0x2ac] sm:$0xf] %vm4176_vm1, %v5124_v56  ;;  %4218 = vst.msk [vmem:[%s8261_s3 + $0xa4] sm:$0xf] %vm4176_vm1, %v4994_v6  ;;  %v2684_v13 = vmul.f32 0.2, %v1538_v26  ;;  %v2050_v4 = vadd.f32 %v6748_v31, %v6787_v14  ;;  %v1549_v9 = vadd.f32 %v6748_v31, %v6789_v38  ;;  %v2942_v12 = vsel %vm2430_vm2, %v1546_v48, %v2686_v8 }
 0x155   :  { %v6957_v11 = vpop.f32.mrb[58].mxu0  ;;  %4346 = vst.msk [vmem:[%s8261_s3 + $0x2a4] sm:$0xf] %vm4176_vm1, %v5122_v5  ;;  %v3070_v15 = vsel %vm2558_vm3, %v2058_v46, %v2814_v60  ;;  %v2061_v61 = vadd.f32 %v6748_v31, %v6791_v16  ;;  %v1541_v14 = vadd.f32 %v6748_v31, %v6805_v19  ;;  %v6968_v25 = vpop.f32.mrb[58].mxu1  ;;  %v4999_v2 = vpack.c.bf16 %v2942_v12, %v2942_v12 }
 0x156   :  { %v6970_v38 = vpop.f32.mrb[59].mxu0  ;;  %v5127_v3 = vpack.c.bf16 %v3070_v15, %v3070_v15  ;;  %v2940_v59 = vsel %vm2428_vm4, %v1538_v26, %v2684_v13  ;;  %vm2556_vm0 = vcmp.gt.f32.partialorder %v2050_v4, 0.0  ;;  %v6972_v36 = vpop.f32.mrb[59].mxu1  ;;  %v2812_v27 = vmul.f32 0.2, %v2050_v4 }
 0x157   :  { %v4997_v52 = vpack.c.bf16 %v2940_v59, %v2940_v59  ;;  %vm2431_vm5 = vcmp.gt.f32.partialorder %v1549_v9, 0.0  ;;  %v2687_v28 = vmul.f32 0.2, %v1549_v9  ;;  %4223 = vst.msk [vmem:[%s8261_s3 + $0xb8] sm:$0xf] %vm4176_vm1, %v4999_v2  ;;  %vm2559_vm6 = vcmp.gt.f32.partialorder %v2061_v61, 0.0 }
 0x158   :  { %4351 = vst.msk [vmem:[%s8261_s3 + $0x2b8] sm:$0xf] %vm4176_vm1, %v5127_v3  ;;  %v2815_v16 = vmul.f32 0.2, %v2061_v61  ;;  %vm2429_vm7 = vcmp.gt.f32.partialorder %v1541_v14, 0.0  ;;  %v3068_v29 = vsel %vm2556_vm0, %v2050_v4, %v2812_v27  ;;  %v2053_v57 = vadd.f32 %v6748_v31, %v6807_v20 }
 0x159   :  { %v2685_v19 = vmul.f32 0.2, %v1541_v14  ;;  %4221 = vst.msk [vmem:[%s8261_s3 + $0xb0] sm:$0xf] %vm4176_vm1, %v4997_v52  ;;  %v2943_v39 = vsel %vm2431_vm5, %v1549_v9, %v2687_v28  ;;  %v1562_v17 = vadd.f32 %v6748_v31, %v6827_v41  ;;  %v5125_v18 = vpack.c.bf16 %v3068_v29, %v3068_v29  ;;  %v6990_v45 = vpop.f32.mrb[60].mxu0  ;;  %v6992_v22 = vpop.f32.mrb[60].mxu1 }
 0x15a   :  { %v5000_v1 = vpack.c.bf16 %v2943_v39, %v2943_v39  ;;  %v3071_v49 = vsel %vm2559_vm6, %v2061_v61, %v2815_v16  ;;  %vm2557_vm8 = vcmp.gt.f32.partialorder %v2053_v57, 0.0  ;;  %v2813_v46 = vmul.f32 0.2, %v2053_v57  ;;  %v6994_v50 = vpop.f32.mrb[61].mxu0  ;;  %v6996_v55 = vpop.f32.mrb[61].mxu1 }
 0x15b   :  { %v2941_v42 = vsel %vm2429_vm7, %v1541_v14, %v2685_v19  ;;  %v5128_v32 = vpack.c.bf16 %v3071_v49, %v3071_v49  ;;  %4349 = vst.msk [vmem:[%s8261_s3 + $0x2b0] sm:$0xf] %vm4176_vm1, %v5125_v18  ;;  %vm2434_vm9 = vcmp.gt.f32.partialorder %v1562_v17, 0.0  ;;  %v2690_v20 = vmul.f32 0.2, %v1562_v17  ;;  %v7010_v26 = vpop.f32.mrb[62].mxu0 }
 0x15c   :  { %v4998_v48 = vpack.c.bf16 %v2941_v42, %v2941_v42  ;;  %4224 = vst.msk [vmem:[%s8261_s3 + $0xbc] sm:$0xf] %vm4176_vm1, %v5000_v1  ;;  %v2074_v41 = vadd.f32 %v6748_v31, %v6833_v43  ;;  %v1554_v47 = vadd.f32 %v6748_v31, %v6835_v44  ;;  %v7012_v56 = vpop.f32.mrb[62].mxu1  ;;  %v3069_v6 = vsel %vm2557_vm8, %v2053_v57, %v2813_v46  ;;  %v7028_v5 = vpop.f32.mrb[63].mxu0 }
 0x15d   :  { %4352 = vst.msk [vmem:[%s8261_s3 + $0x2bc] sm:$0xf] %vm4176_vm1, %v5128_v32  ;;  %v2066_v43 = vadd.f32 %v6748_v31, %v6839_v51  ;;  %v1565_v44 = vadd.f32 %v6748_v31, %v6841_v21  ;;  %v2077_v33 = vadd.f32 %v6748_v31, %v6849_v58  ;;  %v7030_v8 = vpop.f32.mrb[63].mxu1  ;;  %v5126_v60 = vpack.c.bf16 %v3069_v6, %v3069_v6 }
 0x15e   :  { %4222 = vst.msk [vmem:[%s8261_s3 + $0xb4] sm:$0xf] %vm4176_vm1, %v4998_v48  ;;  %v2946_v13 = vsel %vm2434_vm9, %v1562_v17, %v2690_v20  ;;  %vm2562_vm10 = vcmp.gt.f32.partialorder %v2074_v41, 0.0  ;;  %v2818_v4 = vmul.f32 0.2, %v2074_v41  ;;  %vm2432_vm11 = vcmp.gt.f32.partialorder %v1554_v47, 0.0 }
 0x15f   :  { %v5003_v9 = vpack.c.bf16 %v2946_v13, %v2946_v13  ;;  %v2688_v12 = vmul.f32 0.2, %v1554_v47  ;;  %vm2560_vm12 = vcmp.gt.f32.partialorder %v2066_v43, 0.0  ;;  %4350 = vst.msk [vmem:[%s8261_s3 + $0x2b4] sm:$0xf] %vm4176_vm1, %v5126_v60  ;;  %vm2435_vm13 = vcmp.gt.f32.partialorder %v1565_v44, 0.0 }
 0x160   :  { %v3074_v51 = vsel %vm2562_vm10, %v2074_v41, %v2818_v4  ;;  %v2816_v21 = vmul.f32 0.2, %v2066_v43  ;;  %v2691_v58 = vmul.f32 0.2, %v1565_v44  ;;  %vm2563_vm14 = vcmp.gt.f32.partialorder %v2077_v33, 0.0 }
 0x161   :  { %4227 = vst.msk [vmem:[%s8261_s3 + $0xc8] sm:$0xf] %vm4176_vm1, %v5003_v9  ;;  %v5131_v15 = vpack.c.bf16 %v3074_v51, %v3074_v51  ;;  %v2944_v61 = vsel %vm2432_vm11, %v1554_v47, %v2688_v12  ;;  %v2819_v14 = vmul.f32 0.2, %v2077_v33  ;;  %v1557_v52 = vadd.f32 %v6748_v31, %v6851_v30  ;;  %v7042_v27 = vpop.f32.mrb[64].mxu0  ;;  %v7044_v28 = vpop.f32.mrb[64].mxu1 }
 0x162   :  { %v5001_v2 = vpack.c.bf16 %v2944_v61, %v2944_v61  ;;  %v3072_v3 = vsel %vm2560_vm12, %v2066_v43, %v2816_v21  ;;  %v2947_v59 = vsel %vm2435_vm13, %v1565_v44, %v2691_v58  ;;  %v2069_v39 = vadd.f32 %v6748_v31, %v6859_v63  ;;  %v7052_v57 = vpop.f32.mrb[65].mxu0  ;;  %v7054_v17 = vpop.f32.mrb[65].mxu1 }
 0x163   :  { %4355 = vst.msk [vmem:[%s8261_s3 + $0x2c8] sm:$0xf] %vm4176_vm1, %v5131_v15  ;;  %v5129_v16 = vpack.c.bf16 %v3072_v3, %v3072_v3  ;;  %v5004_v19 = vpack.c.bf16 %v2947_v59, %v2947_v59  ;;  %v3075_v29 = vsel %vm2563_vm14, %v2077_v33, %v2819_v14  ;;  %vm2433_vm15 = vcmp.gt.f32.partialorder %v1557_v52, 0.0  ;;  %v7062_v49 = vpop.f32.mrb[66].mxu0  ;;  %v7064_v42 = vpop.f32.mrb[66].mxu1 }
 0x164   :  { %4225 = vst.msk [vmem:[%s8261_s3 + $0xc0] sm:$0xf] %vm4176_vm1, %v5001_v2  ;;  %v5132_v30 = vpack.c.bf16 %v3075_v29, %v3075_v29  ;;  %v2689_v18 = vmul.f32 0.2, %v1557_v52  ;;  %v1578_v1 = vadd.f32 %v6748_v31, %v6879_v35  ;;  %vm2561_vm2 = vcmp.gt.f32.partialorder %v2069_v39, 0.0  ;;  %v7078_v48 = vpop.f32.mrb[67].mxu0 }
 0x165   :  { %4353 = vst.msk [vmem:[%s8261_s3 + $0x2c0] sm:$0xf] %vm4176_vm1, %v5129_v16  ;;  %4228 = vst.msk [vmem:[%s8261_s3 + $0xcc] sm:$0xf] %vm4176_vm1, %v5004_v19  ;;  %v2817_v63 = vmul.f32 0.2, %v2069_v39  ;;  %v2090_v32 = vadd.f32 %v6748_v31, %v6881_v53  ;;  %v1570_v35 = vadd.f32 %v6748_v31, %v6887_v23  ;;  %v2082_v47 = vadd.f32 %v6748_v31, %v6889_v54 }
 0x166   :  { %v7080_v46 = vpop.f32.mrb[67].mxu1  ;;  %4356 = vst.msk [vmem:[%s8261_s3 + $0x2cc] sm:$0xf] %vm4176_vm1, %v5132_v30  ;;  %v2945_v20 = vsel %vm2433_vm15, %v1557_v52, %v2689_v18  ;;  %vm2438_vm3 = vcmp.gt.f32.partialorder %v1578_v1, 0.0  ;;  %v2694_v41 = vmul.f32 0.2, %v1578_v1  ;;  %v1581_v12 = vadd.f32 %v6748_v31, %v6899_v34 }
 0x167   :  { %v5002_v6 = vpack.c.bf16 %v2945_v20, %v2945_v20  ;;  %v3073_v53 = vsel %vm2561_vm2, %v2069_v39, %v2817_v63  ;;  %vm2566_vm4 = vcmp.gt.f32.partialorder %v2090_v32, 0.0  ;;  %v2822_v43 = vmul.f32 0.2, %v2090_v32 }
 0x168   :  { %v5130_v23 = vpack.c.bf16 %v3073_v53, %v3073_v53  ;;  %v2950_v44 = vsel %vm2438_vm3, %v1578_v1, %v2694_v41  ;;  %vm2436_vm0 = vcmp.gt.f32.partialorder %v1570_v35, 0.0  ;;  %v2692_v33 = vmul.f32 0.2, %v1570_v35 }
 0x169   :  { %4226 = vst.msk [vmem:[%s8261_s3 + $0xc4] sm:$0xf] %vm4176_vm1, %v5002_v6  ;;  %v5007_v60 = vpack.c.bf16 %v2950_v44, %v2950_v44  ;;  %v3078_v13 = vsel %vm2566_vm4, %v2090_v32, %v2822_v43  ;;  %vm2564_vm5 = vcmp.gt.f32.partialorder %v2082_v47, 0.0  ;;  %v2820_v4 = vmul.f32 0.2, %v2082_v47  ;;  %v7100_v21 = vpop.f32.mrb[68].mxu0 }
 0x16a   :  { %4354 = vst.msk [vmem:[%s8261_s3 + $0x2c4] sm:$0xf] %vm4176_vm1, %v5130_v23  ;;  %v5135_v54 = vpack.c.bf16 %v3078_v13, %v3078_v13  ;;  %v2948_v9 = vsel %vm2436_vm0, %v1570_v35, %v2692_v33  ;;  %v2093_v51 = vadd.f32 %v6748_v31, %v6901_v37  ;;  %v7102_v58 = vpop.f32.mrb[68].mxu1  ;;  %v1573_v14 = vadd.f32 %v6748_v31, %v6911_v0  ;;  %v7112_v2 = vpop.f32.mrb[69].mxu0 }
 0x16b   :  { %4231 = vst.msk [vmem:[%s8261_s3 + $0xd8] sm:$0xf] %vm4176_vm1, %v5007_v60  ;;  %v5005_v15 = vpack.c.bf16 %v2948_v9, %v2948_v9  ;;  %v3076_v61 = vsel %vm2564_vm5, %v2082_v47, %v2820_v4  ;;  %v2085_v34 = vadd.f32 %v6748_v31, %v6913_v40  ;;  %v7114_v37 = vpop.f32.mrb[69].mxu1  ;;  %vm2439_vm6 = vcmp.gt.f32.partialorder %v1581_v12, 0.0  ;;  %v7120_v52 = vpop.f32.mrb[70].mxu0 }
 0x16c   :  { %4359 = vst.msk [vmem:[%s8261_s3 + $0x2d8] sm:$0xf] %vm4176_vm1, %v5135_v54  ;;  %v5133_v3 = vpack.c.bf16 %v3076_v61, %v3076_v61  ;;  %v2695_v59 = vmul.f32 0.2, %v1581_v12  ;;  %vm2567_vm7 = vcmp.gt.f32.partialorder %v2093_v51, 0.0  ;;  %v7122_v16 = vpop.f32.mrb[70].mxu1  ;;  %v1594_v39 = vadd.f32 %v6748_v31, %v6933_v62 }
 0x16d   :  { %4229 = vst.msk [vmem:[%s8261_s3 + $0xd0] sm:$0xf] %vm4176_vm1, %v5005_v15  ;;  %v2823_v0 = vmul.f32 0.2, %v2093_v51  ;;  %vm2437_vm8 = vcmp.gt.f32.partialorder %v1573_v14, 0.0  ;;  %vm2565_vm9 = vcmp.gt.f32.partialorder %v2085_v34, 0.0  ;;  %v2106_v30 = vadd.f32 %v6748_v31, %v6935_v7 }
 0x16e   :  { %v2693_v40 = vmul.f32 0.2, %v1573_v14  ;;  %4357 = vst.msk [vmem:[%s8261_s3 + $0x2d0] sm:$0xf] %vm4176_vm1, %v5133_v3  ;;  %v2951_v19 = vsel %vm2439_vm6, %v1581_v12, %v2695_v59  ;;  %v2821_v29 = vmul.f32 0.2, %v2085_v34  ;;  %v1586_v20 = vadd.f32 %v6748_v31, %v6941_v24 }
 0x16f   :  { %v7136_v18 = vpop.f32.mrb[71].mxu0  ;;  %v7138_v1 = vpop.f32.mrb[71].mxu1  ;;  %v5008_v63 = vpack.c.bf16 %v2951_v19, %v2951_v19  ;;  %v3079_v32 = vsel %vm2567_vm7, %v2093_v51, %v2823_v0  ;;  %vm2442_vm10 = vcmp.gt.f32.partialorder %v1594_v39, 0.0  ;;  %v2698_v7 = vmul.f32 0.2, %v1594_v39 }
 0x170   :  { %v2949_v35 = vsel %vm2437_vm8, %v1573_v14, %v2693_v40  ;;  %v5136_v41 = vpack.c.bf16 %v3079_v32, %v3079_v32  ;;  %v3077_v6 = vsel %vm2565_vm9, %v2085_v34, %v2821_v29  ;;  %vm2570_vm11 = vcmp.gt.f32.partialorder %v2106_v30, 0.0 }
 0x171   :  { %v5006_v47 = vpack.c.bf16 %v2949_v35, %v2949_v35  ;;  %4232 = vst.msk [vmem:[%s8261_s3 + $0xdc] sm:$0xf] %vm4176_vm1, %v5008_v63  ;;  %v5134_v62 = vpack.c.bf16 %v3077_v6, %v3077_v6  ;;  %v2826_v53 = vmul.f32 0.2, %v2106_v30  ;;  %vm2440_vm12 = vcmp.gt.f32.partialorder %v1586_v20, 0.0  ;;  %v7159_v44 = vpop.f32.mrb[72].mxu0 }
 0x172   :  { %4360 = vst.msk [vmem:[%s8261_s3 + $0x2dc] sm:$0xf] %vm4176_vm1, %v5136_v41  ;;  %v2696_v24 = vmul.f32 0.2, %v1586_v20  ;;  %v2098_v43 = vadd.f32 %v6748_v31, %v6955_v10  ;;  %v1597_v23 = vadd.f32 %v6748_v31, %v6957_v11  ;;  %v7161_v33 = vpop.f32.mrb[72].mxu1  ;;  %v2954_v60 = vsel %vm2442_vm10, %v1594_v39, %v2698_v7  ;;  %v7171_v54 = vpop.f32.mrb[73].mxu0 }
 0x173   :  { %4230 = vst.msk [vmem:[%s8261_s3 + $0xd4] sm:$0xf] %vm4176_vm1, %v5006_v47  ;;  %4358 = vst.msk [vmem:[%s8261_s3 + $0x2d4] sm:$0xf] %vm4176_vm1, %v5134_v62  ;;  %v3082_v13 = vsel %vm2570_vm11, %v2106_v30, %v2826_v53  ;;  %v2109_v4 = vadd.f32 %v6748_v31, %v6968_v25  ;;  %v1589_v10 = vadd.f32 %v6748_v31, %v6970_v38  ;;  %v7173_v11 = vpop.f32.mrb[73].mxu1  ;;  %v7175_v15 = vpop.f32.mrb[74].mxu0 }
 0x174   :  { %v5011_v9 = vpack.c.bf16 %v2954_v60, %v2954_v60  ;;  %v5139_v12 = vpack.c.bf16 %v3082_v13, %v3082_v13  ;;  %v2952_v51 = vsel %vm2440_vm12, %v1586_v20, %v2696_v24  ;;  %vm2568_vm13 = vcmp.gt.f32.partialorder %v2098_v43, 0.0  ;;  %v7177_v61 = vpop.f32.mrb[74].mxu1  ;;  %v7179_v25 = vpop.f32.mrb[75].mxu0 }
 0x175   :  { %v5009_v14 = vpack.c.bf16 %v2952_v51, %v2952_v51  ;;  %v2824_v34 = vmul.f32 0.2, %v2098_v43  ;;  %vm2443_vm14 = vcmp.gt.f32.partialorder %v1597_v23, 0.0  ;;  %v2699_v3 = vmul.f32 0.2, %v1597_v23  ;;  %v7197_v39 = vpop.f32.mrb[75].mxu1 }
 0x176   :  { %4235 = vst.msk [vmem:[%s8261_s3 + $0xe8] sm:$0xf] %vm4176_vm1, %v5011_v9  ;;  %4363 = vst.msk [vmem:[%s8261_s3 + $0x2e8] sm:$0xf] %vm4176_vm1, %v5139_v12  ;;  %vm2571_vm15 = vcmp.gt.f32.partialorder %v2109_v4, 0.0  ;;  %vm2441_vm2 = vcmp.gt.f32.partialorder %v1589_v10, 0.0  ;;  %v2101_v19 = vadd.f32 %v6748_v31, %v6972_v36  ;;  %v1610_v29 = vadd.f32 %v6748_v31, %v6990_v45 }
 0x177   :  { %v2827_v38 = vmul.f32 0.2, %v2109_v4  ;;  %v2697_v59 = vmul.f32 0.2, %v1589_v10  ;;  %4233 = vst.msk [vmem:[%s8261_s3 + $0xe0] sm:$0xf] %vm4176_vm1, %v5009_v14  ;;  %v3080_v0 = vsel %vm2568_vm13, %v2098_v43, %v2824_v34  ;;  %v2955_v40 = vsel %vm2443_vm14, %v1597_v23, %v2699_v3 }
 0x178   :  { %v5137_v30 = vpack.c.bf16 %v3080_v0, %v3080_v0  ;;  %v5012_v63 = vpack.c.bf16 %v2955_v40, %v2955_v40  ;;  %vm2569_vm3 = vcmp.gt.f32.partialorder %v2101_v19, 0.0  ;;  %v2825_v47 = vmul.f32 0.2, %v2101_v19 }
 0x179   :  { %v3083_v32 = vsel %vm2571_vm15, %v2109_v4, %v2827_v38  ;;  %v2953_v35 = vsel %vm2441_vm2, %v1589_v10, %v2697_v59  ;;  %vm2446_vm4 = vcmp.gt.f32.partialorder %v1610_v29, 0.0  ;;  %v2702_v36 = vmul.f32 0.2, %v1610_v29  ;;  %v7211_v62 = vpop.f32.mrb[76].mxu0  ;;  %v7213_v7 = vpop.f32.mrb[76].mxu1 }
 0x17a   :  { %v5140_v20 = vpack.c.bf16 %v3083_v32, %v3083_v32  ;;  %v5010_v41 = vpack.c.bf16 %v2953_v35, %v2953_v35  ;;  %4361 = vst.msk [vmem:[%s8261_s3 + $0x2e0] sm:$0xf] %vm4176_vm1, %v5137_v30  ;;  %4236 = vst.msk [vmem:[%s8261_s3 + $0xec] sm:$0xf] %vm4176_vm1, %v5012_v63  ;;  %v2122_v45 = vadd.f32 %v6748_v31, %v6992_v22  ;;  %v7229_v43 = vpop.f32.mrb[77].mxu0  ;;  %v7231_v23 = vpop.f32.mrb[77].mxu1 }
 0x17b   :  { %v1602_v6 = vadd.f32 %v6748_v31, %v6994_v50  ;;  %v3081_v53 = vsel %vm2569_vm3, %v2101_v19, %v2825_v47  ;;  %v2114_v22 = vadd.f32 %v6748_v31, %v6996_v55  ;;  %v1613_v50 = vadd.f32 %v6748_v31, %v7010_v26  ;;  %v7233_v10 = vpop.f32.mrb[78].mxu0  ;;  %v7235_v9 = vpop.f32.mrb[78].mxu1 }
 0x17c   :  { %4364 = vst.msk [vmem:[%s8261_s3 + $0x2ec] sm:$0xf] %vm4176_vm1, %v5140_v20  ;;  %4234 = vst.msk [vmem:[%s8261_s3 + $0xe4] sm:$0xf] %vm4176_vm1, %v5010_v41  ;;  %v2125_v24 = vadd.f32 %v6748_v31, %v7012_v56  ;;  %v5138_v60 = vpack.c.bf16 %v3081_v53, %v3081_v53  ;;  %v2958_v13 = vsel %vm2446_vm4, %v1610_v29, %v2702_v36  ;;  %vm2574_vm0 = vcmp.gt.f32.partialorder %v2122_v45, 0.0  ;;  %v7237_v26 = vpop.f32.mrb[79].mxu0 }
 0x17d   :  { %v2830_v4 = vmul.f32 0.2, %v2122_v45  ;;  %v5015_v12 = vpack.c.bf16 %v2958_v13, %v2958_v13  ;;  %vm2444_vm5 = vcmp.gt.f32.partialorder %v1602_v6, 0.0  ;;  %v2700_v55 = vmul.f32 0.2, %v1602_v6  ;;  %v7239_v51 = vpop.f32.mrb[79].mxu1 }
 0x17e   :  { %vm2572_vm6 = vcmp.gt.f32.partialorder %v2114_v22, 0.0  ;;  %4362 = vst.msk [vmem:[%s8261_s3 + $0x2e4] sm:$0xf] %vm4176_vm1, %v5138_v60  ;;  %v2828_v14 = vmul.f32 0.2, %v2114_v22  ;;  %vm2447_vm7 = vcmp.gt.f32.partialorder %v1613_v50, 0.0  ;;  %v1605_v29 = vadd.f32 %v6748_v31, %v7028_v5 }
 0x17f   :  { %v3086_v56 = vsel %vm2574_vm0, %v2122_v45, %v2830_v4  ;;  %v2703_v34 = vmul.f32 0.2, %v1613_v50  ;;  %4239 = vst.msk [vmem:[%s8261_s3 + $0xf8] sm:$0xf] %vm4176_vm1, %v5015_v12  ;;  %v2956_v38 = vsel %vm2444_vm5, %v1602_v6, %v2700_v55  ;;  %vm2575_vm8 = vcmp.gt.f32.partialorder %v2125_v24, 0.0 }
 0x180   :  { %v5143_v3 = vpack.c.bf16 %v3086_v56, %v3086_v56  ;;  %v2831_v59 = vmul.f32 0.2, %v2125_v24  ;;  %v5013_v0 = vpack.c.bf16 %v2956_v38, %v2956_v38  ;;  %v3084_v40 = vsel %vm2572_vm6, %v2114_v22, %v2828_v14 }
 0x181   :  { %v2959_v19 = vsel %vm2447_vm7, %v1613_v50, %v2703_v34  ;;  %v5141_v30 = vpack.c.bf16 %v3084_v40, %v3084_v40  ;;  %v2117_v35 = vadd.f32 %v6748_v31, %v7030_v8  ;;  %vm2445_vm9 = vcmp.gt.f32.partialorder %v1605_v29, 0.0  ;;  %v7263_v47 = vpop.f32.mrb[80].mxu0  ;;  %v7265_v36 = vpop.f32.mrb[80].mxu1 }
 0x182   :  { %4367 = vst.msk [vmem:[%s8261_s3 + $0x2f8] sm:$0xf] %vm4176_vm1, %v5143_v3  ;;  %v5016_v63 = vpack.c.bf16 %v2959_v19, %v2959_v19  ;;  %v3087_v32 = vsel %vm2575_vm8, %v2125_v24, %v2831_v59  ;;  %4237 = vst.msk [vmem:[%s8261_s3 + $0xf0] sm:$0xf] %vm4176_vm1, %v5013_v0  ;;  %v2701_v41 = vmul.f32 0.2, %v1605_v29  ;;  %v1626_v5 = vadd.f32 %v6748_v31, %v7042_v27 }
 0x183   :  { %v5144_v20 = vpack.c.bf16 %v3087_v32, %v3087_v32  ;;  %4365 = vst.msk [vmem:[%s8261_s3 + $0x2f0] sm:$0xf] %vm4176_vm1, %v5141_v30  ;;  %vm2573_vm10 = vcmp.gt.f32.partialorder %v2117_v35, 0.0  ;;  %v2829_v8 = vmul.f32 0.2, %v2117_v35  ;;  %v2138_v45 = vadd.f32 %v6748_v31, %v7044_v28  ;;  %v7279_v6 = vpop.f32.mrb[81].mxu0 }
 0x184   :  { %4240 = vst.msk [vmem:[%s8261_s3 + $0xfc] sm:$0xf] %vm4176_vm1, %v5016_v63  ;;  %v1618_v27 = vadd.f32 %v6748_v31, %v7052_v57  ;;  %v7281_v53 = vpop.f32.mrb[81].mxu1  ;;  %v2957_v22 = vsel %vm2445_vm9, %v1605_v29, %v2701_v41  ;;  %vm2450_vm11 = vcmp.gt.f32.partialorder %v1626_v5, 0.0  ;;  %v2706_v50 = vmul.f32 0.2, %v1626_v5 }
 0x185   :  { %4368 = vst.msk [vmem:[%s8261_s3 + $0x2fc] sm:$0xf] %vm4176_vm1, %v5144_v20  ;;  %v2130_v24 = vadd.f32 %v6748_v31, %v7054_v17  ;;  %v7289_v60 = vpop.f32.mrb[82].mxu0  ;;  %v7291_v28 = vpop.f32.mrb[82].mxu1  ;;  %v5014_v57 = vpack.c.bf16 %v2957_v22, %v2957_v22  ;;  %v3085_v13 = vsel %vm2573_vm10, %v2117_v35, %v2829_v8  ;;  %vm2578_vm12 = vcmp.gt.f32.partialorder %v2138_v45, 0.0 }
 0x186   :  { %v2834_v4 = vmul.f32 0.2, %v2138_v45  ;;  %v7293_v12 = vpop.f32.mrb[83].mxu0  ;;  %v7295_v55 = vpop.f32.mrb[83].mxu1  ;;  %v5142_v56 = vpack.c.bf16 %v3085_v13, %v3085_v13  ;;  %v2962_v14 = vsel %vm2450_vm11, %v1626_v5, %v2706_v50  ;;  %vm2448_vm13 = vcmp.gt.f32.partialorder %v1618_v27, 0.0 }
 0x187   :  { %v2704_v34 = vmul.f32 0.2, %v1618_v27  ;;  %4238 = vst.msk [vmem:[%s8261_s3 + $0xf4] sm:$0xf] %vm4176_vm1, %v5014_v57  ;;  %v5019_v17 = vpack.c.bf16 %v2962_v14, %v2962_v14  ;;  %vm2576_vm14 = vcmp.gt.f32.partialorder %v2130_v24, 0.0  ;;  %v1629_v40 = vadd.f32 %v6748_v31, %v7062_v49 }
 0x188   :  { %v3090_v3 = vsel %vm2578_vm12, %v2138_v45, %v2834_v4  ;;  %v2832_v38 = vmul.f32 0.2, %v2130_v24  ;;  %4366 = vst.msk [vmem:[%s8261_s3 + $0x2f4] sm:$0xf] %vm4176_vm1, %v5142_v56  ;;  %v2141_v19 = vadd.f32 %v6748_v31, %v7064_v42  ;;  %v1621_v63 = vadd.f32 %v6748_v31, %v7078_v48 }
 0x189   :  { %v5147_v59 = vpack.c.bf16 %v3090_v3, %v3090_v3  ;;  %v2960_v0 = vsel %vm2448_vm13, %v1618_v27, %v2704_v34  ;;  %4243 = vst.msk [vmem:[%s8261_s3 + $0x108] sm:$0xf] %vm4176_vm1, %v5019_v17  ;;  %v2133_v32 = vadd.f32 %v6748_v31, %v7080_v46  ;;  %vm2451_vm15 = vcmp.gt.f32.partialorder %v1629_v40, 0.0  ;;  %v7321_v35 = vpop.f32.mrb[84].mxu0  ;;  %v7323_v20 = vpop.f32.mrb[84].mxu1 }
 0x18a   :  { %v5017_v29 = vpack.c.bf16 %v2960_v0, %v2960_v0  ;;  %v3088_v30 = vsel %vm2576_vm14, %v2130_v24, %v2832_v38  ;;  %v2707_v42 = vmul.f32 0.2, %v1629_v40  ;;  %vm2579_vm2 = vcmp.gt.f32.partialorder %v2141_v19, 0.0  ;;  %v7337_v27 = vpop.f32.mrb[85].mxu0  ;;  %v7339_v22 = vpop.f32.mrb[85].mxu1 }
 0x18b   :  { %4371 = vst.msk [vmem:[%s8261_s3 + $0x308] sm:$0xf] %vm4176_vm1, %v5147_v59  ;;  %v5145_v49 = vpack.c.bf16 %v3088_v30, %v3088_v30  ;;  %v2835_v48 = vmul.f32 0.2, %v2141_v19  ;;  %vm2449_vm3 = vcmp.gt.f32.partialorder %v1621_v63, 0.0  ;;  %vm2577_vm4 = vcmp.gt.f32.partialorder %v2133_v32, 0.0 }
 0x18c   :  { %4241 = vst.msk [vmem:[%s8261_s3 + $0x100] sm:$0xf] %vm4176_vm1, %v5017_v29  ;;  %v2705_v46 = vmul.f32 0.2, %v1621_v63  ;;  %v2963_v41 = vsel %vm2451_vm15, %v1629_v40, %v2707_v42  ;;  %v2833_v5 = vmul.f32 0.2, %v2133_v32  ;;  %v1642_v8 = vadd.f32 %v6748_v31, %v7100_v21 }
 0x18d   :  { %4369 = vst.msk [vmem:[%s8261_s3 + $0x300] sm:$0xf] %vm4176_vm1, %v5145_v49  ;;  %v2154_v45 = vadd.f32 %v6748_v31, %v7102_v58  ;;  %v5020_v50 = vpack.c.bf16 %v2963_v41, %v2963_v41  ;;  %v3091_v24 = vsel %vm2579_vm2, %v2141_v19, %v2835_v48  ;;  %v1634_v13 = vadd.f32 %v6748_v31, %v7112_v2  ;;  %v7344_v4 = vpop.f32.mrb[86].mxu0  ;;  %v7346_v56 = vpop.f32.mrb[86].mxu1  ;;  %v7368_v59 = vld [vmem:[%s8260_s2] ss:$0 sm:$0xff] }
 0x18e   :  { %v2961_v57 = vsel %vm2449_vm3, %v1621_v63, %v2705_v46  ;;  %v5148_v14 = vpack.c.bf16 %v3091_v24, %v3091_v24  ;;  %v3089_v34 = vsel %vm2577_vm4, %v2133_v32, %v2833_v5  ;;  %vm2454_vm0 = vcmp.gt.f32.partialorder %v1642_v8, 0.0  ;;  %v7349_v58 = vpop.f32.mrb[87].mxu0  ;;  %v7351_v17 = vpop.f32.mrb[87].mxu1 }
 0x18f   :  { %v5018_v21 = vpack.c.bf16 %v2961_v57, %v2961_v57  ;;  %4244 = vst.msk [vmem:[%s8261_s3 + $0x10c] sm:$0xf] %vm4176_vm1, %v5020_v50  ;;  %v5146_v3 = vpack.c.bf16 %v3089_v34, %v3089_v34  ;;  %v2710_v31 = vmul.f32 0.2, %v1642_v8  ;;  %vm2582_vm5 = vcmp.gt.f32.partialorder %v2154_v45, 0.0 }
 0x190   :  { %v2838_v2 = vmul.f32 0.2, %v2154_v45  ;;  %4372 = vst.msk [vmem:[%s8261_s3 + $0x30c] sm:$0xf] %vm4176_vm1, %v5148_v14  ;;  %vm2452_vm6 = vcmp.gt.f32.partialorder %v1634_v13, 0.0  ;;  %v2146_v0 = vadd.f32 %v7368_v59, %v7114_v37  ;;  %v1645_v40 = vadd.f32 %v7368_v59, %v7120_v52 }
 0x191   :  { %4242 = vst.msk [vmem:[%s8261_s3 + $0x104] sm:$0xf] %vm4176_vm1, %v5018_v21  ;;  %v2708_v38 = vmul.f32 0.2, %v1634_v13  ;;  %4370 = vst.msk [vmem:[%s8261_s3 + $0x304] sm:$0xf] %vm4176_vm1, %v5146_v3  ;;  %v2966_v19 = vsel %vm2454_vm0, %v1642_v8, %v2710_v31  ;;  %v2157_v30 = vadd.f32 %v7368_v59, %v7122_v16  ;;  %v1637_v63 = vadd.f32 %v7368_v59, %v7136_v18 }
 0x192   :  { %v3094_v29 = vsel %vm2582_vm5, %v2154_v45, %v2838_v2  ;;  %v5023_v32 = vpack.c.bf16 %v2966_v19, %v2966_v19  ;;  %vm2580_vm7 = vcmp.gt.f32.partialorder %v2146_v0, 0.0  ;;  %v7383_v42 = vpop.f32.mrb[88].mxu0  ;;  %v7385_v52 = vpop.f32.mrb[88].mxu1  ;;  %v2836_v46 = vmul.f32 0.2, %v2146_v0 }
 0x193   :  { %v5151_v49 = vpack.c.bf16 %v3094_v29, %v3094_v29  ;;  %v2964_v37 = vsel %vm2452_vm6, %v1634_v13, %v2708_v38  ;;  %vm2455_vm8 = vcmp.gt.f32.partialorder %v1645_v40, 0.0  ;;  %v2711_v41 = vmul.f32 0.2, %v1645_v40  ;;  %v7387_v5 = vpop.f32.mrb[89].mxu0  ;;  %v7405_v57 = vpop.f32.mrb[89].mxu1 }
 0x194   :  { %v5021_v48 = vpack.c.bf16 %v2964_v37, %v2964_v37  ;;  %4247 = vst.msk [vmem:[%s8261_s3 + $0x118] sm:$0xf] %vm4176_vm1, %v5023_v32  ;;  %vm2583_vm9 = vcmp.gt.f32.partialorder %v2157_v30, 0.0  ;;  %v2839_v16 = vmul.f32 0.2, %v2157_v30  ;;  %vm2453_vm10 = vcmp.gt.f32.partialorder %v1637_v63, 0.0 }
 0x195   :  { %4375 = vst.msk [vmem:[%s8261_s3 + $0x318] sm:$0xf] %vm4176_vm1, %v5151_v49  ;;  %v2709_v18 = vmul.f32 0.2, %v1637_v63  ;;  %v3092_v8 = vsel %vm2580_vm7, %v2146_v0, %v2836_v46  ;;  %v2967_v45 = vsel %vm2455_vm8, %v1645_v40, %v2711_v41  ;;  %v2149_v50 = vadd.f32 %v7368_v59, %v7138_v1  ;;  %v7407_v13 = vpop.f32.mrb[90].mxu0  ;;  %v7409_v31 = vpop.f32.mrb[90].mxu1 }
 0x196   :  { %4245 = vst.msk [vmem:[%s8261_s3 + $0x110] sm:$0xf] %vm4176_vm1, %v5021_v48  ;;  %v1658_v24 = vadd.f32 %v7368_v59, %v7159_v44  ;;  %v5149_v14 = vpack.c.bf16 %v3092_v8, %v3092_v8  ;;  %v5024_v21 = vpack.c.bf16 %v2967_v45, %v2967_v45  ;;  %v3095_v34 = vsel %vm2583_vm9, %v2157_v30, %v2839_v16  ;;  %v7411_v2 = vpop.f32.mrb[91].mxu0  ;;  %v7413_v1 = vpop.f32.mrb[91].mxu1 }
 0x197   :  { %v2965_v3 = vsel %vm2453_vm10, %v1637_v63, %v2709_v18  ;;  %v5152_v38 = vpack.c.bf16 %v3095_v34, %v3095_v34  ;;  %vm2581_vm11 = vcmp.gt.f32.partialorder %v2149_v50, 0.0  ;;  %v2837_v40 = vmul.f32 0.2, %v2149_v50 }
 0x198   :  { %v5022_v0 = vpack.c.bf16 %v2965_v3, %v2965_v3  ;;  %4373 = vst.msk [vmem:[%s8261_s3 + $0x310] sm:$0xf] %vm4176_vm1, %v5149_v14  ;;  %4248 = vst.msk [vmem:[%s8261_s3 + $0x11c] sm:$0xf] %vm4176_vm1, %v5024_v21  ;;  %vm2458_vm12 = vcmp.gt.f32.partialorder %v1658_v24, 0.0  ;;  %v2170_v19 = vadd.f32 %v7368_v59, %v7161_v33  ;;  %v1650_v29 = vadd.f32 %v7368_v59, %v7171_v54 }
 0x199   :  { %v2714_v44 = vmul.f32 0.2, %v1658_v24  ;;  %4376 = vst.msk [vmem:[%s8261_s3 + $0x31c] sm:$0xf] %vm4176_vm1, %v5152_v38  ;;  %v3093_v30 = vsel %vm2581_vm11, %v2149_v50, %v2837_v40  ;;  %v2162_v63 = vadd.f32 %v7368_v59, %v7173_v11  ;;  %v1661_v33 = vadd.f32 %v7368_v59, %v7175_v15  ;;  %v7441_v48 = vpop.f32.mrb[92].mxu0  ;;  %v7443_v46 = vpop.f32.mrb[92].mxu1 }
 0x19a   :  { %4246 = vst.msk [vmem:[%s8261_s3 + $0x114] sm:$0xf] %vm4176_vm1, %v5022_v0  ;;  %v2173_v54 = vadd.f32 %v7368_v59, %v7177_v61  ;;  %v5150_v32 = vpack.c.bf16 %v3093_v30, %v3093_v30  ;;  %vm2586_vm13 = vcmp.gt.f32.partialorder %v2170_v19, 0.0  ;;  %v2842_v37 = vmul.f32 0.2, %v2170_v19  ;;  %v7445_v18 = vpop.f32.mrb[93].mxu0 }
 0x19b   :  { %v2970_v49 = vsel %vm2458_vm12, %v1658_v24, %v2714_v44  ;;  %vm2456_vm14 = vcmp.gt.f32.partialorder %v1650_v29, 0.0  ;;  %v2712_v16 = vmul.f32 0.2, %v1650_v29  ;;  %vm2584_vm15 = vcmp.gt.f32.partialorder %v2162_v63, 0.0  ;;  %v7447_v11 = vpop.f32.mrb[93].mxu1  ;;  %v7453_v45 = vpop.f32.mrb[94].mxu0 }
 0x19c   :  { %v5027_v41 = vpack.c.bf16 %v2970_v49, %v2970_v49  ;;  %4374 = vst.msk [vmem:[%s8261_s3 + $0x314] sm:$0xf] %vm4176_vm1, %v5150_v32  ;;  %v3098_v15 = vsel %vm2586_vm13, %v2170_v19, %v2842_v37  ;;  %v2840_v61 = vmul.f32 0.2, %v2162_v63  ;;  %vm2459_vm2 = vcmp.gt.f32.partialorder %v1661_v33, 0.0  ;;  %v7459_v21 = vpop.f32.mrb[94].mxu1 }
 0x19d   :  { %v2715_v8 = vmul.f32 0.2, %v1661_v33  ;;  %v5155_v50 = vpack.c.bf16 %v3098_v15, %v3098_v15  ;;  %v2968_v24 = vsel %vm2456_vm14, %v1650_v29, %v2712_v16  ;;  %vm2587_vm3 = vcmp.gt.f32.partialorder %v2173_v54, 0.0  ;;  %v7461_v34 = vpop.f32.mrb[95].mxu0  ;;  %v7466_v44 = vpop.f32.mrb[95].mxu1 }
 0x19e   :  { %4251 = vst.msk [vmem:[%s8261_s3 + $0x128] sm:$0xf] %vm4176_vm1, %v5027_v41  ;;  %v2843_v14 = vmul.f32 0.2, %v2173_v54  ;;  %v5025_v3 = vpack.c.bf16 %v2968_v24, %v2968_v24  ;;  %v3096_v38 = vsel %vm2584_vm15, %v2162_v63, %v2840_v61  ;;  %v1653_v40 = vadd.f32 %v7368_v59, %v7179_v25 }
 0x19f   :  { %v2971_v0 = vsel %vm2459_vm2, %v1661_v33, %v2715_v8  ;;  %4379 = vst.msk [vmem:[%s8261_s3 + $0x328] sm:$0xf] %vm4176_vm1, %v5155_v50  ;;  %v5153_v19 = vpack.c.bf16 %v3096_v38, %v3096_v38  ;;  %v2165_v32 = vadd.f32 %v7368_v59, %v7197_v39  ;;  %v1674_v33 = vadd.f32 %v7368_v59, %v7211_v62 }
 0x1a0   :  { %v5028_v29 = vpack.c.bf16 %v2971_v0, %v2971_v0  ;;  %v3099_v30 = vsel %vm2587_vm3, %v2173_v54, %v2843_v14  ;;  %4249 = vst.msk [vmem:[%s8261_s3 + $0x120] sm:$0xf] %vm4176_vm1, %v5025_v3  ;;  %vm2457_vm4 = vcmp.gt.f32.partialorder %v1653_v40, 0.0  ;;  %v2713_v25 = vmul.f32 0.2, %v1653_v40 }
 0x1a1   :  { %v5156_v63 = vpack.c.bf16 %v3099_v30, %v3099_v30  ;;  %4377 = vst.msk [vmem:[%s8261_s3 + $0x320] sm:$0xf] %vm4176_vm1, %v5153_v19  ;;  %vm2585_vm0 = vcmp.gt.f32.partialorder %v2165_v32, 0.0  ;;  %v2841_v39 = vmul.f32 0.2, %v2165_v32  ;;  %v2186_v54 = vadd.f32 %v7368_v59, %v7213_v7  ;;  %v7498_v16 = vpop.f32.mrb[96].mxu0 }
 0x1a2   :  { %4252 = vst.msk [vmem:[%s8261_s3 + $0x12c] sm:$0xf] %vm4176_vm1, %v5028_v29  ;;  %v1666_v49 = vadd.f32 %v7368_v59, %v7229_v43  ;;  %v2969_v62 = vsel %vm2457_vm4, %v1653_v40, %v2713_v25  ;;  %vm2462_vm5 = vcmp.gt.f32.partialorder %v1674_v33, 0.0  ;;  %v2718_v37 = vmul.f32 0.2, %v1674_v33  ;;  %v7500_v15 = vpop.f32.mrb[96].mxu1 }
 0x1a3   :  { %4380 = vst.msk [vmem:[%s8261_s3 + $0x32c] sm:$0xf] %vm4176_vm1, %v5156_v63  ;;  %v2178_v41 = vadd.f32 %v7368_v59, %v7231_v23  ;;  %v5026_v61 = vpack.c.bf16 %v2969_v62, %v2969_v62  ;;  %v3097_v7 = vsel %vm2585_vm0, %v2165_v32, %v2841_v39  ;;  %vm2590_vm6 = vcmp.gt.f32.partialorder %v2186_v54, 0.0  ;;  %v7502_v43 = vpop.f32.mrb[97].mxu0  ;;  %v7504_v50 = vpop.f32.mrb[97].mxu1 }
 0x1a4   :  { %v2846_v8 = vmul.f32 0.2, %v2186_v54  ;;  %v5154_v24 = vpack.c.bf16 %v3097_v7, %v3097_v7  ;;  %v2974_v14 = vsel %vm2462_vm5, %v1674_v33, %v2718_v37  ;;  %vm2460_vm7 = vcmp.gt.f32.partialorder %v1666_v49, 0.0  ;;  %v7506_v38 = vpop.f32.mrb[98].mxu0  ;;  %v7508_v0 = vpop.f32.mrb[98].mxu1 }
 0x1a5   :  { %v2716_v3 = vmul.f32 0.2, %v1666_v49  ;;  %4250 = vst.msk [vmem:[%s8261_s3 + $0x124] sm:$0xf] %vm4176_vm1, %v5026_v61  ;;  %v5031_v23 = vpack.c.bf16 %v2974_v14, %v2974_v14  ;;  %vm2588_vm8 = vcmp.gt.f32.partialorder %v2178_v41, 0.0  ;;  %v7514_v29 = vpop.f32.mrb[99].mxu0  ;;  %v1677_v25 = vadd.f32 %v7368_v59, %v7233_v10 }
 0x1a6   :  { %v3102_v40 = vsel %vm2590_vm6, %v2186_v54, %v2846_v8  ;;  %v2844_v19 = vmul.f32 0.2, %v2178_v41  ;;  %v7516_v30 = vpop.f32.mrb[99].mxu1  ;;  %4378 = vst.msk [vmem:[%s8261_s3 + $0x324] sm:$0xf] %vm4176_vm1, %v5154_v24  ;;  %v2189_v33 = vadd.f32 %v7368_v59, %v7235_v9  ;;  %v1669_v62 = vadd.f32 %v7368_v59, %v7237_v26 }
 0x1a7   :  { %v5159_v32 = vpack.c.bf16 %v3102_v40, %v3102_v40  ;;  %v2972_v63 = vsel %vm2460_vm7, %v1666_v49, %v2716_v3  ;;  %4255 = vst.msk [vmem:[%s8261_s3 + $0x138] sm:$0xf] %vm4176_vm1, %v5031_v23  ;;  %v2181_v37 = vadd.f32 %v7368_v59, %v7239_v51  ;;  %vm2463_vm9 = vcmp.gt.f32.partialorder %v1677_v25, 0.0 }
 0x1a8   :  { %v5029_v39 = vpack.c.bf16 %v2972_v63, %v2972_v63  ;;  %v3100_v54 = vsel %vm2588_vm8, %v2178_v41, %v2844_v19  ;;  %v2719_v9 = vmul.f32 0.2, %v1677_v25  ;;  %vm2591_vm10 = vcmp.gt.f32.partialorder %v2189_v33, 0.0 }
 0x1a9   :  { %4383 = vst.msk [vmem:[%s8261_s3 + $0x338] sm:$0xf] %vm4176_vm1, %v5159_v32  ;;  %v5157_v10 = vpack.c.bf16 %v3100_v54, %v3100_v54  ;;  %v2847_v49 = vmul.f32 0.2, %v2189_v33  ;;  %vm2461_vm11 = vcmp.gt.f32.partialorder %v1669_v62, 0.0  ;;  %vm2589_vm12 = vcmp.gt.f32.partialorder %v2181_v37, 0.0 }
 0x1aa   :  { %4253 = vst.msk [vmem:[%s8261_s3 + $0x130] sm:$0xf] %vm4176_vm1, %v5029_v39  ;;  %v2717_v26 = vmul.f32 0.2, %v1669_v62  ;;  %v2975_v51 = vsel %vm2463_vm9, %v1677_v25, %v2719_v9  ;;  %v2845_v41 = vmul.f32 0.2, %v2181_v37  ;;  %v1690_v61 = vadd.f32 %v7368_v59, %v7263_v47 }
 0x1ab   :  { %4381 = vst.msk [vmem:[%s8261_s3 + $0x330] sm:$0xf] %vm4176_vm1, %v5157_v10  ;;  %v2202_v7 = vadd.f32 %v7368_v59, %v7265_v36  ;;  %v7550_v8 = vpop.f32.mrb[100].mxu0  ;;  %v7552_v24 = vpop.f32.mrb[100].mxu1  ;;  %v5032_v14 = vpack.c.bf16 %v2975_v51, %v2975_v51  ;;  %v3103_v3 = vsel %vm2591_vm10, %v2189_v33, %v2847_v49  ;;  %v1682_v40 = vadd.f32 %v7368_v59, %v7279_v6 }
 0x1ac   :  { %v2973_v23 = vsel %vm2461_vm11, %v1669_v62, %v2717_v26  ;;  %v7556_v19 = vpop.f32.mrb[101].mxu0  ;;  %v7558_v32 = vpop.f32.mrb[101].mxu1  ;;  %v5160_v63 = vpack.c.bf16 %v3103_v3, %v3103_v3  ;;  %v3101_v47 = vsel %vm2589_vm12, %v2181_v37, %v2845_v41  ;;  %vm2466_vm13 = vcmp.gt.f32.partialorder %v1690_v61, 0.0 }
 0x1ad   :  { %v5030_v25 = vpack.c.bf16 %v2973_v23, %v2973_v23  ;;  %v7561_v36 = vpop.f32.mrb[102].mxu0  ;;  %v7563_v39 = vpop.f32.mrb[102].mxu1  ;;  %4256 = vst.msk [vmem:[%s8261_s3 + $0x13c] sm:$0xf] %vm4176_vm1, %v5032_v14  ;;  %v5158_v33 = vpack.c.bf16 %v3101_v47, %v3101_v47  ;;  %v2722_v6 = vmul.f32 0.2, %v1690_v61  ;;  %v2194_v10 = vadd.f32 %v7368_v59, %v7281_v53 }
 0x1ae   :  { %vm2594_vm14 = vcmp.gt.f32.partialorder %v2202_v7, 0.0  ;;  %v2850_v54 = vmul.f32 0.2, %v2202_v7  ;;  %v7569_v62 = vpop.f32.mrb[103].mxu0  ;;  %4384 = vst.msk [vmem:[%s8261_s3 + $0x33c] sm:$0xf] %vm4176_vm1, %v5160_v63  ;;  %v1693_v9 = vadd.f32 %v7368_v59, %v7289_v60  ;;  %v2205_v41 = vadd.f32 %v7368_v59, %v7291_v28 }
 0x1af   :  { %4254 = vst.msk [vmem:[%s8261_s3 + $0x134] sm:$0xf] %vm4176_vm1, %v5030_v25  ;;  %vm2464_vm15 = vcmp.gt.f32.partialorder %v1682_v40, 0.0  ;;  %v2720_v37 = vmul.f32 0.2, %v1682_v40  ;;  %v7583_v49 = vpop.f32.mrb[103].mxu1  ;;  %v2978_v26 = vsel %vm2466_vm13, %v1690_v61, %v2722_v6  ;;  %v1685_v14 = vadd.f32 %v7368_v59, %v7293_v12 }
 0x1b0   :  { %4382 = vst.msk [vmem:[%s8261_s3 + $0x334] sm:$0xf] %vm4176_vm1, %v5158_v33  ;;  %v3106_v51 = vsel %vm2594_vm14, %v2202_v7, %v2850_v54  ;;  %v5035_v53 = vpack.c.bf16 %v2978_v26, %v2978_v26  ;;  %vm2592_vm2 = vcmp.gt.f32.partialorder %v2194_v10, 0.0  ;;  %v2848_v63 = vmul.f32 0.2, %v2194_v10 }
 0x1b1   :  { %v5163_v3 = vpack.c.bf16 %v3106_v51, %v3106_v51  ;;  %v2976_v23 = vsel %vm2464_vm15, %v1682_v40, %v2720_v37  ;;  %vm2467_vm3 = vcmp.gt.f32.partialorder %v1693_v9, 0.0  ;;  %v2723_v25 = vmul.f32 0.2, %v1693_v9  ;;  %v7610_v33 = vpop.f32.mrb[104].mxu0  ;;  %v7612_v6 = vpop.f32.mrb[104].mxu1 }
 0x1b2   :  { %v5033_v60 = vpack.c.bf16 %v2976_v23, %v2976_v23  ;;  %4259 = vst.msk [vmem:[%s8261_s3 + $0x148] sm:$0xf] %vm4176_vm1, %v5035_v53  ;;  %vm2595_vm4 = vcmp.gt.f32.partialorder %v2205_v41, 0.0  ;;  %v2851_v28 = vmul.f32 0.2, %v2205_v41  ;;  %vm2465_vm0 = vcmp.gt.f32.partialorder %v1685_v14, 0.0 }
 0x1b3   :  { %4387 = vst.msk [vmem:[%s8261_s3 + $0x348] sm:$0xf] %vm4176_vm1, %v5163_v3  ;;  %v2721_v12 = vmul.f32 0.2, %v1685_v14  ;;  %v3104_v61 = vsel %vm2592_vm2, %v2194_v10, %v2848_v63  ;;  %v2979_v7 = vsel %vm2467_vm3, %v1693_v9, %v2723_v25  ;;  %v2197_v40 = vadd.f32 %v7368_v59, %v7295_v55  ;;  %v7614_v53 = vpop.f32.mrb[105].mxu0  ;;  %v7616_v3 = vpop.f32.mrb[105].mxu1 }
 0x1b4   :  { %4257 = vst.msk [vmem:[%s8261_s3 + $0x140] sm:$0xf] %vm4176_vm1, %v5033_v60  ;;  %v1706_v47 = vadd.f32 %v7368_v59, %v7321_v35  ;;  %v5161_v54 = vpack.c.bf16 %v3104_v61, %v3104_v61  ;;  %v5036_v37 = vpack.c.bf16 %v2979_v7, %v2979_v7  ;;  %v3107_v26 = vsel %vm2595_vm4, %v2205_v41, %v2851_v28  ;;  %v7618_v55 = vpop.f32.mrb[106].mxu0  ;;  %v7620_v60 = vpop.f32.mrb[106].mxu1 }
 0x1b5   :  { %v2977_v51 = vsel %vm2465_vm0, %v1685_v14, %v2721_v12  ;;  %v5164_v10 = vpack.c.bf16 %v3107_v26, %v3107_v26  ;;  %vm2593_vm5 = vcmp.gt.f32.partialorder %v2197_v40, 0.0  ;;  %v2849_v23 = vmul.f32 0.2, %v2197_v40  ;;  %v7634_v63 = vpop.f32.mrb[107].mxu0  ;;  %v7636_v25 = vpop.f32.mrb[107].mxu1 }
 0x1b6   :  { %v5034_v9 = vpack.c.bf16 %v2977_v51, %v2977_v51  ;;  %4385 = vst.msk [vmem:[%s8261_s3 + $0x340] sm:$0xf] %vm4176_vm1, %v5161_v54  ;;  %4260 = vst.msk [vmem:[%s8261_s3 + $0x14c] sm:$0xf] %vm4176_vm1, %v5036_v37  ;;  %vm2470_vm6 = vcmp.gt.f32.partialorder %v1706_v47, 0.0  ;;  %v2218_v41 = vadd.f32 %v7368_v59, %v7323_v20  ;;  %v1698_v14 = vadd.f32 %v7368_v59, %v7337_v27 }
 0x1b7   :  { %v2726_v35 = vmul.f32 0.2, %v1706_v47  ;;  %4388 = vst.msk [vmem:[%s8261_s3 + $0x34c] sm:$0xf] %vm4176_vm1, %v5164_v10  ;;  %v3105_v28 = vsel %vm2593_vm5, %v2197_v40, %v2849_v23  ;;  %v2210_v20 = vadd.f32 %v7368_v59, %v7339_v22  ;;  %v1709_v27 = vadd.f32 %v7368_v59, %v7344_v4 }
 0x1b8   :  { %4258 = vst.msk [vmem:[%s8261_s3 + $0x144] sm:$0xf] %vm4176_vm1, %v5034_v9  ;;  %v2221_v12 = vadd.f32 %v7368_v59, %v7346_v56  ;;  %v5162_v61 = vpack.c.bf16 %v3105_v28, %v3105_v28  ;;  %vm2598_vm7 = vcmp.gt.f32.partialorder %v2218_v41, 0.0  ;;  %v2854_v54 = vmul.f32 0.2, %v2218_v41 }
 0x1b9   :  { %v2982_v7 = vsel %vm2470_vm6, %v1706_v47, %v2726_v35  ;;  %vm2468_vm8 = vcmp.gt.f32.partialorder %v1698_v14, 0.0  ;;  %v2724_v26 = vmul.f32 0.2, %v1698_v14  ;;  %vm2596_vm9 = vcmp.gt.f32.partialorder %v2210_v20, 0.0  ;;  %v7656_v51 = vpop.f32.mrb[108].mxu0 }
 0x1ba   :  { %v5039_v37 = vpack.c.bf16 %v2982_v7, %v2982_v7  ;;  %4386 = vst.msk [vmem:[%s8261_s3 + $0x344] sm:$0xf] %vm4176_vm1, %v5162_v61  ;;  %v3110_v22 = vsel %vm2598_vm7, %v2218_v41, %v2854_v54  ;;  %v2852_v40 = vmul.f32 0.2, %v2210_v20  ;;  %vm2471_vm10 = vcmp.gt.f32.partialorder %v1709_v27, 0.0  ;;  %v7662_v9 = vpop.f32.mrb[108].mxu1 }
 0x1bb   :  { %v2727_v4 = vmul.f32 0.2, %v1709_v27  ;;  %v5167_v56 = vpack.c.bf16 %v3110_v22, %v3110_v22  ;;  %v2980_v47 = vsel %vm2468_vm8, %v1698_v14, %v2724_v26  ;;  %vm2599_vm11 = vcmp.gt.f32.partialorder %v2221_v12, 0.0  ;;  %v7664_v23 = vpop.f32.mrb[109].mxu0  ;;  %v7668_v7 = vpop.f32.mrb[109].mxu1 }
 0x1bc   :  { %4263 = vst.msk [vmem:[%s8261_s3 + $0x158] sm:$0xf] %vm4176_vm1, %v5039_v37  ;;  %v2855_v10 = vmul.f32 0.2, %v2221_v12  ;;  %v5037_v35 = vpack.c.bf16 %v2980_v47, %v2980_v47  ;;  %v3108_v41 = vsel %vm2596_vm9, %v2210_v20, %v2852_v40  ;;  %v1701_v61 = vadd.f32 %v7368_v59, %v7349_v58  ;;  %v7670_v54 = vpop.f32.mrb[110].mxu0  ;;  %v7678_v20 = vpop.f32.mrb[110].mxu1 }
 0x1bd   :  { %v2983_v28 = vsel %vm2471_vm10, %v1709_v27, %v2727_v4  ;;  %4391 = vst.msk [vmem:[%s8261_s3 + $0x358] sm:$0xf] %vm4176_vm1, %v5167_v56  ;;  %v5165_v14 = vpack.c.bf16 %v3108_v41, %v3108_v41  ;;  %v2213_v22 = vadd.f32 %v7368_v59, %v7351_v17  ;;  %v7680_v27 = vpop.f32.mrb[111].mxu0  ;;  %v1722_v4 = vadd.f32 %v7368_v59, %v7383_v42  ;;  %v7688_v56 = vpop.f32.mrb[111].mxu1 }
 0x1be   :  { %v5040_v37 = vpack.c.bf16 %v2983_v28, %v2983_v28  ;;  %v3111_v26 = vsel %vm2599_vm11, %v2221_v12, %v2855_v10  ;;  %4261 = vst.msk [vmem:[%s8261_s3 + $0x150] sm:$0xf] %vm4176_vm1, %v5037_v35  ;;  %vm2469_vm12 = vcmp.gt.f32.partialorder %v1701_v61, 0.0  ;;  %v2725_v40 = vmul.f32 0.2, %v1701_v61 }
 0x1bf   :  { %v5168_v58 = vpack.c.bf16 %v3111_v26, %v3111_v26  ;;  %4389 = vst.msk [vmem:[%s8261_s3 + $0x350] sm:$0xf] %vm4176_vm1, %v5165_v14  ;;  %vm2597_vm13 = vcmp.gt.f32.partialorder %v2213_v22, 0.0  ;;  %v2853_v17 = vmul.f32 0.2, %v2213_v22  ;;  %v2234_v12 = vadd.f32 %v7368_v59, %v7385_v52 }
 0x1c0   :  { %4264 = vst.msk [vmem:[%s8261_s3 + $0x15c] sm:$0xf] %vm4176_vm1, %v5040_v37  ;;  %v1714_v42 = vadd.f32 %v7368_v59, %v7387_v5  ;;  %v2981_v47 = vsel %vm2469_vm12, %v1701_v61, %v2725_v40  ;;  %vm2474_vm14 = vcmp.gt.f32.partialorder %v1722_v4, 0.0  ;;  %v2730_v10 = vmul.f32 0.2, %v1722_v4 }
 0x1c1   :  { %4392 = vst.msk [vmem:[%s8261_s3 + $0x35c] sm:$0xf] %vm4176_vm1, %v5168_v58  ;;  %v2226_v35 = vadd.f32 %v7368_v59, %v7405_v57  ;;  %v5038_v41 = vpack.c.bf16 %v2981_v47, %v2981_v47  ;;  %v3109_v28 = vsel %vm2597_vm13, %v2213_v22, %v2853_v17  ;;  %vm2602_vm15 = vcmp.gt.f32.partialorder %v2234_v12, 0.0  ;;  %v7708_v5 = vpop.f32.mrb[112].mxu0 }
 0x1c2   :  { %v2858_v14 = vmul.f32 0.2, %v2234_v12  ;;  %v5166_v37 = vpack.c.bf16 %v3109_v28, %v3109_v28  ;;  %v2986_v52 = vsel %vm2474_vm14, %v1722_v4, %v2730_v10  ;;  %vm2472_vm2 = vcmp.gt.f32.partialorder %v1714_v42, 0.0  ;;  %v7716_v22 = vpop.f32.mrb[113].mxu0 }
 0x1c3   :  { %v2728_v26 = vmul.f32 0.2, %v1714_v42  ;;  %4262 = vst.msk [vmem:[%s8261_s3 + $0x154] sm:$0xf] %vm4176_vm1, %v5038_v41  ;;  %v5043_v61 = vpack.c.bf16 %v2986_v52, %v2986_v52  ;;  %vm2600_vm3 = vcmp.gt.f32.partialorder %v2226_v35, 0.0  ;;  %v7714_v57 = vpop.f32.mrb[112].mxu1  ;;  %v1725_v47 = vadd.f32 %v7368_v59, %v7407_v13 }
 0x1c4   :  { %v3114_v58 = vsel %vm2602_vm15, %v2234_v12, %v2858_v14  ;;  %v2856_v40 = vmul.f32 0.2, %v2226_v35  ;;  %4390 = vst.msk [vmem:[%s8261_s3 + $0x354] sm:$0xf] %vm4176_vm1, %v5166_v37  ;;  %v2237_v10 = vadd.f32 %v7368_v59, %v7409_v31  ;;  %v7726_v12 = vpop.f32.mrb[113].mxu1  ;;  %v7728_v41 = vpop.f32.mrb[114].mxu0  ;;  %v2229_v13 = vadd.f32 %v7368_v59, %v7413_v1 }
 0x1c5   :  { %v5171_v4 = vpack.c.bf16 %v3114_v58, %v3114_v58  ;;  %v2984_v17 = vsel %vm2472_vm2, %v1714_v42, %v2728_v26  ;;  %8262 = vst [vmem:[#allocation2_spill] sm:$0xff] %v7726_v12  ;;  %8263 = vst [vmem:[#allocation3_spill] sm:$0xff] %v7728_v41  ;;  %v1717_v42 = vadd.f32 %v7368_v59, %v7411_v2  ;;  %v7738_v37 = vpop.f32.mrb[114].mxu1  ;;  %v7740_v31 = vpop.f32.mrb[115].mxu0  ;;  %vm2475_vm4 = vcmp.gt.f32.partialorder %v1725_v47, 0.0 }
 0x1c6   :  { %4267 = vst.msk [vmem:[%s8261_s3 + $0x168] sm:$0xf] %vm4176_vm1, %v5043_v61  ;;  %v5041_v28 = vpack.c.bf16 %v2984_v17, %v2984_v17  ;;  %v3112_v14 = vsel %vm2600_vm3, %v2226_v35, %v2856_v40  ;;  %8264 = vst [vmem:[#allocation4_spill] sm:$0xff] %v7738_v37  ;;  %v2731_v26 = vmul.f32 0.2, %v1725_v47  ;;  %vm2603_vm0 = vcmp.gt.f32.partialorder %v2237_v10, 0.0 }
 0x1c7   :  { %8265 = vst [vmem:[#allocation5_spill] sm:$0xff] %v7740_v31  ;;  %4395 = vst.msk [vmem:[%s8261_s3 + $0x368] sm:$0xf] %vm4176_vm1, %v5171_v4  ;;  %v5169_v52 = vpack.c.bf16 %v3112_v14, %v3112_v14  ;;  %v7746_v35 = vpop.f32.mrb[115].mxu1  ;;  %v2859_v2 = vmul.f32 0.2, %v2237_v10  ;;  %v1738_v40 = vadd.f32 %v7368_v59, %v7441_v48  ;;  %v2250_v4 = vadd.f32 %v7368_v59, %v7443_v46 }
 0x1c8   :  { %8266 = vst [vmem:[#allocation6_spill] sm:$0xff] %v7746_v35  ;;  %4265 = vst.msk [vmem:[%s8261_s3 + $0x160] sm:$0xf] %vm4176_vm1, %v5041_v28  ;;  %vm2473_vm5 = vcmp.gt.f32.partialorder %v1717_v42, 0.0  ;;  %v2729_v1 = vmul.f32 0.2, %v1717_v42  ;;  %v2987_v61 = vsel %vm2475_vm4, %v1725_v47, %v2731_v26  ;;  %v1730_v35 = vadd.f32 %v7368_v59, %v7445_v18 }
 0x1c9   :  { %vm2601_vm6 = vcmp.gt.f32.partialorder %v2229_v13, 0.0  ;;  %4393 = vst.msk [vmem:[%s8261_s3 + $0x360] sm:$0xf] %vm4176_vm1, %v5169_v52  ;;  %v2857_v58 = vmul.f32 0.2, %v2229_v13  ;;  %v5044_v17 = vpack.c.bf16 %v2987_v61, %v2987_v61  ;;  %v3115_v14 = vsel %vm2603_vm0, %v2237_v10, %v2859_v2  ;;  %v7762_v12 = vpop.f32.mrb[116].mxu0 }
 0x1ca   :  { %v2985_v28 = vsel %vm2473_vm5, %v1717_v42, %v2729_v1  ;;  %v5172_v31 = vpack.c.bf16 %v3115_v14, %v3115_v14  ;;  %vm2478_vm7 = vcmp.gt.f32.partialorder %v1738_v40, 0.0  ;;  %v2734_v47 = vmul.f32 0.2, %v1738_v40 }
 0x1cb   :  { %v5042_v37 = vpack.c.bf16 %v2985_v28, %v2985_v28  ;;  %v3113_v41 = vsel %vm2601_vm6, %v2229_v13, %v2857_v58  ;;  %4268 = vst.msk [vmem:[%s8261_s3 + $0x16c] sm:$0xf] %vm4176_vm1, %v5044_v17  ;;  %vm2606_vm8 = vcmp.gt.f32.partialorder %v2250_v4, 0.0  ;;  %v2862_v46 = vmul.f32 0.2, %v2250_v4  ;;  %v7768_v10 = vpop.f32.mrb[116].mxu1 }
 0x1cc   :  { %v5170_v48 = vpack.c.bf16 %v3113_v41, %v3113_v41  ;;  %4396 = vst.msk [vmem:[%s8261_s3 + $0x36c] sm:$0xf] %vm4176_vm1, %v5172_v31  ;;  %vm2476_vm9 = vcmp.gt.f32.partialorder %v1730_v35, 0.0  ;;  %v2732_v18 = vmul.f32 0.2, %v1730_v35  ;;  %v2242_v41 = vadd.f32 %v7368_v59, %v7447_v11  ;;  %v7782_v13 = vpop.f32.mrb[117].mxu0 }
 0x1cd   :  { %4266 = vst.msk [vmem:[%s8261_s3 + $0x164] sm:$0xf] %vm4176_vm1, %v5042_v37  ;;  %v1741_v42 = vadd.f32 %v7368_v59, %v7453_v45  ;;  %v7784_v52 = vpop.f32.mrb[117].mxu1  ;;  %v2990_v31 = vsel %vm2478_vm7, %v1738_v40, %v2734_v47  ;;  %v3118_v37 = vsel %vm2606_vm8, %v2250_v4, %v2862_v46  ;;  %v2253_v26 = vadd.f32 %v7368_v59, %v7459_v21  ;;  %v7795_v2 = vpop.f32.mrb[118].mxu0 }
 0x1ce   :  { %4394 = vst.msk [vmem:[%s8261_s3 + $0x364] sm:$0xf] %vm4176_vm1, %v5170_v48  ;;  %v1733_v11 = vadd.f32 %v7368_v59, %v7461_v34  ;;  %v7797_v45 = vpop.f32.mrb[118].mxu1  ;;  %v5047_v1 = vpack.c.bf16 %v2990_v31, %v2990_v31  ;;  %v5175_v61 = vpack.c.bf16 %v3118_v37, %v3118_v37  ;;  %v2988_v58 = vsel %vm2476_vm9, %v1730_v35, %v2732_v18  ;;  %v7799_v17 = vpop.f32.mrb[119].mxu0 }
 0x1cf   :  { %8267 = vst [vmem:[#allocation7_spill] sm:$0xff] %v7797_v45  ;;  %vm2604_vm10 = vcmp.gt.f32.partialorder %v2242_v41, 0.0  ;;  %8268 = vst [vmem:[#allocation8_spill] sm:$0xff] %v7799_v17  ;;  %v7801_v14 = vpop.f32.mrb[119].mxu1  ;;  %v5045_v40 = vpack.c.bf16 %v2988_v58, %v2988_v58  ;;  %v2860_v4 = vmul.f32 0.2, %v2242_v41  ;;  %v2245_v47 = vadd.f32 %v7368_v59, %v7466_v44 }
 0x1d0   :  { %8269 = vst [vmem:[#allocation9_spill] sm:$0xff] %v7801_v14  ;;  %vm2479_vm11 = vcmp.gt.f32.partialorder %v1741_v42, 0.0  ;;  %v2735_v28 = vmul.f32 0.2, %v1741_v42  ;;  %4271 = vst.msk [vmem:[%s8261_s3 + $0x178] sm:$0xf] %vm4176_vm1, %v5047_v1  ;;  %v1754_v46 = vadd.f32 %v7368_v59, %v7498_v16  ;;  %v2266_v16 = vadd.f32 %v7368_v59, %v7500_v15 }
 0x1d1   :  { %4399 = vst.msk [vmem:[%s8261_s3 + $0x378] sm:$0xf] %vm4176_vm1, %v5175_v61  ;;  %vm2607_vm12 = vcmp.gt.f32.partialorder %v2253_v26, 0.0  ;;  %v2863_v21 = vmul.f32 0.2, %v2253_v26  ;;  %vm2477_vm13 = vcmp.gt.f32.partialorder %v1733_v11, 0.0  ;;  %v3116_v35 = vsel %vm2604_vm10, %v2242_v41, %v2860_v4 }
 0x1d2   :  { %v2733_v34 = vmul.f32 0.2, %v1733_v11  ;;  %4269 = vst.msk [vmem:[%s8261_s3 + $0x170] sm:$0xf] %vm4176_vm1, %v5045_v40  ;;  %v2991_v48 = vsel %vm2479_vm11, %v1741_v42, %v2735_v28  ;;  %v5173_v18 = vpack.c.bf16 %v3116_v35, %v3116_v35  ;;  %v7819_v61 = vpop.f32.mrb[120].mxu0  ;;  %vm2605_vm14 = vcmp.gt.f32.partialorder %v2245_v47, 0.0 }
 0x1d3   :  { %v5048_v31 = vpack.c.bf16 %v2991_v48, %v2991_v48  ;;  %v3119_v37 = vsel %vm2607_vm12, %v2253_v26, %v2863_v21  ;;  %v2861_v17 = vmul.f32 0.2, %v2245_v47  ;;  %v7821_v45 = vpop.f32.mrb[120].mxu1  ;;  %v7823_v41 = vpop.f32.mrb[121].mxu0  ;;  %vm2482_vm15 = vcmp.gt.f32.partialorder %v1754_v46, 0.0 }
 0x1d4   :  { %v2989_v1 = vsel %vm2477_vm13, %v1733_v11, %v2733_v34  ;;  %v5176_v58 = vpack.c.bf16 %v3119_v37, %v3119_v37  ;;  %4397 = vst.msk [vmem:[%s8261_s3 + $0x370] sm:$0xf] %vm4176_vm1, %v5173_v18  ;;  %v2738_v44 = vmul.f32 0.2, %v1754_v46  ;;  %v1746_v42 = vadd.f32 %v7368_v59, %v7502_v43  ;;  %v7837_v26 = vpop.f32.mrb[121].mxu1  ;;  %v7839_v11 = vpop.f32.mrb[122].mxu0 }
 0x1d5   :  { %v5046_v14 = vpack.c.bf16 %v2989_v1, %v2989_v1  ;;  %4272 = vst.msk [vmem:[%s8261_s3 + $0x17c] sm:$0xf] %vm4176_vm1, %v5048_v31  ;;  %v3117_v40 = vsel %vm2605_vm14, %v2245_v47, %v2861_v17  ;;  %v2258_v15 = vadd.f32 %v7368_v59, %v7504_v50  ;;  %v1757_v43 = vadd.f32 %v7368_v59, %v7506_v38  ;;  %v7855_v28 = vpop.f32.mrb[122].mxu1  ;;  %v7857_v21 = vpop.f32.mrb[123].mxu0 }
 0x1d6   :  { %4400 = vst.msk [vmem:[%s8261_s3 + $0x37c] sm:$0xf] %vm4176_vm1, %v5176_v58  ;;  %v2269_v4 = vadd.f32 %v7368_v59, %v7508_v0  ;;  %v5174_v34 = vpack.c.bf16 %v3117_v40, %v3117_v40  ;;  %v2994_v35 = vsel %vm2482_vm15, %v1754_v46, %v2738_v44  ;;  %vm2610_vm2 = vcmp.gt.f32.partialorder %v2266_v16, 0.0  ;;  %v7859_v18 = vpop.f32.mrb[123].mxu1 }
 0x1d7   :  { %4270 = vst.msk [vmem:[%s8261_s3 + $0x174] sm:$0xf] %vm4176_vm1, %v5046_v14  ;;  %v2866_v48 = vmul.f32 0.2, %v2266_v16  ;;  %v5051_v17 = vpack.c.bf16 %v2994_v35, %v2994_v35  ;;  %vm2480_vm3 = vcmp.gt.f32.partialorder %v1746_v42, 0.0  ;;  %vm2608_vm4 = vcmp.gt.f32.partialorder %v2258_v15, 0.0 }
 0x1d8   :  { %v2736_v14 = vmul.f32 0.2, %v1746_v42  ;;  %4398 = vst.msk [vmem:[%s8261_s3 + $0x374] sm:$0xf] %vm4176_vm1, %v5174_v34  ;;  %v2864_v38 = vmul.f32 0.2, %v2258_v15  ;;  %v1749_v44 = vadd.f32 %v7368_v59, %v7514_v29 }
 0x1d9   :  { %v3122_v50 = vsel %vm2610_vm2, %v2266_v16, %v2866_v48  ;;  %vm2483_vm0 = vcmp.gt.f32.partialorder %v1757_v43, 0.0  ;;  %v2739_v0 = vmul.f32 0.2, %v1757_v43  ;;  %4275 = vst.msk [vmem:[%s8261_s3 + $0x188] sm:$0xf] %vm4176_vm1, %v5051_v17  ;;  %vm2611_vm5 = vcmp.gt.f32.partialorder %v2269_v4, 0.0 }
 0x1da   :  { %v5179_v47 = vpack.c.bf16 %v3122_v50, %v3122_v50  ;;  %v2992_v46 = vsel %vm2480_vm3, %v1746_v42, %v2736_v14  ;;  %v2867_v31 = vmul.f32 0.2, %v2269_v4  ;;  %v3120_v1 = vsel %vm2608_vm4, %v2258_v15, %v2864_v38  ;;  %v7871_v40 = vpop.f32.mrb[124].mxu0 }
 0x1db   :  { %v5049_v37 = vpack.c.bf16 %v2992_v46, %v2992_v46  ;;  %v2995_v58 = vsel %vm2483_vm0, %v1757_v43, %v2739_v0  ;;  %v5177_v16 = vpack.c.bf16 %v3120_v1, %v3120_v1  ;;  %v2261_v42 = vadd.f32 %v7368_v59, %v7516_v30  ;;  %v7879_v48 = vpop.f32.mrb[124].mxu1  ;;  %v7881_v15 = vpop.f32.mrb[125].mxu0 }
 0x1dc   :  { %4403 = vst.msk [vmem:[%s8261_s3 + $0x388] sm:$0xf] %vm4176_vm1, %v5179_v47  ;;  %v5052_v34 = vpack.c.bf16 %v2995_v58, %v2995_v58  ;;  %v3123_v35 = vsel %vm2611_vm5, %v2269_v4, %v2867_v31  ;;  %vm2481_vm6 = vcmp.gt.f32.partialorder %v1749_v44, 0.0  ;;  %v2737_v43 = vmul.f32 0.2, %v1749_v44  ;;  %v7889_v14 = vpop.f32.mrb[125].mxu1 }
 0x1dd   :  { %4273 = vst.msk [vmem:[%s8261_s3 + $0x180] sm:$0xf] %vm4176_vm1, %v5049_v37  ;;  %v5180_v29 = vpack.c.bf16 %v3123_v35, %v3123_v35  ;;  %v1770_v17 = vadd.f32 %v7368_v59, %v7550_v8  ;;  %v7891_v4 = vpop.f32.mrb[126].mxu0  ;;  %4401 = vst.msk [vmem:[%s8261_s3 + $0x380] sm:$0xf] %vm4176_vm1, %v5177_v16  ;;  %vm2609_vm7 = vcmp.gt.f32.partialorder %v2261_v42, 0.0  ;;  %v2282_v50 = vadd.f32 %v7368_v59, %v7552_v24 }
 0x1de   :  { %4276 = vst.msk [vmem:[%s8261_s3 + $0x18c] sm:$0xf] %vm4176_vm1, %v5052_v34  ;;  %v2865_v30 = vmul.f32 0.2, %v2261_v42  ;;  %v1762_v8 = vadd.f32 %v7368_v59, %v7556_v19  ;;  %v7905_v38 = vpop.f32.mrb[126].mxu1  ;;  %v7907_v0 = vpop.f32.mrb[127].mxu0  ;;  %v2993_v47 = vsel %vm2481_vm6, %v1749_v44, %v2737_v43  ;;  %v2274_v31 = vadd.f32 %v7368_v59, %v7558_v32 }
 0x1df   :  { %4404 = vst.msk [vmem:[%s8261_s3 + $0x38c] sm:$0xf] %vm4176_vm1, %v5180_v29  ;;  %vm2486_vm8 = vcmp.gt.f32.partialorder %v1770_v17, 0.0  ;;  %v2742_v46 = vmul.f32 0.2, %v1770_v17  ;;  %v7915_v37 = vpop.f32.mrb[127].mxu1  ;;  %v5050_v24 = vpack.c.bf16 %v2993_v47, %v2993_v47  ;;  %v1773_v43 = vadd.f32 %v7368_v59, %v7561_v36 }
 0x1e0   :  { %v3121_v1 = vsel %vm2609_vm7, %v2261_v42, %v2865_v30  ;;  %vm2614_vm9 = vcmp.gt.f32.partialorder %v2282_v50, 0.0  ;;  %v2870_v19 = vmul.f32 0.2, %v2282_v50  ;;  %vm2484_vm10 = vcmp.gt.f32.partialorder %v1762_v8, 0.0 }
 0x1e1   :  { %v5178_v58 = vpack.c.bf16 %v3121_v1, %v3121_v1  ;;  %v2998_v16 = vsel %vm2486_vm8, %v1770_v17, %v2742_v46  ;;  %v2740_v34 = vmul.f32 0.2, %v1762_v8  ;;  %4274 = vst.msk [vmem:[%s8261_s3 + $0x184] sm:$0xf] %vm4176_vm1, %v5050_v24  ;;  %vm2612_vm11 = vcmp.gt.f32.partialorder %v2274_v31, 0.0 }
 0x1e2   :  { %v5055_v44 = vpack.c.bf16 %v2998_v16, %v2998_v16  ;;  %v3126_v35 = vsel %vm2614_vm9, %v2282_v50, %v2870_v19  ;;  %v2868_v29 = vmul.f32 0.2, %v2274_v31  ;;  %v2285_v17 = vadd.f32 %v7368_v59, %v7563_v39 }
 0x1e3   :  { %4402 = vst.msk [vmem:[%s8261_s3 + $0x384] sm:$0xf] %vm4176_vm1, %v5178_v58  ;;  %v5183_v32 = vpack.c.bf16 %v3126_v35, %v3126_v35  ;;  %v2996_v42 = vsel %vm2484_vm10, %v1762_v8, %v2740_v34  ;;  %v1765_v47 = vadd.f32 %v7368_v59, %v7569_v62  ;;  %v2277_v46 = vadd.f32 %v7368_v59, %v7583_v49 }
 0x1e4   :  { %4279 = vst.msk [vmem:[%s8261_s3 + $0x198] sm:$0xf] %vm4176_vm1, %v5055_v44  ;;  %v5053_v30 = vpack.c.bf16 %v2996_v42, %v2996_v42  ;;  %v3124_v50 = vsel %vm2612_vm11, %v2274_v31, %v2868_v29  ;;  %vm2487_vm12 = vcmp.gt.f32.partialorder %v1773_v43, 0.0  ;;  %v2743_v39 = vmul.f32 0.2, %v1773_v43 }
 0x1e5   :  { %4407 = vst.msk [vmem:[%s8261_s3 + $0x398] sm:$0xf] %vm4176_vm1, %v5183_v32  ;;  %v5181_v36 = vpack.c.bf16 %v3124_v50, %v3124_v50  ;;  %vm2615_vm13 = vcmp.gt.f32.partialorder %v2285_v17, 0.0  ;;  %v2871_v8 = vmul.f32 0.2, %v2285_v17  ;;  %vm2485_vm14 = vcmp.gt.f32.partialorder %v1765_v47, 0.0 }
 0x1e6   :  { %4277 = vst.msk [vmem:[%s8261_s3 + $0x190] sm:$0xf] %vm4176_vm1, %v5053_v30  ;;  %v2741_v62 = vmul.f32 0.2, %v1765_v47  ;;  %vm2613_vm15 = vcmp.gt.f32.partialorder %v2277_v46, 0.0  ;;  %v2999_v49 = vsel %vm2487_vm12, %v1773_v43, %v2743_v39  ;;  %v1786_v24 = vadd.f32 %v7368_v59, %v7610_v33 }
 0x1e7   :  { %4405 = vst.msk [vmem:[%s8261_s3 + $0x390] sm:$0xf] %vm4176_vm1, %v5181_v36  ;;  %v2869_v31 = vmul.f32 0.2, %v2277_v46  ;;  %v2298_v1 = vadd.f32 %v7368_v59, %v7612_v6  ;;  %v5056_v19 = vpack.c.bf16 %v2999_v49, %v2999_v49  ;;  %v3127_v58 = vsel %vm2615_vm13, %v2285_v17, %v2871_v8  ;;  %v7970_v6 = vld [vmem:[%s8260_s2] ss:$0 sm:$0xff] }
 0x1e8   :  { %v2997_v16 = vsel %vm2485_vm14, %v1765_v47, %v2741_v62  ;;  %v1778_v34 = vadd.f32 %v7368_v59, %v7614_v53  ;;  %v5184_v44 = vpack.c.bf16 %v3127_v58, %v3127_v58  ;;  %vm2490_vm2 = vcmp.gt.f32.partialorder %v1786_v24, 0.0 }
 0x1e9   :  { %v5054_v35 = vpack.c.bf16 %v2997_v16, %v2997_v16  ;;  %v3125_v29 = vsel %vm2613_vm15, %v2277_v46, %v2869_v31  ;;  %4280 = vst.msk [vmem:[%s8261_s3 + $0x19c] sm:$0xf] %vm4176_vm1, %v5056_v19  ;;  %v2746_v33 = vmul.f32 0.2, %v1786_v24  ;;  %vm2618_vm3 = vcmp.gt.f32.partialorder %v2298_v1, 0.0 }
 0x1ea   :  { %v5182_v32 = vpack.c.bf16 %v3125_v29, %v3125_v29  ;;  %v2874_v42 = vmul.f32 0.2, %v2298_v1  ;;  %4408 = vst.msk [vmem:[%s8261_s3 + $0x39c] sm:$0xf] %vm4176_vm1, %v5184_v44  ;;  %vm2488_vm4 = vcmp.gt.f32.partialorder %v1778_v34, 0.0  ;;  %v2290_v53 = vadd.f32 %v7970_v6, %v7616_v3 }
 0x1eb   :  { %4278 = vst.msk [vmem:[%s8261_s3 + $0x194] sm:$0xf] %vm4176_vm1, %v5054_v35  ;;  %v2744_v59 = vmul.f32 0.2, %v1778_v34  ;;  %v1789_v43 = vadd.f32 %v7970_v6, %v7618_v55  ;;  %v3002_v17 = vsel %vm2490_vm2, %v1786_v24, %v2746_v33  ;;  %v2301_v50 = vadd.f32 %v7970_v6, %v7620_v60 }
 0x1ec   :  { %4406 = vst.msk [vmem:[%s8261_s3 + $0x394] sm:$0xf] %vm4176_vm1, %v5182_v32  ;;  %v3130_v30 = vsel %vm2618_vm3, %v2298_v1, %v2874_v42  ;;  %v1781_v47 = vadd.f32 %v7970_v6, %v7634_v63  ;;  %v5059_v46 = vpack.c.bf16 %v3002_v17, %v3002_v17  ;;  %vm2616_vm0 = vcmp.gt.f32.partialorder %v2290_v53, 0.0 }
 0x1ed   :  { %v5187_v36 = vpack.c.bf16 %v3130_v30, %v3130_v30  ;;  %v3000_v39 = vsel %vm2488_vm4, %v1778_v34, %v2744_v59  ;;  %v2872_v8 = vmul.f32 0.2, %v2290_v53  ;;  %vm2491_vm5 = vcmp.gt.f32.partialorder %v1789_v43, 0.0 }
 0x1ee   :  { %v5057_v3 = vpack.c.bf16 %v3000_v39, %v3000_v39  ;;  %v2747_v55 = vmul.f32 0.2, %v1789_v43  ;;  %4283 = vst.msk [vmem:[%s8261_s3 + $0x1a8] sm:$0xf] %vm4176_vm1, %v5059_v46  ;;  %vm2619_vm6 = vcmp.gt.f32.partialorder %v2301_v50, 0.0  ;;  %vm2489_vm7 = vcmp.gt.f32.partialorder %v1781_v47, 0.0 }
 0x1ef   :  { %4411 = vst.msk [vmem:[%s8261_s3 + $0x3a8] sm:$0xf] %vm4176_vm1, %v5187_v36  ;;  %v2875_v60 = vmul.f32 0.2, %v2301_v50  ;;  %v2745_v63 = vmul.f32 0.2, %v1781_v47  ;;  %v3128_v62 = vsel %vm2616_vm0, %v2290_v53, %v2872_v8  ;;  %v2293_v31 = vadd.f32 %v7970_v6, %v7636_v25 }
 0x1f0   :  { %4281 = vst.msk [vmem:[%s8261_s3 + $0x1a0] sm:$0xf] %vm4176_vm1, %v5057_v3  ;;  %v3003_v49 = vsel %vm2491_vm5, %v1789_v43, %v2747_v55  ;;  %v1802_v24 = vadd.f32 %v7970_v6, %v7656_v51  ;;  %v5185_v1 = vpack.c.bf16 %v3128_v62, %v3128_v62  ;;  %v2314_v51 = vadd.f32 %v7970_v6, %v7662_v9 }
 0x1f1   :  { %v5060_v19 = vpack.c.bf16 %v3003_v49, %v3003_v49  ;;  %v3131_v58 = vsel %vm2619_vm6, %v2301_v50, %v2875_v60  ;;  %v3001_v16 = vsel %vm2489_vm7, %v1781_v47, %v2745_v63  ;;  %vm2617_vm8 = vcmp.gt.f32.partialorder %v2293_v31, 0.0 }
 0x1f2   :  { %v5188_v34 = vpack.c.bf16 %v3131_v58, %v3131_v58  ;;  %v5058_v44 = vpack.c.bf16 %v3001_v16, %v3001_v16  ;;  %v2873_v35 = vmul.f32 0.2, %v2293_v31  ;;  %4409 = vst.msk [vmem:[%s8261_s3 + $0x3a0] sm:$0xf] %vm4176_vm1, %v5185_v1  ;;  %vm2494_vm9 = vcmp.gt.f32.partialorder %v1802_v24, 0.0 }
 0x1f3   :  { %4284 = vst.msk [vmem:[%s8261_s3 + $0x1ac] sm:$0xf] %vm4176_vm1, %v5060_v19  ;;  %v2750_v25 = vmul.f32 0.2, %v1802_v24  ;;  %v1794_v29 = vadd.f32 %v7970_v6, %v7664_v23  ;;  %v2306_v33 = vadd.f32 %v7970_v6, %v7668_v7  ;;  %v1805_v9 = vadd.f32 %v7970_v6, %v7670_v54  ;;  %v8270_v19 = vld [vmem:[#allocation2_spill] sm:$0xff] }
 0x1f4   :  { %4412 = vst.msk [vmem:[%s8261_s3 + $0x3ac] sm:$0xf] %vm4176_vm1, %v5188_v34  ;;  %4282 = vst.msk [vmem:[%s8261_s3 + $0x1a4] sm:$0xf] %vm4176_vm1, %v5058_v44  ;;  %v3129_v32 = vsel %vm2617_vm8, %v2293_v31, %v2873_v35  ;;  %v2317_v23 = vadd.f32 %v7970_v6, %v7678_v20  ;;  %vm2622_vm10 = vcmp.gt.f32.partialorder %v2314_v51, 0.0  ;;  %v1797_v3 = vadd.f32 %v7970_v6, %v7680_v27 }
 0x1f5   :  { %v5186_v42 = vpack.c.bf16 %v3129_v32, %v3129_v32  ;;  %v3006_v59 = vsel %vm2494_vm9, %v1802_v24, %v2750_v25  ;;  %v2878_v53 = vmul.f32 0.2, %v2314_v51  ;;  %vm2492_vm11 = vcmp.gt.f32.partialorder %v1794_v29, 0.0 }
 0x1f6   :  { %v5063_v43 = vpack.c.bf16 %v3006_v59, %v3006_v59  ;;  %v2748_v17 = vmul.f32 0.2, %v1794_v29  ;;  %vm2620_vm12 = vcmp.gt.f32.partialorder %v2306_v33, 0.0  ;;  %v2876_v30 = vmul.f32 0.2, %v2306_v33 }
 0x1f7   :  { %4410 = vst.msk [vmem:[%s8261_s3 + $0x3a4] sm:$0xf] %vm4176_vm1, %v5186_v42  ;;  %v3134_v7 = vsel %vm2622_vm10, %v2314_v51, %v2878_v53  ;;  %vm2495_vm13 = vcmp.gt.f32.partialorder %v1805_v9, 0.0  ;;  %v2751_v54 = vmul.f32 0.2, %v1805_v9  ;;  %vm2623_vm14 = vcmp.gt.f32.partialorder %v2317_v23, 0.0 }
 0x1f8   :  { %4287 = vst.msk [vmem:[%s8261_s3 + $0x1b8] sm:$0xf] %vm4176_vm1, %v5063_v43  ;;  %v5191_v20 = vpack.c.bf16 %v3134_v7, %v3134_v7  ;;  %v3004_v50 = vsel %vm2492_vm11, %v1794_v29, %v2748_v17  ;;  %v2879_v47 = vmul.f32 0.2, %v2317_v23  ;;  %v3132_v36 = vsel %vm2620_vm12, %v2306_v33, %v2876_v30  ;;  %v8272_v42 = vld [vmem:[#allocation4_spill] sm:$0xff]  ;;  %v8273_v17 = vld [vmem:[#allocation5_spill] sm:$0xff] }
 0x1f9   :  { %v5061_v46 = vpack.c.bf16 %v3004_v50, %v3004_v50  ;;  %v3007_v39 = vsel %vm2495_vm13, %v1805_v9, %v2751_v54  ;;  %v5189_v8 = vpack.c.bf16 %v3132_v36, %v3132_v36  ;;  %v2309_v63 = vadd.f32 %v7970_v6, %v7688_v56  ;;  %v8271_v9 = vld [vmem:[#allocation3_spill] sm:$0xff]  ;;  %v8274_v30 = vld [vmem:[#allocation6_spill] sm:$0xff] }
 0x1fa   :  { %4415 = vst.msk [vmem:[%s8261_s3 + $0x3b8] sm:$0xf] %vm4176_vm1, %v5191_v20  ;;  %v5064_v55 = vpack.c.bf16 %v3007_v39, %v3007_v39  ;;  %v3135_v60 = vsel %vm2623_vm14, %v2317_v23, %v2879_v47  ;;  %vm2493_vm15 = vcmp.gt.f32.partialorder %v1797_v3, 0.0  ;;  %v2749_v49 = vmul.f32 0.2, %v1797_v3 }
 0x1fb   :  { %4285 = vst.msk [vmem:[%s8261_s3 + $0x1b0] sm:$0xf] %vm4176_vm1, %v5061_v46  ;;  %v5192_v62 = vpack.c.bf16 %v3135_v60, %v3135_v60  ;;  %v1818_v27 = vadd.f32 %v7970_v6, %v7708_v5  ;;  %4413 = vst.msk [vmem:[%s8261_s3 + $0x3b0] sm:$0xf] %vm4176_vm1, %v5189_v8  ;;  %vm2621_vm2 = vcmp.gt.f32.partialorder %v2309_v63, 0.0  ;;  %v2330_v31 = vadd.f32 %v7970_v6, %v7714_v57 }
 0x1fc   :  { %4288 = vst.msk [vmem:[%s8261_s3 + $0x1bc] sm:$0xf] %vm4176_vm1, %v5064_v55  ;;  %v2877_v56 = vmul.f32 0.2, %v2309_v63  ;;  %v1810_v24 = vadd.f32 %v7970_v6, %v7716_v22  ;;  %v3005_v5 = vsel %vm2493_vm15, %v1797_v3, %v2749_v49  ;;  %v2322_v58 = vadd.f32 %v7970_v6, %v8270_v19 }
 0x1fd   :  { %4416 = vst.msk [vmem:[%s8261_s3 + $0x3bc] sm:$0xf] %vm4176_vm1, %v5192_v62  ;;  %vm2498_vm3 = vcmp.gt.f32.partialorder %v1818_v27, 0.0  ;;  %v2754_v1 = vmul.f32 0.2, %v1818_v27  ;;  %v5062_v16 = vpack.c.bf16 %v3005_v5, %v3005_v5  ;;  %vm2626_vm4 = vcmp.gt.f32.partialorder %v2330_v31, 0.0 }
 0x1fe   :  { %v3133_v34 = vsel %vm2621_vm2, %v2309_v63, %v2877_v56  ;;  %v2882_v44 = vmul.f32 0.2, %v2330_v31  ;;  %vm2496_vm0 = vcmp.gt.f32.partialorder %v1810_v24, 0.0  ;;  %v2752_v25 = vmul.f32 0.2, %v1810_v24 }
 0x1ff   :  { %v5190_v35 = vpack.c.bf16 %v3133_v34, %v3133_v34  ;;  %v3010_v57 = vsel %vm2498_vm3, %v1818_v27, %v2754_v1  ;;  %4286 = vst.msk [vmem:[%s8261_s3 + $0x1b4] sm:$0xf] %vm4176_vm1, %v5062_v16  ;;  %vm2624_vm5 = vcmp.gt.f32.partialorder %v2322_v58, 0.0  ;;  %v2880_v29 = vmul.f32 0.2, %v2322_v58  ;;  %v8276_v34 = vld [vmem:[#allocation8_spill] sm:$0xff] }
 0x200   :  { %v5067_v22 = vpack.c.bf16 %v3010_v57, %v3010_v57  ;;  %v3138_v51 = vsel %vm2626_vm4, %v2330_v31, %v2882_v44  ;;  %v3008_v33 = vsel %vm2496_vm0, %v1810_v24, %v2752_v25  ;;  %v1821_v23 = vadd.f32 %v7970_v6, %v8271_v9  ;;  %v8277_v9 = vld [vmem:[#allocation9_spill] sm:$0xff] }
 0x201   :  { %4414 = vst.msk [vmem:[%s8261_s3 + $0x3b4] sm:$0xf] %vm4176_vm1, %v5190_v35  ;;  %v5195_v32 = vpack.c.bf16 %v3138_v51, %v3138_v51  ;;  %v2333_v59 = vadd.f32 %v7970_v6, %v8272_v42  ;;  %v5065_v53 = vpack.c.bf16 %v3008_v33, %v3008_v33  ;;  %v3136_v43 = vsel %vm2624_vm5, %v2322_v58, %v2880_v29  ;;  %v8275_v58 = vld [vmem:[#allocation7_spill] sm:$0xff] }
 0x202   :  { %4291 = vst.msk [vmem:[%s8261_s3 + $0x1c8] sm:$0xf] %vm4176_vm1, %v5067_v22  ;;  %v1813_v7 = vadd.f32 %v7970_v6, %v8273_v17  ;;  %v2325_v54 = vadd.f32 %v7970_v6, %v8274_v30  ;;  %v5193_v20 = vpack.c.bf16 %v3136_v43, %v3136_v43  ;;  %vm2499_vm6 = vcmp.gt.f32.partialorder %v1821_v23, 0.0 }
 0x203   :  { %4419 = vst.msk [vmem:[%s8261_s3 + $0x3c8] sm:$0xf] %vm4176_vm1, %v5195_v32  ;;  %v2755_v50 = vmul.f32 0.2, %v1821_v23  ;;  %vm2627_vm7 = vcmp.gt.f32.partialorder %v2333_v59, 0.0  ;;  %v1834_v3 = vadd.f32 %v7970_v6, %v7762_v12  ;;  %v2346_v8 = vadd.f32 %v7970_v6, %v7768_v10 }
 0x204   :  { %4289 = vst.msk [vmem:[%s8261_s3 + $0x1c0] sm:$0xf] %vm4176_vm1, %v5065_v53  ;;  %v2883_v47 = vmul.f32 0.2, %v2333_v59  ;;  %vm2497_vm8 = vcmp.gt.f32.partialorder %v1813_v7, 0.0  ;;  %vm2625_vm9 = vcmp.gt.f32.partialorder %v2325_v54, 0.0  ;;  %v1826_v62 = vadd.f32 %v7970_v6, %v7782_v13 }
 0x205   :  { %v2753_v46 = vmul.f32 0.2, %v1813_v7  ;;  %4417 = vst.msk [vmem:[%s8261_s3 + $0x3c0] sm:$0xf] %vm4176_vm1, %v5193_v20  ;;  %v3011_v36 = vsel %vm2499_vm6, %v1821_v23, %v2755_v50  ;;  %v2881_v39 = vmul.f32 0.2, %v2325_v54  ;;  %v2338_v13 = vadd.f32 %v7970_v6, %v7784_v52 }
 0x206   :  { %v5068_v55 = vpack.c.bf16 %v3011_v36, %v3011_v36  ;;  %v3139_v60 = vsel %vm2627_vm7, %v2333_v59, %v2883_v47  ;;  %vm2502_vm10 = vcmp.gt.f32.partialorder %v1834_v3, 0.0  ;;  %v2758_v12 = vmul.f32 0.2, %v1834_v3 }
 0x207   :  { %v3009_v63 = vsel %vm2497_vm8, %v1813_v7, %v2753_v46  ;;  %v5196_v49 = vpack.c.bf16 %v3139_v60, %v3139_v60  ;;  %v3137_v56 = vsel %vm2625_vm9, %v2325_v54, %v2881_v39  ;;  %vm2630_vm11 = vcmp.gt.f32.partialorder %v2346_v8, 0.0 }
 0x208   :  { %v5066_v27 = vpack.c.bf16 %v3009_v63, %v3009_v63  ;;  %4292 = vst.msk [vmem:[%s8261_s3 + $0x1cc] sm:$0xf] %vm4176_vm1, %v5068_v55  ;;  %v5194_v31 = vpack.c.bf16 %v3137_v56, %v3137_v56  ;;  %v2886_v24 = vmul.f32 0.2, %v2346_v8  ;;  %vm2500_vm12 = vcmp.gt.f32.partialorder %v1826_v62, 0.0 }
 0x209   :  { %4420 = vst.msk [vmem:[%s8261_s3 + $0x3cc] sm:$0xf] %vm4176_vm1, %v5196_v49  ;;  %v2756_v10 = vmul.f32 0.2, %v1826_v62  ;;  %v1837_v5 = vadd.f32 %v7970_v6, %v7795_v2  ;;  %v3014_v1 = vsel %vm2502_vm10, %v1834_v3, %v2758_v12  ;;  %v2349_v16 = vadd.f32 %v7970_v6, %v8275_v58 }
 0x20a   :  { %4290 = vst.msk [vmem:[%s8261_s3 + $0x1c4] sm:$0xf] %vm4176_vm1, %v5066_v27  ;;  %4418 = vst.msk [vmem:[%s8261_s3 + $0x3c4] sm:$0xf] %vm4176_vm1, %v5194_v31  ;;  %v3142_v19 = vsel %vm2630_vm11, %v2346_v8, %v2886_v24  ;;  %v1829_v44 = vadd.f32 %v7970_v6, %v8276_v34  ;;  %v5071_v35 = vpack.c.bf16 %v3014_v1, %v3014_v1  ;;  %vm2628_vm13 = vcmp.gt.f32.partialorder %v2338_v13, 0.0 }
 0x20b   :  { %v5199_v57 = vpack.c.bf16 %v3142_v19, %v3142_v19  ;;  %v3012_v25 = vsel %vm2500_vm12, %v1826_v62, %v2756_v10  ;;  %v2884_v22 = vmul.f32 0.2, %v2338_v13  ;;  %vm2503_vm14 = vcmp.gt.f32.partialorder %v1837_v5, 0.0 }
 0x20c   :  { %v5069_v52 = vpack.c.bf16 %v3012_v25, %v3012_v25  ;;  %v2759_v2 = vmul.f32 0.2, %v1837_v5  ;;  %4295 = vst.msk [vmem:[%s8261_s3 + $0x1d8] sm:$0xf] %vm4176_vm1, %v5071_v35  ;;  %vm2631_vm15 = vcmp.gt.f32.partialorder %v2349_v16, 0.0  ;;  %vm2501_vm2 = vcmp.gt.f32.partialorder %v1829_v44, 0.0 }
 0x20d   :  { %4423 = vst.msk [vmem:[%s8261_s3 + $0x3d8] sm:$0xf] %vm4176_vm1, %v5199_v57  ;;  %v2887_v51 = vmul.f32 0.2, %v2349_v16  ;;  %v2757_v29 = vmul.f32 0.2, %v1829_v44  ;;  %v3140_v32 = vsel %vm2628_vm13, %v2338_v13, %v2884_v22  ;;  %v2341_v23 = vadd.f32 %v7970_v6, %v8277_v9 }
 0x20e   :  { %4293 = vst.msk [vmem:[%s8261_s3 + $0x1d0] sm:$0xf] %vm4176_vm1, %v5069_v52  ;;  %v3015_v33 = vsel %vm2503_vm14, %v1837_v5, %v2759_v2  ;;  %v1850_v42 = vadd.f32 %v7970_v6, %v7819_v61  ;;  %v5197_v59 = vpack.c.bf16 %v3140_v32, %v3140_v32  ;;  %v2362_v20 = vadd.f32 %v7970_v6, %v7821_v45 }
 0x20f   :  { %v5072_v53 = vpack.c.bf16 %v3015_v33, %v3015_v33  ;;  %v3143_v43 = vsel %vm2631_vm15, %v2349_v16, %v2887_v51  ;;  %v3013_v17 = vsel %vm2501_vm2, %v1829_v44, %v2757_v29  ;;  %vm2629_vm3 = vcmp.gt.f32.partialorder %v2341_v23, 0.0 }
 0x210   :  { %v5200_v7 = vpack.c.bf16 %v3143_v43, %v3143_v43  ;;  %v5070_v30 = vpack.c.bf16 %v3013_v17, %v3013_v17  ;;  %v2885_v54 = vmul.f32 0.2, %v2341_v23  ;;  %4421 = vst.msk [vmem:[%s8261_s3 + $0x3d0] sm:$0xf] %vm4176_vm1, %v5197_v59  ;;  %vm2506_vm4 = vcmp.gt.f32.partialorder %v1850_v42, 0.0 }
 0x211   :  { %4296 = vst.msk [vmem:[%s8261_s3 + $0x1dc] sm:$0xf] %vm4176_vm1, %v5072_v53  ;;  %v2762_v61 = vmul.f32 0.2, %v1850_v42  ;;  %v1842_v50 = vadd.f32 %v7970_v6, %v7823_v41  ;;  %v2354_v46 = vadd.f32 %v7970_v6, %v7837_v26  ;;  %v1853_v45 = vadd.f32 %v7970_v6, %v7839_v11 }
 0x212   :  { %4424 = vst.msk [vmem:[%s8261_s3 + $0x3dc] sm:$0xf] %vm4176_vm1, %v5200_v7  ;;  %4294 = vst.msk [vmem:[%s8261_s3 + $0x1d4] sm:$0xf] %vm4176_vm1, %v5070_v30  ;;  %v3141_v47 = vsel %vm2629_vm3, %v2341_v23, %v2885_v54  ;;  %v2365_v41 = vadd.f32 %v7970_v6, %v7855_v28  ;;  %vm2634_vm0 = vcmp.gt.f32.partialorder %v2362_v20, 0.0  ;;  %v1845_v31 = vadd.f32 %v7970_v6, %v7857_v21 }
 0x213   :  { %v5198_v36 = vpack.c.bf16 %v3141_v47, %v3141_v47  ;;  %v3018_v39 = vsel %vm2506_vm4, %v1850_v42, %v2762_v61  ;;  %v2890_v3 = vmul.f32 0.2, %v2362_v20  ;;  %vm2504_vm5 = vcmp.gt.f32.partialorder %v1842_v50, 0.0 }
 0x214   :  { %v5075_v8 = vpack.c.bf16 %v3018_v39, %v3018_v39  ;;  %v2760_v55 = vmul.f32 0.2, %v1842_v50  ;;  %vm2632_vm6 = vcmp.gt.f32.partialorder %v2354_v46, 0.0  ;;  %v2888_v60 = vmul.f32 0.2, %v2354_v46 }
 0x215   :  { %4422 = vst.msk [vmem:[%s8261_s3 + $0x3d4] sm:$0xf] %vm4176_vm1, %v5198_v36  ;;  %v3146_v26 = vsel %vm2634_vm0, %v2362_v20, %v2890_v3  ;;  %vm2507_vm7 = vcmp.gt.f32.partialorder %v1853_v45, 0.0  ;;  %v2763_v11 = vmul.f32 0.2, %v1853_v45  ;;  %vm2635_vm8 = vcmp.gt.f32.partialorder %v2365_v41, 0.0 }
 0x216   :  { %4299 = vst.msk [vmem:[%s8261_s3 + $0x1e8] sm:$0xf] %vm4176_vm1, %v5075_v8  ;;  %v5203_v28 = vpack.c.bf16 %v3146_v26, %v3146_v26  ;;  %v3016_v63 = vsel %vm2504_vm5, %v1842_v50, %v2760_v55  ;;  %v2891_v62 = vmul.f32 0.2, %v2365_v41  ;;  %v3144_v27 = vsel %vm2632_vm6, %v2354_v46, %v2888_v60 }
 0x217   :  { %v5073_v49 = vpack.c.bf16 %v3016_v63, %v3016_v63  ;;  %v3019_v56 = vsel %vm2507_vm7, %v1853_v45, %v2763_v11  ;;  %v5201_v12 = vpack.c.bf16 %v3144_v27, %v3144_v27  ;;  %v2357_v13 = vadd.f32 %v7970_v6, %v7859_v18 }
 0x218   :  { %4427 = vst.msk [vmem:[%s8261_s3 + $0x3e8] sm:$0xf] %vm4176_vm1, %v5203_v28  ;;  %v5076_v24 = vpack.c.bf16 %v3019_v56, %v3019_v56  ;;  %v3147_v10 = vsel %vm2635_vm8, %v2365_v41, %v2891_v62  ;;  %vm2505_vm9 = vcmp.gt.f32.partialorder %v1845_v31, 0.0  ;;  %v2761_v1 = vmul.f32 0.2, %v1845_v31 }
 0x219   :  { %4297 = vst.msk [vmem:[%s8261_s3 + $0x1e0] sm:$0xf] %vm4176_vm1, %v5073_v49  ;;  %v5204_v5 = vpack.c.bf16 %v3147_v10, %v3147_v10  ;;  %v1866_v21 = vadd.f32 %v7970_v6, %v7871_v40  ;;  %4425 = vst.msk [vmem:[%s8261_s3 + $0x3e0] sm:$0xf] %vm4176_vm1, %v5201_v12  ;;  %vm2633_vm10 = vcmp.gt.f32.partialorder %v2357_v13, 0.0  ;;  %v2378_v19 = vadd.f32 %v7970_v6, %v7879_v48 }
 0x21a   :  { %4300 = vst.msk [vmem:[%s8261_s3 + $0x1ec] sm:$0xf] %vm4176_vm1, %v5076_v24  ;;  %v2889_v18 = vmul.f32 0.2, %v2357_v13  ;;  %v1858_v58 = vadd.f32 %v7970_v6, %v7881_v15  ;;  %v3017_v40 = vsel %vm2505_vm9, %v1845_v31, %v2761_v1  ;;  %v2370_v34 = vadd.f32 %v7970_v6, %v7889_v14 }
 0x21b   :  { %4428 = vst.msk [vmem:[%s8261_s3 + $0x3ec] sm:$0xf] %vm4176_vm1, %v5204_v5  ;;  %vm2510_vm11 = vcmp.gt.f32.partialorder %v1866_v21, 0.0  ;;  %v2766_v16 = vmul.f32 0.2, %v1866_v21  ;;  %v5074_v44 = vpack.c.bf16 %v3017_v40, %v3017_v40  ;;  %vm2638_vm12 = vcmp.gt.f32.partialorder %v2378_v19, 0.0 }
 0x21c   :  { %v3145_v35 = vsel %vm2633_vm10, %v2357_v13, %v2889_v18  ;;  %v2894_v57 = vmul.f32 0.2, %v2378_v19  ;;  %vm2508_vm13 = vcmp.gt.f32.partialorder %v1858_v58, 0.0  ;;  %v2764_v52 = vmul.f32 0.2, %v1858_v58 }
 0x21d   :  { %v5202_v25 = vpack.c.bf16 %v3145_v35, %v3145_v35  ;;  %v3022_v48 = vsel %vm2510_vm11, %v1866_v21, %v2766_v16  ;;  %4298 = vst.msk [vmem:[%s8261_s3 + $0x1e4] sm:$0xf] %vm4176_vm1, %v5074_v44  ;;  %vm2636_vm14 = vcmp.gt.f32.partialorder %v2370_v34, 0.0  ;;  %v2892_v2 = vmul.f32 0.2, %v2370_v34 }
 0x21e   :  { %v5079_v15 = vpack.c.bf16 %v3022_v48, %v3022_v48  ;;  %v3150_v22 = vsel %vm2638_vm12, %v2378_v19, %v2894_v57  ;;  %v3020_v51 = vsel %vm2508_vm13, %v1858_v58, %v2764_v52  ;;  %v1869_v29 = vadd.f32 %v7970_v6, %v7891_v4 }
 0x21f   :  { %4426 = vst.msk [vmem:[%s8261_s3 + $0x3e4] sm:$0xf] %vm4176_vm1, %v5202_v25  ;;  %v5207_v14 = vpack.c.bf16 %v3150_v22, %v3150_v22  ;;  %v2381_v32 = vadd.f32 %v7970_v6, %v7905_v38  ;;  %v5077_v33 = vpack.c.bf16 %v3020_v51, %v3020_v51  ;;  %v3148_v9 = vsel %vm2636_vm14, %v2370_v34, %v2892_v2 }
 0x220   :  { %4303 = vst.msk [vmem:[%s8261_s3 + $0x1f8] sm:$0xf] %vm4176_vm1, %v5079_v15  ;;  %v1861_v23 = vadd.f32 %v7970_v6, %v7907_v0  ;;  %v2373_v42 = vadd.f32 %v7970_v6, %v7915_v37  ;;  %v5205_v4 = vpack.c.bf16 %v3148_v9, %v3148_v9  ;;  %vm2511_vm15 = vcmp.gt.f32.partialorder %v1869_v29, 0.0 }
 0x221   :  { %4431 = vst.msk [vmem:[%s8261_s3 + $0x3f8] sm:$0xf] %vm4176_vm1, %v5207_v14  ;;  %v2767_v38 = vmul.f32 0.2, %v1869_v29  ;;  %vm2639_vm2 = vcmp.gt.f32.partialorder %v2381_v32, 0.0 }
 0x222   :  { %4301 = vst.msk [vmem:[%s8261_s3 + $0x1f0] sm:$0xf] %vm4176_vm1, %v5077_v33  ;;  %v2895_v59 = vmul.f32 0.2, %v2381_v32  ;;  %vm2509_vm3 = vcmp.gt.f32.partialorder %v1861_v23, 0.0  ;;  %vm2637_vm4 = vcmp.gt.f32.partialorder %v2373_v42, 0.0 }
 0x223   :  { %v2765_v0 = vmul.f32 0.2, %v1861_v23  ;;  %4429 = vst.msk [vmem:[%s8261_s3 + $0x3f0] sm:$0xf] %vm4176_vm1, %v5205_v4  ;;  %v3023_v37 = vsel %vm2511_vm15, %v1869_v29, %v2767_v38  ;;  %v2893_v6 = vmul.f32 0.2, %v2373_v42 }
 0x224   :  { %v5080_v53 = vpack.c.bf16 %v3023_v37, %v3023_v37  ;;  %v3151_v43 = vsel %vm2639_vm2, %v2381_v32, %v2895_v59 }
 0x225   :  { %v3021_v17 = vsel %vm2509_vm3, %v1861_v23, %v2765_v0  ;;  %v5208_v7 = vpack.c.bf16 %v3151_v43, %v3151_v43  ;;  %v3149_v54 = vsel %vm2637_vm4, %v2373_v42, %v2893_v6 }
 0x226   :  { %v5078_v30 = vpack.c.bf16 %v3021_v17, %v3021_v17  ;;  %4304 = vst.msk [vmem:[%s8261_s3 + $0x1fc] sm:$0xf] %vm4176_vm1, %v5080_v53  ;;  %v5206_v61 = vpack.c.bf16 %v3149_v54, %v3149_v54 }
 0x227   :  { %4432 = vst.msk [vmem:[%s8261_s3 + $0x3fc] sm:$0xf] %vm4176_vm1, %v5208_v7 }
 0x228   :  { %4302 = vst.msk [vmem:[%s8261_s3 + $0x1f4] sm:$0xf] %vm4176_vm1, %v5078_v30  ;;  %4430 = vst.msk [vmem:[%s8261_s3 + $0x3f4] sm:$0xf] %vm4176_vm1, %v5206_v61 }

// kernel: netG_forward.11
= control target key start
LH: loop header
LB: loop body
LE: loop exit
PB: predicated region body
PF: predicated region fallthrough
CT: control target
= control target key end

     0   :  { %vm880_vm0 = vcmask 125952   ;;  %vm945_vm1 = vcmask 130048   ;;  %vm1079_vm2 = vcmask 122880   ;;  %s2394_s1 = inlined_call_operand.vmem [shape: bf16[128,16], index: 1, kind: input, shape index: {}]   ;;  %s2395_s0 = inlined_call_operand.vmem [shape: bf16[512,128], index: 0, kind: input, shape index: {}]   ;;  %s2396_s2 = inlined_call_operand.vmem [shape: bf16[512,16], index: 2, kind: output, shape index: {0}]   ;;  %s2397_s3 = inlined_call_operand.vmem [shape: f32[1,1,16], index: 3, kind: output, shape index: {1}]   ;;  %s2398_s4 = inlined_call_operand.vmem [shape: f32[1,1,16], index: 4, kind: output, shape index: {2}]  }
   0x1   :  { %v1595_v0 = vld [vmem:[%s2394_s1] sm:$0xff]   ;;  %v1596_v1 = vld [vmem:[%s2394_s1 + $0x8] sm:$0xff]   ;;  %v1597_v2 = vld [vmem:[%s2394_s1 + $0x10] sm:$0xff]  }
   0x2   :  { %1499 = vmatprep.subr.bf16.mxu0 %v1595_v0  ;;  %1579 = vmatprep.subr.bf16.mxu1 %v1595_v0  ;;  %v1598_v3 = vld [vmem:[%s2394_s1 + $0x18] sm:$0xff]   ;;  %v1603_v4 = vld [vmem:[%s2395_s0] sm:$0xff]   ;;  %v1600_v6 = vld [vmem:[%s2394_s1 + $0x28] sm:$0xff]  }
   0x3   :  { %1500 = vmatpush3.bf16.msra.mxu0 %v1595_v0  ;;  %1587 = vmatpush3.bf16.msra.mxu1 %v1595_v0  ;;  %v1599_v5 = vld [vmem:[%s2394_s1 + $0x20] sm:$0xff]   ;;  %v1601_v7 = vld [vmem:[%s2394_s1 + $0x30] sm:$0xff]   ;;  %v1602_v8 = vld [vmem:[%s2394_s1 + $0x38] sm:$0xff]  }
   0x4   :  { %1501 = vmatprep.subr.bf16.mxu0 %v1596_v1  ;;  %1580 = vmatprep.subr.bf16.mxu1 %v1596_v1  ;;  %v1619_v9 = vld [vmem:[%s2395_s0 + $0x80] sm:$0xff]   ;;  %v1604_v10 = vld [vmem:[%s2395_s0 + $0x8] sm:$0xff]   ;;  %v1605_v11 = vld [vmem:[%s2395_s0 + $0x10] sm:$0xff]  }
   0x5   :  { %1515 = vmatprep.mubr.bf16.mxu0 %v1603_v4  ;;  %1547 = vmatprep.mubr.bf16.mxu1 %v1619_v9  ;;  %v1620_v12 = vld [vmem:[%s2395_s0 + $0x88] sm:$0xff]   ;;  %v1621_v13 = vld [vmem:[%s2395_s0 + $0x90] sm:$0xff]   ;;  %v1606_v14 = vld [vmem:[%s2395_s0 + $0x18] sm:$0xff]  }
   0x6   :  { %v1607_v15 = vld [vmem:[%s2395_s0 + $0x20] sm:$0xff]   ;;  %v1622_v16 = vld [vmem:[%s2395_s0 + $0x98] sm:$0xff]   ;;  %v1608_v18 = vld [vmem:[%s2395_s0 + $0x28] sm:$0xff]  }
   0x7   :  { %1502 = vmatpush3.bf16.msra.mxu0 %v1596_v1  ;;  %1588 = vmatpush3.bf16.msra.mxu1 %v1596_v1  ;;  %v1623_v17 = vld [vmem:[%s2395_s0 + $0xa0] sm:$0xff]   ;;  %v1624_v19 = vld [vmem:[%s2395_s0 + $0xa8] sm:$0xff]   ;;  %v1609_v20 = vld [vmem:[%s2395_s0 + $0x30] sm:$0xff]  }
   0x8   :  { %1503 = vmatprep.subr.bf16.mxu0 %v1597_v2  ;;  %1581 = vmatprep.subr.bf16.mxu1 %v1597_v2  ;;  %v1625_v21 = vld [vmem:[%s2395_s0 + $0xb0] sm:$0xff]   ;;  %v1610_v22 = vld [vmem:[%s2395_s0 + $0x38] sm:$0xff]   ;;  %v1611_v24 = vld [vmem:[%s2395_s0 + $0x40] sm:$0xff]  }
   0x9   :  { %v1626_v23 = vld [vmem:[%s2395_s0 + $0xb8] sm:$0xff]   ;;  %v1627_v25 = vld [vmem:[%s2395_s0 + $0xc0] sm:$0xff]   ;;  %v1612_v26 = vld [vmem:[%s2395_s0 + $0x48] sm:$0xff]  }
   0xa   :  { %v1628_v27 = vld [vmem:[%s2395_s0 + $0xc8] sm:$0xff]   ;;  %v1613_v28 = vld [vmem:[%s2395_s0 + $0x50] sm:$0xff]   ;;  %v1614_v30 = vld [vmem:[%s2395_s0 + $0x58] sm:$0xff]  }
   0xb   :  { %1504 = vmatpush3.bf16.msra.mxu0 %v1597_v2  ;;  %1589 = vmatpush3.bf16.msra.mxu1 %v1597_v2  ;;  %v1629_v29 = vld [vmem:[%s2395_s0 + $0xd0] sm:$0xff]   ;;  %v1630_v31 = vld [vmem:[%s2395_s0 + $0xd8] sm:$0xff]   ;;  %v1615_v32 = vld [vmem:[%s2395_s0 + $0x60] sm:$0xff]  }
   0xc   :  { %1505 = vmatprep.subr.bf16.mxu0 %v1598_v3  ;;  %1582 = vmatprep.subr.bf16.mxu1 %v1598_v3  ;;  %v1631_v33 = vld [vmem:[%s2395_s0 + $0xe0] sm:$0xff]   ;;  %v1616_v34 = vld [vmem:[%s2395_s0 + $0x68] sm:$0xff]   ;;  %v1617_v36 = vld [vmem:[%s2395_s0 + $0x70] sm:$0xff]  }
   0xd   :  { %v1632_v35 = vld [vmem:[%s2395_s0 + $0xe8] sm:$0xff]   ;;  %v1633_v37 = vld [vmem:[%s2395_s0 + $0xf0] sm:$0xff]   ;;  %v1618_v38 = vld [vmem:[%s2395_s0 + $0x78] sm:$0xff]  }
   0xe   :  { %v1634_v39 = vld [vmem:[%s2395_s0 + $0xf8] sm:$0xff]  }
   0xf   :  { %1506 = vmatpush3.bf16.msra.mxu0 %v1598_v3  ;;  %1590 = vmatpush3.bf16.msra.mxu1 %v1598_v3 }
  0x10   :  { %1507 = vmatprep.subr.bf16.mxu0 %v1599_v5  ;;  %1583 = vmatprep.subr.bf16.mxu1 %v1599_v5 }
  0x13   :  { %1508 = vmatpush3.bf16.msra.mxu0 %v1599_v5  ;;  %1591 = vmatpush3.bf16.msra.mxu1 %v1599_v5 }
  0x14   :  { %1509 = vmatprep.subr.bf16.mxu0 %v1600_v6  ;;  %1584 = vmatprep.subr.bf16.mxu1 %v1600_v6 }
  0x17   :  { %1510 = vmatpush3.bf16.msra.mxu0 %v1600_v6  ;;  %1592 = vmatpush3.bf16.msra.mxu1 %v1600_v6 }
  0x18   :  { %1511 = vmatprep.subr.bf16.mxu0 %v1601_v7  ;;  %1585 = vmatprep.subr.bf16.mxu1 %v1601_v7 }
  0x1b   :  { %1512 = vmatpush3.bf16.msra.mxu0 %v1601_v7  ;;  %1593 = vmatpush3.bf16.msra.mxu1 %v1601_v7 }
  0x1c   :  { %1513 = vmatprep.subr.bf16.mxu0 %v1602_v8  ;;  %1586 = vmatprep.subr.bf16.mxu1 %v1602_v8 }
  0x1f   :  { %1514 = vmatpush3.bf16.msra.mxu0 %v1602_v8  ;;  %1594 = vmatpush3.bf16.msra.mxu1 %v1602_v8 }
  0x22   :  { %1516 = vmatmul.mubr.bf16.vlgmr.msra.gmra.mrb[0].mxu0 %v1604_v10  ;;  %1548 = vmatmul.mubr.bf16.vlgmr.msra.gmra.mrb[0].mxu1 %v1620_v12 }
  0x23   :  { %1519 = vmatprep.mubr.bf16.mxu0 %v1605_v11  ;;  %1551 = vmatprep.mubr.bf16.mxu1 %v1621_v13 }
  0x2a   :  { %1520 = vmatmul.mubr.bf16.gmra.mrb[4].mxu0 %v1606_v14  ;;  %1552 = vmatmul.mubr.bf16.gmra.mrb[4].mxu1 %v1622_v16 }
  0x2b   :  { %1523 = vmatprep.mubr.bf16.mxu0 %v1607_v15  ;;  %1555 = vmatprep.mubr.bf16.mxu1 %v1623_v17 }
  0x32   :  { %1524 = vmatmul.mubr.bf16.gmra.mrb[8].mxu0 %v1608_v18  ;;  %1556 = vmatmul.mubr.bf16.gmra.mrb[8].mxu1 %v1624_v19 }
  0x33   :  { %1527 = vmatprep.mubr.bf16.mxu0 %v1609_v20  ;;  %1559 = vmatprep.mubr.bf16.mxu1 %v1625_v21 }
  0x3a   :  { %1528 = vmatmul.mubr.bf16.gmra.mrb[12].mxu0 %v1610_v22  ;;  %1560 = vmatmul.mubr.bf16.gmra.mrb[12].mxu1 %v1626_v23 }
  0x3b   :  { %1531 = vmatprep.mubr.bf16.mxu0 %v1611_v24  ;;  %1563 = vmatprep.mubr.bf16.mxu1 %v1627_v25 }
  0x42   :  { %1532 = vmatmul.mubr.bf16.gmra.mrb[16].mxu0 %v1612_v26  ;;  %1564 = vmatmul.mubr.bf16.gmra.mrb[16].mxu1 %v1628_v27 }
  0x43   :  { %1535 = vmatprep.mubr.bf16.mxu0 %v1613_v28  ;;  %1567 = vmatprep.mubr.bf16.mxu1 %v1629_v29 }
  0x4a   :  { %1536 = vmatmul.mubr.bf16.gmra.mrb[20].mxu0 %v1614_v30  ;;  %1568 = vmatmul.mubr.bf16.gmra.mrb[20].mxu1 %v1630_v31 }
  0x4b   :  { %1539 = vmatprep.mubr.bf16.mxu0 %v1615_v32  ;;  %1571 = vmatprep.mubr.bf16.mxu1 %v1631_v33 }
  0x52   :  { %1540 = vmatmul.mubr.bf16.gmra.mrb[24].mxu0 %v1616_v34  ;;  %1572 = vmatmul.mubr.bf16.gmra.mrb[24].mxu1 %v1632_v35 }
  0x53   :  { %1543 = vmatprep.mubr.bf16.mxu0 %v1617_v36  ;;  %1575 = vmatprep.mubr.bf16.mxu1 %v1633_v37 }
  0x5a   :  { %1544 = vmatmul.mubr.bf16.gmra.mrb[28].mxu0 %v1618_v38  ;;  %1576 = vmatmul.mubr.bf16.gmra.mrb[28].mxu1 %v1634_v39 }
  0xf5   :  { %v1517_v40 = vpop.f32.mrb[0].mxu0  ;;  %v1780_v41 = vpop.f32.mrb[0].mxu1 }
  0xf6   :  { %v1397_v42 = vpack.c.bf16 %v1517_v40, %v1517_v40  ;;  %v369_v43 = vpop.f32.mrb[1].mxu0  ;;  %v1429_v44 = vpack.c.bf16 %v1780_v41, %v1780_v41  ;;  %v1784_v45 = vpop.f32.mrb[1].mxu1  ;;  %v1083_v50 = vmul.f32 %v1517_v40, %v1517_v40  ;;  %v949_v61 = vsel %vm945_vm1, %v1517_v40, 0.0 }
  0xf7   :  { %v1395_v46 = vpack.c.bf16 %v369_v43, %v369_v43  ;;  %v1081_v47 = vmul.f32 %v369_v43, %v369_v43  ;;  %v1518_v48 = vpop.f32.mrb[2].mxu0  ;;  %v1786_v49 = vpop.f32.mrb[2].mxu1  ;;  %v946_v54 = vsel %vm945_vm1, %v369_v43, 0.0  ;;  %v1427_v60 = vpack.c.bf16 %v1784_v45, %v1784_v45 }
  0xf8   :  { %883 = vst.msk [vmem:[%s2396_s2 + $0x8] sm:$0xf] %vm880_vm0, %v1397_v42  ;;  %v1398_v51 = vpack.c.bf16 %v1518_v48, %v1518_v48  ;;  %v372_v52 = vpop.f32.mrb[3].mxu0  ;;  %915 = vst.msk [vmem:[%s2396_s2 + $0x88] sm:$0xf] %vm880_vm0, %v1429_v44  ;;  %v1796_v53 = vpop.f32.mrb[3].mxu1  ;;  %v1084_v58 = vmul.f32 %v1518_v48, %v1518_v48  ;;  %v1430_v0 = vpack.c.bf16 %v1786_v49, %v1786_v49 }
  0xf9   :  { %881 = vst.msk [vmem:[%s2396_s2] sm:$0xf] %vm880_vm0, %v1395_v46  ;;  %v1396_v55 = vpack.c.bf16 %v372_v52, %v372_v52  ;;  %v947_v56 = vsel %vm945_vm1, %v372_v52, 0.0  ;;  %v1082_v57 = vmul.f32 %v372_v52, %v372_v52  ;;  %v1145_v62 = vsel %vm945_vm1, %v1081_v47, 0.0  ;;  %913 = vst.msk [vmem:[%s2396_s2 + $0x80] sm:$0xf] %vm880_vm0, %v1427_v60 }
  0xfa   :  { %884 = vst.msk [vmem:[%s2396_s2 + $0xc] sm:$0xf] %vm880_vm0, %v1398_v51  ;;  %v948_v59 = vadd.f32 %v947_v56, %v946_v54  ;;  %v1148_v3 = vsel %vm945_vm1, %v1083_v50, 0.0  ;;  %916 = vst.msk [vmem:[%s2396_s2 + $0x8c] sm:$0xf] %vm880_vm0, %v1430_v0  ;;  %v1428_v5 = vpack.c.bf16 %v1796_v53, %v1796_v53  ;;  %v951_v7 = vsel %vm945_vm1, %v1518_v48, 0.0 }
  0xfb   :  { %882 = vst.msk [vmem:[%s2396_s2 + $0x4] sm:$0xf] %vm880_vm0, %v1396_v55  ;;  %v1146_v63 = vsel %vm945_vm1, %v1082_v57, 0.0  ;;  %v1150_v8 = vsel %vm945_vm1, %v1084_v58, 0.0 }
  0xfc   :  { %v950_v1 = vadd.f32 %v949_v61, %v948_v59  ;;  %v1147_v2 = vadd.f32 %v1146_v63, %v1145_v62  ;;  %914 = vst.msk [vmem:[%s2396_s2 + $0x84] sm:$0xf] %vm880_vm0, %v1428_v5 }
  0xfd   :  { %v1521_v4 = vpop.f32.mrb[4].mxu0  ;;  %v1830_v6 = vpop.f32.mrb[4].mxu1 }
  0xfe   :  { %v1149_v9 = vadd.f32 %v1148_v3, %v1147_v2  ;;  %v1401_v10 = vpack.c.bf16 %v1521_v4, %v1521_v4  ;;  %v385_v11 = vpop.f32.mrb[5].mxu0  ;;  %v1834_v12 = vpop.f32.mrb[5].mxu1  ;;  %v952_v14 = vadd.f32 %v951_v7, %v950_v1  ;;  %v1087_v26 = vmul.f32 %v1521_v4, %v1521_v4 }
  0xff   :  { %v1399_v13 = vpack.c.bf16 %v385_v11, %v385_v11  ;;  %v953_v15 = vsel %vm945_vm1, %v385_v11, 0.0  ;;  %v1085_v16 = vmul.f32 %v385_v11, %v385_v11  ;;  %v1522_v17 = vpop.f32.mrb[6].mxu0  ;;  %v1841_v18 = vpop.f32.mrb[6].mxu1  ;;  %v1433_v31 = vpack.c.bf16 %v1830_v6, %v1830_v6 }
 0x100   :  { %887 = vst.msk [vmem:[%s2396_s2 + $0x18] sm:$0xf] %vm880_vm0, %v1401_v10  ;;  %v1151_v19 = vadd.f32 %v1150_v8, %v1149_v9  ;;  %v1402_v20 = vpack.c.bf16 %v1522_v17, %v1522_v17  ;;  %v388_v21 = vpop.f32.mrb[7].mxu0  ;;  %v1847_v22 = vpop.f32.mrb[7].mxu1  ;;  %v954_v23 = vadd.f32 %v953_v15, %v952_v14  ;;  %v957_v32 = vsel %vm945_vm1, %v1521_v4, 0.0 }
 0x101   :  { %885 = vst.msk [vmem:[%s2396_s2 + $0x10] sm:$0xf] %vm880_vm0, %v1399_v13  ;;  %v1152_v24 = vsel %vm945_vm1, %v1085_v16, 0.0  ;;  %v1400_v25 = vpack.c.bf16 %v388_v21, %v388_v21  ;;  %v955_v28 = vsel %vm945_vm1, %v388_v21, 0.0  ;;  %v1086_v29 = vmul.f32 %v388_v21, %v388_v21  ;;  %919 = vst.msk [vmem:[%s2396_s2 + $0x98] sm:$0xf] %vm880_vm0, %v1433_v31 }
 0x102   :  { %v1153_v27 = vadd.f32 %v1152_v24, %v1151_v19  ;;  %888 = vst.msk [vmem:[%s2396_s2 + $0x1c] sm:$0xf] %vm880_vm0, %v1402_v20  ;;  %v956_v30 = vadd.f32 %v955_v28, %v954_v23  ;;  %v1088_v33 = vmul.f32 %v1522_v17, %v1522_v17  ;;  %v1431_v35 = vpack.c.bf16 %v1834_v12, %v1834_v12 }
 0x103   :  { %886 = vst.msk [vmem:[%s2396_s2 + $0x14] sm:$0xf] %vm880_vm0, %v1400_v25  ;;  %v1154_v34 = vsel %vm945_vm1, %v1086_v29, 0.0  ;;  %v1156_v40 = vsel %vm945_vm1, %v1087_v26, 0.0  ;;  %v959_v42 = vsel %vm945_vm1, %v1522_v17, 0.0  ;;  %v1434_v5 = vpack.c.bf16 %v1841_v18, %v1841_v18 }
 0x104   :  { %v958_v36 = vadd.f32 %v957_v32, %v956_v30  ;;  %v1155_v37 = vadd.f32 %v1154_v34, %v1153_v27  ;;  %917 = vst.msk [vmem:[%s2396_s2 + $0x90] sm:$0xf] %vm880_vm0, %v1431_v35  ;;  %v1158_v55 = vsel %vm945_vm1, %v1088_v33, 0.0  ;;  %v1432_v14 = vpack.c.bf16 %v1847_v22, %v1847_v22 }
 0x105   :  { %v1525_v38 = vpop.f32.mrb[8].mxu0  ;;  %v1873_v39 = vpop.f32.mrb[8].mxu1  ;;  %920 = vst.msk [vmem:[%s2396_s2 + $0x9c] sm:$0xf] %vm880_vm0, %v1434_v5 }
 0x106   :  { %v1405_v43 = vpack.c.bf16 %v1525_v38, %v1525_v38  ;;  %v401_v44 = vpop.f32.mrb[9].mxu0  ;;  %v1881_v46 = vpop.f32.mrb[9].mxu1  ;;  %v1157_v47 = vadd.f32 %v1156_v40, %v1155_v37  ;;  %v960_v50 = vadd.f32 %v959_v42, %v958_v36  ;;  %v1091_v63 = vmul.f32 %v1525_v38, %v1525_v38  ;;  %918 = vst.msk [vmem:[%s2396_s2 + $0x94] sm:$0xf] %vm880_vm0, %v1432_v14 }
 0x107   :  { %v1403_v48 = vpack.c.bf16 %v401_v44, %v401_v44  ;;  %v961_v51 = vsel %vm945_vm1, %v401_v44, 0.0  ;;  %v1526_v52 = vpop.f32.mrb[10].mxu0  ;;  %v1884_v54 = vpop.f32.mrb[10].mxu1  ;;  %v1089_v56 = vmul.f32 %v401_v44, %v401_v44  ;;  %v965_v7 = vsel %vm945_vm1, %v1525_v38, 0.0 }
 0x108   :  { %891 = vst.msk [vmem:[%s2396_s2 + $0x28] sm:$0xf] %vm880_vm0, %v1405_v43  ;;  %v1406_v57 = vpack.c.bf16 %v1526_v52, %v1526_v52  ;;  %v404_v58 = vpop.f32.mrb[11].mxu0  ;;  %v1891_v59 = vpop.f32.mrb[11].mxu1  ;;  %v962_v60 = vadd.f32 %v961_v51, %v960_v50  ;;  %v1159_v61 = vadd.f32 %v1158_v55, %v1157_v47  ;;  %v1092_v8 = vmul.f32 %v1526_v52, %v1526_v52 }
 0x109   :  { %889 = vst.msk [vmem:[%s2396_s2 + $0x20] sm:$0xf] %vm880_vm0, %v1403_v48  ;;  %v1404_v62 = vpack.c.bf16 %v404_v58, %v404_v58  ;;  %v1160_v0 = vsel %vm945_vm1, %v1089_v56, 0.0  ;;  %v963_v1 = vsel %vm945_vm1, %v404_v58, 0.0  ;;  %v1090_v2 = vmul.f32 %v404_v58, %v404_v58 }
 0x10a   :  { %892 = vst.msk [vmem:[%s2396_s2 + $0x2c] sm:$0xf] %vm880_vm0, %v1406_v57  ;;  %v1161_v3 = vadd.f32 %v1160_v0, %v1159_v61  ;;  %v964_v4 = vadd.f32 %v963_v1, %v962_v60  ;;  %v1164_v16 = vsel %vm945_vm1, %v1091_v63, 0.0  ;;  %v967_v17 = vsel %vm945_vm1, %v1526_v52, 0.0 }
 0x10b   :  { %890 = vst.msk [vmem:[%s2396_s2 + $0x24] sm:$0xf] %vm880_vm0, %v1404_v62  ;;  %v1162_v9 = vsel %vm945_vm1, %v1090_v2, 0.0  ;;  %v1166_v29 = vsel %vm945_vm1, %v1092_v8, 0.0  ;;  %v1437_v47 = vpack.c.bf16 %v1873_v39, %v1873_v39  ;;  %v1435_v57 = vpack.c.bf16 %v1881_v46, %v1881_v46 }
 0x10c   :  { %v966_v10 = vadd.f32 %v965_v7, %v964_v4  ;;  %v1163_v11 = vadd.f32 %v1162_v9, %v1161_v3 }
 0x10d   :  { %v1529_v13 = vpop.f32.mrb[12].mxu0  ;;  %v1917_v15 = vpop.f32.mrb[12].mxu1  ;;  %923 = vst.msk [vmem:[%s2396_s2 + $0xa8] sm:$0xf] %vm880_vm0, %v1437_v47  ;;  %921 = vst.msk [vmem:[%s2396_s2 + $0xa0] sm:$0xf] %vm880_vm0, %v1435_v57 }
 0x10e   :  { %v1409_v19 = vpack.c.bf16 %v1529_v13, %v1529_v13  ;;  %v417_v20 = vpop.f32.mrb[13].mxu0  ;;  %v1921_v21 = vpop.f32.mrb[13].mxu1  ;;  %v1165_v23 = vadd.f32 %v1164_v16, %v1163_v11  ;;  %v968_v25 = vadd.f32 %v967_v17, %v966_v10  ;;  %v1095_v37 = vmul.f32 %v1529_v13, %v1529_v13 }
 0x10f   :  { %v1407_v24 = vpack.c.bf16 %v417_v20, %v417_v20  ;;  %v969_v26 = vsel %vm945_vm1, %v417_v20, 0.0  ;;  %v1530_v27 = vpop.f32.mrb[14].mxu0  ;;  %v1928_v28 = vpop.f32.mrb[14].mxu1  ;;  %v1093_v30 = vmul.f32 %v417_v20, %v417_v20  ;;  %v973_v48 = vsel %vm945_vm1, %v1529_v13, 0.0 }
 0x110   :  { %895 = vst.msk [vmem:[%s2396_s2 + $0x38] sm:$0xf] %vm880_vm0, %v1409_v19  ;;  %v1410_v31 = vpack.c.bf16 %v1530_v27, %v1530_v27  ;;  %v420_v32 = vpop.f32.mrb[15].mxu0  ;;  %v1935_v33 = vpop.f32.mrb[15].mxu1  ;;  %v970_v34 = vadd.f32 %v969_v26, %v968_v25  ;;  %v1167_v35 = vadd.f32 %v1166_v29, %v1165_v23  ;;  %v1096_v50 = vmul.f32 %v1530_v27, %v1530_v27 }
 0x111   :  { %893 = vst.msk [vmem:[%s2396_s2 + $0x30] sm:$0xf] %vm880_vm0, %v1407_v24  ;;  %v1408_v36 = vpack.c.bf16 %v420_v32, %v420_v32  ;;  %v1168_v38 = vsel %vm945_vm1, %v1093_v30, 0.0  ;;  %v971_v40 = vsel %vm945_vm1, %v420_v32, 0.0  ;;  %v1094_v42 = vmul.f32 %v420_v32, %v420_v32 }
 0x112   :  { %896 = vst.msk [vmem:[%s2396_s2 + $0x3c] sm:$0xf] %vm880_vm0, %v1410_v31  ;;  %v1169_v43 = vadd.f32 %v1168_v38, %v1167_v35  ;;  %v972_v44 = vadd.f32 %v971_v40, %v970_v34  ;;  %v1172_v60 = vsel %vm945_vm1, %v1095_v37, 0.0  ;;  %v975_v61 = vsel %vm945_vm1, %v1530_v27, 0.0 }
 0x113   :  { %894 = vst.msk [vmem:[%s2396_s2 + $0x34] sm:$0xf] %vm880_vm0, %v1408_v36  ;;  %v1170_v51 = vsel %vm945_vm1, %v1094_v42, 0.0  ;;  %v1174_v8 = vsel %vm945_vm1, %v1096_v50, 0.0  ;;  %v1438_v27 = vpack.c.bf16 %v1884_v54, %v1884_v54  ;;  %v1436_v36 = vpack.c.bf16 %v1891_v59, %v1891_v59 }
 0x114   :  { %v974_v52 = vadd.f32 %v973_v48, %v972_v44  ;;  %v1171_v55 = vadd.f32 %v1170_v51, %v1169_v43 }
 0x115   :  { %v1533_v56 = vpop.f32.mrb[16].mxu0  ;;  %v1961_v58 = vpop.f32.mrb[16].mxu1  ;;  %924 = vst.msk [vmem:[%s2396_s2 + $0xac] sm:$0xf] %vm880_vm0, %v1438_v27  ;;  %922 = vst.msk [vmem:[%s2396_s2 + $0xa4] sm:$0xf] %vm880_vm0, %v1436_v36 }
 0x116   :  { %v1413_v62 = vpack.c.bf16 %v1533_v56, %v1533_v56  ;;  %v433_v63 = vpop.f32.mrb[17].mxu0  ;;  %v1965_v0 = vpop.f32.mrb[17].mxu1  ;;  %v1173_v1 = vadd.f32 %v1172_v60, %v1171_v55  ;;  %v976_v3 = vadd.f32 %v975_v61, %v974_v52  ;;  %v1099_v19 = vmul.f32 %v1533_v56, %v1533_v56 }
 0x117   :  { %v1411_v2 = vpack.c.bf16 %v433_v63, %v433_v63  ;;  %v977_v4 = vsel %vm945_vm1, %v433_v63, 0.0  ;;  %v1534_v5 = vpop.f32.mrb[18].mxu0  ;;  %v1972_v7 = vpop.f32.mrb[18].mxu1  ;;  %v1097_v9 = vmul.f32 %v433_v63, %v433_v63  ;;  %v981_v29 = vsel %vm945_vm1, %v1533_v56, 0.0 }
 0x118   :  { %899 = vst.msk [vmem:[%s2396_s2 + $0x48] sm:$0xf] %vm880_vm0, %v1413_v62  ;;  %v1414_v10 = vpack.c.bf16 %v1534_v5, %v1534_v5  ;;  %v436_v11 = vpop.f32.mrb[19].mxu0  ;;  %v1979_v13 = vpop.f32.mrb[19].mxu1  ;;  %v978_v14 = vadd.f32 %v977_v4, %v976_v3  ;;  %v1175_v16 = vadd.f32 %v1174_v8, %v1173_v1  ;;  %v1100_v30 = vmul.f32 %v1534_v5, %v1534_v5 }
 0x119   :  { %897 = vst.msk [vmem:[%s2396_s2 + $0x40] sm:$0xf] %vm880_vm0, %v1411_v2  ;;  %v1412_v17 = vpack.c.bf16 %v436_v11, %v436_v11  ;;  %v1176_v20 = vsel %vm945_vm1, %v1097_v9, 0.0  ;;  %v979_v23 = vsel %vm945_vm1, %v436_v11, 0.0  ;;  %v1098_v24 = vmul.f32 %v436_v11, %v436_v11 }
 0x11a   :  { %900 = vst.msk [vmem:[%s2396_s2 + $0x4c] sm:$0xf] %vm880_vm0, %v1414_v10  ;;  %v1177_v25 = vadd.f32 %v1176_v20, %v1175_v16  ;;  %v980_v26 = vadd.f32 %v979_v23, %v978_v14  ;;  %v1180_v38 = vsel %vm945_vm1, %v1099_v19, 0.0  ;;  %v983_v40 = vsel %vm945_vm1, %v1534_v5, 0.0 }
 0x11b   :  { %898 = vst.msk [vmem:[%s2396_s2 + $0x44] sm:$0xf] %vm880_vm0, %v1412_v17  ;;  %v1178_v31 = vsel %vm945_vm1, %v1098_v24, 0.0  ;;  %v1182_v56 = vsel %vm945_vm1, %v1100_v30, 0.0  ;;  %v1441_v11 = vpack.c.bf16 %v1917_v15, %v1917_v15  ;;  %v1439_v24 = vpack.c.bf16 %v1921_v21, %v1921_v21 }
 0x11c   :  { %v982_v32 = vadd.f32 %v981_v29, %v980_v26  ;;  %v1179_v34 = vadd.f32 %v1178_v31, %v1177_v25 }
 0x11d   :  { %v1537_v35 = vpop.f32.mrb[20].mxu0  ;;  %v2005_v37 = vpop.f32.mrb[20].mxu1  ;;  %927 = vst.msk [vmem:[%s2396_s2 + $0xb8] sm:$0xf] %vm880_vm0, %v1441_v11  ;;  %925 = vst.msk [vmem:[%s2396_s2 + $0xb0] sm:$0xf] %vm880_vm0, %v1439_v24 }
 0x11e   :  { %v1417_v42 = vpack.c.bf16 %v1537_v35, %v1537_v35  ;;  %v449_v43 = vpop.f32.mrb[21].mxu0  ;;  %v2009_v44 = vpop.f32.mrb[21].mxu1  ;;  %v1181_v47 = vadd.f32 %v1180_v38, %v1179_v34  ;;  %v984_v50 = vadd.f32 %v983_v40, %v982_v32  ;;  %v1103_v3 = vmul.f32 %v1537_v35, %v1537_v35 }
 0x11f   :  { %v1415_v48 = vpack.c.bf16 %v449_v43, %v449_v43  ;;  %v985_v51 = vsel %vm945_vm1, %v449_v43, 0.0  ;;  %v1538_v52 = vpop.f32.mrb[22].mxu0  ;;  %v2016_v55 = vpop.f32.mrb[22].mxu1  ;;  %v1101_v57 = vmul.f32 %v449_v43, %v449_v43  ;;  %v989_v14 = vsel %vm945_vm1, %v1537_v35, 0.0 }
 0x120   :  { %903 = vst.msk [vmem:[%s2396_s2 + $0x58] sm:$0xf] %vm880_vm0, %v1417_v42  ;;  %v1418_v60 = vpack.c.bf16 %v1538_v52, %v1538_v52  ;;  %v452_v61 = vpop.f32.mrb[23].mxu0  ;;  %v2023_v62 = vpop.f32.mrb[23].mxu1  ;;  %v986_v63 = vadd.f32 %v985_v51, %v984_v50  ;;  %v1183_v1 = vadd.f32 %v1182_v56, %v1181_v47  ;;  %v1104_v16 = vmul.f32 %v1538_v52, %v1538_v52 }
 0x121   :  { %901 = vst.msk [vmem:[%s2396_s2 + $0x50] sm:$0xf] %vm880_vm0, %v1415_v48  ;;  %v1416_v2 = vpack.c.bf16 %v452_v61, %v452_v61  ;;  %v1184_v4 = vsel %vm945_vm1, %v1101_v57, 0.0  ;;  %v987_v5 = vsel %vm945_vm1, %v452_v61, 0.0  ;;  %v1102_v8 = vmul.f32 %v452_v61, %v452_v61 }
 0x122   :  { %904 = vst.msk [vmem:[%s2396_s2 + $0x5c] sm:$0xf] %vm880_vm0, %v1418_v60  ;;  %v1185_v9 = vadd.f32 %v1184_v4, %v1183_v1  ;;  %v988_v10 = vadd.f32 %v987_v5, %v986_v63  ;;  %v1188_v26 = vsel %vm945_vm1, %v1103_v3, 0.0  ;;  %v991_v27 = vsel %vm945_vm1, %v1538_v52, 0.0 }
 0x123   :  { %902 = vst.msk [vmem:[%s2396_s2 + $0x54] sm:$0xf] %vm880_vm0, %v1416_v2  ;;  %v1186_v17 = vsel %vm945_vm1, %v1102_v8, 0.0  ;;  %v1190_v42 = vsel %vm945_vm1, %v1104_v16, 0.0  ;;  %v1442_v3 = vpack.c.bf16 %v1928_v28, %v1928_v28 }
 0x124   :  { %v990_v19 = vadd.f32 %v989_v14, %v988_v10  ;;  %v1187_v20 = vadd.f32 %v1186_v17, %v1185_v9  ;;  %v1440_v14 = vpack.c.bf16 %v1935_v33, %v1935_v33 }
 0x125   :  { %v1541_v23 = vpop.f32.mrb[24].mxu0  ;;  %v2049_v25 = vpop.f32.mrb[24].mxu1  ;;  %928 = vst.msk [vmem:[%s2396_s2 + $0xbc] sm:$0xf] %vm880_vm0, %v1442_v3 }
 0x126   :  { %v1421_v29 = vpack.c.bf16 %v1541_v23, %v1541_v23  ;;  %v465_v30 = vpop.f32.mrb[25].mxu0  ;;  %v2053_v31 = vpop.f32.mrb[25].mxu1  ;;  %v1189_v32 = vadd.f32 %v1188_v26, %v1187_v20  ;;  %v992_v35 = vadd.f32 %v991_v27, %v990_v19  ;;  %v1107_v57 = vmul.f32 %v1541_v23, %v1541_v23  ;;  %926 = vst.msk [vmem:[%s2396_s2 + $0xb4] sm:$0xf] %vm880_vm0, %v1440_v14 }
 0x127   :  { %v1419_v34 = vpack.c.bf16 %v465_v30, %v465_v30  ;;  %v993_v36 = vsel %vm945_vm1, %v465_v30, 0.0  ;;  %v1542_v38 = vpop.f32.mrb[26].mxu0  ;;  %v2060_v40 = vpop.f32.mrb[26].mxu1  ;;  %v1105_v43 = vmul.f32 %v465_v30, %v465_v30  ;;  %v997_v4 = vsel %vm945_vm1, %v1541_v23, 0.0 }
 0x128   :  { %907 = vst.msk [vmem:[%s2396_s2 + $0x68] sm:$0xf] %vm880_vm0, %v1421_v29  ;;  %v1422_v47 = vpack.c.bf16 %v1542_v38, %v1542_v38  ;;  %v468_v48 = vpop.f32.mrb[27].mxu0  ;;  %v2067_v50 = vpop.f32.mrb[27].mxu1  ;;  %v994_v51 = vadd.f32 %v993_v36, %v992_v35  ;;  %v1191_v52 = vadd.f32 %v1190_v42, %v1189_v32  ;;  %v1108_v5 = vmul.f32 %v1542_v38, %v1542_v38 }
 0x129   :  { %905 = vst.msk [vmem:[%s2396_s2 + $0x60] sm:$0xf] %vm880_vm0, %v1419_v34  ;;  %v1420_v56 = vpack.c.bf16 %v468_v48, %v468_v48  ;;  %v1192_v60 = vsel %vm945_vm1, %v1105_v43, 0.0  ;;  %v995_v61 = vsel %vm945_vm1, %v468_v48, 0.0  ;;  %v1106_v63 = vmul.f32 %v468_v48, %v468_v48 }
 0x12a   :  { %908 = vst.msk [vmem:[%s2396_s2 + $0x6c] sm:$0xf] %vm880_vm0, %v1422_v47  ;;  %v1193_v1 = vadd.f32 %v1192_v60, %v1191_v52  ;;  %v996_v2 = vadd.f32 %v995_v61, %v994_v51  ;;  %v1196_v17 = vsel %vm945_vm1, %v1107_v57, 0.0  ;;  %v999_v19 = vsel %vm945_vm1, %v1542_v38, 0.0 }
 0x12b   :  { %906 = vst.msk [vmem:[%s2396_s2 + $0x64] sm:$0xf] %vm880_vm0, %v1420_v56  ;;  %v1194_v8 = vsel %vm945_vm1, %v1106_v63, 0.0  ;;  %v1198_v35 = vsel %vm945_vm1, %v1108_v5, 0.0  ;;  %v1113_v5 = vmul.f32 %v1784_v45, %v1784_v45 }
 0x12c   :  { %v998_v9 = vadd.f32 %v997_v4, %v996_v2  ;;  %v1195_v10 = vadd.f32 %v1194_v8, %v1193_v1  ;;  %v1445_v1 = vpack.c.bf16 %v1961_v58, %v1961_v58 }
 0x12d   :  { %v1545_v11 = vpop.f32.mrb[28].mxu0  ;;  %v2093_v16 = vpop.f32.mrb[28].mxu1 }
 0x12e   :  { %v1425_v20 = vpack.c.bf16 %v1545_v11, %v1545_v11  ;;  %v481_v23 = vpop.f32.mrb[29].mxu0  ;;  %v2097_v24 = vpop.f32.mrb[29].mxu1  ;;  %v1197_v26 = vadd.f32 %v1196_v17, %v1195_v10  ;;  %v1000_v29 = vadd.f32 %v999_v19, %v998_v9  ;;  %v1111_v52 = vmul.f32 %v1545_v11, %v1545_v11  ;;  %931 = vst.msk [vmem:[%s2396_s2 + $0xc8] sm:$0xf] %vm880_vm0, %v1445_v1 }
 0x12f   :  { %v1423_v27 = vpack.c.bf16 %v481_v23, %v481_v23  ;;  %v1001_v30 = vsel %vm945_vm1, %v481_v23, 0.0  ;;  %v1546_v32 = vpop.f32.mrb[30].mxu0  ;;  %v2104_v34 = vpop.f32.mrb[30].mxu1  ;;  %v1109_v36 = vmul.f32 %v481_v23, %v481_v23  ;;  %v1005_v2 = vsel %vm945_vm1, %v1545_v11, 0.0 }
 0x130   :  { %911 = vst.msk [vmem:[%s2396_s2 + $0x78] sm:$0xf] %vm880_vm0, %v1425_v20  ;;  %v1426_v38 = vpack.c.bf16 %v1546_v32, %v1546_v32  ;;  %v484_v42 = vpop.f32.mrb[31].mxu0  ;;  %v2111_v43 = vpop.f32.mrb[31].mxu1  ;;  %v1002_v47 = vadd.f32 %v1001_v30, %v1000_v29  ;;  %v1199_v48 = vadd.f32 %v1198_v35, %v1197_v26  ;;  %v1112_v3 = vmul.f32 %v1546_v32, %v1546_v32 }
 0x131   :  { %909 = vst.msk [vmem:[%s2396_s2 + $0x70] sm:$0xf] %vm880_vm0, %v1423_v27  ;;  %v1424_v51 = vpack.c.bf16 %v484_v42, %v484_v42  ;;  %v1200_v56 = vsel %vm945_vm1, %v1109_v36, 0.0  ;;  %v1003_v57 = vsel %vm945_vm1, %v484_v42, 0.0  ;;  %v1110_v60 = vmul.f32 %v484_v42, %v484_v42 }
 0x132   :  { %912 = vst.msk [vmem:[%s2396_s2 + $0x7c] sm:$0xf] %vm880_vm0, %v1426_v38  ;;  %v1201_v61 = vadd.f32 %v1200_v56, %v1199_v48  ;;  %v1004_v63 = vadd.f32 %v1003_v57, %v1002_v47  ;;  %v1443_v10 = vpack.c.bf16 %v1965_v0, %v1965_v0  ;;  %v1204_v14 = vsel %vm945_vm1, %v1111_v52, 0.0 }
 0x133   :  { %910 = vst.msk [vmem:[%s2396_s2 + $0x74] sm:$0xf] %vm880_vm0, %v1424_v51  ;;  %v1202_v4 = vsel %vm945_vm1, %v1110_v60, 0.0  ;;  %v1007_v11 = vsel %vm945_vm1, %v1546_v32, 0.0  ;;  %v1009_v17 = vsel %vm945_vm1, %v1784_v45, 0.0  ;;  %v1446_v19 = vpack.c.bf16 %v1972_v7, %v1972_v7 }
 0x134   :  { %v1006_v8 = vadd.f32 %v1005_v2, %v1004_v63  ;;  %v1203_v9 = vadd.f32 %v1202_v4, %v1201_v61  ;;  %929 = vst.msk [vmem:[%s2396_s2 + $0xc0] sm:$0xf] %vm880_vm0, %v1443_v10  ;;  %v1444_v26 = vpack.c.bf16 %v1979_v13, %v1979_v13  ;;  %v1206_v27 = vsel %vm945_vm1, %v1112_v3, 0.0 }
 0x135   :  { %v1208_v29 = vsel %vm945_vm1, %v1113_v5, 0.0  ;;  %v1114_v45 = vmul.f32 %v1796_v53, %v1796_v53  ;;  %932 = vst.msk [vmem:[%s2396_s2 + $0xcc] sm:$0xf] %vm880_vm0, %v1446_v19  ;;  %v1449_v30 = vpack.c.bf16 %v2005_v37, %v2005_v37  ;;  %v1115_v36 = vmul.f32 %v1780_v41, %v1780_v41 }
 0x136   :  { %v1205_v20 = vadd.f32 %v1204_v14, %v1203_v9  ;;  %v1008_v23 = vadd.f32 %v1007_v11, %v1006_v8  ;;  %930 = vst.msk [vmem:[%s2396_s2 + $0xc4] sm:$0xf] %vm880_vm0, %v1444_v26  ;;  %v1011_v38 = vsel %vm945_vm1, %v1796_v53, 0.0  ;;  %v1447_v42 = vpack.c.bf16 %v2009_v44, %v2009_v44 }
 0x137   :  { %935 = vst.msk [vmem:[%s2396_s2 + $0xd8] sm:$0xf] %vm880_vm0, %v1449_v30  ;;  %v1013_v47 = vsel %vm945_vm1, %v1780_v41, 0.0  ;;  %v1450_v52 = vpack.c.bf16 %v2016_v55, %v2016_v55  ;;  %v1116_v56 = vmul.f32 %v1786_v49, %v1786_v49  ;;  %v1210_v53 = vsel %vm945_vm1, %v1114_v45, 0.0 }
 0x138   :  { %v1010_v32 = vadd.f32 %v1009_v17, %v1008_v23  ;;  %v1207_v35 = vadd.f32 %v1206_v27, %v1205_v20  ;;  %v1117_v57 = vmul.f32 %v1834_v12, %v1834_v12  ;;  %933 = vst.msk [vmem:[%s2396_s2 + $0xd0] sm:$0xf] %vm880_vm0, %v1447_v42  ;;  %v1448_v41 = vpack.c.bf16 %v2023_v62, %v2023_v62 }
 0x139   :  { %936 = vst.msk [vmem:[%s2396_s2 + $0xdc] sm:$0xf] %vm880_vm0, %v1450_v52  ;;  %v1212_v63 = vsel %vm945_vm1, %v1115_v36, 0.0  ;;  %v1015_v1 = vsel %vm945_vm1, %v1786_v49, 0.0  ;;  %v1017_v2 = vsel %vm945_vm1, %v1834_v12, 0.0  ;;  %v1453_v3 = vpack.c.bf16 %v2049_v25, %v2049_v25 }
 0x13a   :  { %v1209_v48 = vadd.f32 %v1208_v29, %v1207_v35  ;;  %v1012_v51 = vadd.f32 %v1011_v38, %v1010_v32  ;;  %934 = vst.msk [vmem:[%s2396_s2 + $0xd4] sm:$0xf] %vm880_vm0, %v1448_v41  ;;  %v1451_v8 = vpack.c.bf16 %v2053_v31, %v2053_v31  ;;  %v1214_v9 = vsel %vm945_vm1, %v1116_v56, 0.0 }
 0x13b   :  { %v1216_v49 = vsel %vm945_vm1, %v1117_v57, 0.0  ;;  %v1118_v12 = vmul.f32 %v1847_v22, %v1847_v22  ;;  %939 = vst.msk [vmem:[%s2396_s2 + $0xe8] sm:$0xf] %vm880_vm0, %v1453_v3  ;;  %v1454_v10 = vpack.c.bf16 %v2060_v40, %v2060_v40  ;;  %v1119_v17 = vmul.f32 %v1830_v6, %v1830_v6 }
 0x13c   :  { %v1014_v60 = vadd.f32 %v1013_v47, %v1012_v51  ;;  %v1211_v61 = vadd.f32 %v1210_v53, %v1209_v48  ;;  %937 = vst.msk [vmem:[%s2396_s2 + $0xe0] sm:$0xf] %vm880_vm0, %v1451_v8  ;;  %v1019_v19 = vsel %vm945_vm1, %v1847_v22, 0.0  ;;  %v1452_v20 = vpack.c.bf16 %v2067_v50, %v2067_v50 }
 0x13d   :  { %940 = vst.msk [vmem:[%s2396_s2 + $0xec] sm:$0xf] %vm880_vm0, %v1454_v10  ;;  %v1021_v23 = vsel %vm945_vm1, %v1830_v6, 0.0  ;;  %v1457_v29 = vpack.c.bf16 %v2093_v16, %v2093_v16  ;;  %v1120_v45 = vmul.f32 %v1841_v18, %v1841_v18  ;;  %v1218_v22 = vsel %vm945_vm1, %v1118_v12, 0.0 }
 0x13e   :  { %v1213_v4 = vadd.f32 %v1212_v63, %v1211_v61  ;;  %v1016_v5 = vadd.f32 %v1015_v1, %v1014_v60  ;;  %v1121_v30 = vmul.f32 %v1881_v46, %v1881_v46  ;;  %938 = vst.msk [vmem:[%s2396_s2 + $0xe4] sm:$0xf] %vm880_vm0, %v1452_v20  ;;  %v1455_v6 = vpack.c.bf16 %v2097_v24, %v2097_v24 }
 0x13f   :  { %943 = vst.msk [vmem:[%s2396_s2 + $0xf8] sm:$0xf] %vm880_vm0, %v1457_v29  ;;  %v1220_v36 = vsel %vm945_vm1, %v1119_v17, 0.0  ;;  %v1023_v38 = vsel %vm945_vm1, %v1841_v18, 0.0  ;;  %v1025_v42 = vsel %vm945_vm1, %v1881_v46, 0.0  ;;  %v1458_v47 = vpack.c.bf16 %v2104_v34, %v2104_v34 }
 0x140   :  { %v1018_v14 = vadd.f32 %v1017_v2, %v1016_v5  ;;  %v1215_v11 = vadd.f32 %v1214_v9, %v1213_v4  ;;  %941 = vst.msk [vmem:[%s2396_s2 + $0xf0] sm:$0xf] %vm880_vm0, %v1455_v6  ;;  %v1456_v52 = vpack.c.bf16 %v2111_v43, %v2111_v43  ;;  %v1222_v56 = vsel %vm945_vm1, %v1120_v45, 0.0 }
 0x141   :  { %v1224_v18 = vsel %vm945_vm1, %v1121_v30, 0.0  ;;  %v1122_v46 = vmul.f32 %v1891_v59, %v1891_v59  ;;  %944 = vst.msk [vmem:[%s2396_s2 + $0xfc] sm:$0xf] %vm880_vm0, %v1458_v47  ;;  %v1123_v41 = vmul.f32 %v1873_v39, %v1873_v39  ;;  %v1027_v60 = vsel %vm945_vm1, %v1891_v59, 0.0 }
 0x142   :  { %v1217_v26 = vadd.f32 %v1216_v49, %v1215_v11  ;;  %v1020_v27 = vadd.f32 %v1019_v19, %v1018_v14  ;;  %942 = vst.msk [vmem:[%s2396_s2 + $0xf4] sm:$0xf] %vm880_vm0, %v1456_v52  ;;  %v1029_v1 = vsel %vm945_vm1, %v1873_v39, 0.0  ;;  %v1124_v2 = vmul.f32 %v1884_v54, %v1884_v54 }
 0x143   :  { %v1226_v3 = vsel %vm945_vm1, %v1122_v46, 0.0  ;;  %v1125_v4 = vmul.f32 %v1921_v21, %v1921_v21  ;;  %v1228_v9 = vsel %vm945_vm1, %v1123_v41, 0.0  ;;  %v1031_v59 = vsel %vm945_vm1, %v1884_v54, 0.0 }
 0x144   :  { %v1022_v32 = vadd.f32 %v1021_v23, %v1020_v27  ;;  %v1219_v35 = vadd.f32 %v1218_v22, %v1217_v26  ;;  %v1033_v49 = vsel %vm945_vm1, %v1921_v21, 0.0  ;;  %v1230_v10 = vsel %vm945_vm1, %v1124_v2, 0.0 }
 0x145   :  { %v1232_v14 = vsel %vm945_vm1, %v1125_v4, 0.0  ;;  %v1126_v11 = vmul.f32 %v1935_v33, %v1935_v33  ;;  %v1127_v20 = vmul.f32 %v1917_v15, %v1917_v15  ;;  %v1035_v54 = vsel %vm945_vm1, %v1935_v33, 0.0 }
 0x146   :  { %v1221_v48 = vadd.f32 %v1220_v36, %v1219_v35  ;;  %v1024_v51 = vadd.f32 %v1023_v38, %v1022_v32  ;;  %v1037_v21 = vsel %vm945_vm1, %v1917_v15, 0.0  ;;  %v1128_v27 = vmul.f32 %v1928_v28, %v1928_v28 }
 0x147   :  { %v1234_v29 = vsel %vm945_vm1, %v1126_v11, 0.0  ;;  %v1129_v45 = vmul.f32 %v1965_v0, %v1965_v0  ;;  %v1236_v6 = vsel %vm945_vm1, %v1127_v20, 0.0  ;;  %v1039_v33 = vsel %vm945_vm1, %v1928_v28, 0.0 }
 0x148   :  { %v1026_v53 = vadd.f32 %v1025_v42, %v1024_v51  ;;  %v1223_v57 = vadd.f32 %v1222_v56, %v1221_v48  ;;  %v1041_v32 = vsel %vm945_vm1, %v1965_v0, 0.0  ;;  %v1238_v36 = vsel %vm945_vm1, %v1128_v27, 0.0 }
 0x149   :  { %v1240_v38 = vsel %vm945_vm1, %v1129_v45, 0.0  ;;  %v1130_v42 = vmul.f32 %v1979_v13, %v1979_v13  ;;  %v1131_v51 = vmul.f32 %v1961_v58, %v1961_v58  ;;  %v1043_v28 = vsel %vm945_vm1, %v1979_v13, 0.0 }
 0x14a   :  { %v1225_v61 = vadd.f32 %v1224_v18, %v1223_v57  ;;  %v1028_v63 = vadd.f32 %v1027_v60, %v1026_v53  ;;  %v1045_v0 = vsel %vm945_vm1, %v1961_v58, 0.0  ;;  %v1132_v18 = vmul.f32 %v1972_v7, %v1972_v7 }
 0x14b   :  { %v1242_v46 = vsel %vm945_vm1, %v1130_v42, 0.0  ;;  %v1133_v53 = vmul.f32 %v2009_v44, %v2009_v44  ;;  %v1244_v60 = vsel %vm945_vm1, %v1131_v51, 0.0  ;;  %v1047_v13 = vsel %vm945_vm1, %v1972_v7, 0.0 }
 0x14c   :  { %v1030_v5 = vadd.f32 %v1029_v1, %v1028_v63  ;;  %v1227_v8 = vadd.f32 %v1226_v3, %v1225_v61  ;;  %v1049_v61 = vsel %vm945_vm1, %v2009_v44, 0.0  ;;  %v1246_v1 = vsel %vm945_vm1, %v1132_v18, 0.0 }
 0x14d   :  { %v1248_v2 = vsel %vm945_vm1, %v1133_v53, 0.0  ;;  %v1134_v3 = vmul.f32 %v2023_v62, %v2023_v62  ;;  %v1051_v7 = vsel %vm945_vm1, %v2023_v62, 0.0  ;;  %v1053_v44 = vsel %vm945_vm1, %v2005_v37, 0.0 }
 0x14e   :  { %v1229_v12 = vadd.f32 %v1228_v9, %v1227_v8  ;;  %v1032_v39 = vadd.f32 %v1031_v59, %v1030_v5  ;;  %v1135_v8 = vmul.f32 %v2005_v37, %v2005_v37  ;;  %v1055_v62 = vsel %vm945_vm1, %v2016_v55, 0.0 }
 0x14f   :  { %v1139_v27 = vmul.f32 %v2049_v25, %v2049_v25 }
 0x150   :  { %v1034_v17 = vadd.f32 %v1033_v49, %v1032_v39  ;;  %v1231_v19 = vadd.f32 %v1230_v10, %v1229_v12  ;;  %v1136_v49 = vmul.f32 %v2016_v55, %v2016_v55  ;;  %v1250_v12 = vsel %vm945_vm1, %v1134_v3, 0.0 }
 0x151   :  { %v1137_v39 = vmul.f32 %v2053_v31, %v2053_v31  ;;  %v1252_v11 = vsel %vm945_vm1, %v1135_v8, 0.0  ;;  %v1059_v55 = vsel %vm945_vm1, %v2067_v50, 0.0 }
 0x152   :  { %v1233_v23 = vadd.f32 %v1232_v14, %v1231_v19  ;;  %v1036_v26 = vadd.f32 %v1035_v54, %v1034_v17  ;;  %v1057_v17 = vsel %vm945_vm1, %v2053_v31, 0.0  ;;  %v1254_v20 = vsel %vm945_vm1, %v1136_v49, 0.0 }
 0x153   :  { %v1256_v54 = vsel %vm945_vm1, %v1137_v39, 0.0  ;;  %v1061_v31 = vsel %vm945_vm1, %v2049_v25, 0.0 }
 0x154   :  { %v1038_v22 = vadd.f32 %v1037_v21, %v1036_v26  ;;  %v1235_v30 = vadd.f32 %v1234_v29, %v1233_v23  ;;  %v1138_v23 = vmul.f32 %v2067_v50, %v2067_v50  ;;  %v1063_v50 = vsel %vm945_vm1, %v2060_v40, 0.0 }
 0x156   :  { %v1237_v35 = vadd.f32 %v1236_v6, %v1235_v30  ;;  %v1040_v15 = vadd.f32 %v1039_v33, %v1038_v22  ;;  %v1140_v22 = vmul.f32 %v2060_v40, %v2060_v40  ;;  %v1258_v30 = vsel %vm945_vm1, %v1138_v23, 0.0 }
 0x157   :  { %v1141_v6 = vmul.f32 %v2097_v24, %v2097_v24  ;;  %v1067_v40 = vsel %vm945_vm1, %v2111_v43, 0.0 }
 0x158   :  { %v1042_v47 = vadd.f32 %v1041_v32, %v1040_v15  ;;  %v1239_v48 = vadd.f32 %v1238_v36, %v1237_v35  ;;  %v1260_v35 = vsel %vm945_vm1, %v1139_v27, 0.0  ;;  %v1065_v15 = vsel %vm945_vm1, %v2097_v24, 0.0 }
 0x159   :  { %v1264_v42 = vsel %vm945_vm1, %v1141_v6, 0.0  ;;  %v1069_v24 = vsel %vm945_vm1, %v2093_v16, 0.0 }
 0x15a   :  { %v1241_v52 = vadd.f32 %v1240_v38, %v1239_v48  ;;  %v1044_v56 = vadd.f32 %v1043_v28, %v1042_v47  ;;  %v1262_v38 = vsel %vm945_vm1, %v1140_v22, 0.0  ;;  %v1142_v47 = vmul.f32 %v2111_v43, %v2111_v43 }
 0x15b   :  { %v1143_v28 = vmul.f32 %v2093_v16, %v2093_v16 }
 0x15c   :  { %v1046_v57 = vadd.f32 %v1045_v0, %v1044_v56  ;;  %v1243_v41 = vadd.f32 %v1242_v46, %v1241_v52  ;;  %v1144_v0 = vmul.f32 %v2104_v34, %v2104_v34  ;;  %v1266_v18 = vsel %vm945_vm1, %v1142_v47, 0.0 }
 0x15e   :  { %v1245_v63 = vadd.f32 %v1244_v60, %v1243_v41  ;;  %v1048_v58 = vadd.f32 %v1047_v13, %v1046_v57  ;;  %v1268_v57 = vsel %vm945_vm1, %v1143_v28, 0.0  ;;  %v1071_v41 = vsel %vm945_vm1, %v2104_v34, 0.0 }
 0x15f   :  { %v1270_v43 = vsel %vm945_vm1, %v1144_v0, 0.0 }
 0x160   :  { %v1050_v4 = vadd.f32 %v1049_v61, %v1048_v58  ;;  %v1247_v5 = vadd.f32 %v1246_v1, %v1245_v63 }
 0x162   :  { %v1249_v9 = vadd.f32 %v1248_v2, %v1247_v5  ;;  %v1052_v59 = vadd.f32 %v1051_v7, %v1050_v4 }
 0x164   :  { %v1054_v10 = vadd.f32 %v1053_v44, %v1052_v59  ;;  %v1251_v14 = vadd.f32 %v1250_v12, %v1249_v9 }
 0x166   :  { %v1253_v19 = vadd.f32 %v1252_v11, %v1251_v14  ;;  %v1056_v37 = vadd.f32 %v1055_v62, %v1054_v10 }
 0x168   :  { %v1058_v26 = vadd.f32 %v1057_v17, %v1056_v37  ;;  %v1255_v21 = vadd.f32 %v1254_v20, %v1253_v19 }
 0x16a   :  { %v1257_v29 = vadd.f32 %v1256_v54, %v1255_v21  ;;  %v1060_v45 = vadd.f32 %v1059_v55, %v1058_v26 }
 0x16c   :  { %v1062_v33 = vadd.f32 %v1061_v31, %v1060_v45  ;;  %v1259_v32 = vadd.f32 %v1258_v30, %v1257_v29 }
 0x16e   :  { %v1261_v36 = vadd.f32 %v1260_v35, %v1259_v32  ;;  %v1064_v25 = vadd.f32 %v1063_v50, %v1062_v33 }
 0x170   :  { %v1066_v48 = vadd.f32 %v1065_v15, %v1064_v25  ;;  %v1263_v51 = vadd.f32 %v1262_v38, %v1261_v36 }
 0x172   :  { %v1265_v52 = vadd.f32 %v1264_v42, %v1263_v51  ;;  %v1068_v56 = vadd.f32 %v1067_v40, %v1066_v48 }
 0x174   :  { %v1070_v46 = vadd.f32 %v1069_v24, %v1068_v56  ;;  %v1267_v53 = vadd.f32 %v1266_v18, %v1265_v52 }
 0x176   :  { %v1072_v60 = vadd.f32 %v1071_v41, %v1070_v46  ;;  %v1269_v13 = vadd.f32 %v1268_v57, %v1267_v53 }
 0x178   :  { %v1073_v61 = vrot.slane %v1072_v60, 4  ;;  %v1271_v63 = vadd.f32 %v1270_v43, %v1269_v13 }
 0x17a   :  { %v1074_v58 = vadd.f32 %v1073_v61, %v1072_v60  ;;  %v1272_v16 = vrot.slane %v1271_v63, 4 }
 0x17c   :  { %v1075_v1 = vrot.slane %v1074_v58, 2  ;;  %v1273_v2 = vadd.f32 %v1272_v16, %v1271_v63 }
 0x17e   :  { %v1076_v3 = vadd.f32 %v1075_v1, %v1074_v58  ;;  %v1274_v4 = vrot.slane %v1273_v2, 2 }
 0x180   :  { %v1077_v5 = vrot.slane %v1076_v3, 1  ;;  %v1275_v8 = vadd.f32 %v1274_v4, %v1273_v2 }
 0x182   :  { %v1078_v7 = vadd.f32 %v1077_v5, %v1076_v3  ;;  %v1276_v9 = vrot.slane %v1275_v8, 1 }
 0x184   :  { %1080 = vst.msk [vmem:[%s2397_s3] sm:$0x1] %vm1079_vm2, %v1078_v7  ;;  %v1277_v34 = vadd.f32 %v1276_v9, %v1275_v8 }
 0x186   :  { %1278 = vst.msk [vmem:[%s2398_s4] sm:$0x1] %vm1079_vm2, %v1277_v34 }

// kernel: netG_forward.12
= control target key start
LH: loop header
LB: loop body
LE: loop exit
PB: predicated region body
PF: predicated region fallthrough
CT: control target
= control target key end

     0   :  { %vm400_vm0 = vcmask 257024   ;;  %vm417_vm1 = vcmask 261120   ;;  %vm455_vm2 = vcmask 253952   ;;  %s965_s1 = inlined_call_operand.vmem [shape: bf16[256,32], index: 1, kind: input, shape index: {}]   ;;  %s966_s0 = inlined_call_operand.vmem [shape: bf16[128,256], index: 0, kind: input, shape index: {}]   ;;  %s967_s2 = inlined_call_operand.vmem [shape: bf16[128,32], index: 2, kind: output, shape index: {0}]   ;;  %s968_s3 = inlined_call_operand.vmem [shape: f32[1,1,32], index: 3, kind: output, shape index: {1}]   ;;  %s969_s4 = inlined_call_operand.vmem [shape: f32[1,1,32], index: 4, kind: output, shape index: {2}]  }
   0x1   :  { %v667_v0 = vld [vmem:[%s965_s1 + $0x40] sm:$0xff]   ;;  %v669_v2 = vld [vmem:[%s965_s1 + $0x48] sm:$0xff]   ;;  %v671_v4 = vld [vmem:[%s965_s1 + $0x50] sm:$0xff]  }
   0x2   :  { %v668_v1 = vld [vmem:[%s965_s1] sm:$0xff]   ;;  %587 = vmatprep.subr.bf16.mxu0 %v667_v0  ;;  %651 = vmatprep.subr.bf16.mxu1 %v667_v0  ;;  %v670_v3 = vld [vmem:[%s965_s1 + $0x8] sm:$0xff]   ;;  %v672_v5 = vld [vmem:[%s965_s1 + $0x10] sm:$0xff]  }
   0x3   :  { %588 = vmatpush3.bf16.msra.mxu0 %v668_v1  ;;  %659 = vmatpush3.bf16.msra.mxu1 %v668_v1  ;;  %v673_v6 = vld [vmem:[%s965_s1 + $0x58] sm:$0xff]   ;;  %v675_v8 = vld [vmem:[%s965_s1 + $0x60] sm:$0xff]   ;;  %v677_v10 = vld [vmem:[%s965_s1 + $0x68] sm:$0xff]  }
   0x4   :  { %589 = vmatprep.subr.bf16.mxu0 %v669_v2  ;;  %652 = vmatprep.subr.bf16.mxu1 %v669_v2  ;;  %v674_v7 = vld [vmem:[%s965_s1 + $0x18] sm:$0xff]   ;;  %v676_v9 = vld [vmem:[%s965_s1 + $0x20] sm:$0xff]   ;;  %v678_v12 = vld [vmem:[%s965_s1 + $0x28] sm:$0xff]  }
   0x5   :  { %v685_v11 = vld [vmem:[%s966_s0 + $0x4] ss:$8 sps:$4 sm:$0xff]   ;;  %v679_v14 = vld [vmem:[%s965_s1 + $0x70] sm:$0xff]   ;;  %v681_v16 = vld [vmem:[%s965_s1 + $0x78] sm:$0xff]  }
   0x6   :  { %v691_v13 = vld [vmem:[%s966_s0 + $0x44] ss:$8 sps:$4 sm:$0xff]   ;;  %271 = vmatprep.mubr.bf16.mxu0 %v685_v11  ;;  %v680_v15 = vld [vmem:[%s965_s1 + $0x30] sm:$0xff]   ;;  %v682_v17 = vld [vmem:[%s965_s1 + $0x38] sm:$0xff]  }
   0x7   :  { %590 = vmatpush3.bf16.msra.mxu0 %v670_v3  ;;  %660 = vmatpush3.bf16.msra.mxu1 %v670_v3  ;;  %v683_v18 = vld [vmem:[%s966_s0] ss:$8 sps:$4 sm:$0xff]   ;;  %v686_v20 = vld [vmem:[%s966_s0 + $0x14] ss:$8 sps:$4 sm:$0xff]   ;;  %v688_v22 = vld [vmem:[%s966_s0 + $0x10] ss:$8 sps:$4 sm:$0xff]  }
   0x8   :  { %591 = vmatprep.subr.bf16.mxu0 %v671_v4  ;;  %653 = vmatprep.subr.bf16.mxu1 %v671_v4  ;;  %v689_v19 = vld [vmem:[%s966_s0 + $0x40] ss:$8 sps:$4 sm:$0xff]   ;;  %v695_v21 = vld [vmem:[%s966_s0 + $0x54] ss:$8 sps:$4 sm:$0xff]   ;;  %v697_v23 = vld [vmem:[%s966_s0 + $0x50] ss:$8 sps:$4 sm:$0xff]  }
   0x9   :  { %303 = vmatprep.mubr.bf16.mxu1 %v691_v13  ;;  %v692_v24 = vld [vmem:[%s966_s0 + $0x24] ss:$8 sps:$4 sm:$0xff]   ;;  %v694_v26 = vld [vmem:[%s966_s0 + $0x20] ss:$8 sps:$4 sm:$0xff]   ;;  %v698_v28 = vld [vmem:[%s966_s0 + $0x34] ss:$8 sps:$4 sm:$0xff]  }
   0xa   :  { %v701_v25 = vld [vmem:[%s966_s0 + $0x64] ss:$8 sps:$4 sm:$0xff]   ;;  %v703_v27 = vld [vmem:[%s966_s0 + $0x60] ss:$8 sps:$4 sm:$0xff]   ;;  %v704_v29 = vld [vmem:[%s966_s0 + $0x74] ss:$8 sps:$4 sm:$0xff]  }
   0xb   :  { %592 = vmatpush3.bf16.msra.mxu0 %v672_v5  ;;  %661 = vmatpush3.bf16.msra.mxu1 %v672_v5  ;;  %v700_v30 = vld [vmem:[%s966_s0 + $0x30] ss:$8 sps:$4 sm:$0xff]  }
   0xc   :  { %593 = vmatprep.subr.bf16.mxu0 %v673_v6  ;;  %654 = vmatprep.subr.bf16.mxu1 %v673_v6  ;;  %v706_v31 = vld [vmem:[%s966_s0 + $0x70] ss:$8 sps:$4 sm:$0xff]  }
   0xf   :  { %594 = vmatpush3.bf16.msra.mxu0 %v674_v7  ;;  %662 = vmatpush3.bf16.msra.mxu1 %v674_v7 }
  0x10   :  { %595 = vmatprep.subr.bf16.mxu0 %v675_v8  ;;  %655 = vmatprep.subr.bf16.mxu1 %v675_v8 }
  0x13   :  { %596 = vmatpush3.bf16.msra.mxu0 %v676_v9  ;;  %663 = vmatpush3.bf16.msra.mxu1 %v676_v9 }
  0x14   :  { %597 = vmatprep.subr.bf16.mxu0 %v677_v10  ;;  %656 = vmatprep.subr.bf16.mxu1 %v677_v10 }
  0x17   :  { %598 = vmatpush3.bf16.msra.mxu0 %v678_v12  ;;  %664 = vmatpush3.bf16.msra.mxu1 %v678_v12 }
  0x18   :  { %599 = vmatprep.subr.bf16.mxu0 %v679_v14  ;;  %657 = vmatprep.subr.bf16.mxu1 %v679_v14 }
  0x1b   :  { %600 = vmatpush3.bf16.msra.mxu0 %v680_v15  ;;  %665 = vmatpush3.bf16.msra.mxu1 %v680_v15 }
  0x1c   :  { %601 = vmatprep.subr.bf16.mxu0 %v681_v16  ;;  %658 = vmatprep.subr.bf16.mxu1 %v681_v16 }
  0x1f   :  { %602 = vmatpush3.bf16.msra.mxu0 %v682_v17  ;;  %666 = vmatpush3.bf16.msra.mxu1 %v682_v17 }
  0x22   :  { %272 = vmatmul.mubr.bf16.vlgmr.msra.gmra.mrb[0].mxu0 %v683_v18  ;;  %304 = vmatmul.mubr.bf16.vlgmr.msra.gmra.mrb[0].mxu1 %v689_v19 }
  0x23   :  { %279 = vmatprep.mubr.bf16.mxu0 %v686_v20  ;;  %311 = vmatprep.mubr.bf16.mxu1 %v695_v21 }
  0x2a   :  { %280 = vmatmul.mubr.bf16.gmra.mrb[4].mxu0 %v688_v22  ;;  %312 = vmatmul.mubr.bf16.gmra.mrb[4].mxu1 %v697_v23 }
  0x2b   :  { %287 = vmatprep.mubr.bf16.mxu0 %v692_v24  ;;  %319 = vmatprep.mubr.bf16.mxu1 %v701_v25 }
  0x32   :  { %288 = vmatmul.mubr.bf16.gmra.mrb[8].mxu0 %v694_v26  ;;  %320 = vmatmul.mubr.bf16.gmra.mrb[8].mxu1 %v703_v27 }
  0x33   :  { %295 = vmatprep.mubr.bf16.mxu0 %v698_v28  ;;  %327 = vmatprep.mubr.bf16.mxu1 %v704_v29 }
  0x3a   :  { %296 = vmatmul.mubr.bf16.gmra.mrb[12].mxu0 %v700_v30  ;;  %328 = vmatmul.mubr.bf16.gmra.mrb[12].mxu1 %v706_v31 }
  0xf5   :  { %v603_v32 = vpop.f32.mrb[0].mxu0  ;;  %v627_v33 = vpop.f32.mrb[0].mxu1 }
  0xf6   :  { %v604_v34 = vpop.f32.mrb[1].mxu0  ;;  %v628_v35 = vpop.f32.mrb[1].mxu1 }
  0xf7   :  { %v605_v36 = vadd.f32 %v604_v34, %v603_v32  ;;  %v606_v37 = vpop.f32.mrb[2].mxu0  ;;  %v828_v38 = vadd.f32 %v628_v35, %v627_v33  ;;  %v630_v39 = vpop.f32.mrb[2].mxu1 }
  0xf8   :  { %v607_v40 = vpop.f32.mrb[3].mxu0  ;;  %v631_v41 = vpop.f32.mrb[3].mxu1 }
  0xf9   :  { %v571_v42 = vpack.c.bf16 %v605_v36, %v605_v36  ;;  %v457_v43 = vmul.f32 %v605_v36, %v605_v36  ;;  %v608_v44 = vadd.f32 %v607_v40, %v606_v37  ;;  %v579_v45 = vpack.c.bf16 %v828_v38, %v828_v38 }
  0xfa   :  { %v832_v46 = vadd.f32 %v631_v41, %v630_v39  ;;  %v418_v47 = vsel %vm417_vm1, %v605_v36, 0.0 }
  0xfb   :  { %401 = vst.msk [vmem:[%s967_s2] sm:$0xf] %vm400_vm0, %v571_v42  ;;  %v572_v48 = vpack.c.bf16 %v608_v44, %v608_v44  ;;  %v419_v49 = vsel %vm417_vm1, %v608_v44, 0.0  ;;  %v458_v50 = vmul.f32 %v608_v44, %v608_v44  ;;  %409 = vst.msk [vmem:[%s967_s2 + $0x20] sm:$0xf] %vm400_vm0, %v579_v45  ;;  %v473_v53 = vsel %vm417_vm1, %v457_v43, 0.0 }
  0xfc   :  { %v420_v51 = vadd.f32 %v419_v49, %v418_v47  ;;  %v580_v52 = vpack.c.bf16 %v832_v46, %v832_v46 }
  0xfd   :  { %402 = vst.msk [vmem:[%s967_s2 + $0x4] sm:$0xf] %vm400_vm0, %v572_v48  ;;  %v474_v54 = vsel %vm417_vm1, %v458_v50, 0.0  ;;  %v609_v55 = vpop.f32.mrb[4].mxu0  ;;  %v633_v56 = vpop.f32.mrb[4].mxu1 }
  0xfe   :  { %v475_v57 = vadd.f32 %v474_v54, %v473_v53  ;;  %v610_v58 = vpop.f32.mrb[5].mxu0  ;;  %410 = vst.msk [vmem:[%s967_s2 + $0x24] sm:$0xf] %vm400_vm0, %v580_v52  ;;  %v634_v59 = vpop.f32.mrb[5].mxu1 }
  0xff   :  { %v611_v60 = vadd.f32 %v610_v58, %v609_v55  ;;  %v612_v61 = vpop.f32.mrb[6].mxu0  ;;  %v856_v62 = vadd.f32 %v634_v59, %v633_v56  ;;  %v636_v63 = vpop.f32.mrb[6].mxu1 }
 0x100   :  { %v613_v0 = vpop.f32.mrb[7].mxu0  ;;  %v637_v1 = vpop.f32.mrb[7].mxu1 }
 0x101   :  { %v573_v2 = vpack.c.bf16 %v611_v60, %v611_v60  ;;  %v421_v3 = vsel %vm417_vm1, %v611_v60, 0.0  ;;  %v459_v4 = vmul.f32 %v611_v60, %v611_v60  ;;  %v614_v5 = vadd.f32 %v613_v0, %v612_v61 }
 0x102   :  { %v422_v6 = vadd.f32 %v421_v3, %v420_v51  ;;  %v581_v7 = vpack.c.bf16 %v856_v62, %v856_v62  ;;  %v871_v14 = vadd.f32 %v637_v1, %v636_v63  ;;  %v465_v60 = vmul.f32 %v828_v38, %v828_v38 }
 0x103   :  { %403 = vst.msk [vmem:[%s967_s2 + $0x8] sm:$0xf] %vm400_vm0, %v573_v2  ;;  %v476_v8 = vsel %vm417_vm1, %v459_v4, 0.0  ;;  %v574_v9 = vpack.c.bf16 %v614_v5, %v614_v5  ;;  %v423_v10 = vsel %vm417_vm1, %v614_v5, 0.0  ;;  %v460_v11 = vmul.f32 %v614_v5, %v614_v5 }
 0x104   :  { %v477_v12 = vadd.f32 %v476_v8, %v475_v57  ;;  %v424_v13 = vadd.f32 %v423_v10, %v422_v6  ;;  %411 = vst.msk [vmem:[%s967_s2 + $0x28] sm:$0xf] %vm400_vm0, %v581_v7  ;;  %v582_v20 = vpack.c.bf16 %v871_v14, %v871_v14  ;;  %v433_v7 = vsel %vm417_vm1, %v828_v38, 0.0 }
 0x105   :  { %404 = vst.msk [vmem:[%s967_s2 + $0xc] sm:$0xf] %vm400_vm0, %v574_v9  ;;  %v478_v15 = vsel %vm417_vm1, %v460_v11, 0.0  ;;  %v615_v16 = vpop.f32.mrb[8].mxu0  ;;  %v639_v17 = vpop.f32.mrb[8].mxu1  ;;  %v466_v8 = vmul.f32 %v832_v46, %v832_v46  ;;  %v467_v38 = vmul.f32 %v856_v62, %v856_v62 }
 0x106   :  { %v479_v18 = vadd.f32 %v478_v15, %v477_v12  ;;  %v616_v19 = vpop.f32.mrb[9].mxu0  ;;  %v640_v21 = vpop.f32.mrb[9].mxu1  ;;  %412 = vst.msk [vmem:[%s967_s2 + $0x2c] sm:$0xf] %vm400_vm0, %v582_v20  ;;  %v435_v15 = vsel %vm417_vm1, %v832_v46, 0.0  ;;  %v468_v20 = vmul.f32 %v871_v14, %v871_v14 }
 0x107   :  { %v617_v22 = vadd.f32 %v616_v19, %v615_v16  ;;  %v618_v23 = vpop.f32.mrb[10].mxu0  ;;  %v880_v24 = vadd.f32 %v640_v21, %v639_v17  ;;  %v642_v25 = vpop.f32.mrb[10].mxu1  ;;  %v437_v19 = vsel %vm417_vm1, %v856_v62, 0.0 }
 0x108   :  { %v619_v26 = vpop.f32.mrb[11].mxu0  ;;  %v643_v27 = vpop.f32.mrb[11].mxu1 }
 0x109   :  { %v575_v28 = vpack.c.bf16 %v617_v22, %v617_v22  ;;  %v425_v29 = vsel %vm417_vm1, %v617_v22, 0.0  ;;  %v461_v30 = vmul.f32 %v617_v22, %v617_v22  ;;  %v620_v31 = vadd.f32 %v619_v26, %v618_v23 }
 0x10a   :  { %v426_v32 = vadd.f32 %v425_v29, %v424_v13  ;;  %v583_v33 = vpack.c.bf16 %v880_v24, %v880_v24  ;;  %v644_v41 = vadd.f32 %v643_v27, %v642_v25  ;;  %v488_v13 = vsel %vm417_vm1, %v465_v60, 0.0 }
 0x10b   :  { %405 = vst.msk [vmem:[%s967_s2 + $0x10] sm:$0xf] %vm400_vm0, %v575_v28  ;;  %v480_v34 = vsel %vm417_vm1, %v461_v30, 0.0  ;;  %v576_v35 = vpack.c.bf16 %v620_v31, %v620_v31  ;;  %v427_v36 = vsel %vm417_vm1, %v620_v31, 0.0  ;;  %v462_v37 = vmul.f32 %v620_v31, %v620_v31 }
 0x10c   :  { %v481_v39 = vadd.f32 %v480_v34, %v479_v18  ;;  %v428_v40 = vadd.f32 %v427_v36, %v426_v32  ;;  %413 = vst.msk [vmem:[%s967_s2 + $0x30] sm:$0xf] %vm400_vm0, %v583_v33  ;;  %v584_v48 = vpack.c.bf16 %v644_v41, %v644_v41  ;;  %v490_v18 = vsel %vm417_vm1, %v466_v8, 0.0 }
 0x10d   :  { %406 = vst.msk [vmem:[%s967_s2 + $0x14] sm:$0xf] %vm400_vm0, %v576_v35  ;;  %v482_v42 = vsel %vm417_vm1, %v462_v37, 0.0  ;;  %v621_v43 = vpop.f32.mrb[12].mxu0  ;;  %v645_v44 = vpop.f32.mrb[12].mxu1  ;;  %v492_v22 = vsel %vm417_vm1, %v467_v38, 0.0  ;;  %v469_v25 = vmul.f32 %v880_v24, %v880_v24  ;;  %v470_v29 = vmul.f32 %v644_v41, %v644_v41 }
 0x10e   :  { %v483_v45 = vadd.f32 %v482_v42, %v481_v39  ;;  %v622_v47 = vpop.f32.mrb[13].mxu0  ;;  %v646_v49 = vpop.f32.mrb[13].mxu1  ;;  %414 = vst.msk [vmem:[%s967_s2 + $0x34] sm:$0xf] %vm400_vm0, %v584_v48  ;;  %v439_v23 = vsel %vm417_vm1, %v871_v14, 0.0  ;;  %v494_v28 = vsel %vm417_vm1, %v468_v20, 0.0 }
 0x10f   :  { %v623_v50 = vadd.f32 %v622_v47, %v621_v43  ;;  %v624_v51 = vpop.f32.mrb[14].mxu0  ;;  %v647_v52 = vadd.f32 %v646_v49, %v645_v44  ;;  %v648_v53 = vpop.f32.mrb[14].mxu1  ;;  %v441_v62 = vsel %vm417_vm1, %v880_v24, 0.0  ;;  %v496_v33 = vsel %vm417_vm1, %v469_v25, 0.0 }
 0x110   :  { %v625_v54 = vpop.f32.mrb[15].mxu0  ;;  %v649_v55 = vpop.f32.mrb[15].mxu1  ;;  %v443_v34 = vsel %vm417_vm1, %v644_v41, 0.0  ;;  %v498_v37 = vsel %vm417_vm1, %v470_v29, 0.0 }
 0x111   :  { %v577_v56 = vpack.c.bf16 %v623_v50, %v623_v50  ;;  %v429_v57 = vsel %vm417_vm1, %v623_v50, 0.0  ;;  %v463_v58 = vmul.f32 %v623_v50, %v623_v50  ;;  %v626_v59 = vadd.f32 %v625_v54, %v624_v51 }
 0x112   :  { %v430_v61 = vadd.f32 %v429_v57, %v428_v40  ;;  %v585_v63 = vpack.c.bf16 %v647_v52, %v647_v52  ;;  %v650_v6 = vadd.f32 %v649_v55, %v648_v53  ;;  %v471_v30 = vmul.f32 %v647_v52, %v647_v52 }
 0x113   :  { %407 = vst.msk [vmem:[%s967_s2 + $0x18] sm:$0xf] %vm400_vm0, %v577_v56  ;;  %v484_v0 = vsel %vm417_vm1, %v463_v58, 0.0  ;;  %v578_v1 = vpack.c.bf16 %v626_v59, %v626_v59  ;;  %v431_v2 = vsel %vm417_vm1, %v626_v59, 0.0  ;;  %v464_v3 = vmul.f32 %v626_v59, %v626_v59 }
 0x114   :  { %v485_v4 = vadd.f32 %v484_v0, %v483_v45  ;;  %v432_v5 = vadd.f32 %v431_v2, %v430_v61  ;;  %415 = vst.msk [vmem:[%s967_s2 + $0x38] sm:$0xf] %vm400_vm0, %v585_v63  ;;  %v586_v12 = vpack.c.bf16 %v650_v6, %v650_v6  ;;  %v445_v14 = vsel %vm417_vm1, %v647_v52, 0.0 }
 0x115   :  { %408 = vst.msk [vmem:[%s967_s2 + $0x1c] sm:$0xf] %vm400_vm0, %v578_v1  ;;  %v486_v9 = vsel %vm417_vm1, %v464_v3, 0.0  ;;  %v500_v39 = vsel %vm417_vm1, %v471_v30, 0.0  ;;  %v472_v40 = vmul.f32 %v650_v6, %v650_v6  ;;  %v447_v24 = vsel %vm417_vm1, %v650_v6, 0.0 }
 0x116   :  { %v434_v10 = vadd.f32 %v433_v7, %v432_v5  ;;  %v487_v11 = vadd.f32 %v486_v9, %v485_v4  ;;  %416 = vst.msk [vmem:[%s967_s2 + $0x3c] sm:$0xf] %vm400_vm0, %v586_v12 }
 0x117   :  { %v502_v47 = vsel %vm417_vm1, %v472_v40, 0.0 }
 0x118   :  { %v436_v16 = vadd.f32 %v435_v15, %v434_v10  ;;  %v489_v17 = vadd.f32 %v488_v13, %v487_v11 }
 0x11a   :  { %v491_v21 = vadd.f32 %v490_v18, %v489_v17  ;;  %v438_v46 = vadd.f32 %v437_v19, %v436_v16 }
 0x11c   :  { %v440_v26 = vadd.f32 %v439_v23, %v438_v46  ;;  %v493_v27 = vadd.f32 %v492_v22, %v491_v21 }
 0x11e   :  { %v442_v31 = vadd.f32 %v441_v62, %v440_v26  ;;  %v495_v32 = vadd.f32 %v494_v28, %v493_v27 }
 0x120   :  { %v497_v35 = vadd.f32 %v496_v33, %v495_v32  ;;  %v444_v36 = vadd.f32 %v443_v34, %v442_v31 }
 0x122   :  { %v499_v42 = vadd.f32 %v498_v37, %v497_v35  ;;  %v446_v43 = vadd.f32 %v445_v14, %v444_v36 }
 0x124   :  { %v501_v44 = vadd.f32 %v500_v39, %v499_v42  ;;  %v448_v45 = vadd.f32 %v447_v24, %v446_v43 }
 0x126   :  { %v449_v48 = vrot.slane %v448_v45, 4  ;;  %v503_v49 = vadd.f32 %v502_v47, %v501_v44 }
 0x128   :  { %v450_v41 = vadd.f32 %v449_v48, %v448_v45  ;;  %v504_v50 = vrot.slane %v503_v49, 4 }
 0x12a   :  { %v451_v51 = vrot.slane %v450_v41, 2  ;;  %v505_v52 = vadd.f32 %v504_v50, %v503_v49 }
 0x12c   :  { %v452_v53 = vadd.f32 %v451_v51, %v450_v41  ;;  %v506_v54 = vrot.slane %v505_v52, 2 }
 0x12e   :  { %v453_v55 = vrot.slane %v452_v53, 1  ;;  %v507_v56 = vadd.f32 %v506_v54, %v505_v52 }
 0x130   :  { %v454_v57 = vadd.f32 %v453_v55, %v452_v53  ;;  %v508_v58 = vrot.slane %v507_v56, 1 }
 0x132   :  { %456 = vst.msk [vmem:[%s968_s3] sm:$0x1] %vm455_vm2, %v454_v57  ;;  %v509_v59 = vadd.f32 %v508_v58, %v507_v56 }
 0x134   :  { %510 = vst.msk [vmem:[%s969_s4] sm:$0x1] %vm455_vm2, %v509_v59 }

// kernel: tile.53
= control target key start
LH: loop header
LB: loop body
LE: loop exit
PB: predicated region body
PF: predicated region fallthrough
CT: control target
= control target key end

     0   :  { %s28_s0 = inlined_call_operand.vmem [shape: f32[64], index: 0, kind: input, shape index: {}]   ;;  %s29_s1 = inlined_call_operand.vmem [shape: f32[16,64], index: 1, kind: output, shape index: {}]  }
   0x1   :  { %v4_v0 = vld [vmem:[%s28_s0] ss:$0 sm:$0xff] }
   0x2   :  { %5 = vst [vmem:[%s29_s1] sm:$0xff] %v4_v0  ;;  %8 = vst [vmem:[%s29_s1 + $0x8] sm:$0xff] %v4_v0 }

// kernel: tile.58
= control target key start
LH: loop header
LB: loop body
LE: loop exit
PB: predicated region body
PF: predicated region fallthrough
CT: control target
= control target key end

     0   :  { %vm3_vm0 = vcmask 523264   ;;  %vm10_vm1 = vcmask 1048064   ;;  %s116_s0 = inlined_call_operand.vmem [shape: f32[16,64], index: 0, kind: input, shape index: {}]   ;;  %s117_s1 = inlined_call_operand.vmem [shape: f32[1,1024], index: 1, kind: output, shape index: {}]  }
   0x1   :  { %v66_v0 = vld [vmem:[%s116_s0 + $0x1] ss:$2 sm:$0xff]   ;;  %v2_v1 = vld [vmem:[%s116_s0] ss:$2 sm:$0xff]   ;;  %s75_s0 = smov 64  }
   0x2   :  { %8 = vrot.lane.b32.xlu0 %v66_v0, %s75_s0  ;;  %4 = vst.msk [vmem:[#allocation0] ss:$8 sm:$0xf] %vm3_vm0, %v2_v1   ;;  %5 = vst.msk [vmem:[#allocation0] ss:$8 sm:$0xf0] %vm3_vm0, %v2_v1  }
  0x74   :  { %v9_v2 = vpop.permute.xlu0 %8  }
  0x75   :  { %11 = vst.msk [vmem:[#allocation0] ss:$8 sm:$0xf] %vm10_vm1, %v9_v2   ;;  %12 = vst.msk [vmem:[#allocation0] ss:$8 sm:$0xf0] %vm10_vm1, %v9_v2  }
  0x7c   :  { %v16_v3 = vld [vmem:[#allocation0] sm:$0x1]  ;;  %v20_v4 = vld [vmem:[#allocation0 + $0x8] sm:$0x1]  ;;  %v25_v5 = vld [vmem:[#allocation0 + $0x10] sm:$0x1] }
  0x7d   :  { %18 = vst [vmem:[%s117_s1] sm:$0x1] %v16_v3  ;;  %67 = vst [vmem:[%s117_s1 + $0x1] sm:$0x1] %v20_v4  ;;  %v31_v6 = vld [vmem:[#allocation0 + $0x18] sm:$0x1] }
  0x7e   :  { %68 = vst [vmem:[%s117_s1 + $0x2] sm:$0x1] %v25_v5  ;;  %v37_v7 = vld [vmem:[#allocation0 + $0x20] sm:$0x1]  ;;  %v43_v8 = vld [vmem:[#allocation0 + $0x28] sm:$0x1] }
  0x7f   :  { %69 = vst [vmem:[%s117_s1 + $0x3] sm:$0x1] %v31_v6  ;;  %70 = vst [vmem:[%s117_s1 + $0x4] sm:$0x1] %v37_v7  ;;  %v49_v9 = vld [vmem:[#allocation0 + $0x30] sm:$0x1] }
  0x80   :  { %71 = vst [vmem:[%s117_s1 + $0x5] sm:$0x1] %v43_v8  ;;  %v55_v10 = vld [vmem:[#allocation0 + $0x38] sm:$0x1]  ;;  %72 = vst [vmem:[%s117_s1 + $0x6] sm:$0x1] %v49_v9 }
  0x81   :  { %73 = vst [vmem:[%s117_s1 + $0x7] sm:$0x1] %v55_v10 }

// kernel: netG_forward.13
= control target key start
LH: loop header
LB: loop body
LE: loop exit
PB: predicated region body
PF: predicated region fallthrough
CT: control target
= control target key end

     0   :  { %vm433_vm0 = vcmask 519168   ;;  %vm438_vm1 = vcmask 523264   ;;  %vm452_vm2 = vcmask 516096   ;;  %s807_s1 = inlined_call_operand.vmem [shape: bf16[512,64], index: 1, kind: input, shape index: {}]   ;;  %s808_s0 = inlined_call_operand.vmem [shape: bf16[32,512], index: 0, kind: input, shape index: {}]   ;;  %s809_s2 = inlined_call_operand.vmem [shape: bf16[32,64], index: 2, kind: output, shape index: {0}]   ;;  %s810_s3 = inlined_call_operand.vmem [shape: f32[1,1,64], index: 3, kind: output, shape index: {1}]   ;;  %s811_s4 = inlined_call_operand.vmem [shape: f32[1,1,64], index: 4, kind: output, shape index: {2}]  }
   0x1   :  { %v588_v0 = vld [vmem:[%s807_s1 + $0x40] sm:$0xff]   ;;  %v592_v4 = vld [vmem:[%s807_s1 + $0x48] sm:$0xff]   ;;  %v596_v8 = vld [vmem:[%s807_s1 + $0x50] sm:$0xff]  }
   0x2   :  { %v589_v1 = vld [vmem:[%s807_s1 + $0xc0] sm:$0xff]   ;;  %532 = vmatprep.subr.bf16.mxu0 %v588_v0  ;;  %v593_v5 = vld [vmem:[%s807_s1 + $0xc8] sm:$0xff]   ;;  %v597_v9 = vld [vmem:[%s807_s1 + $0xd0] sm:$0xff]  }
   0x3   :  { %v590_v2 = vld [vmem:[%s807_s1] sm:$0xff]   ;;  %560 = vmatprep.subr.bf16.mxu1 %v589_v1  ;;  %v594_v6 = vld [vmem:[%s807_s1 + $0x8] sm:$0xff]   ;;  %v598_v10 = vld [vmem:[%s807_s1 + $0x10] sm:$0xff]  }
   0x4   :  { %v591_v3 = vld [vmem:[%s807_s1 + $0x80] sm:$0xff]   ;;  %533 = vmatpush3.bf16.msra.mxu0 %v590_v2  ;;  %v595_v7 = vld [vmem:[%s807_s1 + $0x88] sm:$0xff]   ;;  %v599_v11 = vld [vmem:[%s807_s1 + $0x90] sm:$0xff]  }
   0x5   :  { %561 = vmatpush3.bf16.msra.mxu1 %v591_v3  ;;  %534 = vmatprep.subr.bf16.mxu0 %v592_v4  ;;  %v600_v12 = vld [vmem:[%s807_s1 + $0x58] sm:$0xff]   ;;  %v604_v16 = vld [vmem:[%s807_s1 + $0x60] sm:$0xff]   ;;  %v608_v20 = vld [vmem:[%s807_s1 + $0x68] sm:$0xff]  }
   0x6   :  { %562 = vmatprep.subr.bf16.mxu1 %v593_v5  ;;  %v601_v13 = vld [vmem:[%s807_s1 + $0xd8] sm:$0xff]   ;;  %v605_v17 = vld [vmem:[%s807_s1 + $0xe0] sm:$0xff]   ;;  %v609_v21 = vld [vmem:[%s807_s1 + $0xe8] sm:$0xff]  }
   0x7   :  { %v602_v14 = vld [vmem:[%s807_s1 + $0x18] sm:$0xff]   ;;  %v606_v18 = vld [vmem:[%s807_s1 + $0x20] sm:$0xff]   ;;  %v610_v22 = vld [vmem:[%s807_s1 + $0x28] sm:$0xff]  }
   0x8   :  { %535 = vmatpush3.bf16.msra.mxu0 %v594_v6  ;;  %v603_v15 = vld [vmem:[%s807_s1 + $0x98] sm:$0xff]   ;;  %v607_v19 = vld [vmem:[%s807_s1 + $0xa0] sm:$0xff]   ;;  %v611_v23 = vld [vmem:[%s807_s1 + $0xa8] sm:$0xff]  }
   0x9   :  { %563 = vmatpush3.bf16.msra.mxu1 %v595_v7  ;;  %536 = vmatprep.subr.bf16.mxu0 %v596_v8  ;;  %v612_v24 = vld [vmem:[%s807_s1 + $0x70] sm:$0xff]   ;;  %v616_v28 = vld [vmem:[%s807_s1 + $0x78] sm:$0xff]  }
   0xa   :  { %564 = vmatprep.subr.bf16.mxu1 %v597_v9  ;;  %v613_v25 = vld [vmem:[%s807_s1 + $0xf0] sm:$0xff]   ;;  %v617_v29 = vld [vmem:[%s807_s1 + $0xf8] sm:$0xff]  }
   0xb   :  { %v614_v26 = vld [vmem:[%s807_s1 + $0x30] sm:$0xff]   ;;  %v618_v30 = vld [vmem:[%s807_s1 + $0x38] sm:$0xff]  }
   0xc   :  { %537 = vmatpush3.bf16.msra.mxu0 %v598_v10  ;;  %v615_v27 = vld [vmem:[%s807_s1 + $0xb0] sm:$0xff]   ;;  %v619_v31 = vld [vmem:[%s807_s1 + $0xb8] sm:$0xff]  }
   0xd   :  { %565 = vmatpush3.bf16.msra.mxu1 %v599_v11  ;;  %538 = vmatprep.subr.bf16.mxu0 %v600_v12  ;;  %v620_v32 = vld [vmem:[%s808_s0] ss:$16 sps:$4 sm:$0xff]   ;;  %v622_v33 = vld [vmem:[%s808_s0 + $0x4] ss:$16 sps:$4 sm:$0xff]   ;;  %v623_v34 = vld [vmem:[%s808_s0 + $0x8] ss:$16 sps:$4 sm:$0xff]  }
   0xe   :  { %566 = vmatprep.subr.bf16.mxu1 %v601_v13  ;;  %v625_v35 = vld [vmem:[%s808_s0 + $0xc] ss:$16 sps:$4 sm:$0xff]   ;;  %351 = vmatprep.mubr.bf16.mxu0 %v622_v33  ;;  %v626_v36 = vld [vmem:[%s808_s0 + $0x24] ss:$16 sps:$4 sm:$0xff]   ;;  %v630_v38 = vld [vmem:[%s808_s0 + $0x20] ss:$16 sps:$4 sm:$0xff]  }
   0xf   :  { %400 = vmatprep.mubr.bf16.mxu1 %v625_v35  ;;  %v628_v37 = vld [vmem:[%s808_s0 + $0x2c] ss:$16 sps:$4 sm:$0xff]   ;;  %v631_v39 = vld [vmem:[%s808_s0 + $0x28] ss:$16 sps:$4 sm:$0xff]  }
  0x10   :  { %539 = vmatpush3.bf16.msra.mxu0 %v602_v14 }
  0x11   :  { %567 = vmatpush3.bf16.msra.mxu1 %v603_v15  ;;  %540 = vmatprep.subr.bf16.mxu0 %v604_v16 }
  0x12   :  { %568 = vmatprep.subr.bf16.mxu1 %v605_v17 }
  0x14   :  { %541 = vmatpush3.bf16.msra.mxu0 %v606_v18 }
  0x15   :  { %569 = vmatpush3.bf16.msra.mxu1 %v607_v19  ;;  %542 = vmatprep.subr.bf16.mxu0 %v608_v20 }
  0x16   :  { %570 = vmatprep.subr.bf16.mxu1 %v609_v21 }
  0x18   :  { %543 = vmatpush3.bf16.msra.mxu0 %v610_v22 }
  0x19   :  { %571 = vmatpush3.bf16.msra.mxu1 %v611_v23  ;;  %544 = vmatprep.subr.bf16.mxu0 %v612_v24 }
  0x1a   :  { %572 = vmatprep.subr.bf16.mxu1 %v613_v25 }
  0x1c   :  { %545 = vmatpush3.bf16.msra.mxu0 %v614_v26 }
  0x1d   :  { %573 = vmatpush3.bf16.msra.mxu1 %v615_v27  ;;  %546 = vmatprep.subr.bf16.mxu0 %v616_v28 }
  0x1e   :  { %574 = vmatprep.subr.bf16.mxu1 %v617_v29 }
  0x20   :  { %547 = vmatpush3.bf16.msra.mxu0 %v618_v30 }
  0x21   :  { %575 = vmatpush3.bf16.msra.mxu1 %v619_v31 }
  0x23   :  { %352 = vmatmul.mubr.bf16.vlgmr.msra.gmra.mrb[0].mxu0 %v620_v32 }
  0x24   :  { %401 = vmatmul.mubr.bf16.vlgmr.msra.gmra.mrb[0].mxu1 %v623_v34  ;;  %359 = vmatprep.mubr.bf16.mxu0 %v626_v36 }
  0x25   :  { %408 = vmatprep.mubr.bf16.mxu1 %v628_v37 }
  0x2b   :  { %360 = vmatmul.mubr.bf16.gmra.mrb[4].mxu0 %v630_v38 }
  0x2c   :  { %409 = vmatmul.mubr.bf16.gmra.mrb[4].mxu1 %v631_v39 }
  0xf6   :  { %v548_v40 = vpop.f32.mrb[0].mxu0 }
  0xf7   :  { %v576_v41 = vpop.f32.mrb[0].mxu1  ;;  %v549_v42 = vpop.f32.mrb[1].mxu0 }
  0xf8   :  { %v550_v43 = vadd.f32 %v549_v42, %v548_v40  ;;  %v577_v44 = vpop.f32.mrb[1].mxu1  ;;  %v551_v45 = vpop.f32.mrb[2].mxu0 }
  0xf9   :  { %v578_v46 = vadd.f32 %v577_v44, %v576_v41  ;;  %v579_v47 = vpop.f32.mrb[2].mxu1  ;;  %v552_v48 = vpop.f32.mrb[3].mxu0 }
  0xfa   :  { %v553_v49 = vadd.f32 %v552_v48, %v551_v45  ;;  %v580_v50 = vpop.f32.mrb[3].mxu1 }
  0xfb   :  { %v403_v51 = vadd.f32 %v578_v46, %v550_v43  ;;  %v581_v52 = vadd.f32 %v580_v50, %v579_v47 }
  0xfd   :  { %v528_v53 = vpack.c.bf16 %v403_v51, %v403_v51  ;;  %v454_v54 = vmul.f32 %v403_v51, %v403_v51  ;;  %v406_v55 = vadd.f32 %v581_v52, %v553_v49  ;;  %v439_v57 = vsel %vm438_vm1, %v403_v51, 0.0 }
  0xfe   :  { %v554_v56 = vpop.f32.mrb[4].mxu0 }
  0xff   :  { %434 = vst.msk [vmem:[%s809_s2] sm:$0xf] %vm433_vm0, %v528_v53  ;;  %v529_v58 = vpack.c.bf16 %v406_v55, %v406_v55  ;;  %v440_v59 = vsel %vm438_vm1, %v406_v55, 0.0  ;;  %v455_v60 = vmul.f32 %v406_v55, %v406_v55  ;;  %v582_v61 = vpop.f32.mrb[4].mxu1  ;;  %v555_v62 = vpop.f32.mrb[5].mxu0  ;;  %v458_v3 = vsel %vm438_vm1, %v454_v54, 0.0 }
 0x100   :  { %v441_v63 = vadd.f32 %v440_v59, %v439_v57  ;;  %v556_v0 = vadd.f32 %v555_v62, %v554_v56  ;;  %v583_v1 = vpop.f32.mrb[5].mxu1  ;;  %v557_v2 = vpop.f32.mrb[6].mxu0 }
 0x101   :  { %435 = vst.msk [vmem:[%s809_s2 + $0x4] sm:$0xf] %vm433_vm0, %v529_v58  ;;  %v459_v4 = vsel %vm438_vm1, %v455_v60, 0.0  ;;  %v584_v5 = vadd.f32 %v583_v1, %v582_v61  ;;  %v585_v6 = vpop.f32.mrb[6].mxu1  ;;  %v558_v7 = vpop.f32.mrb[7].mxu0 }
 0x102   :  { %v460_v8 = vadd.f32 %v459_v4, %v458_v3  ;;  %v559_v9 = vadd.f32 %v558_v7, %v557_v2  ;;  %v586_v10 = vpop.f32.mrb[7].mxu1 }
 0x103   :  { %v411_v11 = vadd.f32 %v584_v5, %v556_v0  ;;  %v587_v12 = vadd.f32 %v586_v10, %v585_v6 }
 0x105   :  { %v530_v13 = vpack.c.bf16 %v411_v11, %v411_v11  ;;  %v442_v14 = vsel %vm438_vm1, %v411_v11, 0.0  ;;  %v456_v15 = vmul.f32 %v411_v11, %v411_v11  ;;  %v414_v16 = vadd.f32 %v587_v12, %v559_v9 }
 0x106   :  { %v443_v17 = vadd.f32 %v442_v14, %v441_v63 }
 0x107   :  { %436 = vst.msk [vmem:[%s809_s2 + $0x8] sm:$0xf] %vm433_vm0, %v530_v13  ;;  %v461_v18 = vsel %vm438_vm1, %v456_v15, 0.0  ;;  %v531_v19 = vpack.c.bf16 %v414_v16, %v414_v16  ;;  %v444_v20 = vsel %vm438_vm1, %v414_v16, 0.0  ;;  %v457_v21 = vmul.f32 %v414_v16, %v414_v16 }
 0x108   :  { %v462_v22 = vadd.f32 %v461_v18, %v460_v8  ;;  %v445_v23 = vadd.f32 %v444_v20, %v443_v17 }
 0x109   :  { %437 = vst.msk [vmem:[%s809_s2 + $0xc] sm:$0xf] %vm433_vm0, %v531_v19  ;;  %v463_v24 = vsel %vm438_vm1, %v457_v21, 0.0 }
 0x10a   :  { %v446_v25 = vrot.slane %v445_v23, 4  ;;  %v464_v26 = vadd.f32 %v463_v24, %v462_v22 }
 0x10c   :  { %v447_v27 = vadd.f32 %v446_v25, %v445_v23  ;;  %v465_v28 = vrot.slane %v464_v26, 4 }
 0x10e   :  { %v448_v29 = vrot.slane %v447_v27, 2  ;;  %v466_v30 = vadd.f32 %v465_v28, %v464_v26 }
 0x110   :  { %v449_v31 = vadd.f32 %v448_v29, %v447_v27  ;;  %v467_v32 = vrot.slane %v466_v30, 2 }
 0x112   :  { %v450_v33 = vrot.slane %v449_v31, 1  ;;  %v468_v34 = vadd.f32 %v467_v32, %v466_v30 }
 0x114   :  { %v451_v35 = vadd.f32 %v450_v33, %v449_v31  ;;  %v469_v36 = vrot.slane %v468_v34, 1 }
 0x116   :  { %453 = vst.msk [vmem:[%s810_s3] sm:$0x1] %vm452_vm2, %v451_v35  ;;  %v470_v37 = vadd.f32 %v469_v36, %v468_v34 }
 0x118   :  { %471 = vst.msk [vmem:[%s811_s4] sm:$0x1] %vm452_vm2, %v470_v37 }

// kernel: netG_forward.14
= control target key start
LH: loop header
LB: loop body
LE: loop exit
PB: predicated region body
PF: predicated region fallthrough
CT: control target
= control target key end

     0   :  { %v26_v20 = vlaneseq  ;;  %v1148_v28 = vmov 1983009808   ;;  %vm901_vm2 = vcmask 123904   ;;  %vm899_vm3 = vcmask 122880   ;;  %s1422_s1 = inlined_call_operand.vmem [shape: bf16[1024,16], index: 1, kind: input, shape index: {}]   ;;  %s1423_s2 = inlined_call_operand.vmem [shape: f32[1,1024], index: 2, kind: input, shape index: {}]   ;;  %s1424_s3 = inlined_call_operand.vmem [shape: f32[1,1024], index: 3, kind: input, shape index: {}]   ;;  %s1425_s0 = inlined_call_operand.vmem [shape: bf16[2,1024], index: 0, kind: input, shape index: {}]   ;;  %s1426_s4 = inlined_call_operand.vmem [shape: bf16[2,16], index: 4, kind: output, shape index: {0}]   ;;  %s1427_s5 = inlined_call_operand.vmem [shape: f32[1,1,16], index: 5, kind: output, shape index: {1}]   ;;  %s1428_s6 = inlined_call_operand.vmem [shape: f32[1,1,16], index: 6, kind: output, shape index: {2}]  }
   0x1   :  { %v1084_v0 = vld [vmem:[%s1422_s1 + $0x40] sm:$0xff]   ;;  %v1088_v4 = vld [vmem:[%s1422_s1 + $0x48] sm:$0xff]   ;;  %v1092_v8 = vld [vmem:[%s1422_s1 + $0x50] sm:$0xff]   ;;  %v61_v29 = vunpack.c.l.s4 %v1148_v28 }
   0x2   :  { %v1085_v1 = vld [vmem:[%s1422_s1 + $0xc0] sm:$0xff]   ;;  %995 = vmatprep.subr.bf16.mxu0 %v1084_v0  ;;  %v1089_v5 = vld [vmem:[%s1422_s1 + $0xc8] sm:$0xff]   ;;  %v1093_v9 = vld [vmem:[%s1422_s1 + $0xd0] sm:$0xff]   ;;  %v1256_v25 = vshrl.u32 %v26_v20, 7 }
   0x3   :  { %v1086_v2 = vld [vmem:[%s1422_s1] sm:$0xff]   ;;  %1017 = vmatprep.subr.bf16.mxu1 %v1085_v1  ;;  %v1090_v6 = vld [vmem:[%s1422_s1 + $0x8] sm:$0xff]   ;;  %v1094_v10 = vld [vmem:[%s1422_s1 + $0x10] sm:$0xff]   ;;  %v62_v37 = vunpack.c.0.s8 %v61_v29 }
   0x4   :  { %v1087_v3 = vld [vmem:[%s1422_s1 + $0x80] sm:$0xff]   ;;  %996 = vmatpush3.bf16.msra.mxu0 %v1086_v2  ;;  %v1091_v7 = vld [vmem:[%s1422_s1 + $0x88] sm:$0xff]   ;;  %v1095_v11 = vld [vmem:[%s1422_s1 + $0x90] sm:$0xff]   ;;  %v28_v32 = vsub.s32 0, %v1256_v25  ;;  %v32_v34 = vsub.s32 1, %v1256_v25  ;;  %v36_v36 = vsub.s32 2, %v1256_v25 }
   0x5   :  { %1018 = vmatpush3.bf16.msra.mxu1 %v1087_v3  ;;  %997 = vmatprep.subr.bf16.mxu0 %v1088_v4  ;;  %v1096_v12 = vld [vmem:[%s1422_s1 + $0x58] sm:$0xff]   ;;  %v1100_v16 = vld [vmem:[%s1422_s1 + $0x60] sm:$0xff]   ;;  %v1104_v21 = vld [vmem:[%s1422_s1 + $0x68] sm:$0xff]   ;;  %v40_v39 = vsub.s32 3, %v1256_v25  ;;  %v1293_v45 = vsub.s32 %v62_v37, %v1256_v25  ;;  %v44_v47 = vsub.s32 4, %v1256_v25  ;;  %v48_v57 = vsub.s32 5, %v1256_v25 }
   0x6   :  { %1019 = vmatprep.subr.bf16.mxu1 %v1089_v5  ;;  %v1097_v13 = vld [vmem:[%s1422_s1 + $0xd8] sm:$0xff]   ;;  %v1101_v17 = vld [vmem:[%s1422_s1 + $0xe0] sm:$0xff]   ;;  %v1105_v22 = vld [vmem:[%s1422_s1 + $0xe8] sm:$0xff]   ;;  %v52_v60 = vsub.s32 6, %v1256_v25  ;;  %v56_v61 = vsub.s32 7, %v1256_v25 }
   0x7   :  { %v1098_v14 = vld [vmem:[%s1422_s1 + $0x18] sm:$0xff]   ;;  %v1102_v18 = vld [vmem:[%s1422_s1 + $0x20] sm:$0xff]   ;;  %v1106_v23 = vld [vmem:[%s1422_s1 + $0x28] sm:$0xff]  }
   0x8   :  { %998 = vmatpush3.bf16.msra.mxu0 %v1090_v6  ;;  %v1099_v15 = vld [vmem:[%s1422_s1 + $0x98] sm:$0xff]   ;;  %v1103_v19 = vld [vmem:[%s1422_s1 + $0xa0] sm:$0xff]   ;;  %v1107_v24 = vld [vmem:[%s1422_s1 + $0xa8] sm:$0xff]  }
   0x9   :  { %1020 = vmatpush3.bf16.msra.mxu1 %v1091_v7  ;;  %999 = vmatprep.subr.bf16.mxu0 %v1092_v8  ;;  %v1108_v26 = vld [vmem:[%s1422_s1 + $0x70] sm:$0xff]   ;;  %v1112_v33 = vld [vmem:[%s1422_s1 + $0x78] sm:$0xff]   ;;  %v24_v41 = vld [vmem:[%s1423_s2] sm:$0xff] }
   0xa   :  { %1021 = vmatprep.subr.bf16.mxu1 %v1093_v9  ;;  %v1109_v27 = vld [vmem:[%s1422_s1 + $0xf0] sm:$0xff]   ;;  %v1113_v35 = vld [vmem:[%s1422_s1 + $0xf8] sm:$0xff]   ;;  %v96_v42 = vld [vmem:[%s1424_s3] sm:$0xff]  ;;  %v29_v43 = vrot.slane %v24_v41, %v28_v32  ;;  %v33_v44 = vrot.slane %v24_v41, %v32_v34  ;;  %v37_v48 = vrot.slane %v24_v41, %v36_v36  ;;  %v41_v49 = vrot.slane %v24_v41, %v40_v39 }
   0xb   :  { %v1110_v30 = vld [vmem:[%s1422_s1 + $0x30] sm:$0xff]   ;;  %v1114_v38 = vld [vmem:[%s1422_s1 + $0x38] sm:$0xff]   ;;  %v1116_v46 = vld [vmem:[%s1422_s1 + $0x140] sm:$0xff]   ;;  %v101_v50 = vrot.slane %v96_v42, %v28_v32  ;;  %v105_v51 = vrot.slane %v96_v42, %v32_v34  ;;  %v109_v55 = vrot.slane %v96_v42, %v36_v36  ;;  %v113_v56 = vrot.slane %v96_v42, %v40_v39 }
   0xc   :  { %1000 = vmatpush3.bf16.msra.mxu0 %v1094_v10  ;;  %v1111_v31 = vld [vmem:[%s1422_s1 + $0xb0] sm:$0xff]   ;;  %v1115_v40 = vld [vmem:[%s1422_s1 + $0xb8] sm:$0xff]   ;;  %v1117_v52 = vld [vmem:[%s1422_s1 + $0x1c0] sm:$0xff]   ;;  %v58_v54 = vcombine.low %v29_v43, %v33_v44  ;;  %v59_v58 = vcombine.low %v37_v48, %v41_v49  ;;  %v45_v4 = vrot.slane %v24_v41, %v44_v47  ;;  %v49_v5 = vrot.slane %v24_v41, %v48_v57 }
   0xd   :  { %1022 = vmatpush3.bf16.msra.mxu1 %v1095_v11  ;;  %1001 = vmatprep.subr.bf16.mxu0 %v1096_v12  ;;  %v21_v53 = vld [vmem:[%s1425_s0] sm:$0xff]  ;;  %v130_v59 = vcombine.low %v101_v50, %v105_v51  ;;  %v131_v63 = vcombine.low %v109_v55, %v113_v56  ;;  %v53_v7 = vrot.slane %v24_v41, %v52_v60  ;;  %v1120_v37 = vld [vmem:[%s1422_s1 + $0x148] sm:$0xff]   ;;  %v1124_v44 = vld [vmem:[%s1422_s1 + $0x150] sm:$0xff]  }
   0xe   :  { %1023 = vmatprep.subr.bf16.mxu1 %v1097_v13  ;;  %v66_v62 = vrot.slane %v58_v54, %v1293_v45  ;;  %v22_v0 = vunpack.c.l.bf16 %v21_v53  ;;  %v73_v1 = vrot.slane %v59_v58, %v1293_v45  ;;  %v57_v8 = vrot.slane %v24_v41, %v56_v61  ;;  %v1119_v39 = vld [vmem:[%s1422_s1 + $0x180] sm:$0xff]   ;;  %v1122_v43 = vld [vmem:[%s1422_s1 + $0x108] sm:$0xff]   ;;  %v1126_v49 = vld [vmem:[%s1422_s1 + $0x110] sm:$0xff]  }
   0xf   :  { %v138_v2 = vrot.slane %v130_v59, %v1293_v45  ;;  %v145_v3 = vrot.slane %v131_v63, %v1293_v45  ;;  %v75_v11 = vcombine.low %v45_v4, %v49_v5  ;;  %v117_v12 = vrot.slane %v96_v42, %v44_v47  ;;  %v1125_v47 = vld [vmem:[%s1422_s1 + $0x1d0] sm:$0xff]   ;;  %v1128_v50 = vld [vmem:[%s1422_s1 + $0x158] sm:$0xff]   ;;  %v1132_v55 = vld [vmem:[%s1422_s1 + $0x160] sm:$0xff]  }
  0x10   :  { %1002 = vmatpush3.bf16.msra.mxu0 %v1098_v14  ;;  %v74_v6 = vcombine.low %v66_v62, %v73_v1  ;;  %v121_v13 = vrot.slane %v96_v42, %v48_v57  ;;  %v1127_v51 = vld [vmem:[%s1422_s1 + $0x190] sm:$0xff]   ;;  %v1131_v56 = vld [vmem:[%s1422_s1 + $0x198] sm:$0xff]   ;;  %v1133_v58 = vld [vmem:[%s1422_s1 + $0x1e0] sm:$0xff]  }
  0x11   :  { %1024 = vmatpush3.bf16.msra.mxu1 %v1099_v15  ;;  %1003 = vmatprep.subr.bf16.mxu0 %v1100_v16  ;;  %v146_v9 = vcombine.low %v138_v2, %v145_v3  ;;  %v76_v15 = vcombine.low %v53_v7, %v57_v8  ;;  %v125_v16 = vrot.slane %v96_v42, %v52_v60  ;;  %v1136_v62 = vld [vmem:[%s1422_s1 + $0x168] sm:$0xff]   ;;  %v1135_v1 = vld [vmem:[%s1422_s1 + $0x1a0] sm:$0xff]   ;;  %v1141_v8 = vld [vmem:[%s1422_s1 + $0x1f0] sm:$0xff]  }
  0x12   :  { %1025 = vmatprep.subr.bf16.mxu1 %v1101_v17  ;;  %v94_v10 = vmul.f32 %v74_v6, %v22_v0  ;;  %v129_v17 = vrot.slane %v96_v42, %v56_v61  ;;  %v1134_v61 = vld [vmem:[%s1422_s1 + $0x120] sm:$0xff]   ;;  %v1137_v2 = vld [vmem:[%s1422_s1 + $0x1e8] sm:$0xff]  }
  0x13   :  { %v1138_v5 = vld [vmem:[%s1422_s1 + $0x128] sm:$0xff]  }
  0x14   :  { %1004 = vmatpush3.bf16.msra.mxu0 %v1102_v18  ;;  %v166_v14 = vadd.f32 %v146_v9, %v94_v10  ;;  %v1139_v7 = vld [vmem:[%s1422_s1 + $0x1a8] sm:$0xff]   ;;  %v1142_v9 = vld [vmem:[%s1422_s1 + $0x130] sm:$0xff]   ;;  %v1144_v10 = vld [vmem:[%s1422_s1 + $0x178] sm:$0xff]  }
  0x15   :  { %1026 = vmatpush3.bf16.msra.mxu1 %v1103_v19  ;;  %1005 = vmatprep.subr.bf16.mxu0 %v1104_v21  ;;  %v83_v19 = vrot.slane %v75_v11, %v1293_v45  ;;  %v90_v21 = vrot.slane %v76_v15, %v1293_v45  ;;  %v1143_v11 = vld [vmem:[%s1422_s1 + $0x1b0] sm:$0xff]  }
  0x16   :  { %1027 = vmatprep.subr.bf16.mxu1 %v1105_v22  ;;  %vm168_vm0 = vcmp.gt.f32.partialorder %v166_v14, 0.0  ;;  %v170_v18 = vmul.f32 0.2, %v166_v14  ;;  %v147_v22 = vcombine.low %v117_v12, %v121_v13  ;;  %v1145_v12 = vld [vmem:[%s1422_s1 + $0x1f8] sm:$0xff]  }
  0x17   :  { %v1146_v13 = vld [vmem:[%s1422_s1 + $0x138] sm:$0xff]  }
  0x18   :  { %1006 = vmatpush3.bf16.msra.mxu0 %v1106_v23  ;;  %v172_v20 = vsel %vm168_vm0, %v166_v14, %v170_v18  ;;  %v148_v23 = vcombine.low %v125_v16, %v129_v17  ;;  %v1147_v14 = vld [vmem:[%s1422_s1 + $0x1b8] sm:$0xff]  }
  0x19   :  { %1028 = vmatpush3.bf16.msra.mxu1 %v1107_v24  ;;  %1007 = vmatprep.subr.bf16.mxu0 %v1108_v26  ;;  %v183_v24 = vrot.slane %v172_v20, %v1293_v45  ;;  %v176_v25 = vcombine.high %v172_v20, %v172_v20  ;;  %v23_v26 = vunpack.c.h.bf16 %v21_v53  ;;  %v1130_v53 = vld [vmem:[%s1422_s1 + $0x118] sm:$0xff]  }
  0x1a   :  { %1029 = vmatprep.subr.bf16.mxu1 %v1109_v27  ;;  %v162_v32 = vrot.slane %v148_v23, %v1293_v45 }
  0x1b   :  { %v191_v27 = vcombine.high %v183_v24, %v183_v24  ;;  %v190_v28 = vrot.slane %v176_v25, %v1293_v45  ;;  %v218_v29 = vpack.c.bf16 %v183_v24, %v183_v24 }
  0x1c   :  { %1008 = vmatpush3.bf16.msra.mxu0 %v1110_v30  ;;  %v91_v30 = vcombine.low %v83_v19, %v90_v21 }
  0x1d   :  { %1030 = vmatpush3.bf16.msra.mxu1 %v1111_v31  ;;  %1009 = vmatprep.subr.bf16.mxu0 %v1112_v33  ;;  %v155_v31 = vrot.slane %v147_v22, %v1293_v45  ;;  %v219_v33 = vpack.c.bf16 %v191_v27, %v191_v27  ;;  %v192_v34 = vcombine.high %v190_v28, %v190_v28 }
  0x1e   :  { %1031 = vmatprep.subr.bf16.mxu1 %v1113_v35  ;;  %v1118_v35 = vld [vmem:[%s1422_s1 + $0x100] sm:$0xff]   ;;  %v220_v36 = vpack.c.bf16 %v190_v28, %v190_v28  ;;  %v95_v41 = vmul.f32 %v91_v30, %v23_v26 }
  0x1f   :  { %770 = vmatprep.mubr.bf16.mxu0 %v219_v33  ;;  %v163_v42 = vcombine.low %v155_v31, %v162_v32 }
  0x20   :  { %1010 = vmatpush3.bf16.msra.mxu0 %v1114_v38  ;;  %v221_v38 = vpack.c.bf16 %v192_v34, %v192_v34 }
  0x21   :  { %1032 = vmatpush3.bf16.msra.mxu1 %v1115_v40  ;;  %1039 = vmatprep.subr.bf16.mxu0 %v1116_v46  ;;  %v1121_v40 = vld [vmem:[%s1422_s1 + $0x1c8] sm:$0xff]   ;;  %v167_v48 = vadd.f32 %v163_v42, %v95_v41 }
  0x22   :  { %1061 = vmatprep.subr.bf16.mxu1 %v1117_v52  ;;  %810 = vmatprep.mubr.bf16.mxu1 %v221_v38  ;;  %v1123_v46 = vld [vmem:[%s1422_s1 + $0x188] sm:$0xff]   ;;  %v1129_v52 = vld [vmem:[%s1422_s1 + $0x1d8] sm:$0xff]  }
  0x23   :  { %771 = vmatmul.mubr.bf16.vlgmr.msra.gmra.mrb[0].mxu0 %v218_v29  ;;  %vm169_vm1 = vcmp.gt.f32.partialorder %v167_v48, 0.0  ;;  %v171_v54 = vmul.f32 0.2, %v167_v48 }
  0x24   :  { %1040 = vmatpush3.bf16.msra.mxu0 %v1118_v35  ;;  %811 = vmatmul.mubr.bf16.vlgmr.msra.gmra.mrb[0].mxu1 %v220_v36 }
  0x25   :  { %1041 = vmatprep.subr.bf16.mxu0 %v1120_v37  ;;  %1062 = vmatpush3.bf16.msra.mxu1 %v1119_v39  ;;  %v173_v57 = vsel %vm169_vm1, %v167_v48, %v171_v54 }
  0x26   :  { %1063 = vmatprep.subr.bf16.mxu1 %v1121_v40  ;;  %v200_v59 = vrot.slane %v173_v57, %v1293_v45  ;;  %v193_v60 = vcombine.high %v173_v57, %v173_v57 }
  0x28   :  { %1042 = vmatpush3.bf16.msra.mxu0 %v1122_v43  ;;  %v208_v63 = vcombine.high %v200_v59, %v200_v59  ;;  %v207_v0 = vrot.slane %v193_v60, %v1293_v45  ;;  %v1140_v45 = vld [vmem:[%s1422_s1 + $0x170] sm:$0xff]   ;;  %v222_v15 = vpack.c.bf16 %v200_v59, %v200_v59 }
  0x29   :  { %1043 = vmatprep.subr.bf16.mxu0 %v1124_v44  ;;  %1064 = vmatpush3.bf16.msra.mxu1 %v1123_v46 }
  0x2a   :  { %1065 = vmatprep.subr.bf16.mxu1 %v1125_v47  ;;  %v223_v3 = vpack.c.bf16 %v208_v63, %v208_v63  ;;  %v209_v4 = vcombine.high %v207_v0, %v207_v0  ;;  %v224_v16 = vpack.c.bf16 %v207_v0, %v207_v0 }
  0x2c   :  { %1044 = vmatpush3.bf16.msra.mxu0 %v1126_v49  ;;  %850 = vmatprep.mubr.bf16.mxu0 %v223_v3  ;;  %v225_v6 = vpack.c.bf16 %v209_v4, %v209_v4 }
  0x2d   :  { %1045 = vmatprep.subr.bf16.mxu0 %v1128_v50  ;;  %1066 = vmatpush3.bf16.msra.mxu1 %v1127_v51 }
  0x2e   :  { %1067 = vmatprep.subr.bf16.mxu1 %v1129_v52  ;;  %890 = vmatprep.mubr.bf16.mxu1 %v225_v6 }
  0x30   :  { %1046 = vmatpush3.bf16.msra.mxu0 %v1130_v53 }
  0x31   :  { %1047 = vmatprep.subr.bf16.mxu0 %v1132_v55  ;;  %1068 = vmatpush3.bf16.msra.mxu1 %v1131_v56 }
  0x32   :  { %1069 = vmatprep.subr.bf16.mxu1 %v1133_v58 }
  0x34   :  { %1048 = vmatpush3.bf16.msra.mxu0 %v1134_v61 }
  0x35   :  { %1049 = vmatprep.subr.bf16.mxu0 %v1136_v62  ;;  %1070 = vmatpush3.bf16.msra.mxu1 %v1135_v1 }
  0x36   :  { %1071 = vmatprep.subr.bf16.mxu1 %v1137_v2 }
  0x38   :  { %1050 = vmatpush3.bf16.msra.mxu0 %v1138_v5 }
  0x39   :  { %1051 = vmatprep.subr.bf16.mxu0 %v1140_v45  ;;  %1072 = vmatpush3.bf16.msra.mxu1 %v1139_v7 }
  0x3a   :  { %1073 = vmatprep.subr.bf16.mxu1 %v1141_v8 }
  0x3c   :  { %1052 = vmatpush3.bf16.msra.mxu0 %v1142_v9 }
  0x3d   :  { %1053 = vmatprep.subr.bf16.mxu0 %v1144_v10  ;;  %1074 = vmatpush3.bf16.msra.mxu1 %v1143_v11 }
  0x3e   :  { %1075 = vmatprep.subr.bf16.mxu1 %v1145_v12 }
  0x40   :  { %1054 = vmatpush3.bf16.msra.mxu0 %v1146_v13 }
  0x41   :  { %1076 = vmatpush3.bf16.msra.mxu1 %v1147_v14 }
  0x43   :  { %851 = vmatmul.mubr.bf16.vlgmr.msra.gmra.mrb[4].mxu0 %v222_v15 }
  0x44   :  { %891 = vmatmul.mubr.bf16.vlgmr.msra.gmra.mrb[4].mxu1 %v224_v16 }
  0xf6   :  { %v1011_v17 = vpop.f32.mrb[0].mxu0 }
  0xf7   :  { %v1012_v18 = vpop.f32.mrb[1].mxu0  ;;  %v1033_v19 = vpop.f32.mrb[0].mxu1 }
  0xf8   :  { %v1013_v20 = vadd.f32 %v1012_v18, %v1011_v17  ;;  %v1014_v21 = vpop.f32.mrb[2].mxu0  ;;  %v1034_v22 = vpop.f32.mrb[1].mxu1 }
  0xf9   :  { %v1015_v23 = vpop.f32.mrb[3].mxu0  ;;  %v1035_v24 = vadd.f32 %v1034_v22, %v1033_v19  ;;  %v1036_v25 = vpop.f32.mrb[2].mxu1 }
  0xfa   :  { %v1037_v26 = vpop.f32.mrb[3].mxu1 }
  0xfb   :  { %v813_v27 = vadd.f32 %v1035_v24, %v1013_v20 }
 0x116   :  { %v1055_v28 = vpop.f32.mrb[4].mxu0 }
 0x117   :  { %v1056_v29 = vpop.f32.mrb[5].mxu0  ;;  %v1077_v30 = vpop.f32.mrb[4].mxu1 }
 0x118   :  { %v1057_v31 = vadd.f32 %v1056_v29, %v1055_v28  ;;  %v1058_v32 = vpop.f32.mrb[6].mxu0  ;;  %v1078_v33 = vpop.f32.mrb[5].mxu1 }
 0x119   :  { %v1059_v34 = vpop.f32.mrb[7].mxu0  ;;  %v1079_v36 = vadd.f32 %v1078_v33, %v1077_v30  ;;  %v1080_v37 = vpop.f32.mrb[6].mxu1 }
 0x11a   :  { %v853_v35 = vadd.f32 %v1057_v31, %v813_v27  ;;  %v1081_v38 = vpop.f32.mrb[7].mxu1 }
 0x11c   :  { %v893_v39 = vadd.f32 %v1079_v36, %v853_v35 }
 0x11e   :  { %v898_v40 = vpack.c.bf16 %v893_v39, %v893_v39  ;;  %v902_v41 = vsel %vm901_vm2, %v893_v39, 0.0  ;;  %v910_v42 = vmul.f32 %v893_v39, %v893_v39 }
 0x11f   :  { %v903_v43 = vrot.slane %v902_v41, 4 }
 0x120   :  { %900 = vst.msk [vmem:[%s1426_s4] sm:$0x1] %vm899_vm3, %v898_v40  ;;  %v911_v44 = vsel %vm901_vm2, %v910_v42, 0.0 }
 0x121   :  { %v904_v46 = vadd.f32 %v903_v43, %v902_v41  ;;  %v912_v47 = vrot.slane %v911_v44, 4 }
 0x123   :  { %v905_v48 = vrot.slane %v904_v46, 2  ;;  %v913_v49 = vadd.f32 %v912_v47, %v911_v44 }
 0x125   :  { %v906_v50 = vadd.f32 %v905_v48, %v904_v46  ;;  %v914_v51 = vrot.slane %v913_v49, 2 }
 0x127   :  { %v907_v52 = vrot.slane %v906_v50, 1  ;;  %v915_v53 = vadd.f32 %v914_v51, %v913_v49 }
 0x129   :  { %v908_v54 = vadd.f32 %v907_v52, %v906_v50  ;;  %v916_v55 = vrot.slane %v915_v53, 1 }
 0x12b   :  { %909 = vst.msk [vmem:[%s1427_s5] sm:$0x1] %vm899_vm3, %v908_v54  ;;  %v917_v56 = vadd.f32 %v916_v55, %v915_v53 }
 0x12d   :  { %918 = vst.msk [vmem:[%s1428_s6] sm:$0x1] %vm899_vm3, %v917_v56 }

// kernel: netG_forward.15
= control target key start
LH: loop header
LB: loop body
LE: loop exit
PB: predicated region body
PF: predicated region fallthrough
CT: control target
= control target key end

     0   :  { %v597_v3 = vmov 0   ;;  %vm91_vm1 = vcmask 130048   ;;  %v598_v26 = vmov 1966171168   ;;  %v282_v28 = vlaneseq  ;;  %s757_s1 = inlined_call_operand.vmem [shape: bf16[16,1024], index: 1, kind: input, shape index: {}]   ;;  %s758_s0 = inlined_call_operand.vmem [shape: bf16[2,16], index: 0, kind: input, shape index: {}]   ;;  %s759_s2 = inlined_call_operand.vmem [shape: f32[1,16], index: 2, kind: input, shape index: {}]   ;;  %s760_s3 = inlined_call_operand.vmem [shape: f32[1,16], index: 3, kind: input, shape index: {}]   ;;  %s761_s4 = inlined_call_operand.vmem [shape: bf16[2,1024], index: 4, kind: output, shape index: {0}]   ;;  %s762_s5 = inlined_call_operand.vmem [shape: f32[1,1,1024], index: 5, kind: output, shape index: {1}]   ;;  %s763_s6 = inlined_call_operand.vmem [shape: f32[1,1,1024], index: 6, kind: output, shape index: {2}]  }
   0x1   :  { %v43_v0 = vld [vmem:[%s757_s1] sm:$0xff]  ;;  %v44_v2 = vld [vmem:[%s757_s1 + $0x8] sm:$0xff]  ;;  %127 = vmatprep.mubr.bf16.mxu0 %v597_v3  ;;  %168 = vmatprep.mubr.bf16.mxu1 %v597_v3  ;;  %v45_v7 = vld [vmem:[%s757_s1 + $0x10] sm:$0xff]  ;;  %v280_v27 = vunpack.c.l.s4 %v598_v26  ;;  %vm326_vm2 = vcmask 1041408  }
   0x2   :  { %v47_v1 = vld [vmem:[%s757_s1 + $0x20] sm:$0xff]  ;;  %v48_v5 = vld [vmem:[%s757_s1 + $0x28] sm:$0xff]  ;;  %v49_v8 = vld [vmem:[%s757_s1 + $0x30] sm:$0xff]  ;;  %v283_v30 = vshrl.u32 %v282_v28, 7 }
   0x3   :  { %v580_v4 = vcombine.high %v43_v0, %v47_v1  ;;  %v579_v6 = vcombine.low %v43_v0, %v47_v1  ;;  %v582_v9 = vcombine.high %v44_v2, %v48_v5  ;;  %v581_v10 = vcombine.low %v44_v2, %v48_v5  ;;  %v46_v12 = vld [vmem:[%s757_s1 + $0x18] sm:$0xff]  ;;  %v21_v14 = vld [vmem:[%s758_s0] sm:$0x1] }
   0x4   :  { %v584_v11 = vcombine.high %v45_v7, %v49_v8  ;;  %v50_v13 = vld [vmem:[%s757_s1 + $0x38] sm:$0xff]  ;;  %v22_v16 = vunpack.c.l.bf16 %v21_v14  ;;  %v577_v17 = vld [vmem:[%s759_s2] ss:$0 sm:$0xff]  ;;  %v583_v22 = vcombine.low %v45_v7, %v49_v8  ;;  %v281_v29 = vunpack.c.0.s8 %v280_v27 }
   0x5   :  { %95 = vmatprep.subr.bf16.mxu0 %v580_v4  ;;  %v586_v15 = vcombine.high %v46_v12, %v50_v13  ;;  %136 = vmatprep.subr.bf16.mxu1 %v582_v9  ;;  %v578_v18 = vld [vmem:[%s760_s3] ss:$0 sm:$0xff]  ;;  %v585_v23 = vcombine.low %v46_v12, %v50_v13 }
   0x6   :  { %96 = vmatpush1.bf16.msra.mxu0 %v579_v6  ;;  %137 = vmatpush1.bf16.msra.mxu1 %v581_v10  ;;  %v30_v19 = vmul.f32 %v577_v17, %v22_v16  ;;  %v667_v33 = vsub.s32 %v281_v29, %v283_v30 }
   0x7   :  { %177 = vmatprep.subr.bf16.mxu0 %v584_v11  ;;  %218 = vmatprep.subr.bf16.mxu1 %v586_v15 }
   0x8   :  { %v38_v20 = vadd.f32 %v578_v18, %v30_v19 }
   0xa   :  { %vm39_vm0 = vcmp.gt.f32.partialorder %v38_v20, 0.0  ;;  %v40_v21 = vmul.f32 0.2, %v38_v20 }
   0xc   :  { %v41_v24 = vsel %vm39_vm0, %v38_v20, %v40_v21 }
   0xd   :  { %v42_v25 = vpack.c.bf16 %v41_v24, %v41_v24 }
   0xf   :  { %587 = vmatmul.mubr.msk.bf16.vlgmr.msra.gmra.mrb[0].mxu0 %vm91_vm1, %v42_v25  ;;  %588 = vmatmul.mubr.msk.bf16.vlgmr.msra.gmra.mrb[0].mxu1 %vm91_vm1, %v42_v25 }
  0x10   :  { %178 = vmatpush1.bf16.msra.mxu0 %v583_v22  ;;  %219 = vmatpush1.bf16.msra.mxu1 %v585_v23 }
  0x11   :  { %209 = vmatprep.mubr.bf16.mxu0 %v597_v3  ;;  %250 = vmatprep.mubr.bf16.mxu1 %v597_v3 }
  0x17   :  { %589 = vmatmul.mubr.msk.bf16.vlgmr.msra.gmra.mrb[4].mxu0 %vm91_vm1, %v42_v25  ;;  %590 = vmatmul.mubr.msk.bf16.vlgmr.msra.gmra.mrb[4].mxu1 %vm91_vm1, %v42_v25 }
  0xe2   :  { %v129_v31 = vpop.f32.mrb[0].mxu0  ;;  %v170_v32 = vpop.f32.mrb[0].mxu1 }
  0xe3   :  { %v327_v34 = vsel %vm326_vm2, %v129_v31, 0.0  ;;  %v442_v35 = vmul.f32 %v129_v31, %v129_v31  ;;  %v341_v36 = vsel %vm326_vm2, %v170_v32, 0.0  ;;  %v444_v37 = vmul.f32 %v170_v32, %v170_v32  ;;  %v131_v38 = vpop.f32.mrb[1].mxu0  ;;  %v172_v39 = vpop.f32.mrb[1].mxu1 }
  0xe4   :  { %v328_v40 = vrot.slane %v327_v34, 4  ;;  %v342_v41 = vrot.slane %v341_v36, 4  ;;  %v591_v42 = vpack.c.bf16 %v131_v38, %v129_v31  ;;  %v334_v43 = vsel %vm326_vm2, %v131_v38, 0.0  ;;  %v133_v44 = vpop.f32.mrb[2].mxu0  ;;  %v174_v45 = vpop.f32.mrb[2].mxu1 }
  0xe5   :  { %v450_v46 = vsel %vm326_vm2, %v442_v35, 0.0  ;;  %v464_v47 = vsel %vm326_vm2, %v444_v37, 0.0  ;;  %v335_v48 = vrot.slane %v334_v43, 4  ;;  %v443_v49 = vmul.f32 %v131_v38, %v131_v38  ;;  %v134_v50 = vpop.f32.mrb[3].mxu0  ;;  %v175_v51 = vpop.f32.mrb[3].mxu1 }
  0xe6   :  { %v329_v52 = vadd.f32 %v328_v40, %v327_v34  ;;  %v451_v53 = vrot.slane %v450_v46, 4  ;;  %v343_v54 = vadd.f32 %v342_v41, %v341_v36  ;;  %v465_v55 = vrot.slane %v464_v47, 4 }
  0xe7   :  { %v675_v56 = vrot.slane %v591_v42, %v667_v33  ;;  %v336_v57 = vadd.f32 %v335_v48, %v334_v43  ;;  %v457_v58 = vsel %vm326_vm2, %v443_v49, 0.0  ;;  %v592_v59 = vpack.c.bf16 %v172_v39, %v170_v32 }
  0xe8   :  { %v330_v60 = vrot.slane %v329_v52, 2  ;;  %v452_v61 = vadd.f32 %v451_v53, %v450_v46  ;;  %v344_v62 = vrot.slane %v343_v54, 2  ;;  %v466_v63 = vadd.f32 %v465_v55, %v464_v47 }
  0xe9   :  { %v337_v0 = vrot.slane %v336_v57, 2  ;;  %v458_v1 = vrot.slane %v457_v58, 4  ;;  %v679_v2 = vrot.slane %v592_v59, %v667_v33  ;;  %v348_v3 = vsel %vm326_vm2, %v172_v39, 0.0 }
  0xea   :  { %v331_v4 = vadd.f32 %v330_v60, %v329_v52  ;;  %v453_v5 = vrot.slane %v452_v61, 2  ;;  %v345_v6 = vadd.f32 %v344_v62, %v343_v54  ;;  %v467_v7 = vrot.slane %v466_v63, 2  ;;  %v682_v8 = vpop.f32.mrb[4].mxu0  ;;  %v684_v9 = vpop.f32.mrb[4].mxu1 }
  0xeb   :  { %v338_v10 = vadd.f32 %v337_v0, %v336_v57  ;;  %v459_v11 = vadd.f32 %v458_v1, %v457_v58  ;;  %v307_v12 = vcombine.low %v675_v56, %v679_v2  ;;  %v349_v13 = vrot.slane %v348_v3, 4  ;;  %v688_v14 = vpop.f32.mrb[5].mxu0  ;;  %v690_v15 = vpop.f32.mrb[5].mxu1 }
  0xec   :  { %v332_v16 = vrot.slane %v331_v4, 1  ;;  %v454_v17 = vadd.f32 %v453_v5, %v452_v61  ;;  %v346_v18 = vrot.slane %v345_v6, 1  ;;  %v215_v19 = vpop.f32.mrb[6].mxu0  ;;  %v256_v20 = vpop.f32.mrb[6].mxu1  ;;  %v468_v28 = vadd.f32 %v467_v7, %v466_v63 }
  0xed   :  { %v339_v21 = vrot.slane %v338_v10, 1  ;;  %v460_v22 = vrot.slane %v459_v11, 2  ;;  %v350_v23 = vadd.f32 %v349_v13, %v348_v3  ;;  %v216_v24 = vpop.f32.mrb[7].mxu0  ;;  %v257_v25 = vpop.f32.mrb[7].mxu1  ;;  %v445_v32 = vmul.f32 %v172_v39, %v172_v39 }
  0xee   :  { %v333_v26 = vadd.f32 %v332_v16, %v331_v4  ;;  %v455_v27 = vrot.slane %v454_v17, 1  ;;  %v347_v35 = vadd.f32 %v346_v18, %v345_v6  ;;  %v355_v36 = vsel %vm326_vm2, %v682_v8, 0.0 }
  0xef   :  { %v340_v29 = vadd.f32 %v339_v21, %v338_v10  ;;  %v461_v30 = vadd.f32 %v460_v22, %v459_v11  ;;  %v351_v31 = vrot.slane %v350_v23, 2  ;;  %v446_v37 = vmul.f32 %v682_v8, %v682_v8 }
  0xf0   :  { %v456_v34 = vadd.f32 %v455_v27, %v454_v17  ;;  %v471_v42 = vsel %vm326_vm2, %v445_v32, 0.0  ;;  %v356_v44 = vrot.slane %v355_v36, 4  ;;  %v369_v39 = vsel %vm326_vm2, %v684_v9, 0.0 }
  0xf1   :  { %v391_v38 = vcombine.low %v333_v26, %v340_v29  ;;  %v462_v40 = vrot.slane %v461_v30, 1  ;;  %v352_v41 = vadd.f32 %v351_v31, %v350_v23  ;;  %v472_v43 = vrot.slane %v471_v42, 4 }
  0xf2   :  { %v478_v45 = vsel %vm326_vm2, %v446_v37, 0.0  ;;  %v469_v46 = vrot.slane %v468_v28, 1  ;;  %v357_v51 = vadd.f32 %v356_v44, %v355_v36  ;;  %v370_v52 = vrot.slane %v369_v39, 4 }
  0xf3   :  { %v463_v47 = vadd.f32 %v462_v40, %v461_v30  ;;  %v353_v48 = vrot.slane %v352_v41, 1  ;;  %v479_v49 = vrot.slane %v478_v45, 4  ;;  %v473_v50 = vadd.f32 %v472_v43, %v471_v42 }
  0xf4   :  { %v448_v53 = vmul.f32 %v684_v9, %v684_v9  ;;  %v593_v58 = vpack.c.bf16 %v688_v14, %v682_v8  ;;  %v358_v60 = vrot.slane %v357_v51, 2  ;;  %v371_v61 = vadd.f32 %v370_v52, %v369_v39 }
  0xf5   :  { %v514_v54 = vcombine.low %v456_v34, %v463_v47  ;;  %v354_v55 = vadd.f32 %v353_v48, %v352_v41  ;;  %v480_v57 = vadd.f32 %v479_v49, %v478_v45  ;;  %v474_v59 = vrot.slane %v473_v50, 2 }
  0xf6   :  { %v492_v62 = vsel %vm326_vm2, %v448_v53, 0.0  ;;  %v706_v63 = vrot.slane %v391_v38, %v667_v33  ;;  %v359_v5 = vadd.f32 %v358_v60, %v357_v51  ;;  %v362_v7 = vsel %vm326_vm2, %v688_v14, 0.0 }
  0xf7   :  { %v392_v0 = vcombine.low %v347_v35, %v354_v55  ;;  %v493_v1 = vrot.slane %v492_v62, 4  ;;  %v475_v3 = vadd.f32 %v474_v59, %v473_v50  ;;  %v481_v6 = vrot.slane %v480_v57, 2 }
  0xf8   :  { %v470_v8 = vadd.f32 %v469_v46, %v468_v28  ;;  %v372_v11 = vrot.slane %v371_v61, 2  ;;  %v363_v13 = vrot.slane %v362_v7, 4  ;;  %v447_v18 = vmul.f32 %v688_v14, %v688_v14 }
  0xf9   :  { %v709_v4 = vrot.slane %v392_v0, %v667_v33  ;;  %v476_v10 = vrot.slane %v475_v3, 1  ;;  %v494_v17 = vadd.f32 %v493_v1, %v492_v62  ;;  %v718_v19 = vrot.slane %v514_v54, %v667_v33 }
  0xfa   :  { %v364_v21 = vadd.f32 %v363_v13, %v362_v7  ;;  %v360_v22 = vrot.slane %v359_v5, 1  ;;  %v482_v23 = vadd.f32 %v481_v6, %v480_v57  ;;  %v299_v24 = vrot.slane %v593_v58, %v667_v33 }
  0xfb   :  { %v423_v16 = vcombine.low %v706_v63, %v709_v4  ;;  %v477_v20 = vadd.f32 %v476_v10, %v475_v3  ;;  %v485_v25 = vsel %vm326_vm2, %v447_v18, 0.0  ;;  %v373_v27 = vadd.f32 %v372_v11, %v371_v61 }
  0xfc   :  { %v365_v28 = vrot.slane %v364_v21, 2  ;;  %v486_v29 = vrot.slane %v485_v25, 4  ;;  %v495_v30 = vrot.slane %v494_v17, 2  ;;  %v594_v31 = vpack.c.bf16 %v690_v15, %v684_v9 }
  0xfd   :  { %v515_v26 = vcombine.low %v470_v8, %v477_v20  ;;  %v376_v14 = vsel %vm326_vm2, %v690_v15, 0.0  ;;  %v449_v32 = vmul.f32 %v690_v15, %v690_v15  ;;  %v361_v38 = vadd.f32 %v360_v22, %v359_v5 }
  0xfe   :  { %v366_v35 = vadd.f32 %v365_v28, %v364_v21  ;;  %v487_v36 = vadd.f32 %v486_v29, %v485_v25  ;;  %v377_v37 = vrot.slane %v376_v14, 4  ;;  %v483_v40 = vrot.slane %v482_v23, 1 }
  0xff   :  { %v531_v34 = vrot.slane %v515_v26, %v667_v33  ;;  %v306_v41 = vrot.slane %v594_v31, %v667_v33  ;;  %v499_v42 = vsel %vm326_vm2, %v449_v32, 0.0  ;;  %v496_v39 = vadd.f32 %v495_v30, %v494_v17 }
 0x100   :  { %v367_v9 = vrot.slane %v366_v35, 1  ;;  %v488_v44 = vrot.slane %v487_v36, 2  ;;  %v378_v45 = vadd.f32 %v377_v37, %v376_v14  ;;  %v500_v47 = vrot.slane %v499_v42, 4 }
 0x101   :  { %v546_v43 = vcombine.low %v718_v19, %v531_v34  ;;  %v308_v46 = vcombine.low %v299_v24, %v306_v41  ;;  %v374_v15 = vrot.slane %v373_v27, 1  ;;  %v315_v51 = vrot.slane %v307_v12, %v667_v33 }
 0x102   :  { %v368_v48 = vadd.f32 %v367_v9, %v366_v35  ;;  %v489_v49 = vadd.f32 %v488_v44, %v487_v36  ;;  %v379_v50 = vrot.slane %v378_v45, 2  ;;  %v501_v53 = vadd.f32 %v500_v47, %v499_v42 }
 0x103   :  { %v322_v52 = vrot.slane %v308_v46, %v667_v33  ;;  %v484_v54 = vadd.f32 %v483_v40, %v482_v23  ;;  %v497_v59 = vrot.slane %v496_v39, 1  ;;  %v375_v62 = vadd.f32 %v374_v15, %v373_v27 }
 0x104   :  { %v393_v55 = vcombine.low %v361_v38, %v368_v48  ;;  %v490_v57 = vrot.slane %v489_v49, 1  ;;  %v380_v58 = vadd.f32 %v379_v50, %v378_v45  ;;  %v502_v61 = vrot.slane %v501_v53, 2 }
 0x105   :  { %v323_v60 = vcombine.low %v315_v51, %v322_v52  ;;  %v498_v12 = vadd.f32 %v497_v59, %v496_v39  ;;  %v431_v19 = vrot.slane %v423_v16, %v667_v33  ;;  %v554_v23 = vrot.slane %v546_v43, %v667_v33 }
 0x106   :  { %v491_v0 = vadd.f32 %v490_v57, %v489_v49  ;;  %v381_v1 = vrot.slane %v380_v58, 1  ;;  %v503_v3 = vadd.f32 %v502_v61, %v501_v53  ;;  %v415_v6 = vrot.slane %v393_v55, %v667_v33 }
 0x107   :  { %325 = vst [vmem:[%s761_s4] sm:$0xff] %v323_v60 }
 0x108   :  { %v516_v56 = vcombine.low %v484_v54, %v491_v0  ;;  %v382_v2 = vadd.f32 %v381_v1, %v380_v58  ;;  %v504_v5 = vrot.slane %v503_v3, 1 }
 0x10a   :  { %v394_v7 = vcombine.low %v375_v62, %v382_v2  ;;  %v505_v8 = vadd.f32 %v504_v5, %v503_v3  ;;  %v538_v11 = vrot.slane %v516_v56, %v667_v33 }
 0x10c   :  { %v422_v10 = vrot.slane %v394_v7, %v667_v33  ;;  %v517_v13 = vcombine.low %v498_v12, %v505_v8 }
 0x10e   :  { %v424_v17 = vcombine.low %v415_v6, %v422_v10  ;;  %v545_v18 = vrot.slane %v517_v13, %v667_v33 }
 0x110   :  { %v438_v20 = vrot.slane %v424_v17, %v667_v33  ;;  %v547_v21 = vcombine.low %v538_v11, %v545_v18 }
 0x112   :  { %v439_v22 = vcombine.low %v431_v19, %v438_v20  ;;  %v561_v24 = vrot.slane %v547_v21, %v667_v33 }
 0x114   :  { %441 = vst [vmem:[%s762_s5] sm:$0xff] %v439_v22  ;;  %v562_v25 = vcombine.low %v554_v23, %v561_v24 }
 0x116   :  { %564 = vst [vmem:[%s763_s6] sm:$0xff] %v562_v25 }

// kernel: tile.78
= control target key start
LH: loop header
LB: loop body
LE: loop exit
PB: predicated region body
PF: predicated region fallthrough
CT: control target
= control target key end

     0   :  { %s22_s0 = inlined_call_operand.vmem [shape: f32[32], index: 0, kind: input, shape index: {}]   ;;  %s23_s1 = inlined_call_operand.vmem [shape: f32[4,32], index: 1, kind: output, shape index: {}]  }
   0x1   :  { %v4_v0 = vld [vmem:[%s22_s0] ss:$0 sm:$0xff] }
   0x2   :  { %5 = vst [vmem:[%s23_s1] sm:$0xf] %v4_v0 }

// kernel: netG_forward.16
= control target key start
LH: loop header
LB: loop body
LE: loop exit
PB: predicated region body
PF: predicated region fallthrough
CT: control target
= control target key end

     0   :  { %vm365_vm0 = vcmask 523264   ;;  %s941_s1 = inlined_call_operand.vmem [shape: bf16[576,128], index: 1, kind: input, shape index: {}]   ;;  %s942_s0 = inlined_call_operand.vmem [shape: bf16[32,576], index: 0, kind: input, shape index: {}]   ;;  %s943_s2 = inlined_call_operand.vmem [shape: bf16[32,128], index: 2, kind: output, shape index: {0}]   ;;  %s944_s3 = inlined_call_operand.vmem [shape: f32[1,1,128], index: 3, kind: output, shape index: {1}]   ;;  %s945_s4 = inlined_call_operand.vmem [shape: f32[1,1,128], index: 4, kind: output, shape index: {2}]  }
   0x1   :  { %v716_v0 = vld [vmem:[%s941_s1 + $0x40] sm:$0xff]   ;;  %v720_v4 = vld [vmem:[%s941_s1 + $0x48] sm:$0xff]   ;;  %v724_v8 = vld [vmem:[%s941_s1 + $0x50] sm:$0xff]  }
   0x2   :  { %v717_v1 = vld [vmem:[%s941_s1 + $0xc0] sm:$0xff]   ;;  %642 = vmatprep.subr.bf16.mxu0 %v716_v0  ;;  %v721_v5 = vld [vmem:[%s941_s1 + $0xc8] sm:$0xff]   ;;  %v725_v9 = vld [vmem:[%s941_s1 + $0xd0] sm:$0xff]  }
   0x3   :  { %v718_v2 = vld [vmem:[%s941_s1] sm:$0xff]   ;;  %670 = vmatprep.subr.bf16.mxu1 %v717_v1  ;;  %v722_v6 = vld [vmem:[%s941_s1 + $0x8] sm:$0xff]   ;;  %v726_v10 = vld [vmem:[%s941_s1 + $0x10] sm:$0xff]  }
   0x4   :  { %v719_v3 = vld [vmem:[%s941_s1 + $0x80] sm:$0xff]   ;;  %643 = vmatpush3.bf16.msra.mxu0 %v718_v2  ;;  %v723_v7 = vld [vmem:[%s941_s1 + $0x88] sm:$0xff]   ;;  %v727_v11 = vld [vmem:[%s941_s1 + $0x90] sm:$0xff]  }
   0x5   :  { %671 = vmatpush3.bf16.msra.mxu1 %v719_v3  ;;  %644 = vmatprep.subr.bf16.mxu0 %v720_v4  ;;  %v728_v12 = vld [vmem:[%s941_s1 + $0x58] sm:$0xff]   ;;  %v732_v16 = vld [vmem:[%s941_s1 + $0x60] sm:$0xff]   ;;  %v736_v20 = vld [vmem:[%s941_s1 + $0x68] sm:$0xff]  }
   0x6   :  { %672 = vmatprep.subr.bf16.mxu1 %v721_v5  ;;  %v729_v13 = vld [vmem:[%s941_s1 + $0xd8] sm:$0xff]   ;;  %v733_v17 = vld [vmem:[%s941_s1 + $0xe0] sm:$0xff]   ;;  %v737_v21 = vld [vmem:[%s941_s1 + $0xe8] sm:$0xff]  }
   0x7   :  { %v730_v14 = vld [vmem:[%s941_s1 + $0x18] sm:$0xff]   ;;  %v734_v18 = vld [vmem:[%s941_s1 + $0x20] sm:$0xff]   ;;  %v738_v22 = vld [vmem:[%s941_s1 + $0x28] sm:$0xff]  }
   0x8   :  { %645 = vmatpush3.bf16.msra.mxu0 %v722_v6  ;;  %v731_v15 = vld [vmem:[%s941_s1 + $0x98] sm:$0xff]   ;;  %v735_v19 = vld [vmem:[%s941_s1 + $0xa0] sm:$0xff]   ;;  %v739_v23 = vld [vmem:[%s941_s1 + $0xa8] sm:$0xff]  }
   0x9   :  { %673 = vmatpush3.bf16.msra.mxu1 %v723_v7  ;;  %646 = vmatprep.subr.bf16.mxu0 %v724_v8  ;;  %v740_v24 = vld [vmem:[%s941_s1 + $0x70] sm:$0xff]   ;;  %v744_v28 = vld [vmem:[%s941_s1 + $0x78] sm:$0xff]   ;;  %v753_v35 = vld [vmem:[%s942_s0 + $0xc] ss:$20 sps:$4 sm:$0xff]  }
   0xa   :  { %674 = vmatprep.subr.bf16.mxu1 %v725_v9  ;;  %v741_v25 = vld [vmem:[%s941_s1 + $0xf0] sm:$0xff]   ;;  %v745_v29 = vld [vmem:[%s941_s1 + $0xf8] sm:$0xff]   ;;  %v754_v36 = vld [vmem:[%s941_s1 + $0x100] sm:$0xff]   ;;  %453 = vmatprep.mubr.bf16.mxu1 %v753_v35 }
   0xb   :  { %v742_v26 = vld [vmem:[%s941_s1 + $0x30] sm:$0xff]   ;;  %v746_v30 = vld [vmem:[%s941_s1 + $0x38] sm:$0xff]   ;;  %v755_v37 = vld [vmem:[%s941_s1 + $0x108] sm:$0xff]  }
   0xc   :  { %647 = vmatpush3.bf16.msra.mxu0 %v726_v10  ;;  %v743_v27 = vld [vmem:[%s941_s1 + $0xb0] sm:$0xff]   ;;  %v747_v31 = vld [vmem:[%s941_s1 + $0xb8] sm:$0xff]   ;;  %v756_v38 = vld [vmem:[%s942_s0 + $0x2c] ss:$20 sps:$4 sm:$0xff]  }
   0xd   :  { %675 = vmatpush3.bf16.msra.mxu1 %v727_v11  ;;  %648 = vmatprep.subr.bf16.mxu0 %v728_v12  ;;  %v748_v32 = vld [vmem:[%s942_s0] ss:$20 sps:$4 sm:$0xff]   ;;  %v750_v33 = vld [vmem:[%s942_s0 + $0x4] ss:$20 sps:$4 sm:$0xff]   ;;  %v751_v34 = vld [vmem:[%s942_s0 + $0x8] ss:$20 sps:$4 sm:$0xff]  }
   0xe   :  { %676 = vmatprep.subr.bf16.mxu1 %v729_v13  ;;  %404 = vmatprep.mubr.bf16.mxu0 %v750_v33  ;;  %v758_v39 = vld [vmem:[%s942_s0 + $0x34] ss:$20 sps:$4 sm:$0xff]   ;;  %v761_v42 = vld [vmem:[%s942_s0 + $0x30] ss:$20 sps:$4 sm:$0xff]   ;;  %v763_v44 = vld [vmem:[%s941_s1 + $0x118] sm:$0xff]  }
   0xf   :  { %v760_v40 = vld [vmem:[%s942_s0 + $0x28] ss:$20 sps:$4 sm:$0xff]   ;;  %v762_v41 = vld [vmem:[%s941_s1 + $0x110] sm:$0xff]   ;;  %v765_v45 = vld [vmem:[%s942_s0 + $0x38] ss:$20 sps:$4 sm:$0xff]  }
  0x10   :  { %649 = vmatpush3.bf16.msra.mxu0 %v730_v14  ;;  %v764_v43 = vld [vmem:[%s942_s0 + $0x10] ss:$20 sps:$4 sm:$0xff]  }
  0x11   :  { %677 = vmatpush3.bf16.msra.mxu1 %v731_v15  ;;  %650 = vmatprep.subr.bf16.mxu0 %v732_v16 }
  0x12   :  { %678 = vmatprep.subr.bf16.mxu1 %v733_v17 }
  0x14   :  { %651 = vmatpush3.bf16.msra.mxu0 %v734_v18 }
  0x15   :  { %679 = vmatpush3.bf16.msra.mxu1 %v735_v19  ;;  %652 = vmatprep.subr.bf16.mxu0 %v736_v20 }
  0x16   :  { %680 = vmatprep.subr.bf16.mxu1 %v737_v21 }
  0x18   :  { %653 = vmatpush3.bf16.msra.mxu0 %v738_v22 }
  0x19   :  { %681 = vmatpush3.bf16.msra.mxu1 %v739_v23  ;;  %654 = vmatprep.subr.bf16.mxu0 %v740_v24 }
  0x1a   :  { %682 = vmatprep.subr.bf16.mxu1 %v741_v25 }
  0x1c   :  { %655 = vmatpush3.bf16.msra.mxu0 %v742_v26 }
  0x1d   :  { %683 = vmatpush3.bf16.msra.mxu1 %v743_v27  ;;  %656 = vmatprep.subr.bf16.mxu0 %v744_v28 }
  0x1e   :  { %684 = vmatprep.subr.bf16.mxu1 %v745_v29 }
  0x20   :  { %657 = vmatpush3.bf16.msra.mxu0 %v746_v30 }
  0x21   :  { %685 = vmatpush3.bf16.msra.mxu1 %v747_v31  ;;  %704 = vmatprep.subr.bf16.mxu0 %v754_v36 }
  0x23   :  { %405 = vmatmul.mubr.bf16.vlgmr.msra.gmra.mrb[0].mxu0 %v748_v32 }
  0x24   :  { %454 = vmatmul.mubr.bf16.vlgmr.msra.gmra.mrb[0].mxu1 %v751_v34  ;;  %705 = vmatpush3.bf16.msra.mxu0 %v754_v36 }
  0x25   :  { %706 = vmatprep.subr.bf16.mxu0 %v755_v37  ;;  %412 = vmatprep.mubr.bf16.mxu0 %v756_v38 }
  0x26   :  { %461 = vmatprep.mubr.bf16.mxu1 %v758_v39 }
  0x28   :  { %707 = vmatpush3.bf16.msra.mxu0 %v755_v37 }
  0x29   :  { %708 = vmatprep.subr.bf16.mxu0 %v762_v41 }
  0x2b   :  { %413 = vmatmul.mubr.bf16.gmra.mrb[4].mxu0 %v760_v40 }
  0x2c   :  { %462 = vmatmul.mubr.bf16.gmra.mrb[4].mxu1 %v761_v42  ;;  %712 = vmatprep.mubr.msk.bf16.mxu0 %vm365_vm0, %v764_v43 }
  0x2d   :  { %709 = vmatpush3.bf16.msra.mxu0 %v762_v41 }
  0x2e   :  { %710 = vmatprep.subr.bf16.mxu0 %v763_v44 }
  0x31   :  { %711 = vmatpush3.bf16.msra.mxu0 %v763_v44 }
  0x34   :  { %713 = vmatmul.mubr.msk.bf16.vlgmr.msra.gmra.mrb[8].mxu0 %vm365_vm0, %v765_v45 }
  0xf6   :  { %v658_v46 = vpop.f32.mrb[0].mxu0 }
  0xf7   :  { %v686_v47 = vpop.f32.mrb[0].mxu1  ;;  %v659_v48 = vpop.f32.mrb[1].mxu0 }
  0xf8   :  { %v660_v49 = vadd.f32 %v659_v48, %v658_v46  ;;  %v687_v50 = vpop.f32.mrb[1].mxu1  ;;  %v661_v51 = vpop.f32.mrb[2].mxu0 }
  0xf9   :  { %v688_v52 = vadd.f32 %v687_v50, %v686_v47  ;;  %v689_v53 = vpop.f32.mrb[2].mxu1  ;;  %v662_v54 = vpop.f32.mrb[3].mxu0 }
  0xfa   :  { %v663_v55 = vadd.f32 %v662_v54, %v661_v51  ;;  %v690_v56 = vpop.f32.mrb[3].mxu1 }
  0xfb   :  { %v691_v57 = vadd.f32 %v690_v56, %v689_v53  ;;  %v456_v58 = vadd.f32 %v688_v52, %v660_v49 }
  0xfd   :  { %v459_v59 = vadd.f32 %v691_v57, %v663_v55 }
  0xfe   :  { %v664_v60 = vpop.f32.mrb[4].mxu0 }
  0xff   :  { %v692_v61 = vpop.f32.mrb[4].mxu1  ;;  %v665_v62 = vpop.f32.mrb[5].mxu0 }
 0x100   :  { %v666_v63 = vadd.f32 %v665_v62, %v664_v60  ;;  %v693_v0 = vpop.f32.mrb[5].mxu1  ;;  %v667_v1 = vpop.f32.mrb[6].mxu0 }
 0x101   :  { %v694_v2 = vadd.f32 %v693_v0, %v692_v61  ;;  %v695_v3 = vpop.f32.mrb[6].mxu1  ;;  %v668_v4 = vpop.f32.mrb[7].mxu0 }
 0x102   :  { %v669_v5 = vadd.f32 %v668_v4, %v667_v1  ;;  %v696_v6 = vpop.f32.mrb[7].mxu1 }
 0x103   :  { %v697_v7 = vadd.f32 %v696_v6, %v695_v3  ;;  %v464_v8 = vadd.f32 %v694_v2, %v666_v63 }
 0x105   :  { %v467_v9 = vadd.f32 %v697_v7, %v669_v5 }
 0x107   :  { %v714_v10 = vpop.f32.mrb[8].mxu0 }
 0x108   :  { %v513_v11 = vadd.f32 %v714_v10, %v464_v8  ;;  %v504_v12 = vpop.f32.mrb[9].mxu0 }
 0x109   :  { %v505_v13 = vadd.f32 %v504_v12, %v456_v58  ;;  %v715_v14 = vpop.f32.mrb[10].mxu0 }
 0x10a   :  { %v516_v15 = vadd.f32 %v715_v14, %v467_v9  ;;  %v507_v16 = vpop.f32.mrb[11].mxu0  ;;  %v551_v23 = vmul.f32 %v513_v11, %v513_v11 }
 0x10b   :  { %v508_v17 = vadd.f32 %v507_v16, %v459_v59  ;;  %v549_v19 = vmul.f32 %v505_v13, %v505_v13 }
 0x10c   :  { %v639_v18 = vpack.c.bf16 %v516_v15, %v513_v11  ;;  %v552_v26 = vmul.f32 %v516_v15, %v516_v15 }
 0x10d   :  { %v634_v20 = vpack.c.bf16 %v508_v17, %v505_v13  ;;  %v539_v21 = vadd.f32 %v508_v17, %v505_v13  ;;  %v550_v22 = vmul.f32 %v508_v17, %v508_v17 }
 0x10e   :  { %641 = vst [vmem:[%s943_s2 + $0x8] sm:$0xff] %v639_v18  }
 0x10f   :  { %635 = vst [vmem:[%s943_s2] sm:$0xff] %v634_v20   ;;  %v540_v24 = vadd.f32 %v539_v21, %v513_v11  ;;  %v553_v25 = vadd.f32 %v550_v22, %v549_v19 }
 0x111   :  { %v541_v27 = vadd.f32 %v540_v24, %v516_v15  ;;  %v554_v28 = vadd.f32 %v553_v25, %v551_v23 }
 0x113   :  { %v542_v29 = vrot.slane %v541_v27, 4  ;;  %v555_v30 = vadd.f32 %v554_v28, %v552_v26 }
 0x115   :  { %v543_v31 = vadd.f32 %v542_v29, %v541_v27  ;;  %v556_v32 = vrot.slane %v555_v30, 4 }
 0x117   :  { %v544_v33 = vrot.slane %v543_v31, 2  ;;  %v557_v34 = vadd.f32 %v556_v32, %v555_v30 }
 0x119   :  { %v545_v35 = vadd.f32 %v544_v33, %v543_v31  ;;  %v558_v36 = vrot.slane %v557_v34, 2 }
 0x11b   :  { %v546_v37 = vrot.slane %v545_v35, 1  ;;  %v559_v38 = vadd.f32 %v558_v36, %v557_v34 }
 0x11d   :  { %v547_v39 = vadd.f32 %v546_v37, %v545_v35  ;;  %v560_v40 = vrot.slane %v559_v38, 1 }
 0x11f   :  { %548 = vst [vmem:[%s944_s3] sm:$0x1] %v547_v39  ;;  %v561_v41 = vadd.f32 %v560_v40, %v559_v38 }
 0x121   :  { %562 = vst [vmem:[%s945_s4] sm:$0x1] %v561_v41 }

// kernel: netG_forward.17
= control target key start
LH: loop header
LB: loop body
LE: loop exit
PB: predicated region body
PF: predicated region fallthrough
CT: control target
= control target key end

     0   :  { %vm311_vm0 = vcmask 261120   ;;  %vm594_vm1 = vcmask 519168   ;;  %vm611_vm2 = vcmask 523264   ;;  %vm649_vm3 = vcmask 516096   ;;  %s1232_s1 = inlined_call_operand.vmem [shape: bf16[288,64], index: 1, kind: input, shape index: {}]   ;;  %s1233_s0 = inlined_call_operand.vmem [shape: bf16[128,288], index: 0, kind: input, shape index: {}]   ;;  %s1234_s2 = inlined_call_operand.vmem [shape: bf16[128,64], index: 2, kind: output, shape index: {0}]   ;;  %s1235_s3 = inlined_call_operand.vmem [shape: f32[1,1,64], index: 3, kind: output, shape index: {1}]   ;;  %s1236_s4 = inlined_call_operand.vmem [shape: f32[1,1,64], index: 4, kind: output, shape index: {2}]  }
   0x1   :  { %v909_v0 = vld [vmem:[%s1232_s1 + $0x40] sm:$0xff]   ;;  %v911_v2 = vld [vmem:[%s1232_s1 + $0x48] sm:$0xff]   ;;  %v913_v4 = vld [vmem:[%s1232_s1 + $0x50] sm:$0xff]  }
   0x2   :  { %v910_v1 = vld [vmem:[%s1232_s1] sm:$0xff]   ;;  %799 = vmatprep.subr.bf16.mxu0 %v909_v0  ;;  %893 = vmatprep.subr.bf16.mxu1 %v909_v0  ;;  %v912_v3 = vld [vmem:[%s1232_s1 + $0x8] sm:$0xff]   ;;  %v914_v5 = vld [vmem:[%s1232_s1 + $0x10] sm:$0xff]  }
   0x3   :  { %800 = vmatpush3.bf16.msra.mxu0 %v910_v1  ;;  %901 = vmatpush3.bf16.msra.mxu1 %v910_v1  ;;  %v915_v6 = vld [vmem:[%s1232_s1 + $0x58] sm:$0xff]   ;;  %v917_v8 = vld [vmem:[%s1232_s1 + $0x60] sm:$0xff]   ;;  %v919_v10 = vld [vmem:[%s1232_s1 + $0x68] sm:$0xff]  }
   0x4   :  { %801 = vmatprep.subr.bf16.mxu0 %v911_v2  ;;  %894 = vmatprep.subr.bf16.mxu1 %v911_v2  ;;  %v916_v7 = vld [vmem:[%s1232_s1 + $0x18] sm:$0xff]   ;;  %v918_v9 = vld [vmem:[%s1232_s1 + $0x20] sm:$0xff]   ;;  %v920_v13 = vld [vmem:[%s1232_s1 + $0x28] sm:$0xff]  }
   0x5   :  { %v927_v11 = vld [vmem:[%s1233_s0 + $0x4] ss:$12 sps:$4 sm:$0xff]   ;;  %v930_v12 = vld [vmem:[%s1233_s0 + $0x94] ss:$12 sps:$4 sm:$0xff]   ;;  %v923_v16 = vld [vmem:[%s1232_s1 + $0x78] sm:$0xff]  }
   0x6   :  { %v921_v14 = vld [vmem:[%s1232_s1 + $0x70] sm:$0xff]   ;;  %368 = vmatprep.mubr.bf16.mxu0 %v927_v11  ;;  %416 = vmatprep.mubr.bf16.mxu1 %v930_v12  ;;  %v924_v17 = vld [vmem:[%s1232_s1 + $0x38] sm:$0xff]   ;;  %v925_v18 = vld [vmem:[%s1233_s0] ss:$12 sps:$4 sm:$0xff]  }
   0x7   :  { %802 = vmatpush3.bf16.msra.mxu0 %v912_v3  ;;  %902 = vmatpush3.bf16.msra.mxu1 %v912_v3  ;;  %v922_v15 = vld [vmem:[%s1232_s1 + $0x30] sm:$0xff]   ;;  %v931_v19 = vld [vmem:[%s1232_s1 + $0x80] sm:$0xff]   ;;  %v932_v21 = vld [vmem:[%s1233_s0 + $0x1c] ss:$12 sps:$4 sm:$0xff]  }
   0x8   :  { %803 = vmatprep.subr.bf16.mxu0 %v913_v4  ;;  %895 = vmatprep.subr.bf16.mxu1 %v913_v4  ;;  %v928_v20 = vld [vmem:[%s1233_s0 + $0x90] ss:$12 sps:$4 sm:$0xff]   ;;  %v934_v22 = vld [vmem:[%s1233_s0 + $0xac] ss:$12 sps:$4 sm:$0xff]   ;;  %v937_v25 = vld [vmem:[%s1233_s0 + $0xa8] ss:$12 sps:$4 sm:$0xff]  }
   0x9   :  { %v938_v23 = vld [vmem:[%s1232_s1 + $0x88] sm:$0xff]   ;;  %v936_v24 = vld [vmem:[%s1233_s0 + $0x18] ss:$12 sps:$4 sm:$0xff]   ;;  %v939_v26 = vld [vmem:[%s1233_s0 + $0x34] ss:$12 sps:$4 sm:$0xff]  }
   0xa   :  { %v941_v27 = vld [vmem:[%s1233_s0 + $0x8] ss:$12 sps:$4 sm:$0xff]   ;;  %v942_v28 = vld [vmem:[%s1233_s0 + $0x30] ss:$12 sps:$4 sm:$0xff]   ;;  %v943_v29 = vld [vmem:[%s1233_s0 + $0x20] ss:$12 sps:$4 sm:$0xff]  }
   0xb   :  { %804 = vmatpush3.bf16.msra.mxu0 %v914_v5  ;;  %903 = vmatpush3.bf16.msra.mxu1 %v914_v5  ;;  %v944_v30 = vld [vmem:[%s1233_s0 + $0x4c] ss:$12 sps:$4 sm:$0xff]   ;;  %v947_v32 = vld [vmem:[%s1233_s0 + $0x48] ss:$12 sps:$4 sm:$0xff]   ;;  %v948_v33 = vld [vmem:[%s1233_s0 + $0x50] ss:$12 sps:$4 sm:$0xff]  }
   0xc   :  { %805 = vmatprep.subr.bf16.mxu0 %v915_v6  ;;  %896 = vmatprep.subr.bf16.mxu1 %v915_v6  ;;  %v946_v31 = vld [vmem:[%s1233_s0 + $0x38] ss:$12 sps:$4 sm:$0xff]   ;;  %v951_v35 = vld [vmem:[%s1233_s0 + $0x68] ss:$12 sps:$4 sm:$0xff]   ;;  %v952_v36 = vld [vmem:[%s1233_s0 + $0x60] ss:$12 sps:$4 sm:$0xff]  }
   0xd   :  { %v949_v34 = vld [vmem:[%s1233_s0 + $0x64] ss:$12 sps:$4 sm:$0xff]   ;;  %v953_v37 = vld [vmem:[%s1233_s0 + $0x80] ss:$12 sps:$4 sm:$0xff]   ;;  %v954_v38 = vld [vmem:[%s1233_s0 + $0x7c] ss:$12 sps:$4 sm:$0xff]  }
   0xe   :  { %v956_v39 = vld [vmem:[%s1233_s0 + $0x98] ss:$12 sps:$4 sm:$0xff]   ;;  %v958_v41 = vld [vmem:[%s1233_s0 + $0xb0] ss:$12 sps:$4 sm:$0xff]  }
   0xf   :  { %806 = vmatpush3.bf16.msra.mxu0 %v916_v7  ;;  %904 = vmatpush3.bf16.msra.mxu1 %v916_v7  ;;  %v957_v40 = vld [vmem:[%s1233_s0 + $0x78] ss:$12 sps:$4 sm:$0xff]  }
  0x10   :  { %807 = vmatprep.subr.bf16.mxu0 %v917_v8  ;;  %897 = vmatprep.subr.bf16.mxu1 %v917_v8 }
  0x13   :  { %808 = vmatpush3.bf16.msra.mxu0 %v918_v9  ;;  %905 = vmatpush3.bf16.msra.mxu1 %v918_v9 }
  0x14   :  { %809 = vmatprep.subr.bf16.mxu0 %v919_v10  ;;  %898 = vmatprep.subr.bf16.mxu1 %v919_v10 }
  0x17   :  { %810 = vmatpush3.bf16.msra.mxu0 %v920_v13  ;;  %906 = vmatpush3.bf16.msra.mxu1 %v920_v13 }
  0x18   :  { %811 = vmatprep.subr.bf16.mxu0 %v921_v14  ;;  %899 = vmatprep.subr.bf16.mxu1 %v921_v14 }
  0x1b   :  { %812 = vmatpush3.bf16.msra.mxu0 %v922_v15  ;;  %907 = vmatpush3.bf16.msra.mxu1 %v922_v15 }
  0x1c   :  { %813 = vmatprep.subr.bf16.mxu0 %v923_v16  ;;  %900 = vmatprep.subr.bf16.mxu1 %v923_v16 }
  0x1f   :  { %814 = vmatpush3.bf16.msra.mxu0 %v924_v17  ;;  %908 = vmatpush3.bf16.msra.mxu1 %v924_v17 }
  0x20   :  { %873 = vmatprep.subr.bf16.mxu1 %v931_v19 }
  0x22   :  { %369 = vmatmul.mubr.bf16.vlgmr.msra.gmra.mrb[0].mxu0 %v925_v18  ;;  %417 = vmatmul.mubr.bf16.vlgmr.msra.gmra.mrb[0].mxu1 %v928_v20 }
  0x23   :  { %874 = vmatpush3.bf16.msra.mxu1 %v931_v19  ;;  %376 = vmatprep.mubr.bf16.mxu0 %v932_v21 }
  0x24   :  { %424 = vmatprep.mubr.bf16.mxu1 %v934_v22  ;;  %875 = vmatprep.subr.bf16.mxu1 %v938_v23 }
  0x27   :  { %876 = vmatpush3.bf16.msra.mxu1 %v938_v23 }
  0x2a   :  { %377 = vmatmul.mubr.bf16.gmra.mrb[4].mxu0 %v936_v24  ;;  %425 = vmatmul.mubr.bf16.gmra.mrb[4].mxu1 %v937_v25 }
  0x2b   :  { %384 = vmatprep.mubr.bf16.mxu0 %v939_v26  ;;  %877 = vmatprep.mubr.msk.bf16.mxu1 %vm311_vm0, %v941_v27 }
  0x32   :  { %385 = vmatmul.mubr.bf16.gmra.mrb[8].mxu0 %v942_v28  ;;  %878 = vmatmul.mubr.msk.bf16.vlgmr.msra.gmra.mrb[8].mxu1 %vm311_vm0, %v943_v29 }
  0x33   :  { %392 = vmatprep.mubr.bf16.mxu0 %v944_v30  ;;  %881 = vmatprep.mubr.msk.bf16.mxu1 %vm311_vm0, %v946_v31 }
  0x3a   :  { %393 = vmatmul.mubr.bf16.gmra.mrb[12].mxu0 %v947_v32  ;;  %882 = vmatmul.mubr.msk.bf16.gmra.mrb[12].mxu1 %vm311_vm0, %v948_v33 }
  0x3b   :  { %400 = vmatprep.mubr.bf16.mxu0 %v949_v34  ;;  %885 = vmatprep.mubr.msk.bf16.mxu1 %vm311_vm0, %v951_v35 }
  0x42   :  { %401 = vmatmul.mubr.bf16.gmra.mrb[16].mxu0 %v952_v36  ;;  %886 = vmatmul.mubr.msk.bf16.gmra.mrb[16].mxu1 %vm311_vm0, %v953_v37 }
  0x43   :  { %408 = vmatprep.mubr.bf16.mxu0 %v954_v38  ;;  %889 = vmatprep.mubr.msk.bf16.mxu1 %vm311_vm0, %v956_v39 }
  0x4a   :  { %409 = vmatmul.mubr.bf16.gmra.mrb[20].mxu0 %v957_v40  ;;  %890 = vmatmul.mubr.msk.bf16.gmra.mrb[20].mxu1 %vm311_vm0, %v958_v41 }
  0xf5   :  { %v815_v42 = vpop.f32.mrb[0].mxu0  ;;  %v851_v43 = vpop.f32.mrb[0].mxu1 }
  0xf6   :  { %v816_v44 = vpop.f32.mrb[1].mxu0  ;;  %v852_v45 = vpop.f32.mrb[1].mxu1 }
  0xf7   :  { %v817_v46 = vadd.f32 %v816_v44, %v815_v42  ;;  %v818_v47 = vpop.f32.mrb[2].mxu0  ;;  %v1118_v48 = vadd.f32 %v852_v45, %v851_v43  ;;  %v854_v49 = vpop.f32.mrb[2].mxu1 }
  0xf8   :  { %v819_v50 = vpop.f32.mrb[3].mxu0  ;;  %v855_v51 = vpop.f32.mrb[3].mxu1 }
  0xf9   :  { %v820_v52 = vadd.f32 %v819_v50, %v818_v47  ;;  %v1120_v53 = vadd.f32 %v855_v51, %v854_v49 }
  0xfd   :  { %v821_v54 = vpop.f32.mrb[4].mxu0  ;;  %v857_v55 = vpop.f32.mrb[4].mxu1 }
  0xfe   :  { %v822_v56 = vpop.f32.mrb[5].mxu0  ;;  %v858_v57 = vpop.f32.mrb[5].mxu1 }
  0xff   :  { %v823_v58 = vadd.f32 %v822_v56, %v821_v54  ;;  %v824_v59 = vpop.f32.mrb[6].mxu0  ;;  %v1122_v60 = vadd.f32 %v858_v57, %v857_v55  ;;  %v860_v61 = vpop.f32.mrb[6].mxu1 }
 0x100   :  { %v825_v62 = vpop.f32.mrb[7].mxu0  ;;  %v861_v63 = vpop.f32.mrb[7].mxu1 }
 0x101   :  { %v826_v0 = vadd.f32 %v825_v62, %v824_v59  ;;  %v1124_v1 = vadd.f32 %v861_v63, %v860_v61 }
 0x105   :  { %v827_v2 = vpop.f32.mrb[8].mxu0  ;;  %v879_v3 = vpop.f32.mrb[8].mxu1 }
 0x106   :  { %v476_v4 = vadd.f32 %v879_v3, %v823_v58  ;;  %v828_v5 = vpop.f32.mrb[9].mxu0  ;;  %v467_v6 = vpop.f32.mrb[9].mxu1 }
 0x107   :  { %v829_v7 = vadd.f32 %v828_v5, %v827_v2  ;;  %v468_v8 = vadd.f32 %v817_v46, %v467_v6  ;;  %v830_v9 = vpop.f32.mrb[10].mxu0  ;;  %v880_v10 = vpop.f32.mrb[10].mxu1 }
 0x108   :  { %v785_v11 = vpack.c.bf16 %v476_v4, %v476_v4  ;;  %v479_v12 = vadd.f32 %v880_v10, %v826_v0  ;;  %v831_v13 = vpop.f32.mrb[11].mxu0  ;;  %v470_v14 = vpop.f32.mrb[11].mxu1  ;;  %v653_v20 = vmul.f32 %v476_v4, %v476_v4  ;;  %v615_v27 = vsel %vm611_vm2, %v476_v4, 0.0 }
 0x109   :  { %v783_v15 = vpack.c.bf16 %v468_v8, %v468_v8  ;;  %v832_v16 = vadd.f32 %v831_v13, %v830_v9  ;;  %v651_v18 = vmul.f32 %v468_v8, %v468_v8  ;;  %v471_v19 = vadd.f32 %v820_v52, %v470_v14 }
 0x10a   :  { %597 = vst.msk [vmem:[%s1234_s2 + $0x8] sm:$0xf] %vm594_vm1, %v785_v11  ;;  %v786_v17 = vpack.c.bf16 %v479_v12, %v479_v12  ;;  %v612_v21 = vsel %vm611_vm2, %v468_v8, 0.0  ;;  %v654_v28 = vmul.f32 %v479_v12, %v479_v12  ;;  %v670_v38 = vsel %vm611_vm2, %v653_v20, 0.0 }
 0x10b   :  { %595 = vst.msk [vmem:[%s1234_s2] sm:$0xf] %vm594_vm1, %v783_v15  ;;  %v784_v22 = vpack.c.bf16 %v471_v19, %v471_v19  ;;  %v613_v23 = vsel %vm611_vm2, %v471_v19, 0.0  ;;  %v652_v24 = vmul.f32 %v471_v19, %v471_v19  ;;  %v667_v32 = vsel %vm611_vm2, %v651_v18, 0.0 }
 0x10c   :  { %598 = vst.msk [vmem:[%s1234_s2 + $0xc] sm:$0xf] %vm594_vm1, %v786_v17  ;;  %v614_v29 = vadd.f32 %v613_v23, %v612_v21  ;;  %v617_v39 = vsel %vm611_vm2, %v479_v12, 0.0  ;;  %v672_v54 = vsel %vm611_vm2, %v654_v28, 0.0 }
 0x10d   :  { %v833_v25 = vpop.f32.mrb[12].mxu0  ;;  %v883_v26 = vpop.f32.mrb[12].mxu1  ;;  %596 = vst.msk [vmem:[%s1234_s2 + $0x4] sm:$0xf] %vm594_vm1, %v784_v22  ;;  %v668_v33 = vsel %vm611_vm2, %v652_v24, 0.0 }
 0x10e   :  { %v834_v30 = vpop.f32.mrb[13].mxu0  ;;  %v483_v31 = vpop.f32.mrb[13].mxu1  ;;  %v616_v40 = vadd.f32 %v615_v27, %v614_v29  ;;  %v669_v41 = vadd.f32 %v668_v33, %v667_v32 }
 0x10f   :  { %v835_v34 = vadd.f32 %v834_v30, %v833_v25  ;;  %v484_v35 = vadd.f32 %v829_v7, %v483_v31  ;;  %v836_v36 = vpop.f32.mrb[14].mxu0  ;;  %v884_v37 = vpop.f32.mrb[14].mxu1 }
 0x110   :  { %v837_v42 = vpop.f32.mrb[15].mxu0  ;;  %v486_v43 = vpop.f32.mrb[15].mxu1  ;;  %v671_v49 = vadd.f32 %v670_v38, %v669_v41  ;;  %v618_v50 = vadd.f32 %v617_v39, %v616_v40 }
 0x111   :  { %v492_v44 = vadd.f32 %v883_v26, %v835_v34  ;;  %v787_v45 = vpack.c.bf16 %v484_v35, %v484_v35  ;;  %v619_v46 = vsel %vm611_vm2, %v484_v35, 0.0  ;;  %v655_v47 = vmul.f32 %v484_v35, %v484_v35 }
 0x112   :  { %v838_v51 = vadd.f32 %v837_v42, %v836_v36  ;;  %v487_v52 = vadd.f32 %v832_v16, %v486_v43  ;;  %v620_v57 = vadd.f32 %v619_v46, %v618_v50  ;;  %v673_v58 = vadd.f32 %v672_v54, %v671_v49 }
 0x113   :  { %v789_v55 = vpack.c.bf16 %v492_v44, %v492_v44  ;;  %599 = vst.msk [vmem:[%s1234_s2 + $0x10] sm:$0xf] %vm594_vm1, %v787_v45  ;;  %v674_v56 = vsel %vm611_vm2, %v655_v47, 0.0  ;;  %v657_v62 = vmul.f32 %v492_v44, %v492_v44  ;;  %v623_v14 = vsel %vm611_vm2, %v492_v44, 0.0 }
 0x114   :  { %v495_v59 = vadd.f32 %v884_v37, %v838_v51  ;;  %v788_v61 = vpack.c.bf16 %v487_v52, %v487_v52  ;;  %v621_v63 = vsel %vm611_vm2, %v487_v52, 0.0  ;;  %v656_v0 = vmul.f32 %v487_v52, %v487_v52 }
 0x115   :  { %601 = vst.msk [vmem:[%s1234_s2 + $0x18] sm:$0xf] %vm594_vm1, %v789_v55  ;;  %v839_v2 = vpop.f32.mrb[16].mxu0  ;;  %v887_v3 = vpop.f32.mrb[16].mxu1  ;;  %v675_v4 = vadd.f32 %v674_v56, %v673_v58  ;;  %v622_v9 = vadd.f32 %v621_v63, %v620_v57  ;;  %v678_v18 = vsel %vm611_vm2, %v657_v62, 0.0 }
 0x116   :  { %v790_v5 = vpack.c.bf16 %v495_v59, %v495_v59  ;;  %v658_v6 = vmul.f32 %v495_v59, %v495_v59  ;;  %600 = vst.msk [vmem:[%s1234_s2 + $0x14] sm:$0xf] %vm594_vm1, %v788_v61  ;;  %v840_v7 = vpop.f32.mrb[17].mxu0  ;;  %v499_v8 = vpop.f32.mrb[17].mxu1  ;;  %v676_v10 = vsel %vm611_vm2, %v656_v0, 0.0  ;;  %v625_v22 = vsel %vm611_vm2, %v495_v59, 0.0 }
 0x117   :  { %v841_v11 = vadd.f32 %v840_v7, %v839_v2  ;;  %v842_v12 = vpop.f32.mrb[18].mxu0  ;;  %v888_v13 = vpop.f32.mrb[18].mxu1  ;;  %v677_v15 = vadd.f32 %v676_v10, %v675_v4  ;;  %v624_v19 = vadd.f32 %v623_v14, %v622_v9 }
 0x118   :  { %602 = vst.msk [vmem:[%s1234_s2 + $0x1c] sm:$0xf] %vm594_vm1, %v790_v5  ;;  %v843_v16 = vpop.f32.mrb[19].mxu0  ;;  %v502_v17 = vpop.f32.mrb[19].mxu1  ;;  %v680_v23 = vsel %vm611_vm2, %v658_v6, 0.0 }
 0x119   :  { %v844_v20 = vadd.f32 %v843_v16, %v842_v12  ;;  %v500_v21 = vadd.f32 %v841_v11, %v499_v8  ;;  %v679_v24 = vadd.f32 %v678_v18, %v677_v15  ;;  %v626_v26 = vadd.f32 %v625_v22, %v624_v19 }
 0x11b   :  { %v791_v25 = vpack.c.bf16 %v500_v21, %v500_v21  ;;  %v627_v27 = vsel %vm611_vm2, %v500_v21, 0.0  ;;  %v659_v28 = vmul.f32 %v500_v21, %v500_v21  ;;  %v681_v29 = vadd.f32 %v680_v23, %v679_v24 }
 0x11c   :  { %v503_v30 = vadd.f32 %v844_v20, %v502_v17  ;;  %v628_v31 = vadd.f32 %v627_v27, %v626_v26 }
 0x11d   :  { %603 = vst.msk [vmem:[%s1234_s2 + $0x20] sm:$0xf] %vm594_vm1, %v791_v25  ;;  %v682_v32 = vsel %vm611_vm2, %v659_v28, 0.0  ;;  %v845_v33 = vpop.f32.mrb[20].mxu0  ;;  %v891_v34 = vpop.f32.mrb[20].mxu1 }
 0x11e   :  { %v683_v35 = vadd.f32 %v682_v32, %v681_v29  ;;  %v792_v36 = vpack.c.bf16 %v503_v30, %v503_v30  ;;  %v629_v37 = vsel %vm611_vm2, %v503_v30, 0.0  ;;  %v660_v38 = vmul.f32 %v503_v30, %v503_v30  ;;  %v846_v39 = vpop.f32.mrb[21].mxu0  ;;  %v515_v40 = vpop.f32.mrb[21].mxu1 }
 0x11f   :  { %v630_v41 = vadd.f32 %v629_v37, %v628_v31  ;;  %v524_v42 = vadd.f32 %v891_v34, %v1122_v60  ;;  %v847_v43 = vadd.f32 %v846_v39, %v845_v33  ;;  %v516_v44 = vadd.f32 %v1118_v48, %v515_v40  ;;  %v848_v45 = vpop.f32.mrb[22].mxu0  ;;  %v892_v46 = vpop.f32.mrb[22].mxu1 }
 0x120   :  { %604 = vst.msk [vmem:[%s1234_s2 + $0x24] sm:$0xf] %vm594_vm1, %v792_v36  ;;  %v684_v47 = vsel %vm611_vm2, %v660_v38, 0.0  ;;  %v527_v49 = vadd.f32 %v892_v46, %v1124_v1  ;;  %v849_v50 = vpop.f32.mrb[23].mxu0  ;;  %v518_v51 = vpop.f32.mrb[23].mxu1 }
 0x121   :  { %v685_v52 = vadd.f32 %v684_v47, %v683_v35  ;;  %v797_v54 = vpack.c.bf16 %v524_v42, %v524_v42  ;;  %v508_v55 = vadd.f32 %v887_v3, %v847_v43  ;;  %v795_v60 = vpack.c.bf16 %v516_v44, %v516_v44 }
 0x122   :  { %v798_v48 = vpack.c.bf16 %v527_v49, %v527_v49  ;;  %v850_v59 = vadd.f32 %v849_v50, %v848_v45  ;;  %v519_v61 = vadd.f32 %v1120_v53, %v518_v51  ;;  %v663_v3 = vmul.f32 %v516_v44, %v516_v44 }
 0x123   :  { %609 = vst.msk [vmem:[%s1234_s2 + $0x38] sm:$0xf] %vm594_vm1, %v797_v54  ;;  %v793_v56 = vpack.c.bf16 %v508_v55, %v508_v55  ;;  %v631_v57 = vsel %vm611_vm2, %v508_v55, 0.0  ;;  %v661_v58 = vmul.f32 %v508_v55, %v508_v55  ;;  %607 = vst.msk [vmem:[%s1234_s2 + $0x30] sm:$0xf] %vm594_vm1, %v795_v60  ;;  %v635_v7 = vsel %vm611_vm2, %v516_v44, 0.0 }
 0x124   :  { %v632_v1 = vadd.f32 %v631_v57, %v630_v41  ;;  %610 = vst.msk [vmem:[%s1234_s2 + $0x3c] sm:$0xf] %vm594_vm1, %v798_v48  ;;  %v511_v0 = vadd.f32 %v888_v13, %v850_v59  ;;  %v796_v2 = vpack.c.bf16 %v519_v61, %v519_v61  ;;  %v664_v9 = vmul.f32 %v519_v61, %v519_v61 }
 0x125   :  { %605 = vst.msk [vmem:[%s1234_s2 + $0x28] sm:$0xf] %vm594_vm1, %v793_v56  ;;  %v686_v62 = vsel %vm611_vm2, %v661_v58, 0.0  ;;  %v665_v12 = vmul.f32 %v524_v42, %v524_v42  ;;  %v690_v13 = vsel %vm611_vm2, %v663_v3, 0.0  ;;  %v637_v14 = vsel %vm611_vm2, %v519_v61, 0.0 }
 0x126   :  { %v687_v63 = vadd.f32 %v686_v62, %v685_v52  ;;  %v794_v4 = vpack.c.bf16 %v511_v0, %v511_v0  ;;  %v633_v5 = vsel %vm611_vm2, %v511_v0, 0.0  ;;  %v662_v6 = vmul.f32 %v511_v0, %v511_v0  ;;  %608 = vst.msk [vmem:[%s1234_s2 + $0x34] sm:$0xf] %vm594_vm1, %v796_v2 }
 0x127   :  { %v634_v53 = vadd.f32 %v633_v5, %v632_v1  ;;  %v639_v17 = vsel %vm611_vm2, %v524_v42, 0.0  ;;  %v666_v18 = vmul.f32 %v527_v49, %v527_v49  ;;  %v692_v19 = vsel %vm611_vm2, %v664_v9, 0.0 }
 0x128   :  { %606 = vst.msk [vmem:[%s1234_s2 + $0x2c] sm:$0xf] %vm594_vm1, %v794_v4  ;;  %v688_v8 = vsel %vm611_vm2, %v662_v6, 0.0  ;;  %v694_v22 = vsel %vm611_vm2, %v665_v12, 0.0  ;;  %v641_v23 = vsel %vm611_vm2, %v527_v49, 0.0 }
 0x129   :  { %v689_v10 = vadd.f32 %v688_v8, %v687_v63  ;;  %v636_v11 = vadd.f32 %v635_v7, %v634_v53  ;;  %v696_v26 = vsel %vm611_vm2, %v666_v18, 0.0 }
 0x12b   :  { %v638_v15 = vadd.f32 %v637_v14, %v636_v11  ;;  %v691_v16 = vadd.f32 %v690_v13, %v689_v10 }
 0x12d   :  { %v640_v20 = vadd.f32 %v639_v17, %v638_v15  ;;  %v693_v21 = vadd.f32 %v692_v19, %v691_v16 }
 0x12f   :  { %v642_v24 = vadd.f32 %v641_v23, %v640_v20  ;;  %v695_v25 = vadd.f32 %v694_v22, %v693_v21 }
 0x131   :  { %v643_v27 = vrot.slane %v642_v24, 4  ;;  %v697_v28 = vadd.f32 %v696_v26, %v695_v25 }
 0x133   :  { %v644_v29 = vadd.f32 %v643_v27, %v642_v24  ;;  %v698_v30 = vrot.slane %v697_v28, 4 }
 0x135   :  { %v645_v31 = vrot.slane %v644_v29, 2  ;;  %v699_v32 = vadd.f32 %v698_v30, %v697_v28 }
 0x137   :  { %v646_v33 = vadd.f32 %v645_v31, %v644_v29  ;;  %v700_v34 = vrot.slane %v699_v32, 2 }
 0x139   :  { %v647_v35 = vrot.slane %v646_v33, 1  ;;  %v701_v36 = vadd.f32 %v700_v34, %v699_v32 }
 0x13b   :  { %v648_v37 = vadd.f32 %v647_v35, %v646_v33  ;;  %v702_v38 = vrot.slane %v701_v36, 1 }
 0x13d   :  { %650 = vst.msk [vmem:[%s1235_s3] sm:$0x1] %vm649_vm3, %v648_v37  ;;  %v703_v39 = vadd.f32 %v702_v38, %v701_v36 }
 0x13f   :  { %704 = vst.msk [vmem:[%s1236_s4] sm:$0x1] %vm649_vm3, %v703_v39 }

// kernel: tile.88
= control target key start
LH: loop header
LB: loop body
LE: loop exit
PB: predicated region body
PF: predicated region fallthrough
CT: control target
= control target key end

     0   :  { %s22_s0 = inlined_call_operand.vmem [shape: f32[16], index: 0, kind: input, shape index: {}]   ;;  %s23_s1 = inlined_call_operand.vmem [shape: f32[4,16], index: 1, kind: output, shape index: {}]  }
   0x1   :  { %v4_v0 = vld [vmem:[%s22_s0] ss:$0 sm:$0xff] }
   0x2   :  { %5 = vst [vmem:[%s23_s1] sm:$0xf] %v4_v0 }

// kernel: netG_forward.18
= control target key start
LH: loop header
LB: loop body
LE: loop exit
PB: predicated region body
PF: predicated region fallthrough
CT: control target
= control target key end

     0   :  { %v1849_v0 = vmov 0   ;;  %vm439_vm0 = vcmask 130048   ;;  %vm1081_vm1 = vcmask 257024   ;;  %vm1146_vm2 = vcmask 261120   ;;  %s2740_s1 = inlined_call_operand.vmem [shape: bf16[144,32], index: 1, kind: input, shape index: {}]   ;;  %s2741_s0 = inlined_call_operand.vmem [shape: bf16[512,144], index: 0, kind: input, shape index: {}]   ;;  %s2742_s2 = inlined_call_operand.vmem [shape: bf16[512,32], index: 2, kind: output, shape index: {0}]   ;;  %s2743_s3 = inlined_call_operand.vmem [shape: f32[1,1,32], index: 3, kind: output, shape index: {1}]   ;;  %s2744_s4 = inlined_call_operand.vmem [shape: f32[1,1,32], index: 4, kind: output, shape index: {2}]  }
   0x1   :  { %536 = vmatprep.subr.bf16.mxu0 %v1849_v0  ;;  %v1744_v1 = vld [vmem:[%s2740_s1] sm:$0xff]   ;;  %1725 = vmatprep.subr.bf16.mxu1 %v1849_v0  ;;  %v1745_v2 = vld [vmem:[%s2740_s1 + $0x8] sm:$0xff]   ;;  %v1746_v3 = vld [vmem:[%s2740_s1 + $0x10] sm:$0xff]   ;;  %vm1280_vm3 = vcmask 253952  }
   0x2   :  { %537 = vmatpush1.bf16.msra.mxu0 %v1744_v1  ;;  %1734 = vmatpush1.bf16.msra.mxu1 %v1744_v1  ;;  %v1747_v4 = vld [vmem:[%s2740_s1 + $0x18] sm:$0xff]   ;;  %v1755_v5 = vld [vmem:[%s2741_s0 + $0x4] ss:$8 sps:$4 sm:$0xff]   ;;  %v1750_v9 = vld [vmem:[%s2740_s1 + $0x30] sm:$0xff]  }
   0x3   :  { %538 = vmatprep.subr.bf16.mxu0 %v1849_v0  ;;  %1726 = vmatprep.subr.bf16.mxu1 %v1849_v0  ;;  %v1748_v6 = vld [vmem:[%s2740_s1 + $0x20] sm:$0xff]   ;;  %v1749_v7 = vld [vmem:[%s2740_s1 + $0x28] sm:$0xff]   ;;  %v1751_v10 = vld [vmem:[%s2740_s1 + $0x38] sm:$0xff]  }
   0x4   :  { %1565 = vmatprep.mubr.msk.bf16.mxu0 %vm439_vm0, %v1755_v5  ;;  %v1779_v8 = vld [vmem:[%s2741_s0 + $0x104] ss:$8 sps:$4 sm:$0xff]   ;;  %v1753_v12 = vld [vmem:[%s2741_s0] ss:$8 sps:$4 sm:$0xff]   ;;  %v1756_v13 = vld [vmem:[%s2741_s0 + $0x14] ss:$8 sps:$4 sm:$0xff]  }
   0x5   :  { %1581 = vmatprep.mubr.msk.bf16.mxu1 %vm439_vm0, %v1779_v8  ;;  %v1752_v11 = vld [vmem:[%s2740_s1 + $0x40] sm:$0xff]   ;;  %v1783_v15 = vld [vmem:[%s2741_s0 + $0x114] ss:$8 sps:$4 sm:$0xff]   ;;  %v1758_v16 = vld [vmem:[%s2741_s0 + $0x10] ss:$8 sps:$4 sm:$0xff]  }
   0x6   :  { %539 = vmatpush1.bf16.msra.mxu0 %v1745_v2  ;;  %1735 = vmatpush1.bf16.msra.mxu1 %v1745_v2  ;;  %v1777_v14 = vld [vmem:[%s2741_s0 + $0x100] ss:$8 sps:$4 sm:$0xff]   ;;  %v1759_v17 = vld [vmem:[%s2741_s0 + $0x24] ss:$8 sps:$4 sm:$0xff]   ;;  %v1785_v18 = vld [vmem:[%s2741_s0 + $0x110] ss:$8 sps:$4 sm:$0xff]  }
   0x7   :  { %540 = vmatprep.subr.bf16.mxu0 %v1849_v0  ;;  %1727 = vmatprep.subr.bf16.mxu1 %v1849_v0  ;;  %v1789_v19 = vld [vmem:[%s2741_s0 + $0x124] ss:$8 sps:$4 sm:$0xff]   ;;  %v1761_v20 = vld [vmem:[%s2741_s0 + $0x20] ss:$8 sps:$4 sm:$0xff]   ;;  %v1762_v21 = vld [vmem:[%s2741_s0 + $0x34] ss:$8 sps:$4 sm:$0xff]  }
   0x8   :  { %v1791_v22 = vld [vmem:[%s2741_s0 + $0x120] ss:$8 sps:$4 sm:$0xff]   ;;  %v1795_v23 = vld [vmem:[%s2741_s0 + $0x134] ss:$8 sps:$4 sm:$0xff]   ;;  %v1764_v24 = vld [vmem:[%s2741_s0 + $0x30] ss:$8 sps:$4 sm:$0xff]  }
   0x9   :  { %v1797_v25 = vld [vmem:[%s2741_s0 + $0x130] ss:$8 sps:$4 sm:$0xff]   ;;  %v1765_v26 = vld [vmem:[%s2741_s0 + $0x44] ss:$8 sps:$4 sm:$0xff]   ;;  %v1767_v28 = vld [vmem:[%s2741_s0 + $0x40] ss:$8 sps:$4 sm:$0xff]  }
   0xa   :  { %541 = vmatpush1.bf16.msra.mxu0 %v1746_v3  ;;  %1736 = vmatpush1.bf16.msra.mxu1 %v1746_v3  ;;  %v1801_v27 = vld [vmem:[%s2741_s0 + $0x144] ss:$8 sps:$4 sm:$0xff]   ;;  %v1803_v29 = vld [vmem:[%s2741_s0 + $0x140] ss:$8 sps:$4 sm:$0xff]   ;;  %v1768_v30 = vld [vmem:[%s2741_s0 + $0x54] ss:$8 sps:$4 sm:$0xff]  }
   0xb   :  { %542 = vmatprep.subr.bf16.mxu0 %v1849_v0  ;;  %1728 = vmatprep.subr.bf16.mxu1 %v1849_v0  ;;  %v1807_v31 = vld [vmem:[%s2741_s0 + $0x154] ss:$8 sps:$4 sm:$0xff]   ;;  %v1770_v32 = vld [vmem:[%s2741_s0 + $0x50] ss:$8 sps:$4 sm:$0xff]   ;;  %v1771_v34 = vld [vmem:[%s2741_s0 + $0x64] ss:$8 sps:$4 sm:$0xff]  }
   0xc   :  { %v1809_v33 = vld [vmem:[%s2741_s0 + $0x150] ss:$8 sps:$4 sm:$0xff]   ;;  %v1813_v35 = vld [vmem:[%s2741_s0 + $0x164] ss:$8 sps:$4 sm:$0xff]   ;;  %v1773_v36 = vld [vmem:[%s2741_s0 + $0x60] ss:$8 sps:$4 sm:$0xff]  }
   0xd   :  { %v1815_v37 = vld [vmem:[%s2741_s0 + $0x160] ss:$8 sps:$4 sm:$0xff]   ;;  %v1774_v38 = vld [vmem:[%s2741_s0 + $0x74] ss:$8 sps:$4 sm:$0xff]   ;;  %v1776_v40 = vld [vmem:[%s2741_s0 + $0x70] ss:$8 sps:$4 sm:$0xff]  }
   0xe   :  { %543 = vmatpush1.bf16.msra.mxu0 %v1747_v4  ;;  %1737 = vmatpush1.bf16.msra.mxu1 %v1747_v4  ;;  %v1819_v39 = vld [vmem:[%s2741_s0 + $0x174] ss:$8 sps:$4 sm:$0xff]   ;;  %v1821_v41 = vld [vmem:[%s2741_s0 + $0x170] ss:$8 sps:$4 sm:$0xff]   ;;  %v1780_v42 = vld [vmem:[%s2741_s0 + $0x84] ss:$8 sps:$4 sm:$0xff]  }
   0xf   :  { %544 = vmatprep.subr.bf16.mxu0 %v1849_v0  ;;  %1729 = vmatprep.subr.bf16.mxu1 %v1849_v0  ;;  %v1825_v43 = vld [vmem:[%s2741_s0 + $0x184] ss:$8 sps:$4 sm:$0xff]   ;;  %v1782_v44 = vld [vmem:[%s2741_s0 + $0x80] ss:$8 sps:$4 sm:$0xff]   ;;  %v1786_v46 = vld [vmem:[%s2741_s0 + $0x94] ss:$8 sps:$4 sm:$0xff]  }
  0x10   :  { %v1827_v45 = vld [vmem:[%s2741_s0 + $0x180] ss:$8 sps:$4 sm:$0xff]   ;;  %v1828_v47 = vld [vmem:[%s2741_s0 + $0x194] ss:$8 sps:$4 sm:$0xff]   ;;  %v1788_v48 = vld [vmem:[%s2741_s0 + $0x90] ss:$8 sps:$4 sm:$0xff]  }
  0x11   :  { %v1830_v49 = vld [vmem:[%s2741_s0 + $0x190] ss:$8 sps:$4 sm:$0xff]   ;;  %v1792_v50 = vld [vmem:[%s2741_s0 + $0xa4] ss:$8 sps:$4 sm:$0xff]   ;;  %v1794_v52 = vld [vmem:[%s2741_s0 + $0xa0] ss:$8 sps:$4 sm:$0xff]  }
  0x12   :  { %545 = vmatpush1.bf16.msra.mxu0 %v1748_v6  ;;  %1738 = vmatpush1.bf16.msra.mxu1 %v1748_v6  ;;  %v1831_v51 = vld [vmem:[%s2741_s0 + $0x1a4] ss:$8 sps:$4 sm:$0xff]   ;;  %v1833_v53 = vld [vmem:[%s2741_s0 + $0x1a0] ss:$8 sps:$4 sm:$0xff]   ;;  %v1798_v54 = vld [vmem:[%s2741_s0 + $0xb4] ss:$8 sps:$4 sm:$0xff]  }
  0x13   :  { %546 = vmatprep.subr.bf16.mxu0 %v1849_v0  ;;  %1730 = vmatprep.subr.bf16.mxu1 %v1849_v0  ;;  %v1834_v55 = vld [vmem:[%s2741_s0 + $0x1b4] ss:$8 sps:$4 sm:$0xff]   ;;  %v1800_v56 = vld [vmem:[%s2741_s0 + $0xb0] ss:$8 sps:$4 sm:$0xff]   ;;  %v1804_v58 = vld [vmem:[%s2741_s0 + $0xc4] ss:$8 sps:$4 sm:$0xff]  }
  0x14   :  { %v1836_v57 = vld [vmem:[%s2741_s0 + $0x1b0] ss:$8 sps:$4 sm:$0xff]   ;;  %v1837_v59 = vld [vmem:[%s2741_s0 + $0x1c4] ss:$8 sps:$4 sm:$0xff]   ;;  %v1806_v60 = vld [vmem:[%s2741_s0 + $0xc0] ss:$8 sps:$4 sm:$0xff]  }
  0x15   :  { %v1839_v61 = vld [vmem:[%s2741_s0 + $0x1c0] ss:$8 sps:$4 sm:$0xff]   ;;  %v1810_v62 = vld [vmem:[%s2741_s0 + $0xd4] ss:$8 sps:$4 sm:$0xff]   ;;  %v1842_v1 = vld [vmem:[%s2741_s0 + $0x1d0] ss:$8 sps:$4 sm:$0xff]  }
  0x16   :  { %547 = vmatpush1.bf16.msra.mxu0 %v1749_v7  ;;  %1739 = vmatpush1.bf16.msra.mxu1 %v1749_v7  ;;  %v1840_v63 = vld [vmem:[%s2741_s0 + $0x1d4] ss:$8 sps:$4 sm:$0xff]   ;;  %v1816_v2 = vld [vmem:[%s2741_s0 + $0xe4] ss:$8 sps:$4 sm:$0xff]   ;;  %v1818_v4 = vld [vmem:[%s2741_s0 + $0xe0] ss:$8 sps:$4 sm:$0xff]  }
  0x17   :  { %548 = vmatprep.subr.bf16.mxu0 %v1849_v0  ;;  %1731 = vmatprep.subr.bf16.mxu1 %v1849_v0  ;;  %v1843_v3 = vld [vmem:[%s2741_s0 + $0x1e4] ss:$8 sps:$4 sm:$0xff]   ;;  %v1845_v5 = vld [vmem:[%s2741_s0 + $0x1e0] ss:$8 sps:$4 sm:$0xff]   ;;  %v1822_v6 = vld [vmem:[%s2741_s0 + $0xf4] ss:$8 sps:$4 sm:$0xff]  }
  0x18   :  { %v1846_v7 = vld [vmem:[%s2741_s0 + $0x1f4] ss:$8 sps:$4 sm:$0xff]   ;;  %v1824_v8 = vld [vmem:[%s2741_s0 + $0xf0] ss:$8 sps:$4 sm:$0xff]  }
  0x1a   :  { %549 = vmatpush1.bf16.msra.mxu0 %v1750_v9  ;;  %1740 = vmatpush1.bf16.msra.mxu1 %v1750_v9  ;;  %v1848_v9 = vld [vmem:[%s2741_s0 + $0x1f0] ss:$8 sps:$4 sm:$0xff]  }
  0x1b   :  { %550 = vmatprep.subr.bf16.mxu0 %v1849_v0  ;;  %1732 = vmatprep.subr.bf16.mxu1 %v1849_v0 }
  0x1e   :  { %551 = vmatpush1.bf16.msra.mxu0 %v1751_v10  ;;  %1741 = vmatpush1.bf16.msra.mxu1 %v1751_v10 }
  0x1f   :  { %552 = vmatprep.subr.bf16.mxu0 %v1849_v0  ;;  %1733 = vmatprep.subr.bf16.mxu1 %v1849_v0  ;;  %v1812_v0 = vld [vmem:[%s2741_s0 + $0xd0] ss:$8 sps:$4 sm:$0xff]  }
  0x22   :  { %553 = vmatpush1.bf16.msra.mxu0 %v1752_v11  ;;  %1742 = vmatpush1.bf16.msra.mxu1 %v1752_v11 }
  0x25   :  { %569 = vmatmul.mubr.bf16.vlgmr.msra.gmra.mrb[0].mxu0 %v1753_v12  ;;  %697 = vmatmul.mubr.bf16.vlgmr.msra.gmra.mrb[0].mxu1 %v1777_v14 }
  0x26   :  { %1566 = vmatprep.mubr.msk.bf16.mxu0 %vm439_vm0, %v1756_v13  ;;  %1582 = vmatprep.mubr.msk.bf16.mxu1 %vm439_vm0, %v1783_v15 }
  0x2d   :  { %577 = vmatmul.mubr.bf16.gmra.mrb[4].mxu0 %v1758_v16  ;;  %705 = vmatmul.mubr.bf16.gmra.mrb[4].mxu1 %v1785_v18 }
  0x2e   :  { %1567 = vmatprep.mubr.msk.bf16.mxu0 %vm439_vm0, %v1759_v17  ;;  %1583 = vmatprep.mubr.msk.bf16.mxu1 %vm439_vm0, %v1789_v19 }
  0x35   :  { %585 = vmatmul.mubr.bf16.gmra.mrb[8].mxu0 %v1761_v20  ;;  %713 = vmatmul.mubr.bf16.gmra.mrb[8].mxu1 %v1791_v22 }
  0x36   :  { %1568 = vmatprep.mubr.msk.bf16.mxu0 %vm439_vm0, %v1762_v21  ;;  %1584 = vmatprep.mubr.msk.bf16.mxu1 %vm439_vm0, %v1795_v23 }
  0x3d   :  { %593 = vmatmul.mubr.bf16.gmra.mrb[12].mxu0 %v1764_v24  ;;  %721 = vmatmul.mubr.bf16.gmra.mrb[12].mxu1 %v1797_v25 }
  0x3e   :  { %1569 = vmatprep.mubr.msk.bf16.mxu0 %vm439_vm0, %v1765_v26  ;;  %1585 = vmatprep.mubr.msk.bf16.mxu1 %vm439_vm0, %v1801_v27 }
  0x45   :  { %601 = vmatmul.mubr.bf16.gmra.mrb[16].mxu0 %v1767_v28  ;;  %729 = vmatmul.mubr.bf16.gmra.mrb[16].mxu1 %v1803_v29 }
  0x46   :  { %1570 = vmatprep.mubr.msk.bf16.mxu0 %vm439_vm0, %v1768_v30  ;;  %1586 = vmatprep.mubr.msk.bf16.mxu1 %vm439_vm0, %v1807_v31 }
  0x4d   :  { %609 = vmatmul.mubr.bf16.gmra.mrb[20].mxu0 %v1770_v32  ;;  %737 = vmatmul.mubr.bf16.gmra.mrb[20].mxu1 %v1809_v33 }
  0x4e   :  { %1571 = vmatprep.mubr.msk.bf16.mxu0 %vm439_vm0, %v1771_v34  ;;  %1587 = vmatprep.mubr.msk.bf16.mxu1 %vm439_vm0, %v1813_v35 }
  0x55   :  { %617 = vmatmul.mubr.bf16.gmra.mrb[24].mxu0 %v1773_v36  ;;  %745 = vmatmul.mubr.bf16.gmra.mrb[24].mxu1 %v1815_v37 }
  0x56   :  { %1572 = vmatprep.mubr.msk.bf16.mxu0 %vm439_vm0, %v1774_v38  ;;  %1588 = vmatprep.mubr.msk.bf16.mxu1 %vm439_vm0, %v1819_v39 }
  0x5d   :  { %625 = vmatmul.mubr.bf16.gmra.mrb[28].mxu0 %v1776_v40  ;;  %753 = vmatmul.mubr.bf16.gmra.mrb[28].mxu1 %v1821_v41 }
  0x5e   :  { %1573 = vmatprep.mubr.msk.bf16.mxu0 %vm439_vm0, %v1780_v42  ;;  %1589 = vmatprep.mubr.msk.bf16.mxu1 %vm439_vm0, %v1825_v43 }
  0x65   :  { %633 = vmatmul.mubr.bf16.gmra.mrb[32].mxu0 %v1782_v44  ;;  %761 = vmatmul.mubr.bf16.gmra.mrb[32].mxu1 %v1827_v45 }
  0x66   :  { %1574 = vmatprep.mubr.msk.bf16.mxu0 %vm439_vm0, %v1786_v46  ;;  %1590 = vmatprep.mubr.msk.bf16.mxu1 %vm439_vm0, %v1828_v47 }
  0x6d   :  { %641 = vmatmul.mubr.bf16.gmra.mrb[36].mxu0 %v1788_v48  ;;  %769 = vmatmul.mubr.bf16.gmra.mrb[36].mxu1 %v1830_v49 }
  0x6e   :  { %1575 = vmatprep.mubr.msk.bf16.mxu0 %vm439_vm0, %v1792_v50  ;;  %1591 = vmatprep.mubr.msk.bf16.mxu1 %vm439_vm0, %v1831_v51 }
  0x75   :  { %649 = vmatmul.mubr.bf16.gmra.mrb[40].mxu0 %v1794_v52  ;;  %777 = vmatmul.mubr.bf16.gmra.mrb[40].mxu1 %v1833_v53 }
  0x76   :  { %1576 = vmatprep.mubr.msk.bf16.mxu0 %vm439_vm0, %v1798_v54  ;;  %1592 = vmatprep.mubr.msk.bf16.mxu1 %vm439_vm0, %v1834_v55 }
  0x7d   :  { %657 = vmatmul.mubr.bf16.gmra.mrb[44].mxu0 %v1800_v56  ;;  %785 = vmatmul.mubr.bf16.gmra.mrb[44].mxu1 %v1836_v57 }
  0x7e   :  { %1577 = vmatprep.mubr.msk.bf16.mxu0 %vm439_vm0, %v1804_v58  ;;  %1593 = vmatprep.mubr.msk.bf16.mxu1 %vm439_vm0, %v1837_v59 }
  0x85   :  { %665 = vmatmul.mubr.bf16.gmra.mrb[48].mxu0 %v1806_v60  ;;  %793 = vmatmul.mubr.bf16.gmra.mrb[48].mxu1 %v1839_v61 }
  0x86   :  { %1578 = vmatprep.mubr.msk.bf16.mxu0 %vm439_vm0, %v1810_v62  ;;  %1594 = vmatprep.mubr.msk.bf16.mxu1 %vm439_vm0, %v1840_v63 }
  0x8d   :  { %673 = vmatmul.mubr.bf16.gmra.mrb[52].mxu0 %v1812_v0  ;;  %801 = vmatmul.mubr.bf16.gmra.mrb[52].mxu1 %v1842_v1 }
  0x8e   :  { %1579 = vmatprep.mubr.msk.bf16.mxu0 %vm439_vm0, %v1816_v2  ;;  %1595 = vmatprep.mubr.msk.bf16.mxu1 %vm439_vm0, %v1843_v3 }
  0x95   :  { %681 = vmatmul.mubr.bf16.gmra.mrb[56].mxu0 %v1818_v4  ;;  %809 = vmatmul.mubr.bf16.gmra.mrb[56].mxu1 %v1845_v5 }
  0x96   :  { %1580 = vmatprep.mubr.msk.bf16.mxu0 %vm439_vm0, %v1822_v6  ;;  %1596 = vmatprep.mubr.msk.bf16.mxu1 %vm439_vm0, %v1846_v7 }
  0x9d   :  { %689 = vmatmul.mubr.bf16.gmra.mrb[60].mxu0 %v1824_v8  ;;  %817 = vmatmul.mubr.bf16.gmra.mrb[60].mxu1 %v1848_v9 }
  0xf8   :  { %v570_v10 = vpop.f32.mrb[0].mxu0  ;;  %v2126_v11 = vpop.f32.mrb[0].mxu1 }
  0xf9   :  { %v1661_v12 = vpack.c.bf16 %v570_v10, %v570_v10  ;;  %v1282_v13 = vmul.f32 %v570_v10, %v570_v10  ;;  %v572_v14 = vpop.f32.mrb[1].mxu0  ;;  %v1693_v15 = vpack.c.bf16 %v2126_v11, %v2126_v11  ;;  %v700_v16 = vpop.f32.mrb[1].mxu1  ;;  %v1147_v19 = vsel %vm1146_vm2, %v570_v10, 0.0 }
  0xfa   :  { %v573_v17 = vpop.f32.mrb[2].mxu0  ;;  %v2130_v18 = vpop.f32.mrb[2].mxu1 }
  0xfb   :  { %1082 = vst.msk [vmem:[%s2742_s2] sm:$0xf] %vm1081_vm1, %v1661_v12  ;;  %v1662_v20 = vpack.c.bf16 %v573_v17, %v573_v17  ;;  %v1148_v21 = vsel %vm1146_vm2, %v573_v17, 0.0  ;;  %v1283_v22 = vmul.f32 %v573_v17, %v573_v17  ;;  %v575_v23 = vpop.f32.mrb[3].mxu0  ;;  %1114 = vst.msk [vmem:[%s2742_s2 + $0x80] sm:$0xf] %vm1081_vm1, %v1693_v15  ;;  %v1694_v26 = vpack.c.bf16 %v2130_v18, %v2130_v18 }
  0xfc   :  { %v703_v24 = vpop.f32.mrb[3].mxu1  ;;  %v1149_v25 = vadd.f32 %v1148_v21, %v1147_v19  ;;  %v1346_v27 = vsel %vm1146_vm2, %v1282_v13, 0.0 }
  0xfd   :  { %1083 = vst.msk [vmem:[%s2742_s2 + $0x4] sm:$0xf] %vm1081_vm1, %v1662_v20  ;;  %v1347_v28 = vsel %vm1146_vm2, %v1283_v22, 0.0  ;;  %1115 = vst.msk [vmem:[%s2742_s2 + $0x84] sm:$0xf] %vm1081_vm1, %v1694_v26 }
  0xfe   :  { %v1348_v29 = vadd.f32 %v1347_v28, %v1346_v27 }
 0x100   :  { %v578_v30 = vpop.f32.mrb[4].mxu0  ;;  %v2154_v31 = vpop.f32.mrb[4].mxu1 }
 0x101   :  { %v1663_v32 = vpack.c.bf16 %v578_v30, %v578_v30  ;;  %v1150_v33 = vsel %vm1146_vm2, %v578_v30, 0.0  ;;  %v1284_v34 = vmul.f32 %v578_v30, %v578_v30  ;;  %v580_v35 = vpop.f32.mrb[5].mxu0  ;;  %v1695_v36 = vpack.c.bf16 %v2154_v31, %v2154_v31  ;;  %v708_v37 = vpop.f32.mrb[5].mxu1 }
 0x102   :  { %v1151_v38 = vadd.f32 %v1150_v33, %v1149_v25  ;;  %v581_v39 = vpop.f32.mrb[6].mxu0  ;;  %v2159_v40 = vpop.f32.mrb[6].mxu1 }
 0x103   :  { %1084 = vst.msk [vmem:[%s2742_s2 + $0x8] sm:$0xf] %vm1081_vm1, %v1663_v32  ;;  %v1349_v41 = vsel %vm1146_vm2, %v1284_v34, 0.0  ;;  %v1664_v42 = vpack.c.bf16 %v581_v39, %v581_v39  ;;  %v1152_v43 = vsel %vm1146_vm2, %v581_v39, 0.0  ;;  %v1285_v44 = vmul.f32 %v581_v39, %v581_v39  ;;  %v583_v45 = vpop.f32.mrb[7].mxu0  ;;  %v711_v46 = vpop.f32.mrb[7].mxu1 }
 0x104   :  { %1116 = vst.msk [vmem:[%s2742_s2 + $0x88] sm:$0xf] %vm1081_vm1, %v1695_v36  ;;  %v1350_v47 = vadd.f32 %v1349_v41, %v1348_v29  ;;  %v1153_v48 = vadd.f32 %v1152_v43, %v1151_v38  ;;  %v1696_v49 = vpack.c.bf16 %v2159_v40, %v2159_v40 }
 0x105   :  { %1085 = vst.msk [vmem:[%s2742_s2 + $0xc] sm:$0xf] %vm1081_vm1, %v1664_v42  ;;  %v1351_v50 = vsel %vm1146_vm2, %v1285_v44, 0.0 }
 0x106   :  { %v1352_v51 = vadd.f32 %v1351_v50, %v1350_v47  ;;  %1117 = vst.msk [vmem:[%s2742_s2 + $0x8c] sm:$0xf] %vm1081_vm1, %v1696_v49 }
 0x108   :  { %v586_v52 = vpop.f32.mrb[8].mxu0  ;;  %v2182_v53 = vpop.f32.mrb[8].mxu1 }
 0x109   :  { %v1665_v54 = vpack.c.bf16 %v586_v52, %v586_v52  ;;  %v1154_v55 = vsel %vm1146_vm2, %v586_v52, 0.0  ;;  %v1286_v56 = vmul.f32 %v586_v52, %v586_v52  ;;  %v588_v57 = vpop.f32.mrb[9].mxu0  ;;  %v1697_v58 = vpack.c.bf16 %v2182_v53, %v2182_v53  ;;  %v716_v59 = vpop.f32.mrb[9].mxu1 }
 0x10a   :  { %v1155_v60 = vadd.f32 %v1154_v55, %v1153_v48  ;;  %v589_v61 = vpop.f32.mrb[10].mxu0  ;;  %v2187_v62 = vpop.f32.mrb[10].mxu1 }
 0x10b   :  { %1086 = vst.msk [vmem:[%s2742_s2 + $0x10] sm:$0xf] %vm1081_vm1, %v1665_v54  ;;  %v1353_v63 = vsel %vm1146_vm2, %v1286_v56, 0.0  ;;  %v1666_v0 = vpack.c.bf16 %v589_v61, %v589_v61  ;;  %v1156_v1 = vsel %vm1146_vm2, %v589_v61, 0.0  ;;  %v1287_v2 = vmul.f32 %v589_v61, %v589_v61  ;;  %v591_v3 = vpop.f32.mrb[11].mxu0  ;;  %v719_v4 = vpop.f32.mrb[11].mxu1 }
 0x10c   :  { %1118 = vst.msk [vmem:[%s2742_s2 + $0x90] sm:$0xf] %vm1081_vm1, %v1697_v58  ;;  %v1354_v5 = vadd.f32 %v1353_v63, %v1352_v51  ;;  %v1157_v6 = vadd.f32 %v1156_v1, %v1155_v60  ;;  %v1698_v7 = vpack.c.bf16 %v2187_v62, %v2187_v62 }
 0x10d   :  { %1087 = vst.msk [vmem:[%s2742_s2 + $0x14] sm:$0xf] %vm1081_vm1, %v1666_v0  ;;  %v1355_v8 = vsel %vm1146_vm2, %v1287_v2, 0.0 }
 0x10e   :  { %v1356_v9 = vadd.f32 %v1355_v8, %v1354_v5  ;;  %1119 = vst.msk [vmem:[%s2742_s2 + $0x94] sm:$0xf] %vm1081_vm1, %v1698_v7 }
 0x110   :  { %v594_v10 = vpop.f32.mrb[12].mxu0  ;;  %v2210_v12 = vpop.f32.mrb[12].mxu1 }
 0x111   :  { %v1667_v13 = vpack.c.bf16 %v594_v10, %v594_v10  ;;  %v1158_v14 = vsel %vm1146_vm2, %v594_v10, 0.0  ;;  %v1288_v15 = vmul.f32 %v594_v10, %v594_v10  ;;  %v596_v16 = vpop.f32.mrb[13].mxu0  ;;  %v1699_v17 = vpack.c.bf16 %v2210_v12, %v2210_v12  ;;  %v724_v19 = vpop.f32.mrb[13].mxu1 }
 0x112   :  { %v1159_v20 = vadd.f32 %v1158_v14, %v1157_v6  ;;  %v597_v21 = vpop.f32.mrb[14].mxu0  ;;  %v2215_v22 = vpop.f32.mrb[14].mxu1 }
 0x113   :  { %1088 = vst.msk [vmem:[%s2742_s2 + $0x18] sm:$0xf] %vm1081_vm1, %v1667_v13  ;;  %v1357_v23 = vsel %vm1146_vm2, %v1288_v15, 0.0  ;;  %v1668_v24 = vpack.c.bf16 %v597_v21, %v597_v21  ;;  %v1160_v25 = vsel %vm1146_vm2, %v597_v21, 0.0  ;;  %v1289_v26 = vmul.f32 %v597_v21, %v597_v21  ;;  %v599_v27 = vpop.f32.mrb[15].mxu0  ;;  %v727_v28 = vpop.f32.mrb[15].mxu1 }
 0x114   :  { %1120 = vst.msk [vmem:[%s2742_s2 + $0x98] sm:$0xf] %vm1081_vm1, %v1699_v17  ;;  %v1358_v29 = vadd.f32 %v1357_v23, %v1356_v9  ;;  %v1161_v30 = vadd.f32 %v1160_v25, %v1159_v20  ;;  %v1700_v32 = vpack.c.bf16 %v2215_v22, %v2215_v22 }
 0x115   :  { %1089 = vst.msk [vmem:[%s2742_s2 + $0x1c] sm:$0xf] %vm1081_vm1, %v1668_v24  ;;  %v1359_v33 = vsel %vm1146_vm2, %v1289_v26, 0.0 }
 0x116   :  { %v1360_v34 = vadd.f32 %v1359_v33, %v1358_v29  ;;  %1121 = vst.msk [vmem:[%s2742_s2 + $0x9c] sm:$0xf] %vm1081_vm1, %v1700_v32 }
 0x118   :  { %v602_v35 = vpop.f32.mrb[16].mxu0  ;;  %v2238_v36 = vpop.f32.mrb[16].mxu1 }
 0x119   :  { %v1669_v37 = vpack.c.bf16 %v602_v35, %v602_v35  ;;  %v1162_v38 = vsel %vm1146_vm2, %v602_v35, 0.0  ;;  %v1290_v39 = vmul.f32 %v602_v35, %v602_v35  ;;  %v604_v41 = vpop.f32.mrb[17].mxu0  ;;  %v1701_v42 = vpack.c.bf16 %v2238_v36, %v2238_v36  ;;  %v732_v43 = vpop.f32.mrb[17].mxu1 }
 0x11a   :  { %v1163_v44 = vadd.f32 %v1162_v38, %v1161_v30  ;;  %v605_v45 = vpop.f32.mrb[18].mxu0  ;;  %v2243_v46 = vpop.f32.mrb[18].mxu1 }
 0x11b   :  { %1090 = vst.msk [vmem:[%s2742_s2 + $0x20] sm:$0xf] %vm1081_vm1, %v1669_v37  ;;  %v1361_v47 = vsel %vm1146_vm2, %v1290_v39, 0.0  ;;  %v1670_v48 = vpack.c.bf16 %v605_v45, %v605_v45  ;;  %v1164_v49 = vsel %vm1146_vm2, %v605_v45, 0.0  ;;  %v1291_v50 = vmul.f32 %v605_v45, %v605_v45  ;;  %v607_v51 = vpop.f32.mrb[19].mxu0  ;;  %v735_v52 = vpop.f32.mrb[19].mxu1 }
 0x11c   :  { %1122 = vst.msk [vmem:[%s2742_s2 + $0xa0] sm:$0xf] %vm1081_vm1, %v1701_v42  ;;  %v1362_v54 = vadd.f32 %v1361_v47, %v1360_v34  ;;  %v1165_v55 = vadd.f32 %v1164_v49, %v1163_v44  ;;  %v1702_v56 = vpack.c.bf16 %v2243_v46, %v2243_v46 }
 0x11d   :  { %1091 = vst.msk [vmem:[%s2742_s2 + $0x24] sm:$0xf] %vm1081_vm1, %v1670_v48  ;;  %v1363_v57 = vsel %vm1146_vm2, %v1291_v50, 0.0 }
 0x11e   :  { %v1364_v58 = vadd.f32 %v1363_v57, %v1362_v54  ;;  %1123 = vst.msk [vmem:[%s2742_s2 + $0xa4] sm:$0xf] %vm1081_vm1, %v1702_v56 }
 0x120   :  { %v610_v59 = vpop.f32.mrb[20].mxu0  ;;  %v2266_v60 = vpop.f32.mrb[20].mxu1 }
 0x121   :  { %v1671_v61 = vpack.c.bf16 %v610_v59, %v610_v59  ;;  %v1166_v63 = vsel %vm1146_vm2, %v610_v59, 0.0  ;;  %v1292_v0 = vmul.f32 %v610_v59, %v610_v59  ;;  %v612_v1 = vpop.f32.mrb[21].mxu0  ;;  %v1703_v2 = vpack.c.bf16 %v2266_v60, %v2266_v60  ;;  %v740_v3 = vpop.f32.mrb[21].mxu1 }
 0x122   :  { %v1167_v4 = vadd.f32 %v1166_v63, %v1165_v55  ;;  %v613_v5 = vpop.f32.mrb[22].mxu0  ;;  %v2271_v6 = vpop.f32.mrb[22].mxu1 }
 0x123   :  { %1092 = vst.msk [vmem:[%s2742_s2 + $0x28] sm:$0xf] %vm1081_vm1, %v1671_v61  ;;  %v1365_v7 = vsel %vm1146_vm2, %v1292_v0, 0.0  ;;  %v1672_v8 = vpack.c.bf16 %v613_v5, %v613_v5  ;;  %v1168_v9 = vsel %vm1146_vm2, %v613_v5, 0.0  ;;  %v1293_v10 = vmul.f32 %v613_v5, %v613_v5  ;;  %v615_v13 = vpop.f32.mrb[23].mxu0  ;;  %v743_v14 = vpop.f32.mrb[23].mxu1 }
 0x124   :  { %1124 = vst.msk [vmem:[%s2742_s2 + $0xa8] sm:$0xf] %vm1081_vm1, %v1703_v2  ;;  %v1366_v15 = vadd.f32 %v1365_v7, %v1364_v58  ;;  %v1169_v16 = vadd.f32 %v1168_v9, %v1167_v4  ;;  %v1704_v17 = vpack.c.bf16 %v2271_v6, %v2271_v6 }
 0x125   :  { %1093 = vst.msk [vmem:[%s2742_s2 + $0x2c] sm:$0xf] %vm1081_vm1, %v1672_v8  ;;  %v1367_v19 = vsel %vm1146_vm2, %v1293_v10, 0.0 }
 0x126   :  { %v1368_v20 = vadd.f32 %v1367_v19, %v1366_v15  ;;  %1125 = vst.msk [vmem:[%s2742_s2 + $0xac] sm:$0xf] %vm1081_vm1, %v1704_v17 }
 0x128   :  { %v618_v21 = vpop.f32.mrb[24].mxu0  ;;  %v2294_v23 = vpop.f32.mrb[24].mxu1 }
 0x129   :  { %v1673_v24 = vpack.c.bf16 %v618_v21, %v618_v21  ;;  %v1170_v25 = vsel %vm1146_vm2, %v618_v21, 0.0  ;;  %v1294_v26 = vmul.f32 %v618_v21, %v618_v21  ;;  %v620_v27 = vpop.f32.mrb[25].mxu0  ;;  %v1705_v28 = vpack.c.bf16 %v2294_v23, %v2294_v23  ;;  %v748_v29 = vpop.f32.mrb[25].mxu1 }
 0x12a   :  { %v1171_v30 = vadd.f32 %v1170_v25, %v1169_v16  ;;  %v621_v32 = vpop.f32.mrb[26].mxu0  ;;  %v2299_v33 = vpop.f32.mrb[26].mxu1 }
 0x12b   :  { %1094 = vst.msk [vmem:[%s2742_s2 + $0x30] sm:$0xf] %vm1081_vm1, %v1673_v24  ;;  %v1369_v34 = vsel %vm1146_vm2, %v1294_v26, 0.0  ;;  %v1674_v35 = vpack.c.bf16 %v621_v32, %v621_v32  ;;  %v1172_v37 = vsel %vm1146_vm2, %v621_v32, 0.0  ;;  %v1295_v38 = vmul.f32 %v621_v32, %v621_v32  ;;  %v623_v39 = vpop.f32.mrb[27].mxu0  ;;  %v751_v41 = vpop.f32.mrb[27].mxu1 }
 0x12c   :  { %1126 = vst.msk [vmem:[%s2742_s2 + $0xb0] sm:$0xf] %vm1081_vm1, %v1705_v28  ;;  %v1370_v42 = vadd.f32 %v1369_v34, %v1368_v20  ;;  %v1173_v43 = vadd.f32 %v1172_v37, %v1171_v30  ;;  %v1706_v44 = vpack.c.bf16 %v2299_v33, %v2299_v33 }
 0x12d   :  { %1095 = vst.msk [vmem:[%s2742_s2 + $0x34] sm:$0xf] %vm1081_vm1, %v1674_v35  ;;  %v1371_v45 = vsel %vm1146_vm2, %v1295_v38, 0.0 }
 0x12e   :  { %v1372_v47 = vadd.f32 %v1371_v45, %v1370_v42  ;;  %1127 = vst.msk [vmem:[%s2742_s2 + $0xb4] sm:$0xf] %vm1081_vm1, %v1706_v44 }
 0x130   :  { %v626_v48 = vpop.f32.mrb[28].mxu0  ;;  %v2322_v49 = vpop.f32.mrb[28].mxu1 }
 0x131   :  { %v1675_v50 = vpack.c.bf16 %v626_v48, %v626_v48  ;;  %v1174_v51 = vsel %vm1146_vm2, %v626_v48, 0.0  ;;  %v1296_v52 = vmul.f32 %v626_v48, %v626_v48  ;;  %v628_v54 = vpop.f32.mrb[29].mxu0  ;;  %v1707_v55 = vpack.c.bf16 %v2322_v49, %v2322_v49  ;;  %v756_v56 = vpop.f32.mrb[29].mxu1 }
 0x132   :  { %v1175_v57 = vadd.f32 %v1174_v51, %v1173_v43  ;;  %v629_v58 = vpop.f32.mrb[30].mxu0  ;;  %v2327_v59 = vpop.f32.mrb[30].mxu1 }
 0x133   :  { %1096 = vst.msk [vmem:[%s2742_s2 + $0x38] sm:$0xf] %vm1081_vm1, %v1675_v50  ;;  %v1373_v61 = vsel %vm1146_vm2, %v1296_v52, 0.0  ;;  %v1676_v63 = vpack.c.bf16 %v629_v58, %v629_v58  ;;  %v1176_v0 = vsel %vm1146_vm2, %v629_v58, 0.0  ;;  %v1297_v1 = vmul.f32 %v629_v58, %v629_v58  ;;  %v631_v2 = vpop.f32.mrb[31].mxu0  ;;  %v759_v3 = vpop.f32.mrb[31].mxu1 }
 0x134   :  { %1128 = vst.msk [vmem:[%s2742_s2 + $0xb8] sm:$0xf] %vm1081_vm1, %v1707_v55  ;;  %v1374_v4 = vadd.f32 %v1373_v61, %v1372_v47  ;;  %v1177_v5 = vadd.f32 %v1176_v0, %v1175_v57  ;;  %v1708_v7 = vpack.c.bf16 %v2327_v59, %v2327_v59 }
 0x135   :  { %1097 = vst.msk [vmem:[%s2742_s2 + $0x3c] sm:$0xf] %vm1081_vm1, %v1676_v63  ;;  %v1375_v8 = vsel %vm1146_vm2, %v1297_v1, 0.0 }
 0x136   :  { %v1376_v9 = vadd.f32 %v1375_v8, %v1374_v4  ;;  %1129 = vst.msk [vmem:[%s2742_s2 + $0xbc] sm:$0xf] %vm1081_vm1, %v1708_v7 }
 0x138   :  { %v634_v10 = vpop.f32.mrb[32].mxu0  ;;  %v2350_v13 = vpop.f32.mrb[32].mxu1 }
 0x139   :  { %v1677_v14 = vpack.c.bf16 %v634_v10, %v634_v10  ;;  %v1178_v15 = vsel %vm1146_vm2, %v634_v10, 0.0  ;;  %v1298_v16 = vmul.f32 %v634_v10, %v634_v10  ;;  %v636_v17 = vpop.f32.mrb[33].mxu0  ;;  %v1709_v19 = vpack.c.bf16 %v2350_v13, %v2350_v13  ;;  %v764_v20 = vpop.f32.mrb[33].mxu1 }
 0x13a   :  { %v1179_v21 = vadd.f32 %v1178_v15, %v1177_v5  ;;  %v637_v24 = vpop.f32.mrb[34].mxu0  ;;  %v2355_v25 = vpop.f32.mrb[34].mxu1 }
 0x13b   :  { %1098 = vst.msk [vmem:[%s2742_s2 + $0x40] sm:$0xf] %vm1081_vm1, %v1677_v14  ;;  %v1377_v26 = vsel %vm1146_vm2, %v1298_v16, 0.0  ;;  %v1678_v27 = vpack.c.bf16 %v637_v24, %v637_v24  ;;  %v1180_v28 = vsel %vm1146_vm2, %v637_v24, 0.0  ;;  %v1299_v29 = vmul.f32 %v637_v24, %v637_v24  ;;  %v639_v30 = vpop.f32.mrb[35].mxu0  ;;  %v767_v32 = vpop.f32.mrb[35].mxu1 }
 0x13c   :  { %1130 = vst.msk [vmem:[%s2742_s2 + $0xc0] sm:$0xf] %vm1081_vm1, %v1709_v19  ;;  %v1378_v34 = vadd.f32 %v1377_v26, %v1376_v9  ;;  %v1181_v35 = vadd.f32 %v1180_v28, %v1179_v21  ;;  %v1710_v37 = vpack.c.bf16 %v2355_v25, %v2355_v25 }
 0x13d   :  { %1099 = vst.msk [vmem:[%s2742_s2 + $0x44] sm:$0xf] %vm1081_vm1, %v1678_v27  ;;  %v1379_v38 = vsel %vm1146_vm2, %v1299_v29, 0.0 }
 0x13e   :  { %v1380_v39 = vadd.f32 %v1379_v38, %v1378_v34  ;;  %1131 = vst.msk [vmem:[%s2742_s2 + $0xc4] sm:$0xf] %vm1081_vm1, %v1710_v37 }
 0x140   :  { %v642_v41 = vpop.f32.mrb[36].mxu0  ;;  %v2378_v42 = vpop.f32.mrb[36].mxu1 }
 0x141   :  { %v1679_v43 = vpack.c.bf16 %v642_v41, %v642_v41  ;;  %v1182_v44 = vsel %vm1146_vm2, %v642_v41, 0.0  ;;  %v1300_v45 = vmul.f32 %v642_v41, %v642_v41  ;;  %v644_v47 = vpop.f32.mrb[37].mxu0  ;;  %v1711_v48 = vpack.c.bf16 %v2378_v42, %v2378_v42  ;;  %v772_v50 = vpop.f32.mrb[37].mxu1 }
 0x142   :  { %v1183_v51 = vadd.f32 %v1182_v44, %v1181_v35  ;;  %v645_v52 = vpop.f32.mrb[38].mxu0  ;;  %v2383_v54 = vpop.f32.mrb[38].mxu1 }
 0x143   :  { %1100 = vst.msk [vmem:[%s2742_s2 + $0x48] sm:$0xf] %vm1081_vm1, %v1679_v43  ;;  %v1381_v55 = vsel %vm1146_vm2, %v1300_v45, 0.0  ;;  %v1680_v56 = vpack.c.bf16 %v645_v52, %v645_v52  ;;  %v1184_v57 = vsel %vm1146_vm2, %v645_v52, 0.0  ;;  %v1301_v58 = vmul.f32 %v645_v52, %v645_v52  ;;  %v647_v61 = vpop.f32.mrb[39].mxu0  ;;  %v775_v63 = vpop.f32.mrb[39].mxu1 }
 0x144   :  { %1132 = vst.msk [vmem:[%s2742_s2 + $0xc8] sm:$0xf] %vm1081_vm1, %v1711_v48  ;;  %v1382_v0 = vadd.f32 %v1381_v55, %v1380_v39  ;;  %v1185_v1 = vadd.f32 %v1184_v57, %v1183_v51  ;;  %v1712_v2 = vpack.c.bf16 %v2383_v54, %v2383_v54 }
 0x145   :  { %1101 = vst.msk [vmem:[%s2742_s2 + $0x4c] sm:$0xf] %vm1081_vm1, %v1680_v56  ;;  %v1383_v3 = vsel %vm1146_vm2, %v1301_v58, 0.0 }
 0x146   :  { %v1384_v4 = vadd.f32 %v1383_v3, %v1382_v0  ;;  %1133 = vst.msk [vmem:[%s2742_s2 + $0xcc] sm:$0xf] %vm1081_vm1, %v1712_v2 }
 0x148   :  { %v650_v5 = vpop.f32.mrb[40].mxu0  ;;  %v2406_v7 = vpop.f32.mrb[40].mxu1 }
 0x149   :  { %v1681_v8 = vpack.c.bf16 %v650_v5, %v650_v5  ;;  %v1186_v9 = vsel %vm1146_vm2, %v650_v5, 0.0  ;;  %v1302_v10 = vmul.f32 %v650_v5, %v650_v5  ;;  %v652_v14 = vpop.f32.mrb[41].mxu0  ;;  %v1713_v15 = vpack.c.bf16 %v2406_v7, %v2406_v7  ;;  %v780_v16 = vpop.f32.mrb[41].mxu1 }
 0x14a   :  { %v1187_v17 = vadd.f32 %v1186_v9, %v1185_v1  ;;  %v653_v19 = vpop.f32.mrb[42].mxu0  ;;  %v2411_v20 = vpop.f32.mrb[42].mxu1 }
 0x14b   :  { %1102 = vst.msk [vmem:[%s2742_s2 + $0x50] sm:$0xf] %vm1081_vm1, %v1681_v8  ;;  %v1385_v21 = vsel %vm1146_vm2, %v1302_v10, 0.0  ;;  %v1682_v24 = vpack.c.bf16 %v653_v19, %v653_v19  ;;  %v1188_v26 = vsel %vm1146_vm2, %v653_v19, 0.0  ;;  %v1303_v27 = vmul.f32 %v653_v19, %v653_v19  ;;  %v655_v28 = vpop.f32.mrb[43].mxu0  ;;  %v783_v29 = vpop.f32.mrb[43].mxu1 }
 0x14c   :  { %1134 = vst.msk [vmem:[%s2742_s2 + $0xd0] sm:$0xf] %vm1081_vm1, %v1713_v15  ;;  %v1386_v30 = vadd.f32 %v1385_v21, %v1384_v4  ;;  %v1189_v32 = vadd.f32 %v1188_v26, %v1187_v17  ;;  %v1714_v34 = vpack.c.bf16 %v2411_v20, %v2411_v20 }
 0x14d   :  { %1103 = vst.msk [vmem:[%s2742_s2 + $0x54] sm:$0xf] %vm1081_vm1, %v1682_v24  ;;  %v1387_v35 = vsel %vm1146_vm2, %v1303_v27, 0.0 }
 0x14e   :  { %v1388_v37 = vadd.f32 %v1387_v35, %v1386_v30  ;;  %1135 = vst.msk [vmem:[%s2742_s2 + $0xd4] sm:$0xf] %vm1081_vm1, %v1714_v34 }
 0x150   :  { %v658_v38 = vpop.f32.mrb[44].mxu0  ;;  %v2434_v39 = vpop.f32.mrb[44].mxu1 }
 0x151   :  { %v1683_v41 = vpack.c.bf16 %v658_v38, %v658_v38  ;;  %v1190_v43 = vsel %vm1146_vm2, %v658_v38, 0.0  ;;  %v1304_v44 = vmul.f32 %v658_v38, %v658_v38  ;;  %v660_v45 = vpop.f32.mrb[45].mxu0  ;;  %v1715_v47 = vpack.c.bf16 %v2434_v39, %v2434_v39  ;;  %v788_v48 = vpop.f32.mrb[45].mxu1 }
 0x152   :  { %v1191_v50 = vadd.f32 %v1190_v43, %v1189_v32  ;;  %v661_v51 = vpop.f32.mrb[46].mxu0  ;;  %v2439_v52 = vpop.f32.mrb[46].mxu1 }
 0x153   :  { %1104 = vst.msk [vmem:[%s2742_s2 + $0x58] sm:$0xf] %vm1081_vm1, %v1683_v41  ;;  %v1389_v55 = vsel %vm1146_vm2, %v1304_v44, 0.0  ;;  %v1684_v56 = vpack.c.bf16 %v661_v51, %v661_v51  ;;  %v1192_v57 = vsel %vm1146_vm2, %v661_v51, 0.0  ;;  %v1305_v58 = vmul.f32 %v661_v51, %v661_v51  ;;  %v663_v61 = vpop.f32.mrb[47].mxu0  ;;  %v791_v63 = vpop.f32.mrb[47].mxu1 }
 0x154   :  { %1136 = vst.msk [vmem:[%s2742_s2 + $0xd8] sm:$0xf] %vm1081_vm1, %v1715_v47  ;;  %v1390_v0 = vadd.f32 %v1389_v55, %v1388_v37  ;;  %v1193_v1 = vadd.f32 %v1192_v57, %v1191_v50  ;;  %v1716_v2 = vpack.c.bf16 %v2439_v52, %v2439_v52 }
 0x155   :  { %1105 = vst.msk [vmem:[%s2742_s2 + $0x5c] sm:$0xf] %vm1081_vm1, %v1684_v56  ;;  %v1391_v3 = vsel %vm1146_vm2, %v1305_v58, 0.0 }
 0x156   :  { %v1392_v4 = vadd.f32 %v1391_v3, %v1390_v0  ;;  %1137 = vst.msk [vmem:[%s2742_s2 + $0xdc] sm:$0xf] %vm1081_vm1, %v1716_v2 }
 0x158   :  { %v666_v5 = vpop.f32.mrb[48].mxu0  ;;  %v2462_v8 = vpop.f32.mrb[48].mxu1 }
 0x159   :  { %v1685_v9 = vpack.c.bf16 %v666_v5, %v666_v5  ;;  %v1194_v10 = vsel %vm1146_vm2, %v666_v5, 0.0  ;;  %v1306_v14 = vmul.f32 %v666_v5, %v666_v5  ;;  %v668_v15 = vpop.f32.mrb[49].mxu0  ;;  %v1717_v16 = vpack.c.bf16 %v2462_v8, %v2462_v8  ;;  %v796_v17 = vpop.f32.mrb[49].mxu1 }
 0x15a   :  { %v1195_v19 = vadd.f32 %v1194_v10, %v1193_v1  ;;  %v669_v21 = vpop.f32.mrb[50].mxu0  ;;  %v2467_v24 = vpop.f32.mrb[50].mxu1 }
 0x15b   :  { %1106 = vst.msk [vmem:[%s2742_s2 + $0x60] sm:$0xf] %vm1081_vm1, %v1685_v9  ;;  %v1393_v26 = vsel %vm1146_vm2, %v1306_v14, 0.0  ;;  %v1686_v27 = vpack.c.bf16 %v669_v21, %v669_v21  ;;  %v1196_v28 = vsel %vm1146_vm2, %v669_v21, 0.0  ;;  %v1307_v29 = vmul.f32 %v669_v21, %v669_v21  ;;  %v671_v30 = vpop.f32.mrb[51].mxu0  ;;  %v799_v32 = vpop.f32.mrb[51].mxu1 }
 0x15c   :  { %1138 = vst.msk [vmem:[%s2742_s2 + $0xe0] sm:$0xf] %vm1081_vm1, %v1717_v16  ;;  %v1394_v34 = vadd.f32 %v1393_v26, %v1392_v4  ;;  %v1197_v35 = vadd.f32 %v1196_v28, %v1195_v19  ;;  %v1718_v37 = vpack.c.bf16 %v2467_v24, %v2467_v24 }
 0x15d   :  { %1107 = vst.msk [vmem:[%s2742_s2 + $0x64] sm:$0xf] %vm1081_vm1, %v1686_v27  ;;  %v1395_v38 = vsel %vm1146_vm2, %v1307_v29, 0.0 }
 0x15e   :  { %v1396_v41 = vadd.f32 %v1395_v38, %v1394_v34  ;;  %1139 = vst.msk [vmem:[%s2742_s2 + $0xe4] sm:$0xf] %vm1081_vm1, %v1718_v37 }
 0x160   :  { %v674_v43 = vpop.f32.mrb[52].mxu0  ;;  %v2490_v44 = vpop.f32.mrb[52].mxu1 }
 0x161   :  { %v1687_v45 = vpack.c.bf16 %v674_v43, %v674_v43  ;;  %v1198_v47 = vsel %vm1146_vm2, %v674_v43, 0.0  ;;  %v1308_v48 = vmul.f32 %v674_v43, %v674_v43  ;;  %v676_v50 = vpop.f32.mrb[53].mxu0  ;;  %v1719_v51 = vpack.c.bf16 %v2490_v44, %v2490_v44  ;;  %v804_v55 = vpop.f32.mrb[53].mxu1 }
 0x162   :  { %v1199_v56 = vadd.f32 %v1198_v47, %v1197_v35  ;;  %v677_v57 = vpop.f32.mrb[54].mxu0  ;;  %v2495_v58 = vpop.f32.mrb[54].mxu1 }
 0x163   :  { %1108 = vst.msk [vmem:[%s2742_s2 + $0x68] sm:$0xf] %vm1081_vm1, %v1687_v45  ;;  %v1397_v61 = vsel %vm1146_vm2, %v1308_v48, 0.0  ;;  %v1688_v63 = vpack.c.bf16 %v677_v57, %v677_v57  ;;  %v1200_v0 = vsel %vm1146_vm2, %v677_v57, 0.0  ;;  %v1309_v1 = vmul.f32 %v677_v57, %v677_v57  ;;  %v679_v2 = vpop.f32.mrb[55].mxu0  ;;  %v807_v3 = vpop.f32.mrb[55].mxu1 }
 0x164   :  { %1140 = vst.msk [vmem:[%s2742_s2 + $0xe8] sm:$0xf] %vm1081_vm1, %v1719_v51  ;;  %v1398_v4 = vadd.f32 %v1397_v61, %v1396_v41  ;;  %v1201_v5 = vadd.f32 %v1200_v0, %v1199_v56  ;;  %v1720_v9 = vpack.c.bf16 %v2495_v58, %v2495_v58  ;;  %v1314_v3 = vmul.f32 %v2126_v11, %v2126_v11 }
 0x165   :  { %1109 = vst.msk [vmem:[%s2742_s2 + $0x6c] sm:$0xf] %vm1081_vm1, %v1688_v63  ;;  %v1399_v10 = vsel %vm1146_vm2, %v1309_v1, 0.0 }
 0x166   :  { %v1400_v14 = vadd.f32 %v1399_v10, %v1398_v4  ;;  %1141 = vst.msk [vmem:[%s2742_s2 + $0xec] sm:$0xf] %vm1081_vm1, %v1720_v9 }
 0x168   :  { %v682_v15 = vpop.f32.mrb[56].mxu0  ;;  %v2518_v16 = vpop.f32.mrb[56].mxu1 }
 0x169   :  { %v1689_v17 = vpack.c.bf16 %v682_v15, %v682_v15  ;;  %v1202_v19 = vsel %vm1146_vm2, %v682_v15, 0.0  ;;  %v1310_v21 = vmul.f32 %v682_v15, %v682_v15  ;;  %v684_v26 = vpop.f32.mrb[57].mxu0  ;;  %v1721_v27 = vpack.c.bf16 %v2518_v16, %v2518_v16  ;;  %v812_v28 = vpop.f32.mrb[57].mxu1 }
 0x16a   :  { %v1203_v29 = vadd.f32 %v1202_v19, %v1201_v5  ;;  %v685_v30 = vpop.f32.mrb[58].mxu0  ;;  %v2523_v32 = vpop.f32.mrb[58].mxu1 }
 0x16b   :  { %1110 = vst.msk [vmem:[%s2742_s2 + $0x70] sm:$0xf] %vm1081_vm1, %v1689_v17  ;;  %v1401_v34 = vsel %vm1146_vm2, %v1310_v21, 0.0  ;;  %v1690_v35 = vpack.c.bf16 %v685_v30, %v685_v30  ;;  %v1204_v37 = vsel %vm1146_vm2, %v685_v30, 0.0  ;;  %v1311_v38 = vmul.f32 %v685_v30, %v685_v30  ;;  %v687_v41 = vpop.f32.mrb[59].mxu0  ;;  %v815_v43 = vpop.f32.mrb[59].mxu1 }
 0x16c   :  { %1142 = vst.msk [vmem:[%s2742_s2 + $0xf0] sm:$0xf] %vm1081_vm1, %v1721_v27  ;;  %v1402_v45 = vadd.f32 %v1401_v34, %v1400_v14  ;;  %v1205_v47 = vadd.f32 %v1204_v37, %v1203_v29  ;;  %v1722_v48 = vpack.c.bf16 %v2523_v32, %v2523_v32  ;;  %v1210_v29 = vsel %vm1146_vm2, %v2126_v11, 0.0 }
 0x16d   :  { %1111 = vst.msk [vmem:[%s2742_s2 + $0x74] sm:$0xf] %vm1081_vm1, %v1690_v35  ;;  %v1403_v50 = vsel %vm1146_vm2, %v1311_v38, 0.0  ;;  %v1315_v30 = vmul.f32 %v2130_v18, %v2130_v18  ;;  %v1409_v38 = vsel %vm1146_vm2, %v1314_v3, 0.0  ;;  %v1212_v11 = vsel %vm1146_vm2, %v2130_v18, 0.0 }
 0x16e   :  { %v1404_v51 = vadd.f32 %v1403_v50, %v1402_v45  ;;  %1143 = vst.msk [vmem:[%s2742_s2 + $0xf4] sm:$0xf] %vm1081_vm1, %v1722_v48  ;;  %v1316_v41 = vmul.f32 %v2154_v31, %v2154_v31  ;;  %v1214_v48 = vsel %vm1146_vm2, %v2154_v31, 0.0  ;;  %v1317_v50 = vmul.f32 %v2159_v40, %v2159_v40 }
 0x16f   :  { %v1216_v18 = vsel %vm1146_vm2, %v2159_v40, 0.0  ;;  %v1218_v31 = vsel %vm1146_vm2, %v2182_v53, 0.0  ;;  %v1220_v40 = vsel %vm1146_vm2, %v2187_v62, 0.0 }
 0x170   :  { %v690_v55 = vpop.f32.mrb[60].mxu0  ;;  %v2546_v56 = vpop.f32.mrb[60].mxu1 }
 0x171   :  { %v1691_v57 = vpack.c.bf16 %v690_v55, %v690_v55  ;;  %v1206_v61 = vsel %vm1146_vm2, %v690_v55, 0.0  ;;  %v1312_v63 = vmul.f32 %v690_v55, %v690_v55  ;;  %v692_v0 = vpop.f32.mrb[61].mxu0  ;;  %v1723_v1 = vpack.c.bf16 %v2546_v56, %v2546_v56  ;;  %v820_v2 = vpop.f32.mrb[61].mxu1 }
 0x172   :  { %v1207_v4 = vadd.f32 %v1206_v61, %v1205_v47  ;;  %v693_v5 = vpop.f32.mrb[62].mxu0  ;;  %v2553_v9 = vpop.f32.mrb[62].mxu1  ;;  %v1411_v47 = vsel %vm1146_vm2, %v1315_v30, 0.0  ;;  %v1318_v61 = vmul.f32 %v2182_v53, %v2182_v53  ;;  %v1319_v2 = vmul.f32 %v2187_v62, %v2187_v62 }
 0x173   :  { %1112 = vst.msk [vmem:[%s2742_s2 + $0x78] sm:$0xf] %vm1081_vm1, %v1691_v57  ;;  %v1405_v10 = vsel %vm1146_vm2, %v1312_v63, 0.0  ;;  %v1692_v14 = vpack.c.bf16 %v693_v5, %v693_v5  ;;  %v1208_v15 = vsel %vm1146_vm2, %v693_v5, 0.0  ;;  %v1313_v17 = vmul.f32 %v693_v5, %v693_v5  ;;  %v695_v19 = vpop.f32.mrb[63].mxu0  ;;  %v823_v21 = vpop.f32.mrb[63].mxu1 }
 0x174   :  { %1144 = vst.msk [vmem:[%s2742_s2 + $0xf8] sm:$0xf] %vm1081_vm1, %v1723_v1  ;;  %v1406_v26 = vadd.f32 %v1405_v10, %v1404_v51  ;;  %v1209_v27 = vadd.f32 %v1208_v15, %v1207_v4  ;;  %v1724_v28 = vpack.c.bf16 %v2553_v9, %v2553_v9  ;;  %v1413_v57 = vsel %vm1146_vm2, %v1316_v41, 0.0 }
 0x175   :  { %1113 = vst.msk [vmem:[%s2742_s2 + $0x7c] sm:$0xf] %vm1081_vm1, %v1692_v14  ;;  %v1407_v34 = vsel %vm1146_vm2, %v1313_v17, 0.0  ;;  %v1415_v1 = vsel %vm1146_vm2, %v1317_v50, 0.0  ;;  %v1417_v5 = vsel %vm1146_vm2, %v1318_v61, 0.0  ;;  %v1320_v10 = vmul.f32 %v2210_v12, %v2210_v12 }
 0x176   :  { %v1211_v35 = vadd.f32 %v1210_v29, %v1209_v27  ;;  %v1408_v37 = vadd.f32 %v1407_v34, %v1406_v26  ;;  %1145 = vst.msk [vmem:[%s2742_s2 + $0xfc] sm:$0xf] %vm1081_vm1, %v1724_v28  ;;  %v1419_v17 = vsel %vm1146_vm2, %v1319_v2, 0.0  ;;  %v1222_v53 = vsel %vm1146_vm2, %v2210_v12, 0.0 }
 0x177   :  { %v1321_v19 = vmul.f32 %v2215_v22, %v2215_v22  ;;  %v1421_v27 = vsel %vm1146_vm2, %v1320_v10, 0.0  ;;  %v1224_v62 = vsel %vm1146_vm2, %v2215_v22, 0.0  ;;  %v1322_v28 = vmul.f32 %v2238_v36, %v2238_v36 }
 0x178   :  { %v1213_v43 = vadd.f32 %v1212_v11, %v1211_v35  ;;  %v1410_v45 = vadd.f32 %v1409_v38, %v1408_v37  ;;  %v1226_v12 = vsel %vm1146_vm2, %v2238_v36, 0.0  ;;  %v1323_v35 = vmul.f32 %v2243_v46, %v2243_v46 }
 0x179   :  { %v1423_v34 = vsel %vm1146_vm2, %v1321_v19, 0.0  ;;  %v1425_v11 = vsel %vm1146_vm2, %v1322_v28, 0.0  ;;  %v1228_v22 = vsel %vm1146_vm2, %v2243_v46, 0.0  ;;  %v1324_v41 = vmul.f32 %v2266_v60, %v2266_v60 }
 0x17a   :  { %v1215_v51 = vadd.f32 %v1214_v48, %v1213_v43  ;;  %v1412_v55 = vadd.f32 %v1411_v47, %v1410_v45  ;;  %v1427_v47 = vsel %vm1146_vm2, %v1323_v35, 0.0  ;;  %v1230_v36 = vsel %vm1146_vm2, %v2266_v60, 0.0 }
 0x17b   :  { %v1325_v48 = vmul.f32 %v2271_v6, %v2271_v6  ;;  %v1232_v46 = vsel %vm1146_vm2, %v2271_v6, 0.0  ;;  %v1234_v60 = vsel %vm1146_vm2, %v2294_v23, 0.0  ;;  %v1236_v6 = vsel %vm1146_vm2, %v2299_v33, 0.0 }
 0x17c   :  { %v1217_v63 = vadd.f32 %v1216_v18, %v1215_v51  ;;  %v1414_v0 = vadd.f32 %v1413_v57, %v1412_v55  ;;  %v1429_v55 = vsel %vm1146_vm2, %v1324_v41, 0.0  ;;  %v1326_v57 = vmul.f32 %v2294_v23, %v2294_v23 }
 0x17d   :  { %v1238_v23 = vsel %vm1146_vm2, %v2322_v49, 0.0  ;;  %v1329_v10 = vmul.f32 %v2327_v59, %v2327_v59  ;;  %v1334_v41 = vmul.f32 %v2406_v7, %v2406_v7 }
 0x17e   :  { %v1219_v3 = vadd.f32 %v1218_v31, %v1217_v63  ;;  %v1416_v4 = vadd.f32 %v1415_v1, %v1414_v0  ;;  %v1431_v63 = vsel %vm1146_vm2, %v1325_v48, 0.0  ;;  %v1327_v0 = vmul.f32 %v2299_v33, %v2299_v33 }
 0x17f   :  { %v1433_v2 = vsel %vm1146_vm2, %v1326_v57, 0.0  ;;  %v1240_v33 = vsel %vm1146_vm2, %v2327_v59, 0.0  ;;  %v1244_v59 = vsel %vm1146_vm2, %v2355_v25, 0.0 }
 0x180   :  { %v1221_v14 = vadd.f32 %v1220_v40, %v1219_v3  ;;  %v1418_v15 = vadd.f32 %v1417_v5, %v1416_v4  ;;  %v1328_v3 = vmul.f32 %v2322_v49, %v2322_v49  ;;  %v1435_v40 = vsel %vm1146_vm2, %v1327_v0, 0.0 }
 0x181   :  { %v1242_v49 = vsel %vm1146_vm2, %v2350_v13, 0.0 }
 0x182   :  { %v1223_v21 = vadd.f32 %v1222_v53, %v1221_v14  ;;  %v1420_v26 = vadd.f32 %v1419_v17, %v1418_v15  ;;  %v1437_v17 = vsel %vm1146_vm2, %v1328_v3, 0.0  ;;  %v1330_v53 = vmul.f32 %v2350_v13, %v2350_v13 }
 0x183   :  { %v1246_v13 = vsel %vm1146_vm2, %v2378_v42, 0.0  ;;  %v1339_v3 = vmul.f32 %v2467_v24, %v2467_v24 }
 0x184   :  { %v1225_v29 = vadd.f32 %v1224_v62, %v1223_v21  ;;  %v1422_v30 = vadd.f32 %v1421_v27, %v1420_v26  ;;  %v1439_v26 = vsel %vm1146_vm2, %v1329_v10, 0.0  ;;  %v1331_v27 = vmul.f32 %v2355_v25, %v2355_v25 }
 0x185   :  { %v1248_v25 = vsel %vm1146_vm2, %v2383_v54, 0.0 }
 0x186   :  { %v1424_v37 = vadd.f32 %v1423_v34, %v1422_v30  ;;  %v1227_v38 = vadd.f32 %v1226_v12, %v1225_v29  ;;  %v1441_v29 = vsel %vm1146_vm2, %v1330_v53, 0.0  ;;  %v1332_v30 = vmul.f32 %v2378_v42, %v2378_v42 }
 0x187   :  { %v1443_v35 = vsel %vm1146_vm2, %v1331_v27, 0.0  ;;  %v1250_v42 = vsel %vm1146_vm2, %v2406_v7, 0.0  ;;  %v1254_v7 = vsel %vm1146_vm2, %v2434_v39, 0.0 }
 0x188   :  { %v1229_v43 = vadd.f32 %v1228_v22, %v1227_v38  ;;  %v1426_v45 = vadd.f32 %v1425_v11, %v1424_v37  ;;  %v1333_v37 = vmul.f32 %v2383_v54, %v2383_v54  ;;  %v1445_v22 = vsel %vm1146_vm2, %v1332_v30, 0.0 }
 0x189   :  { %v1252_v54 = vsel %vm1146_vm2, %v2411_v20, 0.0  ;;  %v1268_v30 = vsel %vm1146_vm2, %v2523_v32, 0.0 }
 0x18a   :  { %v1231_v50 = vadd.f32 %v1230_v36, %v1229_v43  ;;  %v1428_v51 = vadd.f32 %v1427_v47, %v1426_v45  ;;  %v1447_v47 = vsel %vm1146_vm2, %v1333_v37, 0.0  ;;  %v1335_v36 = vmul.f32 %v2411_v20, %v2411_v20 }
 0x18b   :  { %v1256_v20 = vsel %vm1146_vm2, %v2439_v52, 0.0  ;;  %v1345_v37 = vmul.f32 %v2553_v9, %v2553_v9 }
 0x18c   :  { %v1233_v18 = vadd.f32 %v1232_v46, %v1231_v50  ;;  %v1430_v61 = vadd.f32 %v1429_v55, %v1428_v51  ;;  %v1449_v51 = vsel %vm1146_vm2, %v1334_v41, 0.0  ;;  %v1336_v55 = vmul.f32 %v2434_v39, %v2434_v39 }
 0x18d   :  { %v1258_v39 = vsel %vm1146_vm2, %v2462_v8, 0.0 }
 0x18e   :  { %v1235_v1 = vadd.f32 %v1234_v60, %v1233_v18  ;;  %v1432_v31 = vadd.f32 %v1431_v63, %v1430_v61  ;;  %v1451_v18 = vsel %vm1146_vm2, %v1335_v36, 0.0  ;;  %v1337_v61 = vmul.f32 %v2439_v52, %v2439_v52 }
 0x18f   :  { %v1453_v0 = vsel %vm1146_vm2, %v1336_v55, 0.0  ;;  %v1260_v52 = vsel %vm1146_vm2, %v2467_v24, 0.0  ;;  %v1264_v24 = vsel %vm1146_vm2, %v2495_v58, 0.0 }
 0x190   :  { %v1237_v4 = vadd.f32 %v1236_v6, %v1235_v1  ;;  %v1434_v5 = vadd.f32 %v1433_v2, %v1432_v31  ;;  %v1338_v1 = vmul.f32 %v2462_v8, %v2462_v8  ;;  %v1455_v6 = vsel %vm1146_vm2, %v1337_v61, 0.0 }
 0x191   :  { %v1262_v8 = vsel %vm1146_vm2, %v2490_v44, 0.0 }
 0x192   :  { %v1239_v14 = vadd.f32 %v1238_v23, %v1237_v4  ;;  %v1436_v15 = vadd.f32 %v1435_v40, %v1434_v5  ;;  %v1457_v40 = vsel %vm1146_vm2, %v1338_v1, 0.0  ;;  %v1340_v23 = vmul.f32 %v2490_v44, %v2490_v44 }
 0x193   :  { %v1266_v44 = vsel %vm1146_vm2, %v2518_v16, 0.0 }
 0x194   :  { %v1241_v19 = vadd.f32 %v1240_v33, %v1239_v14  ;;  %v1438_v21 = vadd.f32 %v1437_v17, %v1436_v15  ;;  %v1459_v15 = vsel %vm1146_vm2, %v1339_v3, 0.0  ;;  %v1341_v17 = vmul.f32 %v2495_v58, %v2495_v58 }
 0x196   :  { %v1243_v62 = vadd.f32 %v1242_v49, %v1241_v19  ;;  %v1440_v28 = vadd.f32 %v1439_v26, %v1438_v21  ;;  %v1461_v19 = vsel %vm1146_vm2, %v1340_v23, 0.0  ;;  %v1342_v21 = vmul.f32 %v2518_v16, %v2518_v16 }
 0x197   :  { %v1463_v27 = vsel %vm1146_vm2, %v1341_v17, 0.0 }
 0x198   :  { %v1442_v34 = vadd.f32 %v1441_v29, %v1440_v28  ;;  %v1245_v12 = vadd.f32 %v1244_v59, %v1243_v62  ;;  %v1343_v62 = vmul.f32 %v2523_v32, %v2523_v32  ;;  %v1344_v28 = vmul.f32 %v2546_v56, %v2546_v56 }
 0x199   :  { %v1465_v58 = vsel %vm1146_vm2, %v1342_v21, 0.0  ;;  %v1471_v32 = vsel %vm1146_vm2, %v1345_v37, 0.0 }
 0x19a   :  { %v1444_v38 = vadd.f32 %v1443_v35, %v1442_v34  ;;  %v1247_v11 = vadd.f32 %v1246_v13, %v1245_v12  ;;  %v1270_v34 = vsel %vm1146_vm2, %v2546_v56, 0.0  ;;  %v1467_v16 = vsel %vm1146_vm2, %v1343_v62, 0.0 }
 0x19b   :  { %v1469_v13 = vsel %vm1146_vm2, %v1344_v28, 0.0 }
 0x19c   :  { %v1446_v43 = vadd.f32 %v1445_v22, %v1444_v38  ;;  %v1249_v45 = vadd.f32 %v1248_v25, %v1247_v11  ;;  %v1272_v22 = vsel %vm1146_vm2, %v2553_v9, 0.0 }
 0x19e   :  { %v1448_v48 = vadd.f32 %v1447_v47, %v1446_v43  ;;  %v1251_v50 = vadd.f32 %v1250_v42, %v1249_v45 }
 0x1a0   :  { %v1450_v46 = vadd.f32 %v1449_v51, %v1448_v48  ;;  %v1253_v57 = vadd.f32 %v1252_v54, %v1251_v50 }
 0x1a2   :  { %v1452_v63 = vadd.f32 %v1451_v18, %v1450_v46  ;;  %v1255_v60 = vadd.f32 %v1254_v7, %v1253_v57 }
 0x1a4   :  { %v1454_v31 = vadd.f32 %v1453_v0, %v1452_v63  ;;  %v1257_v2 = vadd.f32 %v1256_v20, %v1255_v60 }
 0x1a6   :  { %v1456_v4 = vadd.f32 %v1455_v6, %v1454_v31  ;;  %v1259_v5 = vadd.f32 %v1258_v39, %v1257_v2 }
 0x1a8   :  { %v1458_v10 = vadd.f32 %v1457_v40, %v1456_v4  ;;  %v1261_v14 = vadd.f32 %v1260_v52, %v1259_v5 }
 0x1aa   :  { %v1460_v33 = vadd.f32 %v1459_v15, %v1458_v10  ;;  %v1263_v53 = vadd.f32 %v1262_v8, %v1261_v14 }
 0x1ac   :  { %v1462_v26 = vadd.f32 %v1461_v19, %v1460_v33  ;;  %v1265_v49 = vadd.f32 %v1264_v24, %v1263_v53 }
 0x1ae   :  { %v1464_v29 = vadd.f32 %v1463_v27, %v1462_v26  ;;  %v1267_v59 = vadd.f32 %v1266_v44, %v1265_v49 }
 0x1b0   :  { %v1466_v12 = vadd.f32 %v1465_v58, %v1464_v29  ;;  %v1269_v35 = vadd.f32 %v1268_v30, %v1267_v59 }
 0x1b2   :  { %v1468_v38 = vadd.f32 %v1467_v16, %v1466_v12  ;;  %v1271_v11 = vadd.f32 %v1270_v34, %v1269_v35 }
 0x1b4   :  { %v1470_v25 = vadd.f32 %v1469_v13, %v1468_v38  ;;  %v1273_v41 = vadd.f32 %v1272_v22, %v1271_v11 }
 0x1b6   :  { %v1274_v43 = vrot.slane %v1273_v41, 4  ;;  %v1472_v56 = vadd.f32 %v1471_v32, %v1470_v25 }
 0x1b8   :  { %v1275_v45 = vadd.f32 %v1274_v43, %v1273_v41  ;;  %v1473_v47 = vrot.slane %v1472_v56, 4 }
 0x1ba   :  { %v1276_v42 = vrot.slane %v1275_v45, 2  ;;  %v1474_v36 = vadd.f32 %v1473_v47, %v1472_v56 }
 0x1bc   :  { %v1277_v48 = vadd.f32 %v1276_v42, %v1275_v45  ;;  %v1475_v50 = vrot.slane %v1474_v36, 2 }
 0x1be   :  { %v1278_v51 = vrot.slane %v1277_v48, 1  ;;  %v1476_v54 = vadd.f32 %v1475_v50, %v1474_v36 }
 0x1c0   :  { %v1279_v55 = vadd.f32 %v1278_v51, %v1277_v48  ;;  %v1477_v46 = vrot.slane %v1476_v54, 1 }
 0x1c2   :  { %1281 = vst.msk [vmem:[%s2743_s3] sm:$0x1] %vm1280_vm3, %v1279_v55  ;;  %v1478_v9 = vadd.f32 %v1477_v46, %v1476_v54 }
 0x1c4   :  { %1479 = vst.msk [vmem:[%s2744_s4] sm:$0x1] %vm1280_vm3, %v1478_v9 }

// kernel: tile.98
= control target key start
LH: loop header
LB: loop body
LE: loop exit
PB: predicated region body
PF: predicated region fallthrough
CT: control target
= control target key end

     0   :  { %s22_s0 = inlined_call_operand.vmem [shape: f32[8], index: 0, kind: input, shape index: {}]   ;;  %s23_s1 = inlined_call_operand.vmem [shape: f32[4,8], index: 1, kind: output, shape index: {}]  }
   0x1   :  { %v4_v0 = vld [vmem:[%s22_s0] ss:$0 sm:$0xff] }
   0x2   :  { %5 = vst [vmem:[%s23_s1] sm:$0xf] %v4_v0 }

// kernel: netG_forward.19
= control target key start
LH: loop header
LB: loop body
LE: loop exit
PB: predicated region body
PF: predicated region fallthrough
CT: control target
= control target key end

     0   :  { %vm954_vm0 = vcmask 588800   ;;  %vm1339_vm1 = vcmask 1043456   ;;  %vm2656_vm2 = vcmask 97280   ;;  %s6079_s1 = inlined_call_operand.vmem [shape: bf16[72,12], index: 1, kind: input, shape index: {}]   ;;  %s6080_s0 = inlined_call_operand.vmem [shape: bf16[2048,72], index: 0, kind: input, shape index: {}]   ;;  %s6081_s2 = inlined_call_operand.vmem [shape: f32[1,12], index: 2, kind: input, shape index: {}]   ;;  %s6082_s3 = inlined_call_operand.vmem [shape: f32[2048,12], index: 3, kind: output, shape index: {}]  }
   0x1   :  { %v3590_v0 = vld [vmem:[%s6079_s1] sm:$0xff]   ;;  %v3591_v1 = vld [vmem:[%s6079_s1 + $0x8] sm:$0xff]   ;;  %v3592_v2 = vld [vmem:[%s6079_s1 + $0x10] sm:$0xff]  }
   0x2   :  { %3312 = vmatprep.subr.bf16.mxu0 %v3590_v0  ;;  %3578 = vmatprep.subr.bf16.mxu1 %v3590_v0  ;;  %v3595_v3 = vld [vmem:[%s6080_s0] sm:$0xff]   ;;  %v3593_v5 = vld [vmem:[%s6079_s1 + $0x18] sm:$0xff]   ;;  %v3597_v8 = vld [vmem:[%s6080_s0 + $0x8] sm:$0xff]  }
   0x3   :  { %3313 = vmatpush3.bf16.msra.mxu0 %v3590_v0  ;;  %3583 = vmatpush3.bf16.msra.mxu1 %v3590_v0  ;;  %v3596_v4 = vld [vmem:[%s6080_s0 + $0x200] sm:$0xff]   ;;  %v3598_v9 = vld [vmem:[%s6080_s0 + $0x208] sm:$0xff]   ;;  %v3599_v10 = vld [vmem:[%s6080_s0 + $0x10] sm:$0xff]  }
   0x4   :  { %3314 = vmatprep.subr.bf16.mxu0 %v3591_v1  ;;  %3579 = vmatprep.subr.bf16.mxu1 %v3591_v1  ;;  %v3594_v6 = vld [vmem:[%s6079_s1 + $0x20] ss:$0 sps:$4 sm:$0xff]   ;;  %v3600_v11 = vld [vmem:[%s6080_s0 + $0x210] sm:$0xff]   ;;  %v3601_v12 = vld [vmem:[%s6080_s0 + $0x18] sm:$0xff]  }
   0x5   :  { %3322 = vmatprep.mubr.msk.bf16.mxu0 %vm954_vm0, %v3595_v3  ;;  %3450 = vmatprep.mubr.msk.bf16.mxu1 %vm954_vm0, %v3596_v4  ;;  %v1341_v7 = vsel %vm1339_vm1, %v3594_v6, 0  ;;  %v3602_v13 = vld [vmem:[%s6080_s0 + $0x218] sm:$0xff]   ;;  %v3603_v14 = vld [vmem:[%s6080_s0 + $0x20] sm:$0xff]   ;;  %v3605_v16 = vld [vmem:[%s6080_s0 + $0x28] sm:$0xff]  }
   0x6   :  { %v3604_v15 = vld [vmem:[%s6080_s0 + $0x220] sm:$0xff]   ;;  %v3606_v17 = vld [vmem:[%s6080_s0 + $0x228] sm:$0xff]   ;;  %v3607_v18 = vld [vmem:[%s6080_s0 + $0x30] sm:$0xff]  }
   0x7   :  { %3315 = vmatpush3.bf16.msra.mxu0 %v3591_v1  ;;  %3584 = vmatpush3.bf16.msra.mxu1 %v3591_v1  ;;  %v3608_v19 = vld [vmem:[%s6080_s0 + $0x230] sm:$0xff]   ;;  %v3609_v20 = vld [vmem:[%s6080_s0 + $0x38] sm:$0xff]   ;;  %v3611_v22 = vld [vmem:[%s6080_s0 + $0x40] sm:$0xff]  }
   0x8   :  { %3316 = vmatprep.subr.bf16.mxu0 %v3592_v2  ;;  %3580 = vmatprep.subr.bf16.mxu1 %v3592_v2  ;;  %v3610_v21 = vld [vmem:[%s6080_s0 + $0x238] sm:$0xff]   ;;  %v3612_v23 = vld [vmem:[%s6080_s0 + $0x240] sm:$0xff]   ;;  %v3613_v24 = vld [vmem:[%s6080_s0 + $0x48] sm:$0xff]  }
   0x9   :  { %v3614_v25 = vld [vmem:[%s6080_s0 + $0x248] sm:$0xff]   ;;  %v3615_v26 = vld [vmem:[%s6080_s0 + $0x50] sm:$0xff]   ;;  %v3617_v28 = vld [vmem:[%s6080_s0 + $0x58] sm:$0xff]  }
   0xa   :  { %v3616_v27 = vld [vmem:[%s6080_s0 + $0x250] sm:$0xff]   ;;  %v3618_v29 = vld [vmem:[%s6080_s0 + $0x258] sm:$0xff]   ;;  %v3619_v30 = vld [vmem:[%s6080_s0 + $0x60] sm:$0xff]  }
   0xb   :  { %3317 = vmatpush3.bf16.msra.mxu0 %v3592_v2  ;;  %3585 = vmatpush3.bf16.msra.mxu1 %v3592_v2  ;;  %v3620_v31 = vld [vmem:[%s6080_s0 + $0x260] sm:$0xff]   ;;  %v3621_v32 = vld [vmem:[%s6080_s0 + $0x68] sm:$0xff]   ;;  %v3623_v34 = vld [vmem:[%s6080_s0 + $0x70] sm:$0xff]  }
   0xc   :  { %3318 = vmatprep.subr.bf16.mxu0 %v3593_v5  ;;  %3581 = vmatprep.subr.bf16.mxu1 %v3593_v5  ;;  %v3622_v33 = vld [vmem:[%s6080_s0 + $0x268] sm:$0xff]   ;;  %v3624_v35 = vld [vmem:[%s6080_s0 + $0x270] sm:$0xff]   ;;  %v3625_v36 = vld [vmem:[%s6080_s0 + $0x78] sm:$0xff]  }
   0xd   :  { %v3626_v37 = vld [vmem:[%s6080_s0 + $0x278] sm:$0xff]   ;;  %v3627_v38 = vld [vmem:[%s6080_s0 + $0x80] sm:$0xff]   ;;  %v3629_v40 = vld [vmem:[%s6080_s0 + $0x88] sm:$0xff]  }
   0xe   :  { %v3628_v39 = vld [vmem:[%s6080_s0 + $0x280] sm:$0xff]   ;;  %v3630_v41 = vld [vmem:[%s6080_s0 + $0x288] sm:$0xff]   ;;  %v3631_v42 = vld [vmem:[%s6080_s0 + $0x90] sm:$0xff]  }
   0xf   :  { %3319 = vmatpush3.bf16.msra.mxu0 %v3593_v5  ;;  %3586 = vmatpush3.bf16.msra.mxu1 %v3593_v5  ;;  %v3632_v43 = vld [vmem:[%s6080_s0 + $0x290] sm:$0xff]   ;;  %v3633_v44 = vld [vmem:[%s6080_s0 + $0x98] sm:$0xff]   ;;  %v3635_v46 = vld [vmem:[%s6080_s0 + $0xa0] sm:$0xff]  }
  0x10   :  { %3588 = vmatprep.subr.msk.bf16.mxu0 %vm1339_vm1, %v3594_v6  ;;  %3589 = vmatprep.subr.msk.bf16.mxu1 %vm1339_vm1, %v3594_v6  ;;  %v3634_v45 = vld [vmem:[%s6080_s0 + $0x298] sm:$0xff]   ;;  %v3636_v47 = vld [vmem:[%s6080_s0 + $0x2a0] sm:$0xff]   ;;  %v3637_v48 = vld [vmem:[%s6080_s0 + $0xa8] sm:$0xff]  }
  0x11   :  { %v3638_v49 = vld [vmem:[%s6080_s0 + $0x2a8] sm:$0xff]   ;;  %v3639_v50 = vld [vmem:[%s6080_s0 + $0xb0] sm:$0xff]   ;;  %v3641_v52 = vld [vmem:[%s6080_s0 + $0xb8] sm:$0xff]  }
  0x12   :  { %v3640_v51 = vld [vmem:[%s6080_s0 + $0x2b0] sm:$0xff]   ;;  %v3642_v53 = vld [vmem:[%s6080_s0 + $0x2b8] sm:$0xff]   ;;  %v3643_v54 = vld [vmem:[%s6080_s0 + $0xc0] sm:$0xff]  }
  0x13   :  { %3321 = vmatpush3.bf16.msra.mxu0 %v1341_v7  ;;  %3587 = vmatpush3.bf16.msra.mxu1 %v1341_v7  ;;  %v3644_v55 = vld [vmem:[%s6080_s0 + $0x2c0] sm:$0xff]   ;;  %v3645_v56 = vld [vmem:[%s6080_s0 + $0xc8] sm:$0xff]   ;;  %v3647_v58 = vld [vmem:[%s6080_s0 + $0xd0] sm:$0xff]  }
  0x14   :  { %v3646_v57 = vld [vmem:[%s6080_s0 + $0x2c8] sm:$0xff]   ;;  %v3648_v59 = vld [vmem:[%s6080_s0 + $0x2d0] sm:$0xff]   ;;  %v3649_v60 = vld [vmem:[%s6080_s0 + $0xd8] sm:$0xff]  }
  0x15   :  { %v3650_v61 = vld [vmem:[%s6080_s0 + $0x2d8] sm:$0xff]   ;;  %v3651_v62 = vld [vmem:[%s6080_s0 + $0xe0] sm:$0xff]   ;;  %v3653_v0 = vld [vmem:[%s6080_s0 + $0xe8] sm:$0xff]  }
  0x16   :  { %3323 = vmatmul.mubr.msk.bf16.vlgmr.msra.gmra.mrb[0].mxu0 %vm954_vm0, %v3597_v8  ;;  %3451 = vmatmul.mubr.msk.bf16.vlgmr.msra.gmra.mrb[0].mxu1 %vm954_vm0, %v3598_v9  ;;  %v3652_v63 = vld [vmem:[%s6080_s0 + $0x2e0] sm:$0xff]   ;;  %v3654_v1 = vld [vmem:[%s6080_s0 + $0x2e8] sm:$0xff]   ;;  %v3655_v2 = vld [vmem:[%s6080_s0 + $0xf0] sm:$0xff]  }
  0x17   :  { %3326 = vmatprep.mubr.msk.bf16.mxu0 %vm954_vm0, %v3599_v10  ;;  %3454 = vmatprep.mubr.msk.bf16.mxu1 %vm954_vm0, %v3600_v11  ;;  %v3656_v3 = vld [vmem:[%s6080_s0 + $0x2f0] sm:$0xff]   ;;  %v3657_v4 = vld [vmem:[%s6080_s0 + $0xf8] sm:$0xff]   ;;  %v3659_v6 = vld [vmem:[%s6080_s0 + $0x100] sm:$0xff]  }
  0x18   :  { %v3658_v5 = vld [vmem:[%s6080_s0 + $0x2f8] sm:$0xff]   ;;  %v3660_v7 = vld [vmem:[%s6080_s0 + $0x300] sm:$0xff]   ;;  %v3661_v8 = vld [vmem:[%s6080_s0 + $0x108] sm:$0xff]  }
  0x19   :  { %v3662_v9 = vld [vmem:[%s6080_s0 + $0x308] sm:$0xff]   ;;  %v3663_v10 = vld [vmem:[%s6080_s0 + $0x110] sm:$0xff]  }
  0x1a   :  { %v3664_v11 = vld [vmem:[%s6080_s0 + $0x310] sm:$0xff]  }
  0x1e   :  { %3327 = vmatmul.mubr.msk.bf16.gmra.mrb[4].mxu0 %vm954_vm0, %v3601_v12  ;;  %3455 = vmatmul.mubr.msk.bf16.gmra.mrb[4].mxu1 %vm954_vm0, %v3602_v13  ;;  %v3665_v12 = vld [vmem:[%s6080_s0 + $0x118] sm:$0xff]  }
  0x1f   :  { %3330 = vmatprep.mubr.msk.bf16.mxu0 %vm954_vm0, %v3603_v14  ;;  %3458 = vmatprep.mubr.msk.bf16.mxu1 %vm954_vm0, %v3604_v15  ;;  %v3666_v13 = vld [vmem:[%s6080_s0 + $0x318] sm:$0xff]   ;;  %v3667_v14 = vld [vmem:[%s6080_s0 + $0x120] sm:$0xff]  }
  0x20   :  { %v3668_v15 = vld [vmem:[%s6080_s0 + $0x320] sm:$0xff]  }
  0x26   :  { %3331 = vmatmul.mubr.msk.bf16.gmra.mrb[8].mxu0 %vm954_vm0, %v3605_v16  ;;  %3459 = vmatmul.mubr.msk.bf16.gmra.mrb[8].mxu1 %vm954_vm0, %v3606_v17  ;;  %v3669_v16 = vld [vmem:[%s6080_s0 + $0x128] sm:$0xff]  }
  0x27   :  { %3334 = vmatprep.mubr.msk.bf16.mxu0 %vm954_vm0, %v3607_v18  ;;  %3462 = vmatprep.mubr.msk.bf16.mxu1 %vm954_vm0, %v3608_v19  ;;  %v3670_v17 = vld [vmem:[%s6080_s0 + $0x328] sm:$0xff]   ;;  %v3671_v18 = vld [vmem:[%s6080_s0 + $0x130] sm:$0xff]  }
  0x28   :  { %v3672_v19 = vld [vmem:[%s6080_s0 + $0x330] sm:$0xff]  }
  0x2e   :  { %3335 = vmatmul.mubr.msk.bf16.gmra.mrb[12].mxu0 %vm954_vm0, %v3609_v20  ;;  %3463 = vmatmul.mubr.msk.bf16.gmra.mrb[12].mxu1 %vm954_vm0, %v3610_v21  ;;  %v3673_v20 = vld [vmem:[%s6080_s0 + $0x138] sm:$0xff]  }
  0x2f   :  { %3338 = vmatprep.mubr.msk.bf16.mxu0 %vm954_vm0, %v3611_v22  ;;  %3466 = vmatprep.mubr.msk.bf16.mxu1 %vm954_vm0, %v3612_v23  ;;  %v3674_v21 = vld [vmem:[%s6080_s0 + $0x338] sm:$0xff]   ;;  %v3675_v22 = vld [vmem:[%s6080_s0 + $0x140] sm:$0xff]  }
  0x30   :  { %v3676_v23 = vld [vmem:[%s6080_s0 + $0x340] sm:$0xff]  }
  0x36   :  { %3339 = vmatmul.mubr.msk.bf16.gmra.mrb[16].mxu0 %vm954_vm0, %v3613_v24  ;;  %3467 = vmatmul.mubr.msk.bf16.gmra.mrb[16].mxu1 %vm954_vm0, %v3614_v25  ;;  %v3677_v24 = vld [vmem:[%s6080_s0 + $0x148] sm:$0xff]  }
  0x37   :  { %3342 = vmatprep.mubr.msk.bf16.mxu0 %vm954_vm0, %v3615_v26  ;;  %3470 = vmatprep.mubr.msk.bf16.mxu1 %vm954_vm0, %v3616_v27  ;;  %v3678_v25 = vld [vmem:[%s6080_s0 + $0x348] sm:$0xff]   ;;  %v3679_v26 = vld [vmem:[%s6080_s0 + $0x150] sm:$0xff]  }
  0x38   :  { %v3680_v27 = vld [vmem:[%s6080_s0 + $0x350] sm:$0xff]  }
  0x3e   :  { %3343 = vmatmul.mubr.msk.bf16.gmra.mrb[20].mxu0 %vm954_vm0, %v3617_v28  ;;  %3471 = vmatmul.mubr.msk.bf16.gmra.mrb[20].mxu1 %vm954_vm0, %v3618_v29  ;;  %v3681_v28 = vld [vmem:[%s6080_s0 + $0x158] sm:$0xff]  }
  0x3f   :  { %3346 = vmatprep.mubr.msk.bf16.mxu0 %vm954_vm0, %v3619_v30  ;;  %3474 = vmatprep.mubr.msk.bf16.mxu1 %vm954_vm0, %v3620_v31  ;;  %v3682_v29 = vld [vmem:[%s6080_s0 + $0x358] sm:$0xff]   ;;  %v3683_v30 = vld [vmem:[%s6080_s0 + $0x160] sm:$0xff]  }
  0x40   :  { %v3684_v31 = vld [vmem:[%s6080_s0 + $0x360] sm:$0xff]  }
  0x46   :  { %3347 = vmatmul.mubr.msk.bf16.gmra.mrb[24].mxu0 %vm954_vm0, %v3621_v32  ;;  %3475 = vmatmul.mubr.msk.bf16.gmra.mrb[24].mxu1 %vm954_vm0, %v3622_v33  ;;  %v3685_v32 = vld [vmem:[%s6080_s0 + $0x168] sm:$0xff]  }
  0x47   :  { %3350 = vmatprep.mubr.msk.bf16.mxu0 %vm954_vm0, %v3623_v34  ;;  %3478 = vmatprep.mubr.msk.bf16.mxu1 %vm954_vm0, %v3624_v35  ;;  %v3686_v33 = vld [vmem:[%s6080_s0 + $0x368] sm:$0xff]   ;;  %v3687_v34 = vld [vmem:[%s6080_s0 + $0x170] sm:$0xff]  }
  0x48   :  { %v3688_v35 = vld [vmem:[%s6080_s0 + $0x370] sm:$0xff]  }
  0x4e   :  { %3351 = vmatmul.mubr.msk.bf16.gmra.mrb[28].mxu0 %vm954_vm0, %v3625_v36  ;;  %3479 = vmatmul.mubr.msk.bf16.gmra.mrb[28].mxu1 %vm954_vm0, %v3626_v37  ;;  %v3689_v36 = vld [vmem:[%s6080_s0 + $0x178] sm:$0xff]  }
  0x4f   :  { %3354 = vmatprep.mubr.msk.bf16.mxu0 %vm954_vm0, %v3627_v38  ;;  %3482 = vmatprep.mubr.msk.bf16.mxu1 %vm954_vm0, %v3628_v39  ;;  %v3690_v37 = vld [vmem:[%s6080_s0 + $0x378] sm:$0xff]   ;;  %v3691_v38 = vld [vmem:[%s6080_s0 + $0x180] sm:$0xff]  }
  0x50   :  { %v3692_v39 = vld [vmem:[%s6080_s0 + $0x380] sm:$0xff]  }
  0x56   :  { %3355 = vmatmul.mubr.msk.bf16.gmra.mrb[32].mxu0 %vm954_vm0, %v3629_v40  ;;  %3483 = vmatmul.mubr.msk.bf16.gmra.mrb[32].mxu1 %vm954_vm0, %v3630_v41  ;;  %v3693_v40 = vld [vmem:[%s6080_s0 + $0x188] sm:$0xff]  }
  0x57   :  { %3358 = vmatprep.mubr.msk.bf16.mxu0 %vm954_vm0, %v3631_v42  ;;  %3486 = vmatprep.mubr.msk.bf16.mxu1 %vm954_vm0, %v3632_v43  ;;  %v3694_v41 = vld [vmem:[%s6080_s0 + $0x388] sm:$0xff]   ;;  %v3695_v42 = vld [vmem:[%s6080_s0 + $0x190] sm:$0xff]  }
  0x58   :  { %v3696_v43 = vld [vmem:[%s6080_s0 + $0x390] sm:$0xff]  }
  0x5e   :  { %3359 = vmatmul.mubr.msk.bf16.gmra.mrb[36].mxu0 %vm954_vm0, %v3633_v44  ;;  %3487 = vmatmul.mubr.msk.bf16.gmra.mrb[36].mxu1 %vm954_vm0, %v3634_v45  ;;  %v3697_v44 = vld [vmem:[%s6080_s0 + $0x198] sm:$0xff]  }
  0x5f   :  { %3362 = vmatprep.mubr.msk.bf16.mxu0 %vm954_vm0, %v3635_v46  ;;  %3490 = vmatprep.mubr.msk.bf16.mxu1 %vm954_vm0, %v3636_v47  ;;  %v3698_v45 = vld [vmem:[%s6080_s0 + $0x398] sm:$0xff]   ;;  %v3699_v46 = vld [vmem:[%s6080_s0 + $0x1a0] sm:$0xff]  }
  0x60   :  { %v3700_v47 = vld [vmem:[%s6080_s0 + $0x3a0] sm:$0xff]  }
  0x66   :  { %3363 = vmatmul.mubr.msk.bf16.gmra.mrb[40].mxu0 %vm954_vm0, %v3637_v48  ;;  %3491 = vmatmul.mubr.msk.bf16.gmra.mrb[40].mxu1 %vm954_vm0, %v3638_v49  ;;  %v3701_v48 = vld [vmem:[%s6080_s0 + $0x1a8] sm:$0xff]  }
  0x67   :  { %3366 = vmatprep.mubr.msk.bf16.mxu0 %vm954_vm0, %v3639_v50  ;;  %3494 = vmatprep.mubr.msk.bf16.mxu1 %vm954_vm0, %v3640_v51  ;;  %v3702_v49 = vld [vmem:[%s6080_s0 + $0x3a8] sm:$0xff]   ;;  %v3703_v50 = vld [vmem:[%s6080_s0 + $0x1b0] sm:$0xff]  }
  0x68   :  { %v3704_v51 = vld [vmem:[%s6080_s0 + $0x3b0] sm:$0xff]  }
  0x6e   :  { %3367 = vmatmul.mubr.msk.bf16.gmra.mrb[44].mxu0 %vm954_vm0, %v3641_v52  ;;  %3495 = vmatmul.mubr.msk.bf16.gmra.mrb[44].mxu1 %vm954_vm0, %v3642_v53  ;;  %v4713_v52 = vld [vmem:[%s6081_s2] ss:$0 sm:$0xff] }
  0x6f   :  { %3370 = vmatprep.mubr.msk.bf16.mxu0 %vm954_vm0, %v3643_v54  ;;  %3498 = vmatprep.mubr.msk.bf16.mxu1 %vm954_vm0, %v3644_v55 }
  0x76   :  { %3371 = vmatmul.mubr.msk.bf16.gmra.mrb[48].mxu0 %vm954_vm0, %v3645_v56  ;;  %3499 = vmatmul.mubr.msk.bf16.gmra.mrb[48].mxu1 %vm954_vm0, %v3646_v57 }
  0x77   :  { %3374 = vmatprep.mubr.msk.bf16.mxu0 %vm954_vm0, %v3647_v58  ;;  %3502 = vmatprep.mubr.msk.bf16.mxu1 %vm954_vm0, %v3648_v59  ;;  %v3705_v59 = vld [vmem:[%s6080_s0 + $0x1b8] sm:$0xff]  }
  0x7e   :  { %3375 = vmatmul.mubr.msk.bf16.gmra.mrb[52].mxu0 %vm954_vm0, %v3649_v60  ;;  %3503 = vmatmul.mubr.msk.bf16.gmra.mrb[52].mxu1 %vm954_vm0, %v3650_v61  ;;  %v3706_v60 = vld [vmem:[%s6080_s0 + $0x3b8] sm:$0xff]  }
  0x7f   :  { %3378 = vmatprep.mubr.msk.bf16.mxu0 %vm954_vm0, %v3651_v62  ;;  %3506 = vmatprep.mubr.msk.bf16.mxu1 %vm954_vm0, %v3652_v63 }
  0x86   :  { %3379 = vmatmul.mubr.msk.bf16.gmra.mrb[56].mxu0 %vm954_vm0, %v3653_v0  ;;  %3507 = vmatmul.mubr.msk.bf16.gmra.mrb[56].mxu1 %vm954_vm0, %v3654_v1  ;;  %v3707_v1 = vld [vmem:[%s6080_s0 + $0x1c0] sm:$0xff]  }
  0x87   :  { %3382 = vmatprep.mubr.msk.bf16.mxu0 %vm954_vm0, %v3655_v2  ;;  %3510 = vmatprep.mubr.msk.bf16.mxu1 %vm954_vm0, %v3656_v3  ;;  %v3708_v2 = vld [vmem:[%s6080_s0 + $0x3c0] sm:$0xff]  }
  0x8e   :  { %3383 = vmatmul.mubr.msk.bf16.gmra.mrb[60].mxu0 %vm954_vm0, %v3657_v4  ;;  %3511 = vmatmul.mubr.msk.bf16.gmra.mrb[60].mxu1 %vm954_vm0, %v3658_v5 }
  0x8f   :  { %3386 = vmatprep.mubr.msk.bf16.mxu0 %vm954_vm0, %v3659_v6  ;;  %3514 = vmatprep.mubr.msk.bf16.mxu1 %vm954_vm0, %v3660_v7 }
  0x96   :  { %3387 = vmatmul.mubr.msk.bf16.gmra.mrb[64].mxu0 %vm954_vm0, %v3661_v8  ;;  %3515 = vmatmul.mubr.msk.bf16.gmra.mrb[64].mxu1 %vm954_vm0, %v3662_v9 }
  0x97   :  { %3390 = vmatprep.mubr.msk.bf16.mxu0 %vm954_vm0, %v3663_v10  ;;  %3518 = vmatprep.mubr.msk.bf16.mxu1 %vm954_vm0, %v3664_v11 }
  0x9e   :  { %3391 = vmatmul.mubr.msk.bf16.gmra.mrb[68].mxu0 %vm954_vm0, %v3665_v12  ;;  %3519 = vmatmul.mubr.msk.bf16.gmra.mrb[68].mxu1 %vm954_vm0, %v3666_v13 }
  0x9f   :  { %3394 = vmatprep.mubr.msk.bf16.mxu0 %vm954_vm0, %v3667_v14  ;;  %3522 = vmatprep.mubr.msk.bf16.mxu1 %vm954_vm0, %v3668_v15  ;;  %v3709_v15 = vld [vmem:[%s6080_s0 + $0x1c8] sm:$0xff]  }
  0xa6   :  { %3395 = vmatmul.mubr.msk.bf16.gmra.mrb[72].mxu0 %vm954_vm0, %v3669_v16  ;;  %3523 = vmatmul.mubr.msk.bf16.gmra.mrb[72].mxu1 %vm954_vm0, %v3670_v17  ;;  %v3710_v16 = vld [vmem:[%s6080_s0 + $0x3c8] sm:$0xff]  }
  0xa7   :  { %3398 = vmatprep.mubr.msk.bf16.mxu0 %vm954_vm0, %v3671_v18  ;;  %3526 = vmatprep.mubr.msk.bf16.mxu1 %vm954_vm0, %v3672_v19 }
  0xae   :  { %3399 = vmatmul.mubr.msk.bf16.gmra.mrb[76].mxu0 %vm954_vm0, %v3673_v20  ;;  %3527 = vmatmul.mubr.msk.bf16.gmra.mrb[76].mxu1 %vm954_vm0, %v3674_v21  ;;  %v3711_v21 = vld [vmem:[%s6080_s0 + $0x1d0] sm:$0xff]  }
  0xaf   :  { %3402 = vmatprep.mubr.msk.bf16.mxu0 %vm954_vm0, %v3675_v22  ;;  %3530 = vmatprep.mubr.msk.bf16.mxu1 %vm954_vm0, %v3676_v23  ;;  %v3712_v22 = vld [vmem:[%s6080_s0 + $0x3d0] sm:$0xff]  }
  0xb6   :  { %3403 = vmatmul.mubr.msk.bf16.gmra.mrb[80].mxu0 %vm954_vm0, %v3677_v24  ;;  %3531 = vmatmul.mubr.msk.bf16.gmra.mrb[80].mxu1 %vm954_vm0, %v3678_v25 }
  0xb7   :  { %3406 = vmatprep.mubr.msk.bf16.mxu0 %vm954_vm0, %v3679_v26  ;;  %3534 = vmatprep.mubr.msk.bf16.mxu1 %vm954_vm0, %v3680_v27 }
  0xbe   :  { %3407 = vmatmul.mubr.msk.bf16.gmra.mrb[84].mxu0 %vm954_vm0, %v3681_v28  ;;  %3535 = vmatmul.mubr.msk.bf16.gmra.mrb[84].mxu1 %vm954_vm0, %v3682_v29 }
  0xbf   :  { %3410 = vmatprep.mubr.msk.bf16.mxu0 %vm954_vm0, %v3683_v30  ;;  %3538 = vmatprep.mubr.msk.bf16.mxu1 %vm954_vm0, %v3684_v31 }
  0xc6   :  { %3411 = vmatmul.mubr.msk.bf16.gmra.mrb[88].mxu0 %vm954_vm0, %v3685_v32  ;;  %3539 = vmatmul.mubr.msk.bf16.gmra.mrb[88].mxu1 %vm954_vm0, %v3686_v33 }
  0xc7   :  { %3414 = vmatprep.mubr.msk.bf16.mxu0 %vm954_vm0, %v3687_v34  ;;  %3542 = vmatprep.mubr.msk.bf16.mxu1 %vm954_vm0, %v3688_v35 }
  0xce   :  { %3415 = vmatmul.mubr.msk.bf16.gmra.mrb[92].mxu0 %vm954_vm0, %v3689_v36  ;;  %3543 = vmatmul.mubr.msk.bf16.gmra.mrb[92].mxu1 %vm954_vm0, %v3690_v37 }
  0xcf   :  { %3418 = vmatprep.mubr.msk.bf16.mxu0 %vm954_vm0, %v3691_v38  ;;  %3546 = vmatprep.mubr.msk.bf16.mxu1 %vm954_vm0, %v3692_v39 }
  0xd6   :  { %3419 = vmatmul.mubr.msk.bf16.gmra.mrb[96].mxu0 %vm954_vm0, %v3693_v40  ;;  %3547 = vmatmul.mubr.msk.bf16.gmra.mrb[96].mxu1 %vm954_vm0, %v3694_v41  ;;  %v3713_v40 = vld [vmem:[%s6080_s0 + $0x1d8] sm:$0xff]  }
  0xd7   :  { %3422 = vmatprep.mubr.msk.bf16.mxu0 %vm954_vm0, %v3695_v42  ;;  %3550 = vmatprep.mubr.msk.bf16.mxu1 %vm954_vm0, %v3696_v43  ;;  %v3714_v41 = vld [vmem:[%s6080_s0 + $0x3d8] sm:$0xff]  }
  0xde   :  { %3423 = vmatmul.mubr.msk.bf16.gmra.mrb[100].mxu0 %vm954_vm0, %v3697_v44  ;;  %3551 = vmatmul.mubr.msk.bf16.gmra.mrb[100].mxu1 %vm954_vm0, %v3698_v45 }
  0xdf   :  { %3426 = vmatprep.mubr.msk.bf16.mxu0 %vm954_vm0, %v3699_v46  ;;  %3554 = vmatprep.mubr.msk.bf16.mxu1 %vm954_vm0, %v3700_v47  ;;  %v3715_v47 = vld [vmem:[%s6080_s0 + $0x1e0] sm:$0xff]  }
  0xe6   :  { %3427 = vmatmul.mubr.msk.bf16.gmra.mrb[104].mxu0 %vm954_vm0, %v3701_v48  ;;  %3555 = vmatmul.mubr.msk.bf16.gmra.mrb[104].mxu1 %vm954_vm0, %v3702_v49  ;;  %v3716_v48 = vld [vmem:[%s6080_s0 + $0x3e0] sm:$0xff]  }
  0xe7   :  { %3430 = vmatprep.mubr.msk.bf16.mxu0 %vm954_vm0, %v3703_v50  ;;  %3558 = vmatprep.mubr.msk.bf16.mxu1 %vm954_vm0, %v3704_v51 }
  0xe9   :  { %v3324_v53 = vpop.f32.mrb[0].mxu0  ;;  %v3452_v54 = vpop.f32.mrb[0].mxu1 }
  0xea   :  { %v1386_v55 = vadd.f32 %v3324_v53, %v4713_v52  ;;  %v1898_v56 = vadd.f32 %v3452_v54, %v4713_v52  ;;  %v1377_v57 = vpop.f32.mrb[1].mxu0  ;;  %v1889_v58 = vpop.f32.mrb[1].mxu1 }
  0xeb   :  { %v1378_v61 = vadd.f32 %v4713_v52, %v1377_v57  ;;  %v1890_v62 = vadd.f32 %v4713_v52, %v1889_v58  ;;  %v3325_v63 = vpop.f32.mrb[2].mxu0  ;;  %v3453_v0 = vpop.f32.mrb[2].mxu1 }
  0xec   :  { %3723 = vtanh.f32 %v1386_v55  ;;  %v1389_v3 = vadd.f32 %v3325_v63, %v4713_v52  ;;  %v1380_v4 = vpop.f32.mrb[3].mxu0  ;;  %v1892_v5 = vpop.f32.mrb[3].mxu1  ;;  %v1901_v6 = vadd.f32 %v3453_v0, %v4713_v52 }
  0xed   :  { %3725 = vtanh.f32 %v1898_v56  ;;  %v1381_v7 = vadd.f32 %v4713_v52, %v1380_v4  ;;  %v1893_v8 = vadd.f32 %v4713_v52, %v1892_v5  ;;  %v3717_v5 = vld [vmem:[%s6080_s0 + $0x1e8] sm:$0xff]  }
  0xee   :  { %3727 = vtanh.f32 %v1378_v61  ;;  %3431 = vmatmul.mubr.msk.bf16.gmra.mrb[108].mxu0 %vm954_vm0, %v3705_v59  ;;  %3559 = vmatmul.mubr.msk.bf16.gmra.mrb[108].mxu1 %vm954_vm0, %v3706_v60 }
  0xef   :  { %3729 = vtanh.f32 %v1890_v62  ;;  %3434 = vmatprep.mubr.msk.bf16.mxu0 %vm954_vm0, %v3707_v1  ;;  %3562 = vmatprep.mubr.msk.bf16.mxu1 %vm954_vm0, %v3708_v2 }
  0xf0   :  { %3731 = vtanh.f32 %v1389_v3 }
  0xf1   :  { %3733 = vtanh.f32 %v1901_v6  ;;  %v3328_v9 = vpop.f32.mrb[4].mxu0  ;;  %v3456_v10 = vpop.f32.mrb[4].mxu1  ;;  %v3718_v6 = vld [vmem:[%s6080_s0 + $0x3e8] sm:$0xff]  }
  0xf2   :  { %3735 = vtanh.f32 %v1381_v7  ;;  %v1402_v11 = vadd.f32 %v3328_v9, %v4713_v52  ;;  %v1914_v12 = vadd.f32 %v3456_v10, %v4713_v52  ;;  %v1393_v13 = vpop.f32.mrb[5].mxu0  ;;  %v1905_v14 = vpop.f32.mrb[5].mxu1 }
  0xf3   :  { %3737 = vtanh.f32 %v1893_v8  ;;  %v1394_v17 = vadd.f32 %v4713_v52, %v1393_v13  ;;  %v1906_v18 = vadd.f32 %v4713_v52, %v1905_v14  ;;  %v3329_v19 = vpop.f32.mrb[6].mxu0  ;;  %v3457_v20 = vpop.f32.mrb[6].mxu1  ;;  %v3720_v13 = vld [vmem:[%s6080_s0 + $0x3f0] sm:$0xff]  }
  0xf4   :  { %3739 = vtanh.f32 %v1402_v11  ;;  %v1405_v23 = vadd.f32 %v3329_v19, %v4713_v52  ;;  %v1396_v24 = vpop.f32.mrb[7].mxu0  ;;  %v1908_v25 = vpop.f32.mrb[7].mxu1  ;;  %v1917_v26 = vadd.f32 %v3457_v20, %v4713_v52 }
  0xf5   :  { %3741 = vtanh.f32 %v1914_v12  ;;  %v1397_v28 = vadd.f32 %v4713_v52, %v1396_v24  ;;  %v1909_v30 = vadd.f32 %v4713_v52, %v1908_v25  ;;  %v3719_v12 = vld [vmem:[%s6080_s0 + $0x1f0] sm:$0xff]  }
  0xf6   :  { %v3724_v27 = vpop.eup %3723  ;;  %3743 = vtanh.f32 %v1394_v17  ;;  %3435 = vmatmul.mubr.msk.bf16.gmra.mrb[112].mxu0 %vm954_vm0, %v3709_v15  ;;  %3563 = vmatmul.mubr.msk.bf16.gmra.mrb[112].mxu1 %vm954_vm0, %v3710_v16 }
  0xf7   :  { %v3726_v29 = vpop.eup %3725  ;;  %2659 = vst.msk [vmem:[%s6082_s3 + $0x10] sm:$0xff] %vm2656_vm2, %v3724_v27  ;;  %3745 = vtanh.f32 %v1906_v18  ;;  %3438 = vmatprep.mubr.msk.bf16.mxu0 %vm954_vm0, %v3711_v21  ;;  %3566 = vmatprep.mubr.msk.bf16.mxu1 %vm954_vm0, %v3712_v22 }
  0xf8   :  { %v3728_v31 = vpop.eup %3727  ;;  %2787 = vst.msk [vmem:[%s6082_s3 + $0x410] sm:$0xff] %vm2656_vm2, %v3726_v29  ;;  %3747 = vtanh.f32 %v1405_v23 }
  0xf9   :  { %v3730_v32 = vpop.eup %3729  ;;  %2657 = vst.msk [vmem:[%s6082_s3] sm:$0xff] %vm2656_vm2, %v3728_v31  ;;  %3749 = vtanh.f32 %v1917_v26  ;;  %v3332_v33 = vpop.f32.mrb[8].mxu0 }
  0xfa   :  { %v3460_v34 = vpop.f32.mrb[8].mxu1  ;;  %v3732_v35 = vpop.eup %3731  ;;  %2785 = vst.msk [vmem:[%s6082_s3 + $0x400] sm:$0xff] %vm2656_vm2, %v3730_v32  ;;  %3751 = vtanh.f32 %v1397_v28  ;;  %v1418_v36 = vadd.f32 %v3332_v33, %v4713_v52  ;;  %v3721_v33 = vld [vmem:[%s6080_s0 + $0x1f8] sm:$0xff]  }
  0xfb   :  { %v1930_v37 = vadd.f32 %v3460_v34, %v4713_v52  ;;  %v1409_v38 = vpop.f32.mrb[9].mxu0  ;;  %v1921_v39 = vpop.f32.mrb[9].mxu1  ;;  %2660 = vst.msk [vmem:[%s6082_s3 + $0x18] sm:$0xff] %vm2656_vm2, %v3732_v35  ;;  %3753 = vtanh.f32 %v1909_v30  ;;  %v3722_v34 = vld [vmem:[%s6080_s0 + $0x3f8] sm:$0xff]  }
  0xfc   :  { %v3734_v42 = vpop.eup %3733  ;;  %v1410_v43 = vadd.f32 %v4713_v52, %v1409_v38  ;;  %v1922_v44 = vadd.f32 %v4713_v52, %v1921_v39  ;;  %v3333_v45 = vpop.f32.mrb[10].mxu0  ;;  %3755 = vtanh.f32 %v1418_v36 }
  0xfd   :  { %v3461_v46 = vpop.f32.mrb[10].mxu1  ;;  %v3736_v49 = vpop.eup %3735  ;;  %2788 = vst.msk [vmem:[%s6082_s3 + $0x418] sm:$0xff] %vm2656_vm2, %v3734_v42  ;;  %v1421_v50 = vadd.f32 %v3333_v45, %v4713_v52  ;;  %3757 = vtanh.f32 %v1930_v37 }
  0xfe   :  { %v1412_v51 = vpop.f32.mrb[11].mxu0  ;;  %v1924_v53 = vpop.f32.mrb[11].mxu1  ;;  %2658 = vst.msk [vmem:[%s6082_s3 + $0x8] sm:$0xff] %vm2656_vm2, %v3736_v49  ;;  %v1933_v55 = vadd.f32 %v3461_v46, %v4713_v52  ;;  %3759 = vtanh.f32 %v1410_v43  ;;  %3439 = vmatmul.mubr.msk.bf16.gmra.mrb[116].mxu0 %vm954_vm0, %v3713_v40  ;;  %3567 = vmatmul.mubr.msk.bf16.gmra.mrb[116].mxu1 %vm954_vm0, %v3714_v41 }
  0xff   :  { %v3738_v54 = vpop.eup %3737  ;;  %v1413_v57 = vadd.f32 %v4713_v52, %v1412_v51  ;;  %3761 = vtanh.f32 %v1922_v44  ;;  %v1925_v59 = vadd.f32 %v4713_v52, %v1924_v53  ;;  %3442 = vmatprep.mubr.msk.bf16.mxu0 %vm954_vm0, %v3715_v47  ;;  %3570 = vmatprep.mubr.msk.bf16.mxu1 %vm954_vm0, %v3716_v48 }
 0x100   :  { %v3740_v56 = vpop.eup %3739  ;;  %2786 = vst.msk [vmem:[%s6082_s3 + $0x408] sm:$0xff] %vm2656_vm2, %v3738_v54  ;;  %3763 = vtanh.f32 %v1421_v50 }
 0x101   :  { %v3742_v58 = vpop.eup %3741  ;;  %2663 = vst.msk [vmem:[%s6082_s3 + $0x30] sm:$0xff] %vm2656_vm2, %v3740_v56  ;;  %3765 = vtanh.f32 %v1933_v55  ;;  %v3336_v62 = vpop.f32.mrb[12].mxu0 }
 0x102   :  { %v3744_v60 = vpop.eup %3743  ;;  %2791 = vst.msk [vmem:[%s6082_s3 + $0x430] sm:$0xff] %vm2656_vm2, %v3742_v58  ;;  %v3464_v63 = vpop.f32.mrb[12].mxu1  ;;  %3767 = vtanh.f32 %v1413_v57  ;;  %v1434_v1 = vadd.f32 %v3336_v62, %v4713_v52 }
 0x103   :  { %v3746_v61 = vpop.eup %3745  ;;  %2661 = vst.msk [vmem:[%s6082_s3 + $0x20] sm:$0xff] %vm2656_vm2, %v3744_v60  ;;  %v1946_v2 = vadd.f32 %v3464_v63, %v4713_v52  ;;  %v1425_v3 = vpop.f32.mrb[13].mxu0  ;;  %3769 = vtanh.f32 %v1925_v59 }
 0x104   :  { %v3748_v0 = vpop.eup %3747  ;;  %2789 = vst.msk [vmem:[%s6082_s3 + $0x420] sm:$0xff] %vm2656_vm2, %v3746_v61  ;;  %v1937_v4 = vpop.f32.mrb[13].mxu1  ;;  %v1426_v8 = vadd.f32 %v4713_v52, %v1425_v3  ;;  %3771 = vtanh.f32 %v1434_v1 }
 0x105   :  { %v3750_v7 = vpop.eup %3749  ;;  %2664 = vst.msk [vmem:[%s6082_s3 + $0x38] sm:$0xff] %vm2656_vm2, %v3748_v0  ;;  %v1938_v9 = vadd.f32 %v4713_v52, %v1937_v4  ;;  %v3337_v10 = vpop.f32.mrb[14].mxu0  ;;  %3773 = vtanh.f32 %v1946_v2 }
 0x106   :  { %v3465_v11 = vpop.f32.mrb[14].mxu1  ;;  %v3752_v14 = vpop.eup %3751  ;;  %2792 = vst.msk [vmem:[%s6082_s3 + $0x438] sm:$0xff] %vm2656_vm2, %v3750_v7  ;;  %v1437_v15 = vadd.f32 %v3337_v10, %v4713_v52  ;;  %3775 = vtanh.f32 %v1426_v8  ;;  %3443 = vmatmul.mubr.msk.bf16.gmra.mrb[120].mxu0 %vm954_vm0, %v3717_v5  ;;  %3571 = vmatmul.mubr.msk.bf16.gmra.mrb[120].mxu1 %vm954_vm0, %v3718_v6 }
 0x107   :  { %v1428_v16 = vpop.f32.mrb[15].mxu0  ;;  %v1940_v17 = vpop.f32.mrb[15].mxu1  ;;  %2662 = vst.msk [vmem:[%s6082_s3 + $0x28] sm:$0xff] %vm2656_vm2, %v3752_v14  ;;  %v1949_v19 = vadd.f32 %v3465_v11, %v4713_v52  ;;  %3777 = vtanh.f32 %v1938_v9  ;;  %3446 = vmatprep.mubr.msk.bf16.mxu0 %vm954_vm0, %v3719_v12  ;;  %3574 = vmatprep.mubr.msk.bf16.mxu1 %vm954_vm0, %v3720_v13 }
 0x108   :  { %v3754_v18 = vpop.eup %3753  ;;  %v1429_v21 = vadd.f32 %v4713_v52, %v1428_v16  ;;  %v1941_v23 = vadd.f32 %v4713_v52, %v1940_v17  ;;  %3779 = vtanh.f32 %v1437_v15 }
 0x109   :  { %v3756_v20 = vpop.eup %3755  ;;  %2790 = vst.msk [vmem:[%s6082_s3 + $0x428] sm:$0xff] %vm2656_vm2, %v3754_v18  ;;  %3781 = vtanh.f32 %v1949_v19  ;;  %v3340_v26 = vpop.f32.mrb[16].mxu0 }
 0x10a   :  { %v3758_v22 = vpop.eup %3757  ;;  %2667 = vst.msk [vmem:[%s6082_s3 + $0x50] sm:$0xff] %vm2656_vm2, %v3756_v20  ;;  %v3468_v27 = vpop.f32.mrb[16].mxu1  ;;  %3783 = vtanh.f32 %v1429_v21  ;;  %v1450_v29 = vadd.f32 %v3340_v26, %v4713_v52 }
 0x10b   :  { %v3760_v24 = vpop.eup %3759  ;;  %2795 = vst.msk [vmem:[%s6082_s3 + $0x450] sm:$0xff] %vm2656_vm2, %v3758_v22  ;;  %v1962_v30 = vadd.f32 %v3468_v27, %v4713_v52  ;;  %v1441_v31 = vpop.f32.mrb[17].mxu0  ;;  %3785 = vtanh.f32 %v1941_v23 }
 0x10c   :  { %v3762_v25 = vpop.eup %3761  ;;  %2665 = vst.msk [vmem:[%s6082_s3 + $0x40] sm:$0xff] %vm2656_vm2, %v3760_v24  ;;  %v1953_v32 = vpop.f32.mrb[17].mxu1  ;;  %v1442_v36 = vadd.f32 %v4713_v52, %v1441_v31  ;;  %3787 = vtanh.f32 %v1450_v29 }
 0x10d   :  { %v3764_v28 = vpop.eup %3763  ;;  %2793 = vst.msk [vmem:[%s6082_s3 + $0x440] sm:$0xff] %vm2656_vm2, %v3762_v25  ;;  %v1954_v37 = vadd.f32 %v4713_v52, %v1953_v32  ;;  %v3341_v38 = vpop.f32.mrb[18].mxu0  ;;  %3789 = vtanh.f32 %v1962_v30 }
 0x10e   :  { %v3766_v35 = vpop.eup %3765  ;;  %2668 = vst.msk [vmem:[%s6082_s3 + $0x58] sm:$0xff] %vm2656_vm2, %v3764_v28  ;;  %v3469_v39 = vpop.f32.mrb[18].mxu1  ;;  %v1453_v41 = vadd.f32 %v3341_v38, %v4713_v52  ;;  %3791 = vtanh.f32 %v1442_v36  ;;  %3447 = vmatmul.mubr.msk.bf16.gmra.mrb[124].mxu0 %vm954_vm0, %v3721_v33  ;;  %3575 = vmatmul.mubr.msk.bf16.gmra.mrb[124].mxu1 %vm954_vm0, %v3722_v34 }
 0x10f   :  { %v3768_v40 = vpop.eup %3767  ;;  %2796 = vst.msk [vmem:[%s6082_s3 + $0x458] sm:$0xff] %vm2656_vm2, %v3766_v35  ;;  %v1444_v42 = vpop.f32.mrb[19].mxu0  ;;  %v1965_v45 = vadd.f32 %v3469_v39, %v4713_v52  ;;  %3793 = vtanh.f32 %v1954_v37 }
 0x110   :  { %v1956_v43 = vpop.f32.mrb[19].mxu1  ;;  %v3770_v44 = vpop.eup %3769  ;;  %2666 = vst.msk [vmem:[%s6082_s3 + $0x48] sm:$0xff] %vm2656_vm2, %v3768_v40  ;;  %v1445_v47 = vadd.f32 %v4713_v52, %v1444_v42  ;;  %3795 = vtanh.f32 %v1453_v41 }
 0x111   :  { %v3772_v46 = vpop.eup %3771  ;;  %2794 = vst.msk [vmem:[%s6082_s3 + $0x448] sm:$0xff] %vm2656_vm2, %v3770_v44  ;;  %v1957_v49 = vadd.f32 %v4713_v52, %v1956_v43  ;;  %3797 = vtanh.f32 %v1965_v45  ;;  %v3344_v53 = vpop.f32.mrb[20].mxu0 }
 0x112   :  { %v3774_v48 = vpop.eup %3773  ;;  %2671 = vst.msk [vmem:[%s6082_s3 + $0x70] sm:$0xff] %vm2656_vm2, %v3772_v46  ;;  %v3472_v54 = vpop.f32.mrb[20].mxu1  ;;  %3799 = vtanh.f32 %v1445_v47  ;;  %v1466_v56 = vadd.f32 %v3344_v53, %v4713_v52 }
 0x113   :  { %v3776_v50 = vpop.eup %3775  ;;  %2799 = vst.msk [vmem:[%s6082_s3 + $0x470] sm:$0xff] %vm2656_vm2, %v3774_v48  ;;  %v1978_v57 = vadd.f32 %v3472_v54, %v4713_v52  ;;  %v1457_v58 = vpop.f32.mrb[21].mxu0  ;;  %3801 = vtanh.f32 %v1957_v49 }
 0x114   :  { %v3778_v51 = vpop.eup %3777  ;;  %2669 = vst.msk [vmem:[%s6082_s3 + $0x60] sm:$0xff] %vm2656_vm2, %v3776_v50  ;;  %v1969_v59 = vpop.f32.mrb[21].mxu1  ;;  %v1458_v61 = vadd.f32 %v4713_v52, %v1457_v58  ;;  %3803 = vtanh.f32 %v1466_v56 }
 0x115   :  { %v3780_v55 = vpop.eup %3779  ;;  %2797 = vst.msk [vmem:[%s6082_s3 + $0x460] sm:$0xff] %vm2656_vm2, %v3778_v51  ;;  %v1970_v62 = vadd.f32 %v4713_v52, %v1969_v59  ;;  %v3345_v63 = vpop.f32.mrb[22].mxu0  ;;  %3805 = vtanh.f32 %v1978_v57 }
 0x116   :  { %v3782_v60 = vpop.eup %3781  ;;  %2672 = vst.msk [vmem:[%s6082_s3 + $0x78] sm:$0xff] %vm2656_vm2, %v3780_v55  ;;  %v3473_v0 = vpop.f32.mrb[22].mxu1  ;;  %v1469_v2 = vadd.f32 %v3345_v63, %v4713_v52  ;;  %3807 = vtanh.f32 %v1458_v61 }
 0x117   :  { %v3784_v1 = vpop.eup %3783  ;;  %2800 = vst.msk [vmem:[%s6082_s3 + $0x478] sm:$0xff] %vm2656_vm2, %v3782_v60  ;;  %v1460_v3 = vpop.f32.mrb[23].mxu0  ;;  %v1981_v6 = vadd.f32 %v3473_v0, %v4713_v52  ;;  %3809 = vtanh.f32 %v1970_v62 }
 0x118   :  { %v1972_v4 = vpop.f32.mrb[23].mxu1  ;;  %v3786_v5 = vpop.eup %3785  ;;  %2670 = vst.msk [vmem:[%s6082_s3 + $0x68] sm:$0xff] %vm2656_vm2, %v3784_v1  ;;  %v1461_v8 = vadd.f32 %v4713_v52, %v1460_v3  ;;  %3811 = vtanh.f32 %v1469_v2 }
 0x119   :  { %v3788_v7 = vpop.eup %3787  ;;  %2798 = vst.msk [vmem:[%s6082_s3 + $0x468] sm:$0xff] %vm2656_vm2, %v3786_v5  ;;  %v1973_v10 = vadd.f32 %v4713_v52, %v1972_v4  ;;  %3813 = vtanh.f32 %v1981_v6  ;;  %v3348_v13 = vpop.f32.mrb[24].mxu0 }
 0x11a   :  { %v3790_v9 = vpop.eup %3789  ;;  %2675 = vst.msk [vmem:[%s6082_s3 + $0x90] sm:$0xff] %vm2656_vm2, %v3788_v7  ;;  %v3476_v14 = vpop.f32.mrb[24].mxu1  ;;  %3815 = vtanh.f32 %v1461_v8  ;;  %v1482_v16 = vadd.f32 %v3348_v13, %v4713_v52 }
 0x11b   :  { %v3792_v11 = vpop.eup %3791  ;;  %2803 = vst.msk [vmem:[%s6082_s3 + $0x490] sm:$0xff] %vm2656_vm2, %v3790_v9  ;;  %v1994_v17 = vadd.f32 %v3476_v14, %v4713_v52  ;;  %v1473_v18 = vpop.f32.mrb[25].mxu0  ;;  %3817 = vtanh.f32 %v1973_v10 }
 0x11c   :  { %v3794_v12 = vpop.eup %3793  ;;  %2673 = vst.msk [vmem:[%s6082_s3 + $0x80] sm:$0xff] %vm2656_vm2, %v3792_v11  ;;  %v1985_v19 = vpop.f32.mrb[25].mxu1  ;;  %v1474_v21 = vadd.f32 %v4713_v52, %v1473_v18  ;;  %3819 = vtanh.f32 %v1482_v16 }
 0x11d   :  { %v3796_v15 = vpop.eup %3795  ;;  %2801 = vst.msk [vmem:[%s6082_s3 + $0x480] sm:$0xff] %vm2656_vm2, %v3794_v12  ;;  %v1986_v22 = vadd.f32 %v4713_v52, %v1985_v19  ;;  %v3349_v23 = vpop.f32.mrb[26].mxu0  ;;  %3821 = vtanh.f32 %v1994_v17 }
 0x11e   :  { %v3798_v20 = vpop.eup %3797  ;;  %2676 = vst.msk [vmem:[%s6082_s3 + $0x98] sm:$0xff] %vm2656_vm2, %v3796_v15  ;;  %v3477_v24 = vpop.f32.mrb[26].mxu1  ;;  %v1485_v26 = vadd.f32 %v3349_v23, %v4713_v52  ;;  %3823 = vtanh.f32 %v1474_v21 }
 0x11f   :  { %v3800_v25 = vpop.eup %3799  ;;  %2804 = vst.msk [vmem:[%s6082_s3 + $0x498] sm:$0xff] %vm2656_vm2, %v3798_v20  ;;  %v1476_v27 = vpop.f32.mrb[27].mxu0  ;;  %v1997_v30 = vadd.f32 %v3477_v24, %v4713_v52  ;;  %3825 = vtanh.f32 %v1986_v22 }
 0x120   :  { %v1988_v28 = vpop.f32.mrb[27].mxu1  ;;  %v3802_v29 = vpop.eup %3801  ;;  %2674 = vst.msk [vmem:[%s6082_s3 + $0x88] sm:$0xff] %vm2656_vm2, %v3800_v25  ;;  %v1477_v32 = vadd.f32 %v4713_v52, %v1476_v27  ;;  %3827 = vtanh.f32 %v1485_v26 }
 0x121   :  { %v3804_v31 = vpop.eup %3803  ;;  %2802 = vst.msk [vmem:[%s6082_s3 + $0x488] sm:$0xff] %vm2656_vm2, %v3802_v29  ;;  %v1989_v34 = vadd.f32 %v4713_v52, %v1988_v28  ;;  %3829 = vtanh.f32 %v1997_v30  ;;  %v3352_v37 = vpop.f32.mrb[28].mxu0 }
 0x122   :  { %v3806_v33 = vpop.eup %3805  ;;  %2679 = vst.msk [vmem:[%s6082_s3 + $0xb0] sm:$0xff] %vm2656_vm2, %v3804_v31  ;;  %v3480_v38 = vpop.f32.mrb[28].mxu1  ;;  %3831 = vtanh.f32 %v1477_v32  ;;  %v1498_v40 = vadd.f32 %v3352_v37, %v4713_v52 }
 0x123   :  { %v3808_v35 = vpop.eup %3807  ;;  %2807 = vst.msk [vmem:[%s6082_s3 + $0x4b0] sm:$0xff] %vm2656_vm2, %v3806_v33  ;;  %v2010_v41 = vadd.f32 %v3480_v38, %v4713_v52  ;;  %v1489_v42 = vpop.f32.mrb[29].mxu0  ;;  %3833 = vtanh.f32 %v1989_v34 }
 0x124   :  { %v3810_v36 = vpop.eup %3809  ;;  %2677 = vst.msk [vmem:[%s6082_s3 + $0xa0] sm:$0xff] %vm2656_vm2, %v3808_v35  ;;  %v2001_v43 = vpop.f32.mrb[29].mxu1  ;;  %v1490_v45 = vadd.f32 %v4713_v52, %v1489_v42  ;;  %3835 = vtanh.f32 %v1498_v40 }
 0x125   :  { %v3812_v39 = vpop.eup %3811  ;;  %2805 = vst.msk [vmem:[%s6082_s3 + $0x4a0] sm:$0xff] %vm2656_vm2, %v3810_v36  ;;  %v2002_v46 = vadd.f32 %v4713_v52, %v2001_v43  ;;  %v3353_v47 = vpop.f32.mrb[30].mxu0  ;;  %3837 = vtanh.f32 %v2010_v41 }
 0x126   :  { %v3814_v44 = vpop.eup %3813  ;;  %2680 = vst.msk [vmem:[%s6082_s3 + $0xb8] sm:$0xff] %vm2656_vm2, %v3812_v39  ;;  %v3481_v48 = vpop.f32.mrb[30].mxu1  ;;  %v1501_v50 = vadd.f32 %v3353_v47, %v4713_v52  ;;  %3839 = vtanh.f32 %v1490_v45 }
 0x127   :  { %v3816_v49 = vpop.eup %3815  ;;  %2808 = vst.msk [vmem:[%s6082_s3 + $0x4b8] sm:$0xff] %vm2656_vm2, %v3814_v44  ;;  %v1492_v51 = vpop.f32.mrb[31].mxu0  ;;  %v2013_v55 = vadd.f32 %v3481_v48, %v4713_v52  ;;  %3841 = vtanh.f32 %v2002_v46 }
 0x128   :  { %v2004_v53 = vpop.f32.mrb[31].mxu1  ;;  %v3818_v54 = vpop.eup %3817  ;;  %2678 = vst.msk [vmem:[%s6082_s3 + $0xa8] sm:$0xff] %vm2656_vm2, %v3816_v49  ;;  %v1493_v57 = vadd.f32 %v4713_v52, %v1492_v51  ;;  %3843 = vtanh.f32 %v1501_v50 }
 0x129   :  { %v3820_v56 = vpop.eup %3819  ;;  %2806 = vst.msk [vmem:[%s6082_s3 + $0x4a8] sm:$0xff] %vm2656_vm2, %v3818_v54  ;;  %v2005_v59 = vadd.f32 %v4713_v52, %v2004_v53  ;;  %3845 = vtanh.f32 %v2013_v55  ;;  %v3356_v62 = vpop.f32.mrb[32].mxu0 }
 0x12a   :  { %v3822_v58 = vpop.eup %3821  ;;  %2683 = vst.msk [vmem:[%s6082_s3 + $0xd0] sm:$0xff] %vm2656_vm2, %v3820_v56  ;;  %v3484_v63 = vpop.f32.mrb[32].mxu1  ;;  %3847 = vtanh.f32 %v1493_v57  ;;  %v1514_v1 = vadd.f32 %v3356_v62, %v4713_v52 }
 0x12b   :  { %v3824_v60 = vpop.eup %3823  ;;  %2811 = vst.msk [vmem:[%s6082_s3 + $0x4d0] sm:$0xff] %vm2656_vm2, %v3822_v58  ;;  %v2026_v2 = vadd.f32 %v3484_v63, %v4713_v52  ;;  %v1505_v3 = vpop.f32.mrb[33].mxu0  ;;  %3849 = vtanh.f32 %v2005_v59 }
 0x12c   :  { %v3826_v61 = vpop.eup %3825  ;;  %2681 = vst.msk [vmem:[%s6082_s3 + $0xc0] sm:$0xff] %vm2656_vm2, %v3824_v60  ;;  %v2017_v4 = vpop.f32.mrb[33].mxu1  ;;  %v1506_v6 = vadd.f32 %v4713_v52, %v1505_v3  ;;  %3851 = vtanh.f32 %v1514_v1 }
 0x12d   :  { %v3828_v0 = vpop.eup %3827  ;;  %2809 = vst.msk [vmem:[%s6082_s3 + $0x4c0] sm:$0xff] %vm2656_vm2, %v3826_v61  ;;  %v2018_v7 = vadd.f32 %v4713_v52, %v2017_v4  ;;  %v3357_v8 = vpop.f32.mrb[34].mxu0  ;;  %3853 = vtanh.f32 %v2026_v2 }
 0x12e   :  { %v3830_v5 = vpop.eup %3829  ;;  %2684 = vst.msk [vmem:[%s6082_s3 + $0xd8] sm:$0xff] %vm2656_vm2, %v3828_v0  ;;  %v3485_v9 = vpop.f32.mrb[34].mxu1  ;;  %v1517_v11 = vadd.f32 %v3357_v8, %v4713_v52  ;;  %3855 = vtanh.f32 %v1506_v6 }
 0x12f   :  { %v3832_v10 = vpop.eup %3831  ;;  %2812 = vst.msk [vmem:[%s6082_s3 + $0x4d8] sm:$0xff] %vm2656_vm2, %v3830_v5  ;;  %v1508_v12 = vpop.f32.mrb[35].mxu0  ;;  %v2029_v15 = vadd.f32 %v3485_v9, %v4713_v52  ;;  %3857 = vtanh.f32 %v2018_v7 }
 0x130   :  { %v2020_v13 = vpop.f32.mrb[35].mxu1  ;;  %v3834_v14 = vpop.eup %3833  ;;  %2682 = vst.msk [vmem:[%s6082_s3 + $0xc8] sm:$0xff] %vm2656_vm2, %v3832_v10  ;;  %v1509_v17 = vadd.f32 %v4713_v52, %v1508_v12  ;;  %3859 = vtanh.f32 %v1517_v11 }
 0x131   :  { %v3836_v16 = vpop.eup %3835  ;;  %2810 = vst.msk [vmem:[%s6082_s3 + $0x4c8] sm:$0xff] %vm2656_vm2, %v3834_v14  ;;  %v2021_v19 = vadd.f32 %v4713_v52, %v2020_v13  ;;  %3861 = vtanh.f32 %v2029_v15  ;;  %v3360_v22 = vpop.f32.mrb[36].mxu0 }
 0x132   :  { %v3838_v18 = vpop.eup %3837  ;;  %2687 = vst.msk [vmem:[%s6082_s3 + $0xf0] sm:$0xff] %vm2656_vm2, %v3836_v16  ;;  %v3488_v23 = vpop.f32.mrb[36].mxu1  ;;  %3863 = vtanh.f32 %v1509_v17  ;;  %v1530_v25 = vadd.f32 %v3360_v22, %v4713_v52 }
 0x133   :  { %v3840_v20 = vpop.eup %3839  ;;  %2815 = vst.msk [vmem:[%s6082_s3 + $0x4f0] sm:$0xff] %vm2656_vm2, %v3838_v18  ;;  %v2042_v26 = vadd.f32 %v3488_v23, %v4713_v52  ;;  %v1521_v27 = vpop.f32.mrb[37].mxu0  ;;  %3865 = vtanh.f32 %v2021_v19 }
 0x134   :  { %v3842_v21 = vpop.eup %3841  ;;  %2685 = vst.msk [vmem:[%s6082_s3 + $0xe0] sm:$0xff] %vm2656_vm2, %v3840_v20  ;;  %v2033_v28 = vpop.f32.mrb[37].mxu1  ;;  %v1522_v30 = vadd.f32 %v4713_v52, %v1521_v27  ;;  %3867 = vtanh.f32 %v1530_v25 }
 0x135   :  { %v3844_v24 = vpop.eup %3843  ;;  %2813 = vst.msk [vmem:[%s6082_s3 + $0x4e0] sm:$0xff] %vm2656_vm2, %v3842_v21  ;;  %v2034_v31 = vadd.f32 %v4713_v52, %v2033_v28  ;;  %v3361_v32 = vpop.f32.mrb[38].mxu0  ;;  %3869 = vtanh.f32 %v2042_v26 }
 0x136   :  { %v3846_v29 = vpop.eup %3845  ;;  %2688 = vst.msk [vmem:[%s6082_s3 + $0xf8] sm:$0xff] %vm2656_vm2, %v3844_v24  ;;  %v3489_v33 = vpop.f32.mrb[38].mxu1  ;;  %v1533_v35 = vadd.f32 %v3361_v32, %v4713_v52  ;;  %3871 = vtanh.f32 %v1522_v30 }
 0x137   :  { %v3848_v34 = vpop.eup %3847  ;;  %2816 = vst.msk [vmem:[%s6082_s3 + $0x4f8] sm:$0xff] %vm2656_vm2, %v3846_v29  ;;  %v1524_v36 = vpop.f32.mrb[39].mxu0  ;;  %v2045_v39 = vadd.f32 %v3489_v33, %v4713_v52  ;;  %3873 = vtanh.f32 %v2034_v31 }
 0x138   :  { %v2036_v37 = vpop.f32.mrb[39].mxu1  ;;  %v3850_v38 = vpop.eup %3849  ;;  %2686 = vst.msk [vmem:[%s6082_s3 + $0xe8] sm:$0xff] %vm2656_vm2, %v3848_v34  ;;  %v1525_v41 = vadd.f32 %v4713_v52, %v1524_v36  ;;  %3875 = vtanh.f32 %v1533_v35 }
 0x139   :  { %v3852_v40 = vpop.eup %3851  ;;  %2814 = vst.msk [vmem:[%s6082_s3 + $0x4e8] sm:$0xff] %vm2656_vm2, %v3850_v38  ;;  %v2037_v43 = vadd.f32 %v4713_v52, %v2036_v37  ;;  %3877 = vtanh.f32 %v2045_v39  ;;  %v3364_v46 = vpop.f32.mrb[40].mxu0 }
 0x13a   :  { %v3854_v42 = vpop.eup %3853  ;;  %2691 = vst.msk [vmem:[%s6082_s3 + $0x110] sm:$0xff] %vm2656_vm2, %v3852_v40  ;;  %v3492_v47 = vpop.f32.mrb[40].mxu1  ;;  %3879 = vtanh.f32 %v1525_v41  ;;  %v1546_v49 = vadd.f32 %v3364_v46, %v4713_v52 }
 0x13b   :  { %v3856_v44 = vpop.eup %3855  ;;  %2819 = vst.msk [vmem:[%s6082_s3 + $0x510] sm:$0xff] %vm2656_vm2, %v3854_v42  ;;  %v2058_v50 = vadd.f32 %v3492_v47, %v4713_v52  ;;  %v1537_v51 = vpop.f32.mrb[41].mxu0  ;;  %3881 = vtanh.f32 %v2037_v43 }
 0x13c   :  { %v3858_v45 = vpop.eup %3857  ;;  %2689 = vst.msk [vmem:[%s6082_s3 + $0x100] sm:$0xff] %vm2656_vm2, %v3856_v44  ;;  %v2049_v53 = vpop.f32.mrb[41].mxu1  ;;  %v1538_v55 = vadd.f32 %v4713_v52, %v1537_v51  ;;  %3883 = vtanh.f32 %v1546_v49  ;;  %v5236_v44 = vld [vmem:[%s6081_s2] ss:$0 sm:$0xff] }
 0x13d   :  { %v3860_v48 = vpop.eup %3859  ;;  %2817 = vst.msk [vmem:[%s6082_s3 + $0x500] sm:$0xff] %vm2656_vm2, %v3858_v45  ;;  %v2050_v56 = vadd.f32 %v4713_v52, %v2049_v53  ;;  %v3365_v57 = vpop.f32.mrb[42].mxu0  ;;  %3885 = vtanh.f32 %v2058_v50 }
 0x13e   :  { %v3862_v54 = vpop.eup %3861  ;;  %2692 = vst.msk [vmem:[%s6082_s3 + $0x118] sm:$0xff] %vm2656_vm2, %v3860_v48  ;;  %v3493_v58 = vpop.f32.mrb[42].mxu1  ;;  %v1549_v60 = vadd.f32 %v3365_v57, %v4713_v52  ;;  %3887 = vtanh.f32 %v1538_v55 }
 0x13f   :  { %v3864_v59 = vpop.eup %3863  ;;  %2820 = vst.msk [vmem:[%s6082_s3 + $0x518] sm:$0xff] %vm2656_vm2, %v3862_v54  ;;  %v1540_v61 = vpop.f32.mrb[43].mxu0  ;;  %v2061_v0 = vadd.f32 %v3493_v58, %v4713_v52  ;;  %3889 = vtanh.f32 %v2050_v56 }
 0x140   :  { %v2052_v62 = vpop.f32.mrb[43].mxu1  ;;  %v3866_v63 = vpop.eup %3865  ;;  %2690 = vst.msk [vmem:[%s6082_s3 + $0x108] sm:$0xff] %vm2656_vm2, %v3864_v59  ;;  %v1541_v2 = vadd.f32 %v4713_v52, %v1540_v61  ;;  %3891 = vtanh.f32 %v1549_v60 }
 0x141   :  { %v3868_v1 = vpop.eup %3867  ;;  %2818 = vst.msk [vmem:[%s6082_s3 + $0x508] sm:$0xff] %vm2656_vm2, %v3866_v63  ;;  %v2053_v4 = vadd.f32 %v4713_v52, %v2052_v62  ;;  %3893 = vtanh.f32 %v2061_v0  ;;  %v3368_v7 = vpop.f32.mrb[44].mxu0 }
 0x142   :  { %v3870_v3 = vpop.eup %3869  ;;  %2695 = vst.msk [vmem:[%s6082_s3 + $0x130] sm:$0xff] %vm2656_vm2, %v3868_v1  ;;  %v3496_v8 = vpop.f32.mrb[44].mxu1  ;;  %3895 = vtanh.f32 %v1541_v2  ;;  %v1562_v10 = vadd.f32 %v3368_v7, %v4713_v52 }
 0x143   :  { %v3872_v5 = vpop.eup %3871  ;;  %2823 = vst.msk [vmem:[%s6082_s3 + $0x530] sm:$0xff] %vm2656_vm2, %v3870_v3  ;;  %v2074_v11 = vadd.f32 %v3496_v8, %v4713_v52  ;;  %v1553_v12 = vpop.f32.mrb[45].mxu0  ;;  %3897 = vtanh.f32 %v2053_v4 }
 0x144   :  { %v3874_v6 = vpop.eup %3873  ;;  %2693 = vst.msk [vmem:[%s6082_s3 + $0x120] sm:$0xff] %vm2656_vm2, %v3872_v5  ;;  %v2065_v13 = vpop.f32.mrb[45].mxu1  ;;  %v1554_v15 = vadd.f32 %v4713_v52, %v1553_v12  ;;  %3899 = vtanh.f32 %v1562_v10 }
 0x145   :  { %v3876_v9 = vpop.eup %3875  ;;  %2821 = vst.msk [vmem:[%s6082_s3 + $0x520] sm:$0xff] %vm2656_vm2, %v3874_v6  ;;  %v2066_v16 = vadd.f32 %v4713_v52, %v2065_v13  ;;  %v3369_v17 = vpop.f32.mrb[46].mxu0  ;;  %3901 = vtanh.f32 %v2074_v11 }
 0x146   :  { %v3878_v14 = vpop.eup %3877  ;;  %2696 = vst.msk [vmem:[%s6082_s3 + $0x138] sm:$0xff] %vm2656_vm2, %v3876_v9  ;;  %v3497_v18 = vpop.f32.mrb[46].mxu1  ;;  %v1565_v20 = vadd.f32 %v3369_v17, %v4713_v52  ;;  %3903 = vtanh.f32 %v1554_v15 }
 0x147   :  { %v3880_v19 = vpop.eup %3879  ;;  %2824 = vst.msk [vmem:[%s6082_s3 + $0x538] sm:$0xff] %vm2656_vm2, %v3878_v14  ;;  %v1556_v21 = vpop.f32.mrb[47].mxu0  ;;  %v2077_v24 = vadd.f32 %v3497_v18, %v4713_v52  ;;  %3905 = vtanh.f32 %v2066_v16 }
 0x148   :  { %v2068_v22 = vpop.f32.mrb[47].mxu1  ;;  %v3882_v23 = vpop.eup %3881  ;;  %2694 = vst.msk [vmem:[%s6082_s3 + $0x128] sm:$0xff] %vm2656_vm2, %v3880_v19  ;;  %v1557_v26 = vadd.f32 %v4713_v52, %v1556_v21  ;;  %3907 = vtanh.f32 %v1565_v20 }
 0x149   :  { %v3884_v25 = vpop.eup %3883  ;;  %2822 = vst.msk [vmem:[%s6082_s3 + $0x528] sm:$0xff] %vm2656_vm2, %v3882_v23  ;;  %v2069_v28 = vadd.f32 %v4713_v52, %v2068_v22  ;;  %3909 = vtanh.f32 %v2077_v24  ;;  %v3372_v31 = vpop.f32.mrb[48].mxu0 }
 0x14a   :  { %v3886_v27 = vpop.eup %3885  ;;  %2699 = vst.msk [vmem:[%s6082_s3 + $0x150] sm:$0xff] %vm2656_vm2, %v3884_v25  ;;  %v3500_v32 = vpop.f32.mrb[48].mxu1  ;;  %3911 = vtanh.f32 %v1557_v26  ;;  %v1578_v34 = vadd.f32 %v3372_v31, %v4713_v52 }
 0x14b   :  { %v3888_v29 = vpop.eup %3887  ;;  %2827 = vst.msk [vmem:[%s6082_s3 + $0x550] sm:$0xff] %vm2656_vm2, %v3886_v27  ;;  %v2090_v35 = vadd.f32 %v3500_v32, %v4713_v52  ;;  %v1569_v36 = vpop.f32.mrb[49].mxu0  ;;  %3913 = vtanh.f32 %v2069_v28 }
 0x14c   :  { %v3890_v30 = vpop.eup %3889  ;;  %2697 = vst.msk [vmem:[%s6082_s3 + $0x140] sm:$0xff] %vm2656_vm2, %v3888_v29  ;;  %v2081_v37 = vpop.f32.mrb[49].mxu1  ;;  %v1570_v39 = vadd.f32 %v4713_v52, %v1569_v36  ;;  %3915 = vtanh.f32 %v1578_v34 }
 0x14d   :  { %v3892_v33 = vpop.eup %3891  ;;  %2825 = vst.msk [vmem:[%s6082_s3 + $0x540] sm:$0xff] %vm2656_vm2, %v3890_v30  ;;  %v2082_v40 = vadd.f32 %v4713_v52, %v2081_v37  ;;  %v3373_v41 = vpop.f32.mrb[50].mxu0  ;;  %3917 = vtanh.f32 %v2090_v35 }
 0x14e   :  { %v3894_v38 = vpop.eup %3893  ;;  %2700 = vst.msk [vmem:[%s6082_s3 + $0x158] sm:$0xff] %vm2656_vm2, %v3892_v33  ;;  %v3501_v42 = vpop.f32.mrb[50].mxu1  ;;  %v1581_v45 = vadd.f32 %v5236_v44, %v3373_v41  ;;  %3919 = vtanh.f32 %v1570_v39 }
 0x14f   :  { %v3896_v43 = vpop.eup %3895  ;;  %2828 = vst.msk [vmem:[%s6082_s3 + $0x558] sm:$0xff] %vm2656_vm2, %v3894_v38  ;;  %v1572_v46 = vpop.f32.mrb[51].mxu0  ;;  %v2093_v52 = vadd.f32 %v5236_v44, %v3501_v42  ;;  %3921 = vtanh.f32 %v2082_v40 }
 0x150   :  { %v2084_v47 = vpop.f32.mrb[51].mxu1  ;;  %v3898_v48 = vpop.eup %3897  ;;  %2698 = vst.msk [vmem:[%s6082_s3 + $0x148] sm:$0xff] %vm2656_vm2, %v3896_v43  ;;  %v1573_v50 = vadd.f32 %v5236_v44, %v1572_v46  ;;  %3923 = vtanh.f32 %v1581_v45 }
 0x151   :  { %v3900_v49 = vpop.eup %3899  ;;  %2826 = vst.msk [vmem:[%s6082_s3 + $0x548] sm:$0xff] %vm2656_vm2, %v3898_v48  ;;  %v2085_v53 = vadd.f32 %v5236_v44, %v2084_v47  ;;  %3925 = vtanh.f32 %v2093_v52  ;;  %v3376_v56 = vpop.f32.mrb[52].mxu0 }
 0x152   :  { %v3902_v51 = vpop.eup %3901  ;;  %2703 = vst.msk [vmem:[%s6082_s3 + $0x170] sm:$0xff] %vm2656_vm2, %v3900_v49  ;;  %v3504_v57 = vpop.f32.mrb[52].mxu1  ;;  %3927 = vtanh.f32 %v1573_v50  ;;  %v1594_v59 = vadd.f32 %v5236_v44, %v3376_v56 }
 0x153   :  { %v3904_v54 = vpop.eup %3903  ;;  %2831 = vst.msk [vmem:[%s6082_s3 + $0x570] sm:$0xff] %vm2656_vm2, %v3902_v51  ;;  %v2106_v60 = vadd.f32 %v5236_v44, %v3504_v57  ;;  %v1585_v61 = vpop.f32.mrb[53].mxu0  ;;  %3929 = vtanh.f32 %v2085_v53 }
 0x154   :  { %v3906_v55 = vpop.eup %3905  ;;  %2701 = vst.msk [vmem:[%s6082_s3 + $0x160] sm:$0xff] %vm2656_vm2, %v3904_v54  ;;  %v2097_v62 = vpop.f32.mrb[53].mxu1  ;;  %v1586_v0 = vadd.f32 %v5236_v44, %v1585_v61  ;;  %3931 = vtanh.f32 %v1594_v59 }
 0x155   :  { %v3908_v58 = vpop.eup %3907  ;;  %2829 = vst.msk [vmem:[%s6082_s3 + $0x560] sm:$0xff] %vm2656_vm2, %v3906_v55  ;;  %v2098_v1 = vadd.f32 %v5236_v44, %v2097_v62  ;;  %v3377_v2 = vpop.f32.mrb[54].mxu0  ;;  %3933 = vtanh.f32 %v2106_v60 }
 0x156   :  { %v3910_v63 = vpop.eup %3909  ;;  %2704 = vst.msk [vmem:[%s6082_s3 + $0x178] sm:$0xff] %vm2656_vm2, %v3908_v58  ;;  %v3505_v3 = vpop.f32.mrb[54].mxu1  ;;  %v1597_v5 = vadd.f32 %v5236_v44, %v3377_v2  ;;  %3935 = vtanh.f32 %v1586_v0 }
 0x157   :  { %v3912_v4 = vpop.eup %3911  ;;  %2832 = vst.msk [vmem:[%s6082_s3 + $0x578] sm:$0xff] %vm2656_vm2, %v3910_v63  ;;  %v1588_v6 = vpop.f32.mrb[55].mxu0  ;;  %v2109_v9 = vadd.f32 %v5236_v44, %v3505_v3  ;;  %3937 = vtanh.f32 %v2098_v1 }
 0x158   :  { %v2100_v7 = vpop.f32.mrb[55].mxu1  ;;  %v3914_v8 = vpop.eup %3913  ;;  %2702 = vst.msk [vmem:[%s6082_s3 + $0x168] sm:$0xff] %vm2656_vm2, %v3912_v4  ;;  %v1589_v11 = vadd.f32 %v5236_v44, %v1588_v6  ;;  %3939 = vtanh.f32 %v1597_v5 }
 0x159   :  { %v3916_v10 = vpop.eup %3915  ;;  %2830 = vst.msk [vmem:[%s6082_s3 + $0x568] sm:$0xff] %vm2656_vm2, %v3914_v8  ;;  %v2101_v13 = vadd.f32 %v5236_v44, %v2100_v7  ;;  %3941 = vtanh.f32 %v2109_v9  ;;  %v3380_v16 = vpop.f32.mrb[56].mxu0 }
 0x15a   :  { %v3918_v12 = vpop.eup %3917  ;;  %2707 = vst.msk [vmem:[%s6082_s3 + $0x190] sm:$0xff] %vm2656_vm2, %v3916_v10  ;;  %v3508_v17 = vpop.f32.mrb[56].mxu1  ;;  %3943 = vtanh.f32 %v1589_v11  ;;  %v1610_v19 = vadd.f32 %v5236_v44, %v3380_v16 }
 0x15b   :  { %v3920_v14 = vpop.eup %3919  ;;  %2835 = vst.msk [vmem:[%s6082_s3 + $0x590] sm:$0xff] %vm2656_vm2, %v3918_v12  ;;  %v2122_v20 = vadd.f32 %v5236_v44, %v3508_v17  ;;  %v1601_v21 = vpop.f32.mrb[57].mxu0  ;;  %3945 = vtanh.f32 %v2101_v13 }
 0x15c   :  { %v3922_v15 = vpop.eup %3921  ;;  %2705 = vst.msk [vmem:[%s6082_s3 + $0x180] sm:$0xff] %vm2656_vm2, %v3920_v14  ;;  %v2113_v22 = vpop.f32.mrb[57].mxu1  ;;  %v1602_v24 = vadd.f32 %v5236_v44, %v1601_v21  ;;  %3947 = vtanh.f32 %v1610_v19 }
 0x15d   :  { %v3924_v18 = vpop.eup %3923  ;;  %2833 = vst.msk [vmem:[%s6082_s3 + $0x580] sm:$0xff] %vm2656_vm2, %v3922_v15  ;;  %v2114_v25 = vadd.f32 %v5236_v44, %v2113_v22  ;;  %v3381_v26 = vpop.f32.mrb[58].mxu0  ;;  %3949 = vtanh.f32 %v2122_v20 }
 0x15e   :  { %v3926_v23 = vpop.eup %3925  ;;  %2708 = vst.msk [vmem:[%s6082_s3 + $0x198] sm:$0xff] %vm2656_vm2, %v3924_v18  ;;  %v3509_v27 = vpop.f32.mrb[58].mxu1  ;;  %v1613_v29 = vadd.f32 %v5236_v44, %v3381_v26  ;;  %3951 = vtanh.f32 %v1602_v24 }
 0x15f   :  { %v3928_v28 = vpop.eup %3927  ;;  %2836 = vst.msk [vmem:[%s6082_s3 + $0x598] sm:$0xff] %vm2656_vm2, %v3926_v23  ;;  %v1604_v30 = vpop.f32.mrb[59].mxu0  ;;  %v2125_v33 = vadd.f32 %v5236_v44, %v3509_v27  ;;  %3953 = vtanh.f32 %v2114_v25 }
 0x160   :  { %v2116_v31 = vpop.f32.mrb[59].mxu1  ;;  %v3930_v32 = vpop.eup %3929  ;;  %2706 = vst.msk [vmem:[%s6082_s3 + $0x188] sm:$0xff] %vm2656_vm2, %v3928_v28  ;;  %v1605_v35 = vadd.f32 %v5236_v44, %v1604_v30  ;;  %3955 = vtanh.f32 %v1613_v29 }
 0x161   :  { %v3932_v34 = vpop.eup %3931  ;;  %2834 = vst.msk [vmem:[%s6082_s3 + $0x588] sm:$0xff] %vm2656_vm2, %v3930_v32  ;;  %v2117_v37 = vadd.f32 %v5236_v44, %v2116_v31  ;;  %3957 = vtanh.f32 %v2125_v33  ;;  %v3384_v40 = vpop.f32.mrb[60].mxu0 }
 0x162   :  { %v3934_v36 = vpop.eup %3933  ;;  %2711 = vst.msk [vmem:[%s6082_s3 + $0x1b0] sm:$0xff] %vm2656_vm2, %v3932_v34  ;;  %v3512_v41 = vpop.f32.mrb[60].mxu1  ;;  %3959 = vtanh.f32 %v1605_v35  ;;  %v1626_v43 = vadd.f32 %v5236_v44, %v3384_v40 }
 0x163   :  { %v3936_v38 = vpop.eup %3935  ;;  %2839 = vst.msk [vmem:[%s6082_s3 + $0x5b0] sm:$0xff] %vm2656_vm2, %v3934_v36  ;;  %v2138_v45 = vadd.f32 %v5236_v44, %v3512_v41  ;;  %v1617_v46 = vpop.f32.mrb[61].mxu0  ;;  %3961 = vtanh.f32 %v2117_v37 }
 0x164   :  { %v3938_v39 = vpop.eup %3937  ;;  %2709 = vst.msk [vmem:[%s6082_s3 + $0x1a0] sm:$0xff] %vm2656_vm2, %v3936_v38  ;;  %v2129_v47 = vpop.f32.mrb[61].mxu1  ;;  %v1618_v52 = vadd.f32 %v5236_v44, %v1617_v46  ;;  %3963 = vtanh.f32 %v1626_v43 }
 0x165   :  { %v3940_v42 = vpop.eup %3939  ;;  %2837 = vst.msk [vmem:[%s6082_s3 + $0x5a0] sm:$0xff] %vm2656_vm2, %v3938_v39  ;;  %v2130_v49 = vadd.f32 %v5236_v44, %v2129_v47  ;;  %v3385_v50 = vpop.f32.mrb[62].mxu0  ;;  %3965 = vtanh.f32 %v2138_v45 }
 0x166   :  { %v3942_v48 = vpop.eup %3941  ;;  %2712 = vst.msk [vmem:[%s6082_s3 + $0x1b8] sm:$0xff] %vm2656_vm2, %v3940_v42  ;;  %v3513_v51 = vpop.f32.mrb[62].mxu1  ;;  %v1629_v54 = vadd.f32 %v5236_v44, %v3385_v50  ;;  %3967 = vtanh.f32 %v1618_v52 }
 0x167   :  { %v3944_v53 = vpop.eup %3943  ;;  %2840 = vst.msk [vmem:[%s6082_s3 + $0x5b8] sm:$0xff] %vm2656_vm2, %v3942_v48  ;;  %v1620_v55 = vpop.f32.mrb[63].mxu0  ;;  %v2141_v58 = vadd.f32 %v5236_v44, %v3513_v51  ;;  %3969 = vtanh.f32 %v2130_v49 }
 0x168   :  { %v2132_v56 = vpop.f32.mrb[63].mxu1  ;;  %v3946_v57 = vpop.eup %3945  ;;  %2710 = vst.msk [vmem:[%s6082_s3 + $0x1a8] sm:$0xff] %vm2656_vm2, %v3944_v53  ;;  %v1621_v60 = vadd.f32 %v5236_v44, %v1620_v55  ;;  %3971 = vtanh.f32 %v1629_v54 }
 0x169   :  { %v3948_v59 = vpop.eup %3947  ;;  %2838 = vst.msk [vmem:[%s6082_s3 + $0x5a8] sm:$0xff] %vm2656_vm2, %v3946_v57  ;;  %v2133_v62 = vadd.f32 %v5236_v44, %v2132_v56  ;;  %3973 = vtanh.f32 %v2141_v58  ;;  %v3388_v1 = vpop.f32.mrb[64].mxu0 }
 0x16a   :  { %v3950_v61 = vpop.eup %3949  ;;  %2715 = vst.msk [vmem:[%s6082_s3 + $0x1d0] sm:$0xff] %vm2656_vm2, %v3948_v59  ;;  %v3516_v2 = vpop.f32.mrb[64].mxu1  ;;  %3975 = vtanh.f32 %v1621_v60  ;;  %v1642_v4 = vadd.f32 %v5236_v44, %v3388_v1 }
 0x16b   :  { %v3952_v63 = vpop.eup %3951  ;;  %2843 = vst.msk [vmem:[%s6082_s3 + $0x5d0] sm:$0xff] %vm2656_vm2, %v3950_v61  ;;  %v2154_v5 = vadd.f32 %v5236_v44, %v3516_v2  ;;  %v1633_v6 = vpop.f32.mrb[65].mxu0  ;;  %3977 = vtanh.f32 %v2133_v62 }
 0x16c   :  { %v3954_v0 = vpop.eup %3953  ;;  %2713 = vst.msk [vmem:[%s6082_s3 + $0x1c0] sm:$0xff] %vm2656_vm2, %v3952_v63  ;;  %v2145_v7 = vpop.f32.mrb[65].mxu1  ;;  %v1634_v9 = vadd.f32 %v5236_v44, %v1633_v6  ;;  %3979 = vtanh.f32 %v1642_v4 }
 0x16d   :  { %v3956_v3 = vpop.eup %3955  ;;  %2841 = vst.msk [vmem:[%s6082_s3 + $0x5c0] sm:$0xff] %vm2656_vm2, %v3954_v0  ;;  %v2146_v10 = vadd.f32 %v5236_v44, %v2145_v7  ;;  %v3389_v11 = vpop.f32.mrb[66].mxu0  ;;  %3981 = vtanh.f32 %v2154_v5 }
 0x16e   :  { %v3958_v8 = vpop.eup %3957  ;;  %2716 = vst.msk [vmem:[%s6082_s3 + $0x1d8] sm:$0xff] %vm2656_vm2, %v3956_v3  ;;  %v3517_v12 = vpop.f32.mrb[66].mxu1  ;;  %v1645_v14 = vadd.f32 %v5236_v44, %v3389_v11  ;;  %3983 = vtanh.f32 %v1634_v9 }
 0x16f   :  { %v3960_v13 = vpop.eup %3959  ;;  %2844 = vst.msk [vmem:[%s6082_s3 + $0x5d8] sm:$0xff] %vm2656_vm2, %v3958_v8  ;;  %v1636_v15 = vpop.f32.mrb[67].mxu0  ;;  %v2157_v18 = vadd.f32 %v5236_v44, %v3517_v12  ;;  %3985 = vtanh.f32 %v2146_v10 }
 0x170   :  { %v2148_v16 = vpop.f32.mrb[67].mxu1  ;;  %v3962_v17 = vpop.eup %3961  ;;  %2714 = vst.msk [vmem:[%s6082_s3 + $0x1c8] sm:$0xff] %vm2656_vm2, %v3960_v13  ;;  %v1637_v20 = vadd.f32 %v5236_v44, %v1636_v15  ;;  %3987 = vtanh.f32 %v1645_v14 }
 0x171   :  { %v3964_v19 = vpop.eup %3963  ;;  %2842 = vst.msk [vmem:[%s6082_s3 + $0x5c8] sm:$0xff] %vm2656_vm2, %v3962_v17  ;;  %v2149_v22 = vadd.f32 %v5236_v44, %v2148_v16  ;;  %3989 = vtanh.f32 %v2157_v18  ;;  %v3392_v25 = vpop.f32.mrb[68].mxu0 }
 0x172   :  { %v3966_v21 = vpop.eup %3965  ;;  %2719 = vst.msk [vmem:[%s6082_s3 + $0x1f0] sm:$0xff] %vm2656_vm2, %v3964_v19  ;;  %v3520_v26 = vpop.f32.mrb[68].mxu1  ;;  %3991 = vtanh.f32 %v1637_v20  ;;  %v1658_v28 = vadd.f32 %v5236_v44, %v3392_v25 }
 0x173   :  { %v3968_v23 = vpop.eup %3967  ;;  %2847 = vst.msk [vmem:[%s6082_s3 + $0x5f0] sm:$0xff] %vm2656_vm2, %v3966_v21  ;;  %v2170_v29 = vadd.f32 %v5236_v44, %v3520_v26  ;;  %v1649_v30 = vpop.f32.mrb[69].mxu0  ;;  %3993 = vtanh.f32 %v2149_v22 }
 0x174   :  { %v3970_v24 = vpop.eup %3969  ;;  %2717 = vst.msk [vmem:[%s6082_s3 + $0x1e0] sm:$0xff] %vm2656_vm2, %v3968_v23  ;;  %v2161_v31 = vpop.f32.mrb[69].mxu1  ;;  %v1650_v33 = vadd.f32 %v5236_v44, %v1649_v30  ;;  %3995 = vtanh.f32 %v1658_v28 }
 0x175   :  { %v3972_v27 = vpop.eup %3971  ;;  %2845 = vst.msk [vmem:[%s6082_s3 + $0x5e0] sm:$0xff] %vm2656_vm2, %v3970_v24  ;;  %v2162_v34 = vadd.f32 %v5236_v44, %v2161_v31  ;;  %v3393_v35 = vpop.f32.mrb[70].mxu0  ;;  %3997 = vtanh.f32 %v2170_v29 }
 0x176   :  { %v3974_v32 = vpop.eup %3973  ;;  %2720 = vst.msk [vmem:[%s6082_s3 + $0x1f8] sm:$0xff] %vm2656_vm2, %v3972_v27  ;;  %v3521_v36 = vpop.f32.mrb[70].mxu1  ;;  %v1661_v38 = vadd.f32 %v5236_v44, %v3393_v35  ;;  %3999 = vtanh.f32 %v1650_v33 }
 0x177   :  { %v3976_v37 = vpop.eup %3975  ;;  %2848 = vst.msk [vmem:[%s6082_s3 + $0x5f8] sm:$0xff] %vm2656_vm2, %v3974_v32  ;;  %v1652_v39 = vpop.f32.mrb[71].mxu0  ;;  %v2173_v42 = vadd.f32 %v5236_v44, %v3521_v36  ;;  %4001 = vtanh.f32 %v2162_v34 }
 0x178   :  { %v2164_v40 = vpop.f32.mrb[71].mxu1  ;;  %v3978_v41 = vpop.eup %3977  ;;  %2718 = vst.msk [vmem:[%s6082_s3 + $0x1e8] sm:$0xff] %vm2656_vm2, %v3976_v37  ;;  %v1653_v45 = vadd.f32 %v5236_v44, %v1652_v39  ;;  %4003 = vtanh.f32 %v1661_v38 }
 0x179   :  { %v3980_v43 = vpop.eup %3979  ;;  %2846 = vst.msk [vmem:[%s6082_s3 + $0x5e8] sm:$0xff] %vm2656_vm2, %v3978_v41  ;;  %v2165_v47 = vadd.f32 %v5236_v44, %v2164_v40  ;;  %4005 = vtanh.f32 %v2173_v42  ;;  %v3396_v49 = vpop.f32.mrb[72].mxu0 }
 0x17a   :  { %v3982_v46 = vpop.eup %3981  ;;  %2723 = vst.msk [vmem:[%s6082_s3 + $0x210] sm:$0xff] %vm2656_vm2, %v3980_v43  ;;  %v3524_v50 = vpop.f32.mrb[72].mxu1  ;;  %4007 = vtanh.f32 %v1653_v45  ;;  %v1674_v53 = vadd.f32 %v5236_v44, %v3396_v49 }
 0x17b   :  { %v3984_v48 = vpop.eup %3983  ;;  %2851 = vst.msk [vmem:[%s6082_s3 + $0x610] sm:$0xff] %vm2656_vm2, %v3982_v46  ;;  %v2186_v54 = vadd.f32 %v5236_v44, %v3524_v50  ;;  %v1665_v55 = vpop.f32.mrb[73].mxu0  ;;  %4009 = vtanh.f32 %v2165_v47 }
 0x17c   :  { %v3986_v52 = vpop.eup %3985  ;;  %2721 = vst.msk [vmem:[%s6082_s3 + $0x200] sm:$0xff] %vm2656_vm2, %v3984_v48  ;;  %v2177_v56 = vpop.f32.mrb[73].mxu1  ;;  %v1666_v58 = vadd.f32 %v5236_v44, %v1665_v55  ;;  %4011 = vtanh.f32 %v1674_v53 }
 0x17d   :  { %v3988_v51 = vpop.eup %3987  ;;  %2849 = vst.msk [vmem:[%s6082_s3 + $0x600] sm:$0xff] %vm2656_vm2, %v3986_v52  ;;  %v2178_v59 = vadd.f32 %v5236_v44, %v2177_v56  ;;  %v3397_v60 = vpop.f32.mrb[74].mxu0  ;;  %4013 = vtanh.f32 %v2186_v54 }
 0x17e   :  { %v3990_v57 = vpop.eup %3989  ;;  %2724 = vst.msk [vmem:[%s6082_s3 + $0x218] sm:$0xff] %vm2656_vm2, %v3988_v51  ;;  %v3525_v61 = vpop.f32.mrb[74].mxu1  ;;  %v1677_v63 = vadd.f32 %v5236_v44, %v3397_v60  ;;  %4015 = vtanh.f32 %v1666_v58 }
 0x17f   :  { %v3992_v62 = vpop.eup %3991  ;;  %2852 = vst.msk [vmem:[%s6082_s3 + $0x618] sm:$0xff] %vm2656_vm2, %v3990_v57  ;;  %v1668_v0 = vpop.f32.mrb[75].mxu0  ;;  %v2189_v3 = vadd.f32 %v5236_v44, %v3525_v61  ;;  %4017 = vtanh.f32 %v2178_v59 }
 0x180   :  { %v2180_v1 = vpop.f32.mrb[75].mxu1  ;;  %v3994_v2 = vpop.eup %3993  ;;  %2722 = vst.msk [vmem:[%s6082_s3 + $0x208] sm:$0xff] %vm2656_vm2, %v3992_v62  ;;  %v1669_v5 = vadd.f32 %v5236_v44, %v1668_v0  ;;  %4019 = vtanh.f32 %v1677_v63 }
 0x181   :  { %v3996_v4 = vpop.eup %3995  ;;  %2850 = vst.msk [vmem:[%s6082_s3 + $0x608] sm:$0xff] %vm2656_vm2, %v3994_v2  ;;  %v2181_v7 = vadd.f32 %v5236_v44, %v2180_v1  ;;  %4021 = vtanh.f32 %v2189_v3  ;;  %v3400_v10 = vpop.f32.mrb[76].mxu0 }
 0x182   :  { %v3998_v6 = vpop.eup %3997  ;;  %2727 = vst.msk [vmem:[%s6082_s3 + $0x230] sm:$0xff] %vm2656_vm2, %v3996_v4  ;;  %v3528_v11 = vpop.f32.mrb[76].mxu1  ;;  %4023 = vtanh.f32 %v1669_v5  ;;  %v1690_v13 = vadd.f32 %v5236_v44, %v3400_v10 }
 0x183   :  { %v4000_v8 = vpop.eup %3999  ;;  %2855 = vst.msk [vmem:[%s6082_s3 + $0x630] sm:$0xff] %vm2656_vm2, %v3998_v6  ;;  %v2202_v14 = vadd.f32 %v5236_v44, %v3528_v11  ;;  %v1681_v15 = vpop.f32.mrb[77].mxu0  ;;  %4025 = vtanh.f32 %v2181_v7 }
 0x184   :  { %v4002_v9 = vpop.eup %4001  ;;  %2725 = vst.msk [vmem:[%s6082_s3 + $0x220] sm:$0xff] %vm2656_vm2, %v4000_v8  ;;  %v2193_v16 = vpop.f32.mrb[77].mxu1  ;;  %v1682_v18 = vadd.f32 %v5236_v44, %v1681_v15  ;;  %4027 = vtanh.f32 %v1690_v13 }
 0x185   :  { %v4004_v12 = vpop.eup %4003  ;;  %2853 = vst.msk [vmem:[%s6082_s3 + $0x620] sm:$0xff] %vm2656_vm2, %v4002_v9  ;;  %v2194_v19 = vadd.f32 %v5236_v44, %v2193_v16  ;;  %v3401_v20 = vpop.f32.mrb[78].mxu0  ;;  %4029 = vtanh.f32 %v2202_v14 }
 0x186   :  { %v4006_v17 = vpop.eup %4005  ;;  %2728 = vst.msk [vmem:[%s6082_s3 + $0x238] sm:$0xff] %vm2656_vm2, %v4004_v12  ;;  %v3529_v21 = vpop.f32.mrb[78].mxu1  ;;  %v1693_v23 = vadd.f32 %v5236_v44, %v3401_v20  ;;  %4031 = vtanh.f32 %v1682_v18 }
 0x187   :  { %v4008_v22 = vpop.eup %4007  ;;  %2856 = vst.msk [vmem:[%s6082_s3 + $0x638] sm:$0xff] %vm2656_vm2, %v4006_v17  ;;  %v1684_v24 = vpop.f32.mrb[79].mxu0  ;;  %v2205_v27 = vadd.f32 %v5236_v44, %v3529_v21  ;;  %4033 = vtanh.f32 %v2194_v19 }
 0x188   :  { %v2196_v25 = vpop.f32.mrb[79].mxu1  ;;  %v4010_v26 = vpop.eup %4009  ;;  %2726 = vst.msk [vmem:[%s6082_s3 + $0x228] sm:$0xff] %vm2656_vm2, %v4008_v22  ;;  %v1685_v29 = vadd.f32 %v5236_v44, %v1684_v24  ;;  %4035 = vtanh.f32 %v1693_v23 }
 0x189   :  { %v4012_v28 = vpop.eup %4011  ;;  %2854 = vst.msk [vmem:[%s6082_s3 + $0x628] sm:$0xff] %vm2656_vm2, %v4010_v26  ;;  %v2197_v31 = vadd.f32 %v5236_v44, %v2196_v25  ;;  %4037 = vtanh.f32 %v2205_v27  ;;  %v3404_v34 = vpop.f32.mrb[80].mxu0 }
 0x18a   :  { %v4014_v30 = vpop.eup %4013  ;;  %2731 = vst.msk [vmem:[%s6082_s3 + $0x250] sm:$0xff] %vm2656_vm2, %v4012_v28  ;;  %v3532_v35 = vpop.f32.mrb[80].mxu1  ;;  %4039 = vtanh.f32 %v1685_v29  ;;  %v1706_v37 = vadd.f32 %v5236_v44, %v3404_v34 }
 0x18b   :  { %v4016_v32 = vpop.eup %4015  ;;  %2859 = vst.msk [vmem:[%s6082_s3 + $0x650] sm:$0xff] %vm2656_vm2, %v4014_v30  ;;  %v2218_v38 = vadd.f32 %v5236_v44, %v3532_v35  ;;  %v1697_v39 = vpop.f32.mrb[81].mxu0  ;;  %4041 = vtanh.f32 %v2197_v31 }
 0x18c   :  { %v4018_v33 = vpop.eup %4017  ;;  %2729 = vst.msk [vmem:[%s6082_s3 + $0x240] sm:$0xff] %vm2656_vm2, %v4016_v32  ;;  %v2209_v40 = vpop.f32.mrb[81].mxu1  ;;  %v1698_v42 = vadd.f32 %v5236_v44, %v1697_v39  ;;  %4043 = vtanh.f32 %v1706_v37 }
 0x18d   :  { %v4020_v36 = vpop.eup %4019  ;;  %2857 = vst.msk [vmem:[%s6082_s3 + $0x640] sm:$0xff] %vm2656_vm2, %v4018_v33  ;;  %v2210_v43 = vadd.f32 %v5236_v44, %v2209_v40  ;;  %v3405_v45 = vpop.f32.mrb[82].mxu0  ;;  %4045 = vtanh.f32 %v2218_v38 }
 0x18e   :  { %v4022_v41 = vpop.eup %4021  ;;  %2732 = vst.msk [vmem:[%s6082_s3 + $0x258] sm:$0xff] %vm2656_vm2, %v4020_v36  ;;  %v3533_v46 = vpop.f32.mrb[82].mxu1  ;;  %v1709_v48 = vadd.f32 %v5236_v44, %v3405_v45  ;;  %4047 = vtanh.f32 %v1698_v42 }
 0x18f   :  { %v4024_v47 = vpop.eup %4023  ;;  %2860 = vst.msk [vmem:[%s6082_s3 + $0x658] sm:$0xff] %vm2656_vm2, %v4022_v41  ;;  %v1700_v52 = vpop.f32.mrb[83].mxu0  ;;  %v2221_v51 = vadd.f32 %v5236_v44, %v3533_v46  ;;  %4049 = vtanh.f32 %v2210_v43 }
 0x190   :  { %v2212_v49 = vpop.f32.mrb[83].mxu1  ;;  %v4026_v50 = vpop.eup %4025  ;;  %2730 = vst.msk [vmem:[%s6082_s3 + $0x248] sm:$0xff] %vm2656_vm2, %v4024_v47  ;;  %v1701_v54 = vadd.f32 %v5236_v44, %v1700_v52  ;;  %4051 = vtanh.f32 %v1709_v48 }
 0x191   :  { %v4028_v53 = vpop.eup %4027  ;;  %2858 = vst.msk [vmem:[%s6082_s3 + $0x648] sm:$0xff] %vm2656_vm2, %v4026_v50  ;;  %v2213_v56 = vadd.f32 %v5236_v44, %v2212_v49  ;;  %4053 = vtanh.f32 %v2221_v51  ;;  %v3408_v59 = vpop.f32.mrb[84].mxu0 }
 0x192   :  { %v4030_v55 = vpop.eup %4029  ;;  %2735 = vst.msk [vmem:[%s6082_s3 + $0x270] sm:$0xff] %vm2656_vm2, %v4028_v53  ;;  %v3536_v60 = vpop.f32.mrb[84].mxu1  ;;  %4055 = vtanh.f32 %v1701_v54  ;;  %v1722_v62 = vadd.f32 %v5236_v44, %v3408_v59 }
 0x193   :  { %v4032_v57 = vpop.eup %4031  ;;  %2863 = vst.msk [vmem:[%s6082_s3 + $0x670] sm:$0xff] %vm2656_vm2, %v4030_v55  ;;  %v2234_v63 = vadd.f32 %v5236_v44, %v3536_v60  ;;  %v1713_v0 = vpop.f32.mrb[85].mxu0  ;;  %4057 = vtanh.f32 %v2213_v56 }
 0x194   :  { %v4034_v58 = vpop.eup %4033  ;;  %2733 = vst.msk [vmem:[%s6082_s3 + $0x260] sm:$0xff] %vm2656_vm2, %v4032_v57  ;;  %v2225_v1 = vpop.f32.mrb[85].mxu1  ;;  %v1714_v3 = vadd.f32 %v5236_v44, %v1713_v0  ;;  %4059 = vtanh.f32 %v1722_v62 }
 0x195   :  { %v4036_v61 = vpop.eup %4035  ;;  %2861 = vst.msk [vmem:[%s6082_s3 + $0x660] sm:$0xff] %vm2656_vm2, %v4034_v58  ;;  %v2226_v4 = vadd.f32 %v5236_v44, %v2225_v1  ;;  %v3409_v5 = vpop.f32.mrb[86].mxu0  ;;  %4061 = vtanh.f32 %v2234_v63 }
 0x196   :  { %v4038_v2 = vpop.eup %4037  ;;  %2736 = vst.msk [vmem:[%s6082_s3 + $0x278] sm:$0xff] %vm2656_vm2, %v4036_v61  ;;  %v3537_v6 = vpop.f32.mrb[86].mxu1  ;;  %v1725_v8 = vadd.f32 %v5236_v44, %v3409_v5  ;;  %4063 = vtanh.f32 %v1714_v3 }
 0x197   :  { %v4040_v7 = vpop.eup %4039  ;;  %2864 = vst.msk [vmem:[%s6082_s3 + $0x678] sm:$0xff] %vm2656_vm2, %v4038_v2  ;;  %v1716_v9 = vpop.f32.mrb[87].mxu0  ;;  %v2237_v12 = vadd.f32 %v5236_v44, %v3537_v6  ;;  %4065 = vtanh.f32 %v2226_v4 }
 0x198   :  { %v2228_v10 = vpop.f32.mrb[87].mxu1  ;;  %v4042_v11 = vpop.eup %4041  ;;  %2734 = vst.msk [vmem:[%s6082_s3 + $0x268] sm:$0xff] %vm2656_vm2, %v4040_v7  ;;  %v1717_v14 = vadd.f32 %v5236_v44, %v1716_v9  ;;  %4067 = vtanh.f32 %v1725_v8 }
 0x199   :  { %v4044_v13 = vpop.eup %4043  ;;  %2862 = vst.msk [vmem:[%s6082_s3 + $0x668] sm:$0xff] %vm2656_vm2, %v4042_v11  ;;  %v2229_v16 = vadd.f32 %v5236_v44, %v2228_v10  ;;  %4069 = vtanh.f32 %v2237_v12  ;;  %v3412_v19 = vpop.f32.mrb[88].mxu0 }
 0x19a   :  { %v4046_v15 = vpop.eup %4045  ;;  %2739 = vst.msk [vmem:[%s6082_s3 + $0x290] sm:$0xff] %vm2656_vm2, %v4044_v13  ;;  %v3540_v20 = vpop.f32.mrb[88].mxu1  ;;  %4071 = vtanh.f32 %v1717_v14  ;;  %v1738_v22 = vadd.f32 %v5236_v44, %v3412_v19 }
 0x19b   :  { %v4048_v17 = vpop.eup %4047  ;;  %2867 = vst.msk [vmem:[%s6082_s3 + $0x690] sm:$0xff] %vm2656_vm2, %v4046_v15  ;;  %v2250_v23 = vadd.f32 %v5236_v44, %v3540_v20  ;;  %v1729_v24 = vpop.f32.mrb[89].mxu0  ;;  %4073 = vtanh.f32 %v2229_v16 }
 0x19c   :  { %v4050_v18 = vpop.eup %4049  ;;  %2737 = vst.msk [vmem:[%s6082_s3 + $0x280] sm:$0xff] %vm2656_vm2, %v4048_v17  ;;  %v2241_v25 = vpop.f32.mrb[89].mxu1  ;;  %v1730_v27 = vadd.f32 %v5236_v44, %v1729_v24  ;;  %4075 = vtanh.f32 %v1738_v22 }
 0x19d   :  { %v4052_v21 = vpop.eup %4051  ;;  %2865 = vst.msk [vmem:[%s6082_s3 + $0x680] sm:$0xff] %vm2656_vm2, %v4050_v18  ;;  %v2242_v28 = vadd.f32 %v5236_v44, %v2241_v25  ;;  %v3413_v29 = vpop.f32.mrb[90].mxu0  ;;  %4077 = vtanh.f32 %v2250_v23 }
 0x19e   :  { %v4054_v26 = vpop.eup %4053  ;;  %2740 = vst.msk [vmem:[%s6082_s3 + $0x298] sm:$0xff] %vm2656_vm2, %v4052_v21  ;;  %v3541_v30 = vpop.f32.mrb[90].mxu1  ;;  %v1741_v32 = vadd.f32 %v5236_v44, %v3413_v29  ;;  %4079 = vtanh.f32 %v1730_v27 }
 0x19f   :  { %v4056_v31 = vpop.eup %4055  ;;  %2868 = vst.msk [vmem:[%s6082_s3 + $0x698] sm:$0xff] %vm2656_vm2, %v4054_v26  ;;  %v1732_v33 = vpop.f32.mrb[91].mxu0  ;;  %v2253_v36 = vadd.f32 %v5236_v44, %v3541_v30  ;;  %4081 = vtanh.f32 %v2242_v28 }
 0x1a0   :  { %v2244_v34 = vpop.f32.mrb[91].mxu1  ;;  %v4058_v35 = vpop.eup %4057  ;;  %2738 = vst.msk [vmem:[%s6082_s3 + $0x288] sm:$0xff] %vm2656_vm2, %v4056_v31  ;;  %v1733_v38 = vadd.f32 %v5236_v44, %v1732_v33  ;;  %4083 = vtanh.f32 %v1741_v32 }
 0x1a1   :  { %v4060_v37 = vpop.eup %4059  ;;  %2866 = vst.msk [vmem:[%s6082_s3 + $0x688] sm:$0xff] %vm2656_vm2, %v4058_v35  ;;  %v2245_v40 = vadd.f32 %v5236_v44, %v2244_v34  ;;  %4085 = vtanh.f32 %v2253_v36  ;;  %v3416_v43 = vpop.f32.mrb[92].mxu0  ;;  %v5755_v36 = vld [vmem:[%s6081_s2] ss:$0 sm:$0xff] }
 0x1a2   :  { %v4062_v39 = vpop.eup %4061  ;;  %2743 = vst.msk [vmem:[%s6082_s3 + $0x2b0] sm:$0xff] %vm2656_vm2, %v4060_v37  ;;  %v3544_v45 = vpop.f32.mrb[92].mxu1  ;;  %4087 = vtanh.f32 %v1733_v38  ;;  %v1754_v47 = vadd.f32 %v5236_v44, %v3416_v43 }
 0x1a3   :  { %v4064_v41 = vpop.eup %4063  ;;  %2871 = vst.msk [vmem:[%s6082_s3 + $0x6b0] sm:$0xff] %vm2656_vm2, %v4062_v39  ;;  %v2266_v48 = vadd.f32 %v5236_v44, %v3544_v45  ;;  %v1745_v52 = vpop.f32.mrb[93].mxu0  ;;  %4089 = vtanh.f32 %v2245_v40 }
 0x1a4   :  { %v4066_v42 = vpop.eup %4065  ;;  %2741 = vst.msk [vmem:[%s6082_s3 + $0x2a0] sm:$0xff] %vm2656_vm2, %v4064_v41  ;;  %v2257_v49 = vpop.f32.mrb[93].mxu1  ;;  %v1746_v51 = vadd.f32 %v5236_v44, %v1745_v52  ;;  %4091 = vtanh.f32 %v1754_v47 }
 0x1a5   :  { %v4068_v46 = vpop.eup %4067  ;;  %2869 = vst.msk [vmem:[%s6082_s3 + $0x6a0] sm:$0xff] %vm2656_vm2, %v4066_v42  ;;  %v2258_v53 = vadd.f32 %v5236_v44, %v2257_v49  ;;  %v3417_v54 = vpop.f32.mrb[94].mxu0  ;;  %4093 = vtanh.f32 %v2266_v48 }
 0x1a6   :  { %v4070_v50 = vpop.eup %4069  ;;  %2744 = vst.msk [vmem:[%s6082_s3 + $0x2b8] sm:$0xff] %vm2656_vm2, %v4068_v46  ;;  %v3545_v55 = vpop.f32.mrb[94].mxu1  ;;  %v1757_v57 = vadd.f32 %v5236_v44, %v3417_v54  ;;  %4095 = vtanh.f32 %v1746_v51 }
 0x1a7   :  { %v4072_v56 = vpop.eup %4071  ;;  %2872 = vst.msk [vmem:[%s6082_s3 + $0x6b8] sm:$0xff] %vm2656_vm2, %v4070_v50  ;;  %v1748_v58 = vpop.f32.mrb[95].mxu0  ;;  %v2269_v61 = vadd.f32 %v5236_v44, %v3545_v55  ;;  %4097 = vtanh.f32 %v2258_v53 }
 0x1a8   :  { %v2260_v59 = vpop.f32.mrb[95].mxu1  ;;  %v4074_v60 = vpop.eup %4073  ;;  %2742 = vst.msk [vmem:[%s6082_s3 + $0x2a8] sm:$0xff] %vm2656_vm2, %v4072_v56  ;;  %v1749_v63 = vadd.f32 %v5236_v44, %v1748_v58  ;;  %4099 = vtanh.f32 %v1757_v57 }
 0x1a9   :  { %v4076_v62 = vpop.eup %4075  ;;  %2870 = vst.msk [vmem:[%s6082_s3 + $0x6a8] sm:$0xff] %vm2656_vm2, %v4074_v60  ;;  %v2261_v1 = vadd.f32 %v5236_v44, %v2260_v59  ;;  %4101 = vtanh.f32 %v2269_v61  ;;  %v3420_v4 = vpop.f32.mrb[96].mxu0 }
 0x1aa   :  { %v4078_v0 = vpop.eup %4077  ;;  %2747 = vst.msk [vmem:[%s6082_s3 + $0x2d0] sm:$0xff] %vm2656_vm2, %v4076_v62  ;;  %v3548_v5 = vpop.f32.mrb[96].mxu1  ;;  %4103 = vtanh.f32 %v1749_v63  ;;  %v1770_v7 = vadd.f32 %v5236_v44, %v3420_v4 }
 0x1ab   :  { %v4080_v2 = vpop.eup %4079  ;;  %2875 = vst.msk [vmem:[%s6082_s3 + $0x6d0] sm:$0xff] %vm2656_vm2, %v4078_v0  ;;  %v2282_v8 = vadd.f32 %v5236_v44, %v3548_v5  ;;  %v1761_v9 = vpop.f32.mrb[97].mxu0  ;;  %4105 = vtanh.f32 %v2261_v1 }
 0x1ac   :  { %v4082_v3 = vpop.eup %4081  ;;  %2745 = vst.msk [vmem:[%s6082_s3 + $0x2c0] sm:$0xff] %vm2656_vm2, %v4080_v2  ;;  %v2273_v10 = vpop.f32.mrb[97].mxu1  ;;  %v1762_v12 = vadd.f32 %v5236_v44, %v1761_v9  ;;  %4107 = vtanh.f32 %v1770_v7 }
 0x1ad   :  { %v4084_v6 = vpop.eup %4083  ;;  %2873 = vst.msk [vmem:[%s6082_s3 + $0x6c0] sm:$0xff] %vm2656_vm2, %v4082_v3  ;;  %v2274_v13 = vadd.f32 %v5236_v44, %v2273_v10  ;;  %v3421_v14 = vpop.f32.mrb[98].mxu0  ;;  %4109 = vtanh.f32 %v2282_v8 }
 0x1ae   :  { %v4086_v11 = vpop.eup %4085  ;;  %2748 = vst.msk [vmem:[%s6082_s3 + $0x2d8] sm:$0xff] %vm2656_vm2, %v4084_v6  ;;  %v3549_v15 = vpop.f32.mrb[98].mxu1  ;;  %v1773_v17 = vadd.f32 %v5236_v44, %v3421_v14  ;;  %4111 = vtanh.f32 %v1762_v12 }
 0x1af   :  { %v4088_v16 = vpop.eup %4087  ;;  %2876 = vst.msk [vmem:[%s6082_s3 + $0x6d8] sm:$0xff] %vm2656_vm2, %v4086_v11  ;;  %v1764_v18 = vpop.f32.mrb[99].mxu0  ;;  %v2285_v21 = vadd.f32 %v5236_v44, %v3549_v15  ;;  %4113 = vtanh.f32 %v2274_v13 }
 0x1b0   :  { %v2276_v19 = vpop.f32.mrb[99].mxu1  ;;  %v4090_v20 = vpop.eup %4089  ;;  %2746 = vst.msk [vmem:[%s6082_s3 + $0x2c8] sm:$0xff] %vm2656_vm2, %v4088_v16  ;;  %v1765_v23 = vadd.f32 %v5236_v44, %v1764_v18  ;;  %4115 = vtanh.f32 %v1773_v17 }
 0x1b1   :  { %v4092_v22 = vpop.eup %4091  ;;  %2874 = vst.msk [vmem:[%s6082_s3 + $0x6c8] sm:$0xff] %vm2656_vm2, %v4090_v20  ;;  %v2277_v25 = vadd.f32 %v5236_v44, %v2276_v19  ;;  %4117 = vtanh.f32 %v2285_v21  ;;  %v3424_v28 = vpop.f32.mrb[100].mxu0 }
 0x1b2   :  { %v4094_v24 = vpop.eup %4093  ;;  %2751 = vst.msk [vmem:[%s6082_s3 + $0x2f0] sm:$0xff] %vm2656_vm2, %v4092_v22  ;;  %v3552_v29 = vpop.f32.mrb[100].mxu1  ;;  %4119 = vtanh.f32 %v1765_v23  ;;  %v1786_v31 = vadd.f32 %v5236_v44, %v3424_v28 }
 0x1b3   :  { %v4096_v26 = vpop.eup %4095  ;;  %2879 = vst.msk [vmem:[%s6082_s3 + $0x6f0] sm:$0xff] %vm2656_vm2, %v4094_v24  ;;  %v2298_v32 = vadd.f32 %v5236_v44, %v3552_v29  ;;  %v1777_v33 = vpop.f32.mrb[101].mxu0  ;;  %4121 = vtanh.f32 %v2277_v25 }
 0x1b4   :  { %v4098_v27 = vpop.eup %4097  ;;  %2749 = vst.msk [vmem:[%s6082_s3 + $0x2e0] sm:$0xff] %vm2656_vm2, %v4096_v26  ;;  %v2289_v34 = vpop.f32.mrb[101].mxu1  ;;  %v1778_v37 = vadd.f32 %v5755_v36, %v1777_v33  ;;  %4123 = vtanh.f32 %v1786_v31 }
 0x1b5   :  { %v4100_v30 = vpop.eup %4099  ;;  %2877 = vst.msk [vmem:[%s6082_s3 + $0x6e0] sm:$0xff] %vm2656_vm2, %v4098_v27  ;;  %v2290_v38 = vadd.f32 %v5755_v36, %v2289_v34  ;;  %v3425_v39 = vpop.f32.mrb[102].mxu0  ;;  %4125 = vtanh.f32 %v2298_v32 }
 0x1b6   :  { %v4102_v35 = vpop.eup %4101  ;;  %2752 = vst.msk [vmem:[%s6082_s3 + $0x2f8] sm:$0xff] %vm2656_vm2, %v4100_v30  ;;  %v3553_v44 = vpop.f32.mrb[102].mxu1  ;;  %v1789_v41 = vadd.f32 %v5755_v36, %v3425_v39  ;;  %4127 = vtanh.f32 %v1778_v37 }
 0x1b7   :  { %v4104_v40 = vpop.eup %4103  ;;  %2880 = vst.msk [vmem:[%s6082_s3 + $0x6f8] sm:$0xff] %vm2656_vm2, %v4102_v35  ;;  %v1780_v42 = vpop.f32.mrb[103].mxu0  ;;  %v2301_v46 = vadd.f32 %v5755_v36, %v3553_v44  ;;  %4129 = vtanh.f32 %v2290_v38 }
 0x1b8   :  { %v2292_v43 = vpop.f32.mrb[103].mxu1  ;;  %v4106_v45 = vpop.eup %4105  ;;  %2750 = vst.msk [vmem:[%s6082_s3 + $0x2e8] sm:$0xff] %vm2656_vm2, %v4104_v40  ;;  %v1781_v48 = vadd.f32 %v5755_v36, %v1780_v42  ;;  %4131 = vtanh.f32 %v1789_v41 }
 0x1b9   :  { %v4108_v47 = vpop.eup %4107  ;;  %2878 = vst.msk [vmem:[%s6082_s3 + $0x6e8] sm:$0xff] %vm2656_vm2, %v4106_v45  ;;  %v2293_v49 = vadd.f32 %v5755_v36, %v2292_v43  ;;  %4133 = vtanh.f32 %v2301_v46  ;;  %v3428_v53 = vpop.f32.mrb[104].mxu0 }
 0x1ba   :  { %v4110_v52 = vpop.eup %4109  ;;  %2755 = vst.msk [vmem:[%s6082_s3 + $0x310] sm:$0xff] %vm2656_vm2, %v4108_v47  ;;  %v3556_v54 = vpop.f32.mrb[104].mxu1  ;;  %4135 = vtanh.f32 %v1781_v48  ;;  %v1802_v56 = vadd.f32 %v5755_v36, %v3428_v53 }
 0x1bb   :  { %v4112_v50 = vpop.eup %4111  ;;  %2883 = vst.msk [vmem:[%s6082_s3 + $0x710] sm:$0xff] %vm2656_vm2, %v4110_v52  ;;  %v2314_v57 = vadd.f32 %v5755_v36, %v3556_v54  ;;  %v1793_v58 = vpop.f32.mrb[105].mxu0  ;;  %4137 = vtanh.f32 %v2293_v49 }
 0x1bc   :  { %v4114_v51 = vpop.eup %4113  ;;  %2753 = vst.msk [vmem:[%s6082_s3 + $0x300] sm:$0xff] %vm2656_vm2, %v4112_v50  ;;  %v2305_v59 = vpop.f32.mrb[105].mxu1  ;;  %v1794_v61 = vadd.f32 %v5755_v36, %v1793_v58  ;;  %4139 = vtanh.f32 %v1802_v56 }
 0x1bd   :  { %v4116_v55 = vpop.eup %4115  ;;  %2881 = vst.msk [vmem:[%s6082_s3 + $0x700] sm:$0xff] %vm2656_vm2, %v4114_v51  ;;  %v2306_v62 = vadd.f32 %v5755_v36, %v2305_v59  ;;  %v3429_v63 = vpop.f32.mrb[106].mxu0  ;;  %4141 = vtanh.f32 %v2314_v57 }
 0x1be   :  { %v4118_v60 = vpop.eup %4117  ;;  %2756 = vst.msk [vmem:[%s6082_s3 + $0x318] sm:$0xff] %vm2656_vm2, %v4116_v55  ;;  %v3557_v0 = vpop.f32.mrb[106].mxu1  ;;  %v1805_v2 = vadd.f32 %v5755_v36, %v3429_v63  ;;  %4143 = vtanh.f32 %v1794_v61 }
 0x1bf   :  { %v4120_v1 = vpop.eup %4119  ;;  %2884 = vst.msk [vmem:[%s6082_s3 + $0x718] sm:$0xff] %vm2656_vm2, %v4118_v60  ;;  %v1796_v3 = vpop.f32.mrb[107].mxu0  ;;  %v2317_v6 = vadd.f32 %v5755_v36, %v3557_v0  ;;  %4145 = vtanh.f32 %v2306_v62 }
 0x1c0   :  { %v2308_v4 = vpop.f32.mrb[107].mxu1  ;;  %v4122_v5 = vpop.eup %4121  ;;  %2754 = vst.msk [vmem:[%s6082_s3 + $0x308] sm:$0xff] %vm2656_vm2, %v4120_v1  ;;  %v1797_v8 = vadd.f32 %v5755_v36, %v1796_v3  ;;  %4147 = vtanh.f32 %v1805_v2 }
 0x1c1   :  { %v4124_v7 = vpop.eup %4123  ;;  %2882 = vst.msk [vmem:[%s6082_s3 + $0x708] sm:$0xff] %vm2656_vm2, %v4122_v5  ;;  %v2309_v10 = vadd.f32 %v5755_v36, %v2308_v4  ;;  %4149 = vtanh.f32 %v2317_v6  ;;  %v3432_v13 = vpop.f32.mrb[108].mxu0 }
 0x1c2   :  { %v4126_v9 = vpop.eup %4125  ;;  %2759 = vst.msk [vmem:[%s6082_s3 + $0x330] sm:$0xff] %vm2656_vm2, %v4124_v7  ;;  %v3560_v14 = vpop.f32.mrb[108].mxu1  ;;  %4151 = vtanh.f32 %v1797_v8  ;;  %v1818_v16 = vadd.f32 %v5755_v36, %v3432_v13 }
 0x1c3   :  { %v4128_v11 = vpop.eup %4127  ;;  %2887 = vst.msk [vmem:[%s6082_s3 + $0x730] sm:$0xff] %vm2656_vm2, %v4126_v9  ;;  %v2330_v17 = vadd.f32 %v5755_v36, %v3560_v14  ;;  %v1809_v18 = vpop.f32.mrb[109].mxu0  ;;  %4153 = vtanh.f32 %v2309_v10 }
 0x1c4   :  { %v4130_v12 = vpop.eup %4129  ;;  %2757 = vst.msk [vmem:[%s6082_s3 + $0x320] sm:$0xff] %vm2656_vm2, %v4128_v11  ;;  %v2321_v19 = vpop.f32.mrb[109].mxu1  ;;  %v1810_v21 = vadd.f32 %v5755_v36, %v1809_v18  ;;  %4155 = vtanh.f32 %v1818_v16 }
 0x1c5   :  { %v4132_v15 = vpop.eup %4131  ;;  %2885 = vst.msk [vmem:[%s6082_s3 + $0x720] sm:$0xff] %vm2656_vm2, %v4130_v12  ;;  %v2322_v22 = vadd.f32 %v5755_v36, %v2321_v19  ;;  %v3433_v23 = vpop.f32.mrb[110].mxu0  ;;  %4157 = vtanh.f32 %v2330_v17 }
 0x1c6   :  { %v4134_v20 = vpop.eup %4133  ;;  %2760 = vst.msk [vmem:[%s6082_s3 + $0x338] sm:$0xff] %vm2656_vm2, %v4132_v15  ;;  %v3561_v24 = vpop.f32.mrb[110].mxu1  ;;  %v1821_v26 = vadd.f32 %v5755_v36, %v3433_v23  ;;  %4159 = vtanh.f32 %v1810_v21 }
 0x1c7   :  { %v4136_v25 = vpop.eup %4135  ;;  %2888 = vst.msk [vmem:[%s6082_s3 + $0x738] sm:$0xff] %vm2656_vm2, %v4134_v20  ;;  %v1812_v27 = vpop.f32.mrb[111].mxu0  ;;  %v2333_v30 = vadd.f32 %v5755_v36, %v3561_v24  ;;  %4161 = vtanh.f32 %v2322_v22 }
 0x1c8   :  { %v2324_v28 = vpop.f32.mrb[111].mxu1  ;;  %v4138_v29 = vpop.eup %4137  ;;  %2758 = vst.msk [vmem:[%s6082_s3 + $0x328] sm:$0xff] %vm2656_vm2, %v4136_v25  ;;  %v1813_v32 = vadd.f32 %v5755_v36, %v1812_v27  ;;  %4163 = vtanh.f32 %v1821_v26 }
 0x1c9   :  { %v4140_v31 = vpop.eup %4139  ;;  %2886 = vst.msk [vmem:[%s6082_s3 + $0x728] sm:$0xff] %vm2656_vm2, %v4138_v29  ;;  %v2325_v34 = vadd.f32 %v5755_v36, %v2324_v28  ;;  %4165 = vtanh.f32 %v2333_v30  ;;  %v3436_v38 = vpop.f32.mrb[112].mxu0 }
 0x1ca   :  { %v4142_v33 = vpop.eup %4141  ;;  %2763 = vst.msk [vmem:[%s6082_s3 + $0x350] sm:$0xff] %vm2656_vm2, %v4140_v31  ;;  %v3564_v39 = vpop.f32.mrb[112].mxu1  ;;  %4167 = vtanh.f32 %v1813_v32  ;;  %v1834_v40 = vadd.f32 %v5755_v36, %v3436_v38 }
 0x1cb   :  { %v4144_v35 = vpop.eup %4143  ;;  %2891 = vst.msk [vmem:[%s6082_s3 + $0x750] sm:$0xff] %vm2656_vm2, %v4142_v33  ;;  %v2346_v41 = vadd.f32 %v5755_v36, %v3564_v39  ;;  %v1825_v42 = vpop.f32.mrb[113].mxu0  ;;  %4169 = vtanh.f32 %v2325_v34 }
 0x1cc   :  { %v4146_v37 = vpop.eup %4145  ;;  %2761 = vst.msk [vmem:[%s6082_s3 + $0x340] sm:$0xff] %vm2656_vm2, %v4144_v35  ;;  %v2337_v43 = vpop.f32.mrb[113].mxu1  ;;  %v1826_v46 = vadd.f32 %v5755_v36, %v1825_v42  ;;  %4171 = vtanh.f32 %v1834_v40 }
 0x1cd   :  { %v4148_v44 = vpop.eup %4147  ;;  %2889 = vst.msk [vmem:[%s6082_s3 + $0x740] sm:$0xff] %vm2656_vm2, %v4146_v37  ;;  %v2338_v47 = vadd.f32 %v5755_v36, %v2337_v43  ;;  %v3437_v48 = vpop.f32.mrb[114].mxu0  ;;  %4173 = vtanh.f32 %v2346_v41 }
 0x1ce   :  { %v4150_v45 = vpop.eup %4149  ;;  %2764 = vst.msk [vmem:[%s6082_s3 + $0x358] sm:$0xff] %vm2656_vm2, %v4148_v44  ;;  %v3565_v52 = vpop.f32.mrb[114].mxu1  ;;  %v1837_v50 = vadd.f32 %v5755_v36, %v3437_v48  ;;  %4175 = vtanh.f32 %v1826_v46 }
 0x1cf   :  { %v4152_v49 = vpop.eup %4151  ;;  %2892 = vst.msk [vmem:[%s6082_s3 + $0x758] sm:$0xff] %vm2656_vm2, %v4150_v45  ;;  %v1828_v51 = vpop.f32.mrb[115].mxu0  ;;  %v2349_v55 = vadd.f32 %v5755_v36, %v3565_v52  ;;  %4177 = vtanh.f32 %v2338_v47 }
 0x1d0   :  { %v2340_v53 = vpop.f32.mrb[115].mxu1  ;;  %v4154_v54 = vpop.eup %4153  ;;  %2762 = vst.msk [vmem:[%s6082_s3 + $0x348] sm:$0xff] %vm2656_vm2, %v4152_v49  ;;  %v1829_v57 = vadd.f32 %v5755_v36, %v1828_v51  ;;  %4179 = vtanh.f32 %v1837_v50 }
 0x1d1   :  { %v4156_v56 = vpop.eup %4155  ;;  %2890 = vst.msk [vmem:[%s6082_s3 + $0x748] sm:$0xff] %vm2656_vm2, %v4154_v54  ;;  %v2341_v59 = vadd.f32 %v5755_v36, %v2340_v53  ;;  %4181 = vtanh.f32 %v2349_v55  ;;  %v3440_v62 = vpop.f32.mrb[116].mxu0 }
 0x1d2   :  { %v4158_v58 = vpop.eup %4157  ;;  %2767 = vst.msk [vmem:[%s6082_s3 + $0x370] sm:$0xff] %vm2656_vm2, %v4156_v56  ;;  %v3568_v63 = vpop.f32.mrb[116].mxu1  ;;  %4183 = vtanh.f32 %v1829_v57  ;;  %v1850_v1 = vadd.f32 %v5755_v36, %v3440_v62 }
 0x1d3   :  { %v4160_v60 = vpop.eup %4159  ;;  %2895 = vst.msk [vmem:[%s6082_s3 + $0x770] sm:$0xff] %vm2656_vm2, %v4158_v58  ;;  %v2362_v2 = vadd.f32 %v5755_v36, %v3568_v63  ;;  %v1841_v3 = vpop.f32.mrb[117].mxu0  ;;  %4185 = vtanh.f32 %v2341_v59 }
 0x1d4   :  { %v4162_v61 = vpop.eup %4161  ;;  %2765 = vst.msk [vmem:[%s6082_s3 + $0x360] sm:$0xff] %vm2656_vm2, %v4160_v60  ;;  %v2353_v4 = vpop.f32.mrb[117].mxu1  ;;  %v1842_v6 = vadd.f32 %v5755_v36, %v1841_v3  ;;  %4187 = vtanh.f32 %v1850_v1 }
 0x1d5   :  { %v4164_v0 = vpop.eup %4163  ;;  %2893 = vst.msk [vmem:[%s6082_s3 + $0x760] sm:$0xff] %vm2656_vm2, %v4162_v61  ;;  %v2354_v7 = vadd.f32 %v5755_v36, %v2353_v4  ;;  %v3441_v8 = vpop.f32.mrb[118].mxu0  ;;  %4189 = vtanh.f32 %v2362_v2 }
 0x1d6   :  { %v4166_v5 = vpop.eup %4165  ;;  %2768 = vst.msk [vmem:[%s6082_s3 + $0x378] sm:$0xff] %vm2656_vm2, %v4164_v0  ;;  %v3569_v9 = vpop.f32.mrb[118].mxu1  ;;  %v1853_v11 = vadd.f32 %v5755_v36, %v3441_v8  ;;  %4191 = vtanh.f32 %v1842_v6 }
 0x1d7   :  { %v4168_v10 = vpop.eup %4167  ;;  %2896 = vst.msk [vmem:[%s6082_s3 + $0x778] sm:$0xff] %vm2656_vm2, %v4166_v5  ;;  %v1844_v12 = vpop.f32.mrb[119].mxu0  ;;  %v2365_v15 = vadd.f32 %v5755_v36, %v3569_v9  ;;  %4193 = vtanh.f32 %v2354_v7 }
 0x1d8   :  { %v2356_v13 = vpop.f32.mrb[119].mxu1  ;;  %v4170_v14 = vpop.eup %4169  ;;  %2766 = vst.msk [vmem:[%s6082_s3 + $0x368] sm:$0xff] %vm2656_vm2, %v4168_v10  ;;  %v1845_v17 = vadd.f32 %v5755_v36, %v1844_v12  ;;  %4195 = vtanh.f32 %v1853_v11 }
 0x1d9   :  { %v4172_v16 = vpop.eup %4171  ;;  %2894 = vst.msk [vmem:[%s6082_s3 + $0x768] sm:$0xff] %vm2656_vm2, %v4170_v14  ;;  %v2357_v19 = vadd.f32 %v5755_v36, %v2356_v13  ;;  %4197 = vtanh.f32 %v2365_v15  ;;  %v3444_v22 = vpop.f32.mrb[120].mxu0 }
 0x1da   :  { %v4174_v18 = vpop.eup %4173  ;;  %2771 = vst.msk [vmem:[%s6082_s3 + $0x390] sm:$0xff] %vm2656_vm2, %v4172_v16  ;;  %v3572_v23 = vpop.f32.mrb[120].mxu1  ;;  %4199 = vtanh.f32 %v1845_v17  ;;  %v1866_v25 = vadd.f32 %v5755_v36, %v3444_v22 }
 0x1db   :  { %v4176_v20 = vpop.eup %4175  ;;  %2899 = vst.msk [vmem:[%s6082_s3 + $0x790] sm:$0xff] %vm2656_vm2, %v4174_v18  ;;  %v2378_v26 = vadd.f32 %v5755_v36, %v3572_v23  ;;  %v1857_v27 = vpop.f32.mrb[121].mxu0  ;;  %4201 = vtanh.f32 %v2357_v19 }
 0x1dc   :  { %v4178_v21 = vpop.eup %4177  ;;  %2769 = vst.msk [vmem:[%s6082_s3 + $0x380] sm:$0xff] %vm2656_vm2, %v4176_v20  ;;  %v2369_v28 = vpop.f32.mrb[121].mxu1  ;;  %v1858_v30 = vadd.f32 %v5755_v36, %v1857_v27  ;;  %4203 = vtanh.f32 %v1866_v25 }
 0x1dd   :  { %v4180_v24 = vpop.eup %4179  ;;  %2897 = vst.msk [vmem:[%s6082_s3 + $0x780] sm:$0xff] %vm2656_vm2, %v4178_v21  ;;  %v2370_v31 = vadd.f32 %v5755_v36, %v2369_v28  ;;  %v3445_v32 = vpop.f32.mrb[122].mxu0  ;;  %4205 = vtanh.f32 %v2378_v26 }
 0x1de   :  { %v4182_v29 = vpop.eup %4181  ;;  %2772 = vst.msk [vmem:[%s6082_s3 + $0x398] sm:$0xff] %vm2656_vm2, %v4180_v24  ;;  %v3573_v33 = vpop.f32.mrb[122].mxu1  ;;  %v1869_v35 = vadd.f32 %v5755_v36, %v3445_v32  ;;  %4207 = vtanh.f32 %v1858_v30 }
 0x1df   :  { %v4184_v34 = vpop.eup %4183  ;;  %2900 = vst.msk [vmem:[%s6082_s3 + $0x798] sm:$0xff] %vm2656_vm2, %v4182_v29  ;;  %v1860_v37 = vpop.f32.mrb[123].mxu0  ;;  %v2381_v44 = vadd.f32 %v5755_v36, %v3573_v33  ;;  %4209 = vtanh.f32 %v2370_v31 }
 0x1e0   :  { %v2372_v38 = vpop.f32.mrb[123].mxu1  ;;  %v4186_v39 = vpop.eup %4185  ;;  %2770 = vst.msk [vmem:[%s6082_s3 + $0x388] sm:$0xff] %vm2656_vm2, %v4184_v34  ;;  %v1861_v41 = vadd.f32 %v5755_v36, %v1860_v37  ;;  %4211 = vtanh.f32 %v1869_v35 }
 0x1e1   :  { %v4188_v40 = vpop.eup %4187  ;;  %2898 = vst.msk [vmem:[%s6082_s3 + $0x788] sm:$0xff] %vm2656_vm2, %v4186_v39  ;;  %v2373_v43 = vadd.f32 %v5755_v36, %v2372_v38  ;;  %4213 = vtanh.f32 %v2381_v44  ;;  %v3448_v47 = vpop.f32.mrb[124].mxu0 }
 0x1e2   :  { %v4190_v42 = vpop.eup %4189  ;;  %2775 = vst.msk [vmem:[%s6082_s3 + $0x3b0] sm:$0xff] %vm2656_vm2, %v4188_v40  ;;  %v3576_v48 = vpop.f32.mrb[124].mxu1  ;;  %4215 = vtanh.f32 %v1861_v41  ;;  %v1882_v49 = vadd.f32 %v5755_v36, %v3448_v47 }
 0x1e3   :  { %v4192_v45 = vpop.eup %4191  ;;  %2903 = vst.msk [vmem:[%s6082_s3 + $0x7b0] sm:$0xff] %vm2656_vm2, %v4190_v42  ;;  %v2394_v50 = vadd.f32 %v5755_v36, %v3576_v48  ;;  %v1873_v51 = vpop.f32.mrb[125].mxu0  ;;  %4217 = vtanh.f32 %v2373_v43 }
 0x1e4   :  { %v4194_v46 = vpop.eup %4193  ;;  %2773 = vst.msk [vmem:[%s6082_s3 + $0x3a0] sm:$0xff] %vm2656_vm2, %v4192_v45  ;;  %v2385_v53 = vpop.f32.mrb[125].mxu1  ;;  %v1874_v55 = vadd.f32 %v5755_v36, %v1873_v51  ;;  %4219 = vtanh.f32 %v1882_v49 }
 0x1e5   :  { %v4196_v52 = vpop.eup %4195  ;;  %2901 = vst.msk [vmem:[%s6082_s3 + $0x7a0] sm:$0xff] %vm2656_vm2, %v4194_v46  ;;  %v2386_v56 = vadd.f32 %v5755_v36, %v2385_v53  ;;  %v3449_v57 = vpop.f32.mrb[126].mxu0  ;;  %4221 = vtanh.f32 %v2394_v50 }
 0x1e6   :  { %v4198_v54 = vpop.eup %4197  ;;  %2776 = vst.msk [vmem:[%s6082_s3 + $0x3b8] sm:$0xff] %vm2656_vm2, %v4196_v52  ;;  %v3577_v58 = vpop.f32.mrb[126].mxu1  ;;  %v1885_v60 = vadd.f32 %v5755_v36, %v3449_v57  ;;  %4223 = vtanh.f32 %v1874_v55 }
 0x1e7   :  { %v4200_v59 = vpop.eup %4199  ;;  %2904 = vst.msk [vmem:[%s6082_s3 + $0x7b8] sm:$0xff] %vm2656_vm2, %v4198_v54  ;;  %v1876_v61 = vpop.f32.mrb[127].mxu0  ;;  %v2397_v0 = vadd.f32 %v5755_v36, %v3577_v58  ;;  %4225 = vtanh.f32 %v2386_v56 }
 0x1e8   :  { %v2388_v62 = vpop.f32.mrb[127].mxu1  ;;  %v4202_v63 = vpop.eup %4201  ;;  %2774 = vst.msk [vmem:[%s6082_s3 + $0x3a8] sm:$0xff] %vm2656_vm2, %v4200_v59  ;;  %v1877_v2 = vadd.f32 %v5755_v36, %v1876_v61  ;;  %4227 = vtanh.f32 %v1885_v60 }
 0x1e9   :  { %v4204_v1 = vpop.eup %4203  ;;  %2902 = vst.msk [vmem:[%s6082_s3 + $0x7a8] sm:$0xff] %vm2656_vm2, %v4202_v63  ;;  %v2389_v4 = vadd.f32 %v5755_v36, %v2388_v62  ;;  %4229 = vtanh.f32 %v2397_v0 }
 0x1ea   :  { %v4206_v3 = vpop.eup %4205  ;;  %2779 = vst.msk [vmem:[%s6082_s3 + $0x3d0] sm:$0xff] %vm2656_vm2, %v4204_v1  ;;  %4231 = vtanh.f32 %v1877_v2 }
 0x1eb   :  { %v4208_v5 = vpop.eup %4207  ;;  %2907 = vst.msk [vmem:[%s6082_s3 + $0x7d0] sm:$0xff] %vm2656_vm2, %v4206_v3  ;;  %4233 = vtanh.f32 %v2389_v4 }
 0x1ec   :  { %v4210_v6 = vpop.eup %4209  ;;  %2777 = vst.msk [vmem:[%s6082_s3 + $0x3c0] sm:$0xff] %vm2656_vm2, %v4208_v5 }
 0x1ed   :  { %v4212_v7 = vpop.eup %4211  ;;  %2905 = vst.msk [vmem:[%s6082_s3 + $0x7c0] sm:$0xff] %vm2656_vm2, %v4210_v6 }
 0x1ee   :  { %v4214_v36 = vpop.eup %4213  ;;  %2780 = vst.msk [vmem:[%s6082_s3 + $0x3d8] sm:$0xff] %vm2656_vm2, %v4212_v7 }
 0x1ef   :  { %v4216_v8 = vpop.eup %4215  ;;  %2908 = vst.msk [vmem:[%s6082_s3 + $0x7d8] sm:$0xff] %vm2656_vm2, %v4214_v36 }
 0x1f0   :  { %v4218_v9 = vpop.eup %4217  ;;  %2778 = vst.msk [vmem:[%s6082_s3 + $0x3c8] sm:$0xff] %vm2656_vm2, %v4216_v8 }
 0x1f1   :  { %v4220_v10 = vpop.eup %4219  ;;  %2906 = vst.msk [vmem:[%s6082_s3 + $0x7c8] sm:$0xff] %vm2656_vm2, %v4218_v9 }
 0x1f2   :  { %v4222_v11 = vpop.eup %4221  ;;  %2783 = vst.msk [vmem:[%s6082_s3 + $0x3f0] sm:$0xff] %vm2656_vm2, %v4220_v10 }
 0x1f3   :  { %v4224_v12 = vpop.eup %4223  ;;  %2911 = vst.msk [vmem:[%s6082_s3 + $0x7f0] sm:$0xff] %vm2656_vm2, %v4222_v11 }
 0x1f4   :  { %v4226_v13 = vpop.eup %4225  ;;  %2781 = vst.msk [vmem:[%s6082_s3 + $0x3e0] sm:$0xff] %vm2656_vm2, %v4224_v12 }
 0x1f5   :  { %v4228_v14 = vpop.eup %4227  ;;  %2909 = vst.msk [vmem:[%s6082_s3 + $0x7e0] sm:$0xff] %vm2656_vm2, %v4226_v13 }
 0x1f6   :  { %v4230_v15 = vpop.eup %4229  ;;  %2784 = vst.msk [vmem:[%s6082_s3 + $0x3f8] sm:$0xff] %vm2656_vm2, %v4228_v14 }
 0x1f7   :  { %v4232_v16 = vpop.eup %4231  ;;  %2912 = vst.msk [vmem:[%s6082_s3 + $0x7f8] sm:$0xff] %vm2656_vm2, %v4230_v15 }
 0x1f8   :  { %v4234_v17 = vpop.eup %4233  ;;  %2782 = vst.msk [vmem:[%s6082_s3 + $0x3e8] sm:$0xff] %vm2656_vm2, %v4232_v16 }
 0x1f9   :  { %2910 = vst.msk [vmem:[%s6082_s3 + $0x7e8] sm:$0xff] %vm2656_vm2, %v4234_v17 }

</bundles_post_ra>
